<compile_context>
chip_gen: v5e
topology: v5e:2x2
jax: 0.10.0
libtpu: 0.0.40
codegen_flags: <defaults>
</compile_context>

<pallas_src>
import jax
import jax.numpy as jnp
from jax.experimental import pallas as pl
from jax.experimental.pallas import tpu as pltpu

LAMBDA_TRADEOFF = 0.01
IMAGENET_MEAN = (0.485, 0.456, 0.406)
IMAGENET_STD = (0.229, 0.224, 0.225)

# VGG16 "features" conv layers grouped into the 4 blocks used by the common
# VGGPerceptualLoss (outputs of relu1_2, relu2_2, relu3_3, relu4_3); every conv
# is 3x3/pad=1 followed by ReLU, with 2x2 max-pool between blocks.
VGG_BLOCKS = (
    ((3, 64), (64, 64)),
    ((64, 128), (128, 128)),
    ((128, 256), (256, 256), (256, 256)),
    ((256, 512), (512, 512), (512, 512)),
)


def _pick_tile(dim, pref, align):
    """Largest tile <= pref that exactly divides dim (multiple of align), else the full dim."""
    if dim <= pref:
        return dim
    if dim % align != 0:
        return dim
    t = (pref // align) * align
    while dim % t != 0:
        t -= align
    return t


# ---------------------------------------------------------------------------
# Kernel 1: tiled matmul + bias + ReLU (drives every VGG conv layer via im2col)
# ---------------------------------------------------------------------------
def _matmul_bias_relu_kernel(a_ref, w_ref, b_ref, o_ref, acc_ref):
    k = pl.program_id(2)

    @pl.when(k == 0)
    def _():
        acc_ref[...] = jnp.zeros_like(acc_ref)

    acc_ref[...] += jnp.dot(a_ref[...], w_ref[...],
                            preferred_element_type=jnp.float32)

    @pl.when(k == pl.num_programs(2) - 1)
    def _():
        o_ref[...] = jnp.maximum(acc_ref[...] + b_ref[...], 0.0).astype(o_ref.dtype)


def matmul_bias_relu(a, w, b):
    """relu(a @ w + b): a (M, K) f32, w (K, N) f32, b (N,) f32 -> (M, N) f32."""
    M, K = a.shape
    K2, N = w.shape
    assert K == K2 and b.shape == (N,)
    tm = _pick_tile(M, 256, 8)
    tn = _pick_tile(N, 256, 128)
    tk = _pick_tile(K, 512, 128)
    grid = (M // tm, N // tn, K // tk)
    return pl.pallas_call(
        _matmul_bias_relu_kernel,
        out_shape=jax.ShapeDtypeStruct((M, N), jnp.float32),
        grid_spec=pltpu.PrefetchScalarGridSpec(
            num_scalar_prefetch=0,
            grid=grid,
            in_specs=[
                pl.BlockSpec((tm, tk), lambda i, j, k: (i, k)),
                pl.BlockSpec((tk, tn), lambda i, j, k: (k, j)),
                pl.BlockSpec((1, tn), lambda i, j, k: (0, j)),
            ],
            out_specs=pl.BlockSpec((tm, tn), lambda i, j, k: (i, j)),
            scratch_shapes=[pltpu.VMEM((tm, tn), jnp.float32)],
        ),
        compiler_params=pltpu.CompilerParams(
            dimension_semantics=("parallel", "parallel", "arbitrary")),
    )(a, w, b.reshape(1, N))


# ---------------------------------------------------------------------------
# Kernel 2: tiled sum-of-squared-error reduction -> (1, 1) scalar in SMEM
# ---------------------------------------------------------------------------
def _sse_kernel(a_ref, b_ref, o_ref):
    @pl.when(pl.program_id(0) == 0)
    def _():
        o_ref[0, 0] = jnp.float32(0.0)

    d = a_ref[...].astype(jnp.float32) - b_ref[...].astype(jnp.float32)
    o_ref[0, 0] += jnp.sum(d * d)


def _as_2d_lane_dense(a):
    n = a.size
    if n % 128 == 0:
        return a.reshape(n // 128, 128)
    return a.reshape(1, n)


def mse(a, b):
    """mean((a - b)**2) over all elements (== torch.nn.MSELoss())."""
    assert a.shape == b.shape
    numel = a.size
    a2 = _as_2d_lane_dense(a.astype(jnp.float32))
    b2 = _as_2d_lane_dense(b.astype(jnp.float32))
    rows, cols = a2.shape
    tr = _pick_tile(rows, 1024, 8)
    sse = pl.pallas_call(
        _sse_kernel,
        out_shape=jax.ShapeDtypeStruct((1, 1), jnp.float32),
        grid_spec=pltpu.PrefetchScalarGridSpec(
            num_scalar_prefetch=0,
            grid=(rows // tr,),
            in_specs=[
                pl.BlockSpec((tr, cols), lambda i: (i, 0)),
                pl.BlockSpec((tr, cols), lambda i: (i, 0)),
            ],
            out_specs=pl.BlockSpec(memory_space=pltpu.MemorySpace.SMEM),
        ),
        compiler_params=pltpu.CompilerParams(
            dimension_semantics=("arbitrary",)),
    )(a2, b2)
    return sse[0, 0] / jnp.float32(numel)


# ---------------------------------------------------------------------------
# VGG feature extractor built from the Pallas conv kernel
# ---------------------------------------------------------------------------
def conv3x3_relu(x, w, b):
    """x (N, H, W, Cin), w (3, 3, Cin, Cout), b (Cout,) -> relu(conv2d(x) + b), pad=1."""
    n, h, wi, cin = x.shape
    cout = w.shape[-1]
    xp = jnp.pad(x, ((0, 0), (1, 1), (1, 1), (0, 0)))
    cols = [xp[:, kh:kh + h, kw:kw + wi, :] for kh in range(3) for kw in range(3)]
    patches = jnp.concatenate(cols, axis=-1).reshape(n * h * wi, 9 * cin)
    out = matmul_bias_relu(patches, w.reshape(9 * cin, cout), b)
    return out.reshape(n, h, wi, cout)


def maxpool2x2(x):
    n, h, w, c = x.shape
    return jnp.max(x.reshape(n, h // 2, 2, w // 2, 2, c), axis=(2, 4))


def init_vgg_params(key):
    # TODO(synk): torchvision's pretrained ImageNet VGG16 weights cannot be loaded
    # here (no file / network access); deterministic He-init stand-ins are used.
    params = []
    for block in VGG_BLOCKS:
        layers = []
        for cin, cout in block:
            key, k1 = jax.random.split(key)
            w = jax.random.normal(k1, (3, 3, cin, cout), jnp.float32) * jnp.sqrt(2.0 / (9 * cin))
            layers.append((w, jnp.zeros((cout,), jnp.float32)))
        params.append(tuple(layers))
    return tuple(params)


def _normalize_nhwc(x):
    mean = jnp.asarray(IMAGENET_MEAN, jnp.float32).reshape(1, 1, 1, 3)
    std = jnp.asarray(IMAGENET_STD, jnp.float32).reshape(1, 1, 1, 3)
    return (x - mean) / std


def vgg_perceptual_loss(params, x_nchw, y_nchw):
    # TODO(synk): the reference VGGPerceptualLoss source is not provided; this follows the
    # common implementation (feature_layers=[0,1,2,3], no style terms, no 224x224 resize).
    def to_nhwc3(t):
        if t.shape[1] == 1:
            t = jnp.repeat(t, 3, axis=1)
        assert t.shape[1] == 3, "VGG perceptual loss expects 1 or 3 input channels"
        return jnp.transpose(t, (0, 2, 3, 1)).astype(jnp.float32)

    n = x_nchw.shape[0]
    # Run x and y through the shared-weight feature extractor as one batch so
    # every MXU matmul has double the M rows (fewer, fatter kernel launches).
    feats = jnp.concatenate(
        [_normalize_nhwc(to_nhwc3(x_nchw)), _normalize_nhwc(to_nhwc3(y_nchw))], axis=0)

    loss = jnp.float32(0.0)
    for bi, block in enumerate(params):
        if bi > 0:
            feats = maxpool2x2(feats)
        for w, b in block:
            feats = conv3x3_relu(feats, w, b)
        loss = loss + mse(feats[:n], feats[n:])
    return loss


def vgg_mse(params, x, y):
    """Forward of VGG_MSE: 0.01 * VGGPerceptualLoss(x, y) + MSELoss(x, y)."""
    return jnp.float32(LAMBDA_TRADEOFF) * vgg_perceptual_loss(params, x, y) + mse(x, y)


if __name__ == "__main__":
    key = jax.random.PRNGKey(0)
    kx, ky, kp = jax.random.split(key, 3)
    x = jax.random.normal(kx, (2, 3, 16, 16), dtype=jnp.float32)
    y = jax.random.normal(ky, (2, 3, 16, 16), dtype=jnp.float32)
    params = init_vgg_params(kp)
    loss = jax.jit(vgg_mse)(params, x, y)
    jax.block_until_ready(loss)
    print("KERNEL_OK")
</pallas_src>

<mosaic_0001>
module attributes {stable_mosaic.version = 11 : i64} {
  func.func @_matmul_bias_relu_kernel(%arg0: i32, %arg1: i32, %arg2: i32, %arg3: memref<256x27xf32, #tpu.memory_space<vmem>>, %arg4: memref<27x64xf32, #tpu.memory_space<vmem>>, %arg5: memref<1x64xf32, #tpu.memory_space<vmem>>, %arg6: memref<256x64xf32, #tpu.memory_space<vmem>>, %arg7: memref<256x64xf32, #tpu.memory_space<vmem>>) attributes {dimension_semantics = [#tpu.dimension_semantics<parallel>, #tpu.dimension_semantics<parallel>, #tpu.dimension_semantics<arbitrary>], iteration_bounds = array<i64: 4, 1, 1>, scalar_prefetch = 0 : i64, scratch_operands = 1 : i64, tpu.core_type = #tpu.core_type<tc>, window_params = [{transform_indices = @transform_0, window_bounds = array<i64: 256, 27>}, {transform_indices = @transform_1, window_bounds = array<i64: 27, 64>}, {transform_indices = @transform_2, window_bounds = array<i64: 1, 64>}, {transform_indices = @transform_3, window_bounds = array<i64: 256, 64>}]} {
    %c0_i32 = arith.constant 0 : i32
    %0 = arith.cmpi eq, %arg2, %c0_i32 : i32
    %1 = arith.extui %0 : i1 to i32
    %c0_i32_0 = arith.constant 0 : i32
    %2 = arith.cmpi ne, %1, %c0_i32_0 : i32
    scf.if %2 {
      %cst_10 = arith.constant 0.000000e+00 : f32
      %12 = vector.broadcast %cst_10 : f32 to vector<256x64xf32>
      %c0_11 = arith.constant 0 : index
      %c0_12 = arith.constant 0 : index
      %13 = vector.load %arg7[%c0_11, %c0_12] : memref<256x64xf32, #tpu.memory_space<vmem>>, vector<256x64xf32>
      tpu.vector_store %arg7[%c0_11, %c0_12], %12 {strides = array<i32>} : memref<256x64xf32, #tpu.memory_space<vmem>>, vector<256x64xf32>,
    } else {
    }
    %c0 = arith.constant 0 : index
    %c0_1 = arith.constant 0 : index
    %3 = vector.load %arg7[%c0, %c0_1] : memref<256x64xf32, #tpu.memory_space<vmem>>, vector<256x64xf32>
    %c0_2 = arith.constant 0 : index
    %c0_3 = arith.constant 0 : index
    %4 = vector.load %arg3[%c0_2, %c0_3] : memref<256x27xf32, #tpu.memory_space<vmem>>, vector<256x27xf32>
    %c0_4 = arith.constant 0 : index
    %c0_5 = arith.constant 0 : index
    %5 = vector.load %arg4[%c0_4, %c0_5] : memref<27x64xf32, #tpu.memory_space<vmem>>, vector<27x64xf32>
    %cst = arith.constant dense<0.000000e+00> : vector<256x64xf32>
    %6 = tpu.matmul %4, %5, %cst {dimension_numbers = #tpu.dot_dimension_numbers<[1], [0], [0], [1], [0, 0, 1, 1], [], []>} : vector<256x27xf32>, vector<27x64xf32>, vector<256x64xf32> -> vector<256x64xf32>
    %7 = arith.addf %3, %6 : vector<256x64xf32>
    %c0_6 = arith.constant 0 : index
    %c0_7 = arith.constant 0 : index
    %8 = vector.load %arg7[%c0_6, %c0_7] : memref<256x64xf32, #tpu.memory_space<vmem>>, vector<256x64xf32>
    tpu.vector_store %arg7[%c0_6, %c0_7], %7 {strides = array<i32>} : memref<256x64xf32, #tpu.memory_space<vmem>>, vector<256x64xf32>,
    %c0_i32_8 = arith.constant 0 : i32
    %9 = arith.cmpi eq, %arg2, %c0_i32_8 : i32
    %10 = arith.extui %9 : i1 to i32
    %c0_i32_9 = arith.constant 0 : i32
    %11 = arith.cmpi ne, %10, %c0_i32_9 : i32
    scf.if %11 {
      %c0_10 = arith.constant 0 : index
      %c0_11 = arith.constant 0 : index
      %12 = vector.load %arg7[%c0_10, %c0_11] : memref<256x64xf32, #tpu.memory_space<vmem>>, vector<256x64xf32>
      %c0_12 = arith.constant 0 : index
      %c0_13 = arith.constant 0 : index
      %13 = vector.load %arg5[%c0_12, %c0_13] : memref<1x64xf32, #tpu.memory_space<vmem>>, vector<1x64xf32>
      %14 = vector.broadcast %13 : vector<1x64xf32> to vector<256x64xf32>
      %15 = arith.addf %12, %14 : vector<256x64xf32>
      %cst_14 = arith.constant 0.000000e+00 : f32
      %16 = vector.broadcast %cst_14 : f32 to vector<256x64xf32>
      %17 = arith.maximumf %15, %16 : vector<256x64xf32>
      %c0_15 = arith.constant 0 : index
      %c0_16 = arith.constant 0 : index
      %18 = vector.load %arg6[%c0_15, %c0_16] : memref<256x64xf32, #tpu.memory_space<vmem>>, vector<256x64xf32>
      tpu.vector_store %arg6[%c0_15, %c0_16], %17 {strides = array<i32>} : memref<256x64xf32, #tpu.memory_space<vmem>>, vector<256x64xf32>,
    } else {
    }
    return
  }
  func.func @transform_0(%arg0: i32, %arg1: i32, %arg2: i32) -> (i32, i32) {
    %c0_i32 = arith.constant 0 : i32
    return %arg0, %arg2 : i32, i32
  }
  func.func @transform_1(%arg0: i32, %arg1: i32, %arg2: i32) -> (i32, i32) {
    %c0_i32 = arith.constant 0 : i32
    return %arg2, %arg1 : i32, i32
  }
  func.func @transform_2(%arg0: i32, %arg1: i32, %arg2: i32) -> (i32, i32) {
    %c0_i32 = arith.constant 0 : i32
    %c0_i32_0 = arith.constant 0 : i32
    return %c0_i32, %arg1 : i32, i32
  }
  func.func @transform_3(%arg0: i32, %arg1: i32, %arg2: i32) -> (i32, i32) {
    %c0_i32 = arith.constant 0 : i32
    return %arg0, %arg1 : i32, i32
  }
}

module attributes {stable_mosaic.version = 11 : i64} {
  func.func @_matmul_bias_relu_kernel(%arg0: i32, %arg1: i32, %arg2: i32, %arg3: memref<256x576xf32, #tpu.memory_space<vmem>>, %arg4: memref<576x64xf32, #tpu.memory_space<vmem>>, %arg5: memref<1x64xf32, #tpu.memory_space<vmem>>, %arg6: memref<256x64xf32, #tpu.memory_space<vmem>>, %arg7: memref<256x64xf32, #tpu.memory_space<vmem>>) attributes {dimension_semantics = [#tpu.dimension_semantics<parallel>, #tpu.dimension_semantics<parallel>, #tpu.dimension_semantics<arbitrary>], iteration_bounds = array<i64: 4, 1, 1>, scalar_prefetch = 0 : i64, scratch_operands = 1 : i64, tpu.core_type = #tpu.core_type<tc>, window_params = [{transform_indices = @transform_0, window_bounds = array<i64: 256, 576>}, {transform_indices = @transform_1, window_bounds = array<i64: 576, 64>}, {transform_indices = @transform_2, window_bounds = array<i64: 1, 64>}, {transform_indices = @transform_3, window_bounds = array<i64: 256, 64>}]} {
    %c0_i32 = arith.constant 0 : i32
    %0 = arith.cmpi eq, %arg2, %c0_i32 : i32
    %1 = arith.extui %0 : i1 to i32
    %c0_i32_0 = arith.constant 0 : i32
    %2 = arith.cmpi ne, %1, %c0_i32_0 : i32
    scf.if %2 {
      %cst_10 = arith.constant 0.000000e+00 : f32
      %12 = vector.broadcast %cst_10 : f32 to vector<256x64xf32>
      %c0_11 = arith.constant 0 : index
      %c0_12 = arith.constant 0 : index
      %13 = vector.load %arg7[%c0_11, %c0_12] : memref<256x64xf32, #tpu.memory_space<vmem>>, vector<256x64xf32>
      tpu.vector_store %arg7[%c0_11, %c0_12], %12 {strides = array<i32>} : memref<256x64xf32, #tpu.memory_space<vmem>>, vector<256x64xf32>,
    } else {
    }
    %c0 = arith.constant 0 : index
    %c0_1 = arith.constant 0 : index
    %3 = vector.load %arg7[%c0, %c0_1] : memref<256x64xf32, #tpu.memory_space<vmem>>, vector<256x64xf32>
    %c0_2 = arith.constant 0 : index
    %c0_3 = arith.constant 0 : index
    %4 = vector.load %arg3[%c0_2, %c0_3] : memref<256x576xf32, #tpu.memory_space<vmem>>, vector<256x576xf32>
    %c0_4 = arith.constant 0 : index
    %c0_5 = arith.constant 0 : index
    %5 = vector.load %arg4[%c0_4, %c0_5] : memref<576x64xf32, #tpu.memory_space<vmem>>, vector<576x64xf32>
    %cst = arith.constant dense<0.000000e+00> : vector<256x64xf32>
    %6 = tpu.matmul %4, %5, %cst {dimension_numbers = #tpu.dot_dimension_numbers<[1], [0], [0], [1], [0, 0, 1, 1], [], []>} : vector<256x576xf32>, vector<576x64xf32>, vector<256x64xf32> -> vector<256x64xf32>
    %7 = arith.addf %3, %6 : vector<256x64xf32>
    %c0_6 = arith.constant 0 : index
    %c0_7 = arith.constant 0 : index
    %8 = vector.load %arg7[%c0_6, %c0_7] : memref<256x64xf32, #tpu.memory_space<vmem>>, vector<256x64xf32>
    tpu.vector_store %arg7[%c0_6, %c0_7], %7 {strides = array<i32>} : memref<256x64xf32, #tpu.memory_space<vmem>>, vector<256x64xf32>,
    %c0_i32_8 = arith.constant 0 : i32
    %9 = arith.cmpi eq, %arg2, %c0_i32_8 : i32
    %10 = arith.extui %9 : i1 to i32
    %c0_i32_9 = arith.constant 0 : i32
    %11 = arith.cmpi ne, %10, %c0_i32_9 : i32
    scf.if %11 {
      %c0_10 = arith.constant 0 : index
      %c0_11 = arith.constant 0 : index
      %12 = vector.load %arg7[%c0_10, %c0_11] : memref<256x64xf32, #tpu.memory_space<vmem>>, vector<256x64xf32>
      %c0_12 = arith.constant 0 : index
      %c0_13 = arith.constant 0 : index
      %13 = vector.load %arg5[%c0_12, %c0_13] : memref<1x64xf32, #tpu.memory_space<vmem>>, vector<1x64xf32>
      %14 = vector.broadcast %13 : vector<1x64xf32> to vector<256x64xf32>
      %15 = arith.addf %12, %14 : vector<256x64xf32>
      %cst_14 = arith.constant 0.000000e+00 : f32
      %16 = vector.broadcast %cst_14 : f32 to vector<256x64xf32>
      %17 = arith.maximumf %15, %16 : vector<256x64xf32>
      %c0_15 = arith.constant 0 : index
      %c0_16 = arith.constant 0 : index
      %18 = vector.load %arg6[%c0_15, %c0_16] : memref<256x64xf32, #tpu.memory_space<vmem>>, vector<256x64xf32>
      tpu.vector_store %arg6[%c0_15, %c0_16], %17 {strides = array<i32>} : memref<256x64xf32, #tpu.memory_space<vmem>>, vector<256x64xf32>,
    } else {
    }
    return
  }
  func.func @transform_0(%arg0: i32, %arg1: i32, %arg2: i32) -> (i32, i32) {
    %c0_i32 = arith.constant 0 : i32
    return %arg0, %arg2 : i32, i32
  }
  func.func @transform_1(%arg0: i32, %arg1: i32, %arg2: i32) -> (i32, i32) {
    %c0_i32 = arith.constant 0 : i32
    return %arg2, %arg1 : i32, i32
  }
  func.func @transform_2(%arg0: i32, %arg1: i32, %arg2: i32) -> (i32, i32) {
    %c0_i32 = arith.constant 0 : i32
    %c0_i32_0 = arith.constant 0 : i32
    return %c0_i32, %arg1 : i32, i32
  }
  func.func @transform_3(%arg0: i32, %arg1: i32, %arg2: i32) -> (i32, i32) {
    %c0_i32 = arith.constant 0 : i32
    return %arg0, %arg1 : i32, i32
  }
}

module attributes {stable_mosaic.version = 11 : i64} {
  func.func @_matmul_bias_relu_kernel(%arg0: i32, %arg1: i32, %arg2: i32, %arg3: memref<256x576xf32, #tpu.memory_space<vmem>>, %arg4: memref<576x128xf32, #tpu.memory_space<vmem>>, %arg5: memref<1x128xf32, #tpu.memory_space<vmem>>, %arg6: memref<256x128xf32, #tpu.memory_space<vmem>>, %arg7: memref<256x128xf32, #tpu.memory_space<vmem>>) attributes {dimension_semantics = [#tpu.dimension_semantics<parallel>, #tpu.dimension_semantics<parallel>, #tpu.dimension_semantics<arbitrary>], iteration_bounds = array<i64: 1, 1, 1>, scalar_prefetch = 0 : i64, scratch_operands = 1 : i64, tpu.core_type = #tpu.core_type<tc>, window_params = [{transform_indices = @transform_0, window_bounds = array<i64: 256, 576>}, {transform_indices = @transform_1, window_bounds = array<i64: 576, 128>}, {transform_indices = @transform_2, window_bounds = array<i64: 1, 128>}, {transform_indices = @transform_3, window_bounds = array<i64: 256, 128>}]} {
    %c0_i32 = arith.constant 0 : i32
    %0 = arith.cmpi eq, %arg2, %c0_i32 : i32
    %1 = arith.extui %0 : i1 to i32
    %c0_i32_0 = arith.constant 0 : i32
    %2 = arith.cmpi ne, %1, %c0_i32_0 : i32
    scf.if %2 {
      %cst_10 = arith.constant 0.000000e+00 : f32
      %12 = vector.broadcast %cst_10 : f32 to vector<256x128xf32>
      %c0_11 = arith.constant 0 : index
      %c0_12 = arith.constant 0 : index
      %13 = vector.load %arg7[%c0_11, %c0_12] : memref<256x128xf32, #tpu.memory_space<vmem>>, vector<256x128xf32>
      tpu.vector_store %arg7[%c0_11, %c0_12], %12 {strides = array<i32>} : memref<256x128xf32, #tpu.memory_space<vmem>>, vector<256x128xf32>,
    } else {
    }
    %c0 = arith.constant 0 : index
    %c0_1 = arith.constant 0 : index
    %3 = vector.load %arg7[%c0, %c0_1] : memref<256x128xf32, #tpu.memory_space<vmem>>, vector<256x128xf32>
    %c0_2 = arith.constant 0 : index
    %c0_3 = arith.constant 0 : index
    %4 = vector.load %arg3[%c0_2, %c0_3] : memref<256x576xf32, #tpu.memory_space<vmem>>, vector<256x576xf32>
    %c0_4 = arith.constant 0 : index
    %c0_5 = arith.constant 0 : index
    %5 = vector.load %arg4[%c0_4, %c0_5] : memref<576x128xf32, #tpu.memory_space<vmem>>, vector<576x128xf32>
    %cst = arith.constant dense<0.000000e+00> : vector<256x128xf32>
    %6 = tpu.matmul %4, %5, %cst {dimension_numbers = #tpu.dot_dimension_numbers<[1], [0], [0], [1], [0, 0, 1, 1], [], []>} : vector<256x576xf32>, vector<576x128xf32>, vector<256x128xf32> -> vector<256x128xf32>
    %7 = arith.addf %3, %6 : vector<256x128xf32>
    %c0_6 = arith.constant 0 : index
    %c0_7 = arith.constant 0 : index
    %8 = vector.load %arg7[%c0_6, %c0_7] : memref<256x128xf32, #tpu.memory_space<vmem>>, vector<256x128xf32>
    tpu.vector_store %arg7[%c0_6, %c0_7], %7 {strides = array<i32>} : memref<256x128xf32, #tpu.memory_space<vmem>>, vector<256x128xf32>,
    %c0_i32_8 = arith.constant 0 : i32
    %9 = arith.cmpi eq, %arg2, %c0_i32_8 : i32
    %10 = arith.extui %9 : i1 to i32
    %c0_i32_9 = arith.constant 0 : i32
    %11 = arith.cmpi ne, %10, %c0_i32_9 : i32
    scf.if %11 {
      %c0_10 = arith.constant 0 : index
      %c0_11 = arith.constant 0 : index
      %12 = vector.load %arg7[%c0_10, %c0_11] : memref<256x128xf32, #tpu.memory_space<vmem>>, vector<256x128xf32>
      %c0_12 = arith.constant 0 : index
      %c0_13 = arith.constant 0 : index
      %13 = vector.load %arg5[%c0_12, %c0_13] : memref<1x128xf32, #tpu.memory_space<vmem>>, vector<1x128xf32>
      %14 = vector.broadcast %13 : vector<1x128xf32> to vector<256x128xf32>
      %15 = arith.addf %12, %14 : vector<256x128xf32>
      %cst_14 = arith.constant 0.000000e+00 : f32
      %16 = vector.broadcast %cst_14 : f32 to vector<256x128xf32>
      %17 = arith.maximumf %15, %16 : vector<256x128xf32>
      %c0_15 = arith.constant 0 : index
      %c0_16 = arith.constant 0 : index
      %18 = vector.load %arg6[%c0_15, %c0_16] : memref<256x128xf32, #tpu.memory_space<vmem>>, vector<256x128xf32>
      tpu.vector_store %arg6[%c0_15, %c0_16], %17 {strides = array<i32>} : memref<256x128xf32, #tpu.memory_space<vmem>>, vector<256x128xf32>,
    } else {
    }
    return
  }
  func.func @transform_0(%arg0: i32, %arg1: i32, %arg2: i32) -> (i32, i32) {
    %c0_i32 = arith.constant 0 : i32
    return %arg0, %arg2 : i32, i32
  }
  func.func @transform_1(%arg0: i32, %arg1: i32, %arg2: i32) -> (i32, i32) {
    %c0_i32 = arith.constant 0 : i32
    return %arg2, %arg1 : i32, i32
  }
  func.func @transform_2(%arg0: i32, %arg1: i32, %arg2: i32) -> (i32, i32) {
    %c0_i32 = arith.constant 0 : i32
    %c0_i32_0 = arith.constant 0 : i32
    return %c0_i32, %arg1 : i32, i32
  }
  func.func @transform_3(%arg0: i32, %arg1: i32, %arg2: i32) -> (i32, i32) {
    %c0_i32 = arith.constant 0 : i32
    return %arg0, %arg1 : i32, i32
  }
}

module attributes {stable_mosaic.version = 11 : i64} {
  func.func @_matmul_bias_relu_kernel(%arg0: i32, %arg1: i32, %arg2: i32, %arg3: memref<256x384xf32, #tpu.memory_space<vmem>>, %arg4: memref<384x128xf32, #tpu.memory_space<vmem>>, %arg5: memref<1x128xf32, #tpu.memory_space<vmem>>, %arg6: memref<256x128xf32, #tpu.memory_space<vmem>>, %arg7: memref<256x128xf32, #tpu.memory_space<vmem>>) attributes {dimension_semantics = [#tpu.dimension_semantics<parallel>, #tpu.dimension_semantics<parallel>, #tpu.dimension_semantics<arbitrary>], iteration_bounds = array<i64: 1, 1, 3>, scalar_prefetch = 0 : i64, scratch_operands = 1 : i64, tpu.core_type = #tpu.core_type<tc>, window_params = [{transform_indices = @transform_0, window_bounds = array<i64: 256, 384>}, {transform_indices = @transform_1, window_bounds = array<i64: 384, 128>}, {transform_indices = @transform_2, window_bounds = array<i64: 1, 128>}, {transform_indices = @transform_3, window_bounds = array<i64: 256, 128>}]} {
    %c0_i32 = arith.constant 0 : i32
    %0 = arith.cmpi eq, %arg2, %c0_i32 : i32
    %1 = arith.extui %0 : i1 to i32
    %c0_i32_0 = arith.constant 0 : i32
    %2 = arith.cmpi ne, %1, %c0_i32_0 : i32
    scf.if %2 {
      %cst_9 = arith.constant 0.000000e+00 : f32
      %12 = vector.broadcast %cst_9 : f32 to vector<256x128xf32>
      %c0_10 = arith.constant 0 : index
      %c0_11 = arith.constant 0 : index
      %13 = vector.load %arg7[%c0_10, %c0_11] : memref<256x128xf32, #tpu.memory_space<vmem>>, vector<256x128xf32>
      tpu.vector_store %arg7[%c0_10, %c0_11], %12 {strides = array<i32>} : memref<256x128xf32, #tpu.memory_space<vmem>>, vector<256x128xf32>,
    } else {
    }
    %c0 = arith.constant 0 : index
    %c0_1 = arith.constant 0 : index
    %3 = vector.load %arg7[%c0, %c0_1] : memref<256x128xf32, #tpu.memory_space<vmem>>, vector<256x128xf32>
    %c0_2 = arith.constant 0 : index
    %c0_3 = arith.constant 0 : index
    %4 = vector.load %arg3[%c0_2, %c0_3] : memref<256x384xf32, #tpu.memory_space<vmem>>, vector<256x384xf32>
    %c0_4 = arith.constant 0 : index
    %c0_5 = arith.constant 0 : index
    %5 = vector.load %arg4[%c0_4, %c0_5] : memref<384x128xf32, #tpu.memory_space<vmem>>, vector<384x128xf32>
    %cst = arith.constant dense<0.000000e+00> : vector<256x128xf32>
    %6 = tpu.matmul %4, %5, %cst {dimension_numbers = #tpu.dot_dimension_numbers<[1], [0], [0], [1], [0, 0, 1, 1], [], []>} : vector<256x384xf32>, vector<384x128xf32>, vector<256x128xf32> -> vector<256x128xf32>
    %7 = arith.addf %3, %6 : vector<256x128xf32>
    %c0_6 = arith.constant 0 : index
    %c0_7 = arith.constant 0 : index
    %8 = vector.load %arg7[%c0_6, %c0_7] : memref<256x128xf32, #tpu.memory_space<vmem>>, vector<256x128xf32>
    tpu.vector_store %arg7[%c0_6, %c0_7], %7 {strides = array<i32>} : memref<256x128xf32, #tpu.memory_space<vmem>>, vector<256x128xf32>,
    %c2_i32 = arith.constant 2 : i32
    %9 = arith.cmpi eq, %arg2, %c2_i32 : i32
    %10 = arith.extui %9 : i1 to i32
    %c0_i32_8 = arith.constant 0 : i32
    %11 = arith.cmpi ne, %10, %c0_i32_8 : i32
    scf.if %11 {
      %c0_9 = arith.constant 0 : index
      %c0_10 = arith.constant 0 : index
      %12 = vector.load %arg7[%c0_9, %c0_10] : memref<256x128xf32, #tpu.memory_space<vmem>>, vector<256x128xf32>
      %c0_11 = arith.constant 0 : index
      %c0_12 = arith.constant 0 : index
      %13 = vector.load %arg5[%c0_11, %c0_12] : memref<1x128xf32, #tpu.memory_space<vmem>>, vector<1x128xf32>
      %14 = vector.broadcast %13 : vector<1x128xf32> to vector<256x128xf32>
      %15 = arith.addf %12, %14 : vector<256x128xf32>
      %cst_13 = arith.constant 0.000000e+00 : f32
      %16 = vector.broadcast %cst_13 : f32 to vector<256x128xf32>
      %17 = arith.maximumf %15, %16 : vector<256x128xf32>
      %c0_14 = arith.constant 0 : index
      %c0_15 = arith.constant 0 : index
      %18 = vector.load %arg6[%c0_14, %c0_15] : memref<256x128xf32, #tpu.memory_space<vmem>>, vector<256x128xf32>
      tpu.vector_store %arg6[%c0_14, %c0_15], %17 {strides = array<i32>} : memref<256x128xf32, #tpu.memory_space<vmem>>, vector<256x128xf32>,
    } else {
    }
    return
  }
  func.func @transform_0(%arg0: i32, %arg1: i32, %arg2: i32) -> (i32, i32) {
    %c0_i32 = arith.constant 0 : i32
    return %arg0, %arg2 : i32, i32
  }
  func.func @transform_1(%arg0: i32, %arg1: i32, %arg2: i32) -> (i32, i32) {
    %c0_i32 = arith.constant 0 : i32
    return %arg2, %arg1 : i32, i32
  }
  func.func @transform_2(%arg0: i32, %arg1: i32, %arg2: i32) -> (i32, i32) {
    %c0_i32 = arith.constant 0 : i32
    %c0_i32_0 = arith.constant 0 : i32
    return %c0_i32, %arg1 : i32, i32
  }
  func.func @transform_3(%arg0: i32, %arg1: i32, %arg2: i32) -> (i32, i32) {
    %c0_i32 = arith.constant 0 : i32
    return %arg0, %arg1 : i32, i32
  }
}

module attributes {stable_mosaic.version = 11 : i64} {
  func.func @_matmul_bias_relu_kernel(%arg0: i32, %arg1: i32, %arg2: i32, %arg3: memref<64x384xf32, #tpu.memory_space<vmem>>, %arg4: memref<384x256xf32, #tpu.memory_space<vmem>>, %arg5: memref<1x256xf32, #tpu.memory_space<vmem>>, %arg6: memref<64x256xf32, #tpu.memory_space<vmem>>, %arg7: memref<64x256xf32, #tpu.memory_space<vmem>>) attributes {dimension_semantics = [#tpu.dimension_semantics<parallel>, #tpu.dimension_semantics<parallel>, #tpu.dimension_semantics<arbitrary>], iteration_bounds = array<i64: 1, 1, 3>, scalar_prefetch = 0 : i64, scratch_operands = 1 : i64, tpu.core_type = #tpu.core_type<tc>, window_params = [{transform_indices = @transform_0, window_bounds = array<i64: 64, 384>}, {transform_indices = @transform_1, window_bounds = array<i64: 384, 256>}, {transform_indices = @transform_2, window_bounds = array<i64: 1, 256>}, {transform_indices = @transform_3, window_bounds = array<i64: 64, 256>}]} {
    %c0_i32 = arith.constant 0 : i32
    %0 = arith.cmpi eq, %arg2, %c0_i32 : i32
    %1 = arith.extui %0 : i1 to i32
    %c0_i32_0 = arith.constant 0 : i32
    %2 = arith.cmpi ne, %1, %c0_i32_0 : i32
    scf.if %2 {
      %cst_9 = arith.constant 0.000000e+00 : f32
      %12 = vector.broadcast %cst_9 : f32 to vector<64x256xf32>
      %c0_10 = arith.constant 0 : index
      %c0_11 = arith.constant 0 : index
      %13 = vector.load %arg7[%c0_10, %c0_11] : memref<64x256xf32, #tpu.memory_space<vmem>>, vector<64x256xf32>
      tpu.vector_store %arg7[%c0_10, %c0_11], %12 {strides = array<i32>} : memref<64x256xf32, #tpu.memory_space<vmem>>, vector<64x256xf32>,
    } else {
    }
    %c0 = arith.constant 0 : index
    %c0_1 = arith.constant 0 : index
    %3 = vector.load %arg7[%c0, %c0_1] : memref<64x256xf32, #tpu.memory_space<vmem>>, vector<64x256xf32>
    %c0_2 = arith.constant 0 : index
    %c0_3 = arith.constant 0 : index
    %4 = vector.load %arg3[%c0_2, %c0_3] : memref<64x384xf32, #tpu.memory_space<vmem>>, vector<64x384xf32>
    %c0_4 = arith.constant 0 : index
    %c0_5 = arith.constant 0 : index
    %5 = vector.load %arg4[%c0_4, %c0_5] : memref<384x256xf32, #tpu.memory_space<vmem>>, vector<384x256xf32>
    %cst = arith.constant dense<0.000000e+00> : vector<64x256xf32>
    %6 = tpu.matmul %4, %5, %cst {dimension_numbers = #tpu.dot_dimension_numbers<[1], [0], [0], [1], [0, 0, 1, 1], [], []>} : vector<64x384xf32>, vector<384x256xf32>, vector<64x256xf32> -> vector<64x256xf32>
    %7 = arith.addf %3, %6 : vector<64x256xf32>
    %c0_6 = arith.constant 0 : index
    %c0_7 = arith.constant 0 : index
    %8 = vector.load %arg7[%c0_6, %c0_7] : memref<64x256xf32, #tpu.memory_space<vmem>>, vector<64x256xf32>
    tpu.vector_store %arg7[%c0_6, %c0_7], %7 {strides = array<i32>} : memref<64x256xf32, #tpu.memory_space<vmem>>, vector<64x256xf32>,
    %c2_i32 = arith.constant 2 : i32
    %9 = arith.cmpi eq, %arg2, %c2_i32 : i32
    %10 = arith.extui %9 : i1 to i32
    %c0_i32_8 = arith.constant 0 : i32
    %11 = arith.cmpi ne, %10, %c0_i32_8 : i32
    scf.if %11 {
      %c0_9 = arith.constant 0 : index
      %c0_10 = arith.constant 0 : index
      %12 = vector.load %arg7[%c0_9, %c0_10] : memref<64x256xf32, #tpu.memory_space<vmem>>, vector<64x256xf32>
      %c0_11 = arith.constant 0 : index
      %c0_12 = arith.constant 0 : index
      %13 = vector.load %arg5[%c0_11, %c0_12] : memref<1x256xf32, #tpu.memory_space<vmem>>, vector<1x256xf32>
      %14 = vector.broadcast %13 : vector<1x256xf32> to vector<64x256xf32>
      %15 = arith.addf %12, %14 : vector<64x256xf32>
      %cst_13 = arith.constant 0.000000e+00 : f32
      %16 = vector.broadcast %cst_13 : f32 to vector<64x256xf32>
      %17 = arith.maximumf %15, %16 : vector<64x256xf32>
      %c0_14 = arith.constant 0 : index
      %c0_15 = arith.constant 0 : index
      %18 = vector.load %arg6[%c0_14, %c0_15] : memref<64x256xf32, #tpu.memory_space<vmem>>, vector<64x256xf32>
      tpu.vector_store %arg6[%c0_14, %c0_15], %17 {strides = array<i32>} : memref<64x256xf32, #tpu.memory_space<vmem>>, vector<64x256xf32>,
    } else {
    }
    return
  }
  func.func @transform_0(%arg0: i32, %arg1: i32, %arg2: i32) -> (i32, i32) {
    %c0_i32 = arith.constant 0 : i32
    return %arg0, %arg2 : i32, i32
  }
  func.func @transform_1(%arg0: i32, %arg1: i32, %arg2: i32) -> (i32, i32) {
    %c0_i32 = arith.constant 0 : i32
    return %arg2, %arg1 : i32, i32
  }
  func.func @transform_2(%arg0: i32, %arg1: i32, %arg2: i32) -> (i32, i32) {
    %c0_i32 = arith.constant 0 : i32
    %c0_i32_0 = arith.constant 0 : i32
    return %c0_i32, %arg1 : i32, i32
  }
  func.func @transform_3(%arg0: i32, %arg1: i32, %arg2: i32) -> (i32, i32) {
    %c0_i32 = arith.constant 0 : i32
    return %arg0, %arg1 : i32, i32
  }
}

module attributes {stable_mosaic.version = 11 : i64} {
  func.func @_matmul_bias_relu_kernel(%arg0: i32, %arg1: i32, %arg2: i32, %arg3: memref<64x384xf32, #tpu.memory_space<vmem>>, %arg4: memref<384x256xf32, #tpu.memory_space<vmem>>, %arg5: memref<1x256xf32, #tpu.memory_space<vmem>>, %arg6: memref<64x256xf32, #tpu.memory_space<vmem>>, %arg7: memref<64x256xf32, #tpu.memory_space<vmem>>) attributes {dimension_semantics = [#tpu.dimension_semantics<parallel>, #tpu.dimension_semantics<parallel>, #tpu.dimension_semantics<arbitrary>], iteration_bounds = array<i64: 1, 1, 6>, scalar_prefetch = 0 : i64, scratch_operands = 1 : i64, tpu.core_type = #tpu.core_type<tc>, window_params = [{transform_indices = @transform_0, window_bounds = array<i64: 64, 384>}, {transform_indices = @transform_1, window_bounds = array<i64: 384, 256>}, {transform_indices = @transform_2, window_bounds = array<i64: 1, 256>}, {transform_indices = @transform_3, window_bounds = array<i64: 64, 256>}]} {
    %c0_i32 = arith.constant 0 : i32
    %0 = arith.cmpi eq, %arg2, %c0_i32 : i32
    %1 = arith.extui %0 : i1 to i32
    %c0_i32_0 = arith.constant 0 : i32
    %2 = arith.cmpi ne, %1, %c0_i32_0 : i32
    scf.if %2 {
      %cst_9 = arith.constant 0.000000e+00 : f32
      %12 = vector.broadcast %cst_9 : f32 to vector<64x256xf32>
      %c0_10 = arith.constant 0 : index
      %c0_11 = arith.constant 0 : index
      %13 = vector.load %arg7[%c0_10, %c0_11] : memref<64x256xf32, #tpu.memory_space<vmem>>, vector<64x256xf32>
      tpu.vector_store %arg7[%c0_10, %c0_11], %12 {strides = array<i32>} : memref<64x256xf32, #tpu.memory_space<vmem>>, vector<64x256xf32>,
    } else {
    }
    %c0 = arith.constant 0 : index
    %c0_1 = arith.constant 0 : index
    %3 = vector.load %arg7[%c0, %c0_1] : memref<64x256xf32, #tpu.memory_space<vmem>>, vector<64x256xf32>
    %c0_2 = arith.constant 0 : index
    %c0_3 = arith.constant 0 : index
    %4 = vector.load %arg3[%c0_2, %c0_3] : memref<64x384xf32, #tpu.memory_space<vmem>>, vector<64x384xf32>
    %c0_4 = arith.constant 0 : index
    %c0_5 = arith.constant 0 : index
    %5 = vector.load %arg4[%c0_4, %c0_5] : memref<384x256xf32, #tpu.memory_space<vmem>>, vector<384x256xf32>
    %cst = arith.constant dense<0.000000e+00> : vector<64x256xf32>
    %6 = tpu.matmul %4, %5, %cst {dimension_numbers = #tpu.dot_dimension_numbers<[1], [0], [0], [1], [0, 0, 1, 1], [], []>} : vector<64x384xf32>, vector<384x256xf32>, vector<64x256xf32> -> vector<64x256xf32>
    %7 = arith.addf %3, %6 : vector<64x256xf32>
    %c0_6 = arith.constant 0 : index
    %c0_7 = arith.constant 0 : index
    %8 = vector.load %arg7[%c0_6, %c0_7] : memref<64x256xf32, #tpu.memory_space<vmem>>, vector<64x256xf32>
    tpu.vector_store %arg7[%c0_6, %c0_7], %7 {strides = array<i32>} : memref<64x256xf32, #tpu.memory_space<vmem>>, vector<64x256xf32>,
    %c5_i32 = arith.constant 5 : i32
    %9 = arith.cmpi eq, %arg2, %c5_i32 : i32
    %10 = arith.extui %9 : i1 to i32
    %c0_i32_8 = arith.constant 0 : i32
    %11 = arith.cmpi ne, %10, %c0_i32_8 : i32
    scf.if %11 {
      %c0_9 = arith.constant 0 : index
      %c0_10 = arith.constant 0 : index
      %12 = vector.load %arg7[%c0_9, %c0_10] : memref<64x256xf32, #tpu.memory_space<vmem>>, vector<64x256xf32>
      %c0_11 = arith.constant 0 : index
      %c0_12 = arith.constant 0 : index
      %13 = vector.load %arg5[%c0_11, %c0_12] : memref<1x256xf32, #tpu.memory_space<vmem>>, vector<1x256xf32>
      %14 = vector.broadcast %13 : vector<1x256xf32> to vector<64x256xf32>
      %15 = arith.addf %12, %14 : vector<64x256xf32>
      %cst_13 = arith.constant 0.000000e+00 : f32
      %16 = vector.broadcast %cst_13 : f32 to vector<64x256xf32>
      %17 = arith.maximumf %15, %16 : vector<64x256xf32>
      %c0_14 = arith.constant 0 : index
      %c0_15 = arith.constant 0 : index
      %18 = vector.load %arg6[%c0_14, %c0_15] : memref<64x256xf32, #tpu.memory_space<vmem>>, vector<64x256xf32>
      tpu.vector_store %arg6[%c0_14, %c0_15], %17 {strides = array<i32>} : memref<64x256xf32, #tpu.memory_space<vmem>>, vector<64x256xf32>,
    } else {
    }
    return
  }
  func.func @transform_0(%arg0: i32, %arg1: i32, %arg2: i32) -> (i32, i32) {
    %c0_i32 = arith.constant 0 : i32
    return %arg0, %arg2 : i32, i32
  }
  func.func @transform_1(%arg0: i32, %arg1: i32, %arg2: i32) -> (i32, i32) {
    %c0_i32 = arith.constant 0 : i32
    return %arg2, %arg1 : i32, i32
  }
  func.func @transform_2(%arg0: i32, %arg1: i32, %arg2: i32) -> (i32, i32) {
    %c0_i32 = arith.constant 0 : i32
    %c0_i32_0 = arith.constant 0 : i32
    return %c0_i32, %arg1 : i32, i32
  }
  func.func @transform_3(%arg0: i32, %arg1: i32, %arg2: i32) -> (i32, i32) {
    %c0_i32 = arith.constant 0 : i32
    return %arg0, %arg1 : i32, i32
  }
}

module attributes {stable_mosaic.version = 11 : i64} {
  func.func @_matmul_bias_relu_kernel(%arg0: i32, %arg1: i32, %arg2: i32, %arg3: memref<16x384xf32, #tpu.memory_space<vmem>>, %arg4: memref<384x256xf32, #tpu.memory_space<vmem>>, %arg5: memref<1x256xf32, #tpu.memory_space<vmem>>, %arg6: memref<16x256xf32, #tpu.memory_space<vmem>>, %arg7: memref<16x256xf32, #tpu.memory_space<vmem>>) attributes {dimension_semantics = [#tpu.dimension_semantics<parallel>, #tpu.dimension_semantics<parallel>, #tpu.dimension_semantics<arbitrary>], iteration_bounds = array<i64: 1, 2, 6>, scalar_prefetch = 0 : i64, scratch_operands = 1 : i64, tpu.core_type = #tpu.core_type<tc>, window_params = [{transform_indices = @transform_0, window_bounds = array<i64: 16, 384>}, {transform_indices = @transform_1, window_bounds = array<i64: 384, 256>}, {transform_indices = @transform_2, window_bounds = array<i64: 1, 256>}, {transform_indices = @transform_3, window_bounds = array<i64: 16, 256>}]} {
    %c0_i32 = arith.constant 0 : i32
    %0 = arith.cmpi eq, %arg2, %c0_i32 : i32
    %1 = arith.extui %0 : i1 to i32
    %c0_i32_0 = arith.constant 0 : i32
    %2 = arith.cmpi ne, %1, %c0_i32_0 : i32
    scf.if %2 {
      %cst_9 = arith.constant 0.000000e+00 : f32
      %12 = vector.broadcast %cst_9 : f32 to vector<16x256xf32>
      %c0_10 = arith.constant 0 : index
      %c0_11 = arith.constant 0 : index
      %13 = vector.load %arg7[%c0_10, %c0_11] : memref<16x256xf32, #tpu.memory_space<vmem>>, vector<16x256xf32>
      tpu.vector_store %arg7[%c0_10, %c0_11], %12 {strides = array<i32>} : memref<16x256xf32, #tpu.memory_space<vmem>>, vector<16x256xf32>,
    } else {
    }
    %c0 = arith.constant 0 : index
    %c0_1 = arith.constant 0 : index
    %3 = vector.load %arg7[%c0, %c0_1] : memref<16x256xf32, #tpu.memory_space<vmem>>, vector<16x256xf32>
    %c0_2 = arith.constant 0 : index
    %c0_3 = arith.constant 0 : index
    %4 = vector.load %arg3[%c0_2, %c0_3] : memref<16x384xf32, #tpu.memory_space<vmem>>, vector<16x384xf32>
    %c0_4 = arith.constant 0 : index
    %c0_5 = arith.constant 0 : index
    %5 = vector.load %arg4[%c0_4, %c0_5] : memref<384x256xf32, #tpu.memory_space<vmem>>, vector<384x256xf32>
    %cst = arith.constant dense<0.000000e+00> : vector<16x256xf32>
    %6 = tpu.matmul %4, %5, %cst {dimension_numbers = #tpu.dot_dimension_numbers<[1], [0], [0], [1], [0, 0, 1, 1], [], []>} : vector<16x384xf32>, vector<384x256xf32>, vector<16x256xf32> -> vector<16x256xf32>
    %7 = arith.addf %3, %6 : vector<16x256xf32>
    %c0_6 = arith.constant 0 : index
    %c0_7 = arith.constant 0 : index
    %8 = vector.load %arg7[%c0_6, %c0_7] : memref<16x256xf32, #tpu.memory_space<vmem>>, vector<16x256xf32>
    tpu.vector_store %arg7[%c0_6, %c0_7], %7 {strides = array<i32>} : memref<16x256xf32, #tpu.memory_space<vmem>>, vector<16x256xf32>,
    %c5_i32 = arith.constant 5 : i32
    %9 = arith.cmpi eq, %arg2, %c5_i32 : i32
    %10 = arith.extui %9 : i1 to i32
    %c0_i32_8 = arith.constant 0 : i32
    %11 = arith.cmpi ne, %10, %c0_i32_8 : i32
    scf.if %11 {
      %c0_9 = arith.constant 0 : index
      %c0_10 = arith.constant 0 : index
      %12 = vector.load %arg7[%c0_9, %c0_10] : memref<16x256xf32, #tpu.memory_space<vmem>>, vector<16x256xf32>
      %c0_11 = arith.constant 0 : index
      %c0_12 = arith.constant 0 : index
      %13 = vector.load %arg5[%c0_11, %c0_12] : memref<1x256xf32, #tpu.memory_space<vmem>>, vector<1x256xf32>
      %14 = vector.broadcast %13 : vector<1x256xf32> to vector<16x256xf32>
      %15 = arith.addf %12, %14 : vector<16x256xf32>
      %cst_13 = arith.constant 0.000000e+00 : f32
      %16 = vector.broadcast %cst_13 : f32 to vector<16x256xf32>
      %17 = arith.maximumf %15, %16 : vector<16x256xf32>
      %c0_14 = arith.constant 0 : index
      %c0_15 = arith.constant 0 : index
      %18 = vector.load %arg6[%c0_14, %c0_15] : memref<16x256xf32, #tpu.memory_space<vmem>>, vector<16x256xf32>
      tpu.vector_store %arg6[%c0_14, %c0_15], %17 {strides = array<i32>} : memref<16x256xf32, #tpu.memory_space<vmem>>, vector<16x256xf32>,
    } else {
    }
    return
  }
  func.func @transform_0(%arg0: i32, %arg1: i32, %arg2: i32) -> (i32, i32) {
    %c0_i32 = arith.constant 0 : i32
    return %arg0, %arg2 : i32, i32
  }
  func.func @transform_1(%arg0: i32, %arg1: i32, %arg2: i32) -> (i32, i32) {
    %c0_i32 = arith.constant 0 : i32
    return %arg2, %arg1 : i32, i32
  }
  func.func @transform_2(%arg0: i32, %arg1: i32, %arg2: i32) -> (i32, i32) {
    %c0_i32 = arith.constant 0 : i32
    %c0_i32_0 = arith.constant 0 : i32
    return %c0_i32, %arg1 : i32, i32
  }
  func.func @transform_3(%arg0: i32, %arg1: i32, %arg2: i32) -> (i32, i32) {
    %c0_i32 = arith.constant 0 : i32
    return %arg0, %arg1 : i32, i32
  }
}

module attributes {stable_mosaic.version = 11 : i64} {
  func.func @_matmul_bias_relu_kernel(%arg0: i32, %arg1: i32, %arg2: i32, %arg3: memref<16x512xf32, #tpu.memory_space<vmem>>, %arg4: memref<512x256xf32, #tpu.memory_space<vmem>>, %arg5: memref<1x256xf32, #tpu.memory_space<vmem>>, %arg6: memref<16x256xf32, #tpu.memory_space<vmem>>, %arg7: memref<16x256xf32, #tpu.memory_space<vmem>>) attributes {dimension_semantics = [#tpu.dimension_semantics<parallel>, #tpu.dimension_semantics<parallel>, #tpu.dimension_semantics<arbitrary>], iteration_bounds = array<i64: 1, 2, 9>, scalar_prefetch = 0 : i64, scratch_operands = 1 : i64, tpu.core_type = #tpu.core_type<tc>, window_params = [{transform_indices = @transform_0, window_bounds = array<i64: 16, 512>}, {transform_indices = @transform_1, window_bounds = array<i64: 512, 256>}, {transform_indices = @transform_2, window_bounds = array<i64: 1, 256>}, {transform_indices = @transform_3, window_bounds = array<i64: 16, 256>}]} {
    %c0_i32 = arith.constant 0 : i32
    %0 = arith.cmpi eq, %arg2, %c0_i32 : i32
    %1 = arith.extui %0 : i1 to i32
    %c0_i32_0 = arith.constant 0 : i32
    %2 = arith.cmpi ne, %1, %c0_i32_0 : i32
    scf.if %2 {
      %cst_9 = arith.constant 0.000000e+00 : f32
      %12 = vector.broadcast %cst_9 : f32 to vector<16x256xf32>
      %c0_10 = arith.constant 0 : index
      %c0_11 = arith.constant 0 : index
      %13 = vector.load %arg7[%c0_10, %c0_11] : memref<16x256xf32, #tpu.memory_space<vmem>>, vector<16x256xf32>
      tpu.vector_store %arg7[%c0_10, %c0_11], %12 {strides = array<i32>} : memref<16x256xf32, #tpu.memory_space<vmem>>, vector<16x256xf32>,
    } else {
    }
    %c0 = arith.constant 0 : index
    %c0_1 = arith.constant 0 : index
    %3 = vector.load %arg7[%c0, %c0_1] : memref<16x256xf32, #tpu.memory_space<vmem>>, vector<16x256xf32>
    %c0_2 = arith.constant 0 : index
    %c0_3 = arith.constant 0 : index
    %4 = vector.load %arg3[%c0_2, %c0_3] : memref<16x512xf32, #tpu.memory_space<vmem>>, vector<16x512xf32>
    %c0_4 = arith.constant 0 : index
    %c0_5 = arith.constant 0 : index
    %5 = vector.load %arg4[%c0_4, %c0_5] : memref<512x256xf32, #tpu.memory_space<vmem>>, vector<512x256xf32>
    %cst = arith.constant dense<0.000000e+00> : vector<16x256xf32>
    %6 = tpu.matmul %4, %5, %cst {dimension_numbers = #tpu.dot_dimension_numbers<[1], [0], [0], [1], [0, 0, 1, 1], [], []>} : vector<16x512xf32>, vector<512x256xf32>, vector<16x256xf32> -> vector<16x256xf32>
    %7 = arith.addf %3, %6 : vector<16x256xf32>
    %c0_6 = arith.constant 0 : index
    %c0_7 = arith.constant 0 : index
    %8 = vector.load %arg7[%c0_6, %c0_7] : memref<16x256xf32, #tpu.memory_space<vmem>>, vector<16x256xf32>
    tpu.vector_store %arg7[%c0_6, %c0_7], %7 {strides = array<i32>} : memref<16x256xf32, #tpu.memory_space<vmem>>, vector<16x256xf32>,
    %c8_i32 = arith.constant 8 : i32
    %9 = arith.cmpi eq, %arg2, %c8_i32 : i32
    %10 = arith.extui %9 : i1 to i32
    %c0_i32_8 = arith.constant 0 : i32
    %11 = arith.cmpi ne, %10, %c0_i32_8 : i32
    scf.if %11 {
      %c0_9 = arith.constant 0 : index
      %c0_10 = arith.constant 0 : index
      %12 = vector.load %arg7[%c0_9, %c0_10] : memref<16x256xf32, #tpu.memory_space<vmem>>, vector<16x256xf32>
      %c0_11 = arith.constant 0 : index
      %c0_12 = arith.constant 0 : index
      %13 = vector.load %arg5[%c0_11, %c0_12] : memref<1x256xf32, #tpu.memory_space<vmem>>, vector<1x256xf32>
      %14 = vector.broadcast %13 : vector<1x256xf32> to vector<16x256xf32>
      %15 = arith.addf %12, %14 : vector<16x256xf32>
      %cst_13 = arith.constant 0.000000e+00 : f32
      %16 = vector.broadcast %cst_13 : f32 to vector<16x256xf32>
      %17 = arith.maximumf %15, %16 : vector<16x256xf32>
      %c0_14 = arith.constant 0 : index
      %c0_15 = arith.constant 0 : index
      %18 = vector.load %arg6[%c0_14, %c0_15] : memref<16x256xf32, #tpu.memory_space<vmem>>, vector<16x256xf32>
      tpu.vector_store %arg6[%c0_14, %c0_15], %17 {strides = array<i32>} : memref<16x256xf32, #tpu.memory_space<vmem>>, vector<16x256xf32>,
    } else {
    }
    return
  }
  func.func @transform_0(%arg0: i32, %arg1: i32, %arg2: i32) -> (i32, i32) {
    %c0_i32 = arith.constant 0 : i32
    return %arg0, %arg2 : i32, i32
  }
  func.func @transform_1(%arg0: i32, %arg1: i32, %arg2: i32) -> (i32, i32) {
    %c0_i32 = arith.constant 0 : i32
    return %arg2, %arg1 : i32, i32
  }
  func.func @transform_2(%arg0: i32, %arg1: i32, %arg2: i32) -> (i32, i32) {
    %c0_i32 = arith.constant 0 : i32
    %c0_i32_0 = arith.constant 0 : i32
    return %c0_i32, %arg1 : i32, i32
  }
  func.func @transform_3(%arg0: i32, %arg1: i32, %arg2: i32) -> (i32, i32) {
    %c0_i32 = arith.constant 0 : i32
    return %arg0, %arg1 : i32, i32
  }
}

module attributes {stable_mosaic.version = 11 : i64} {
  func.func @_sse_kernel(%arg0: i32, %arg1: memref<64x128xf32, #tpu.memory_space<vmem>>, %arg2: memref<64x128xf32, #tpu.memory_space<vmem>>, %arg3: memref<1x1xf32, #tpu.memory_space<smem>>) attributes {dimension_semantics = [#tpu.dimension_semantics<arbitrary>], iteration_bounds = array<i64: 1>, scalar_prefetch = 0 : i64, scratch_operands = 0 : i64, tpu.core_type = #tpu.core_type<tc>, window_params = [{transform_indices = @transform_0, window_bounds = array<i64: 64, 128>}, {transform_indices = @transform_1, window_bounds = array<i64: 64, 128>}, {transform_indices = @transform_2, window_bounds = array<i64: 1, 1>}]} {
    %c0_i32 = arith.constant 0 : i32
    %0 = arith.cmpi eq, %arg0, %c0_i32 : i32
    %1 = arith.extui %0 : i1 to i32
    %c0_i32_0 = arith.constant 0 : i32
    %2 = arith.cmpi ne, %1, %c0_i32_0 : i32
    scf.if %2 {
      %cst_8 = arith.constant 0.000000e+00 : f32
      %c0_9 = arith.constant 0 : index
      %c0_10 = arith.constant 0 : index
      %14 = memref.load %arg3[%c0_9, %c0_10] : memref<1x1xf32, #tpu.memory_space<smem>>
      memref.store %cst_8, %arg3[%c0_9, %c0_10] : memref<1x1xf32, #tpu.memory_space<smem>>
    } else {
    }
    %c0 = arith.constant 0 : index
    %c0_1 = arith.constant 0 : index
    %3 = vector.load %arg1[%c0, %c0_1] : memref<64x128xf32, #tpu.memory_space<vmem>>, vector<64x128xf32>
    %c0_2 = arith.constant 0 : index
    %c0_3 = arith.constant 0 : index
    %4 = vector.load %arg2[%c0_2, %c0_3] : memref<64x128xf32, #tpu.memory_space<vmem>>, vector<64x128xf32>
    %5 = arith.subf %3, %4 : vector<64x128xf32>
    %c0_4 = arith.constant 0 : index
    %c0_5 = arith.constant 0 : index
    %6 = memref.load %arg3[%c0_4, %c0_5] : memref<1x1xf32, #tpu.memory_space<smem>>
    %7 = arith.mulf %5, %5 : vector<64x128xf32>
    %8 = vector.shape_cast %7 : vector<64x128xf32> to vector<1x64x128xf32>
    %cst = arith.constant dense<0.000000e+00> : vector<1xf32>
    %9 = vector.multi_reduction <add>, %8, %cst [1, 2] : vector<1x64x128xf32> to vector<1xf32>
    %10 = vector.shape_cast %9 : vector<1xf32> to vector<1x1x1xf32>
    %11 = vector.extract %10[0, 0, 0] : f32 from vector<1x1x1xf32>
    %12 = arith.addf %6, %11 : f32
    %c0_6 = arith.constant 0 : index
    %c0_7 = arith.constant 0 : index
    %13 = memref.load %arg3[%c0_6, %c0_7] : memref<1x1xf32, #tpu.memory_space<smem>>
    memref.store %12, %arg3[%c0_6, %c0_7] : memref<1x1xf32, #tpu.memory_space<smem>>
    return
  }
  func.func @transform_0(%arg0: i32) -> (i32, i32) {
    %c0_i32 = arith.constant 0 : i32
    %c0_i32_0 = arith.constant 0 : i32
    return %arg0, %c0_i32 : i32, i32
  }
  func.func @transform_1(%arg0: i32) -> (i32, i32) {
    %c0_i32 = arith.constant 0 : i32
    %c0_i32_0 = arith.constant 0 : i32
    return %arg0, %c0_i32 : i32, i32
  }
  func.func @transform_2(%arg0: i32) -> (i32, i32) {
    %c0_i32 = arith.constant 0 : i32
    %c0_i32_0 = arith.constant 0 : i32
    %c0_i32_1 = arith.constant 0 : i32
    return %c0_i32, %c0_i32_0 : i32, i32
  }
}

module attributes {stable_mosaic.version = 11 : i64} {
  func.func @_sse_kernel(%arg0: i32, %arg1: memref<32x128xf32, #tpu.memory_space<vmem>>, %arg2: memref<32x128xf32, #tpu.memory_space<vmem>>, %arg3: memref<1x1xf32, #tpu.memory_space<smem>>) attributes {dimension_semantics = [#tpu.dimension_semantics<arbitrary>], iteration_bounds = array<i64: 1>, scalar_prefetch = 0 : i64, scratch_operands = 0 : i64, tpu.core_type = #tpu.core_type<tc>, window_params = [{transform_indices = @transform_0, window_bounds = array<i64: 32, 128>}, {transform_indices = @transform_1, window_bounds = array<i64: 32, 128>}, {transform_indices = @transform_2, window_bounds = array<i64: 1, 1>}]} {
    %c0_i32 = arith.constant 0 : i32
    %0 = arith.cmpi eq, %arg0, %c0_i32 : i32
    %1 = arith.extui %0 : i1 to i32
    %c0_i32_0 = arith.constant 0 : i32
    %2 = arith.cmpi ne, %1, %c0_i32_0 : i32
    scf.if %2 {
      %cst_8 = arith.constant 0.000000e+00 : f32
      %c0_9 = arith.constant 0 : index
      %c0_10 = arith.constant 0 : index
      %14 = memref.load %arg3[%c0_9, %c0_10] : memref<1x1xf32, #tpu.memory_space<smem>>
      memref.store %cst_8, %arg3[%c0_9, %c0_10] : memref<1x1xf32, #tpu.memory_space<smem>>
    } else {
    }
    %c0 = arith.constant 0 : index
    %c0_1 = arith.constant 0 : index
    %3 = vector.load %arg1[%c0, %c0_1] : memref<32x128xf32, #tpu.memory_space<vmem>>, vector<32x128xf32>
    %c0_2 = arith.constant 0 : index
    %c0_3 = arith.constant 0 : index
    %4 = vector.load %arg2[%c0_2, %c0_3] : memref<32x128xf32, #tpu.memory_space<vmem>>, vector<32x128xf32>
    %5 = arith.subf %3, %4 : vector<32x128xf32>
    %c0_4 = arith.constant 0 : index
    %c0_5 = arith.constant 0 : index
    %6 = memref.load %arg3[%c0_4, %c0_5] : memref<1x1xf32, #tpu.memory_space<smem>>
    %7 = arith.mulf %5, %5 : vector<32x128xf32>
    %8 = vector.shape_cast %7 : vector<32x128xf32> to vector<1x32x128xf32>
    %cst = arith.constant dense<0.000000e+00> : vector<1xf32>
    %9 = vector.multi_reduction <add>, %8, %cst [1, 2] : vector<1x32x128xf32> to vector<1xf32>
    %10 = vector.shape_cast %9 : vector<1xf32> to vector<1x1x1xf32>
    %11 = vector.extract %10[0, 0, 0] : f32 from vector<1x1x1xf32>
    %12 = arith.addf %6, %11 : f32
    %c0_6 = arith.constant 0 : index
    %c0_7 = arith.constant 0 : index
    %13 = memref.load %arg3[%c0_6, %c0_7] : memref<1x1xf32, #tpu.memory_space<smem>>
    memref.store %12, %arg3[%c0_6, %c0_7] : memref<1x1xf32, #tpu.memory_space<smem>>
    return
  }
  func.func @transform_0(%arg0: i32) -> (i32, i32) {
    %c0_i32 = arith.constant 0 : i32
    %c0_i32_0 = arith.constant 0 : i32
    return %arg0, %c0_i32 : i32, i32
  }
  func.func @transform_1(%arg0: i32) -> (i32, i32) {
    %c0_i32 = arith.constant 0 : i32
    %c0_i32_0 = arith.constant 0 : i32
    return %arg0, %c0_i32 : i32, i32
  }
  func.func @transform_2(%arg0: i32) -> (i32, i32) {
    %c0_i32 = arith.constant 0 : i32
    %c0_i32_0 = arith.constant 0 : i32
    %c0_i32_1 = arith.constant 0 : i32
    return %c0_i32, %c0_i32_0 : i32, i32
  }
}

module attributes {stable_mosaic.version = 11 : i64} {
  func.func @_sse_kernel(%arg0: i32, %arg1: memref<128x128xf32, #tpu.memory_space<vmem>>, %arg2: memref<128x128xf32, #tpu.memory_space<vmem>>, %arg3: memref<1x1xf32, #tpu.memory_space<smem>>) attributes {dimension_semantics = [#tpu.dimension_semantics<arbitrary>], iteration_bounds = array<i64: 1>, scalar_prefetch = 0 : i64, scratch_operands = 0 : i64, tpu.core_type = #tpu.core_type<tc>, window_params = [{transform_indices = @transform_0, window_bounds = array<i64: 128, 128>}, {transform_indices = @transform_1, window_bounds = array<i64: 128, 128>}, {transform_indices = @transform_2, window_bounds = array<i64: 1, 1>}]} {
    %c0_i32 = arith.constant 0 : i32
    %0 = arith.cmpi eq, %arg0, %c0_i32 : i32
    %1 = arith.extui %0 : i1 to i32
    %c0_i32_0 = arith.constant 0 : i32
    %2 = arith.cmpi ne, %1, %c0_i32_0 : i32
    scf.if %2 {
      %cst_8 = arith.constant 0.000000e+00 : f32
      %c0_9 = arith.constant 0 : index
      %c0_10 = arith.constant 0 : index
      %14 = memref.load %arg3[%c0_9, %c0_10] : memref<1x1xf32, #tpu.memory_space<smem>>
      memref.store %cst_8, %arg3[%c0_9, %c0_10] : memref<1x1xf32, #tpu.memory_space<smem>>
    } else {
    }
    %c0 = arith.constant 0 : index
    %c0_1 = arith.constant 0 : index
    %3 = vector.load %arg1[%c0, %c0_1] : memref<128x128xf32, #tpu.memory_space<vmem>>, vector<128x128xf32>
    %c0_2 = arith.constant 0 : index
    %c0_3 = arith.constant 0 : index
    %4 = vector.load %arg2[%c0_2, %c0_3] : memref<128x128xf32, #tpu.memory_space<vmem>>, vector<128x128xf32>
    %5 = arith.subf %3, %4 : vector<128x128xf32>
    %c0_4 = arith.constant 0 : index
    %c0_5 = arith.constant 0 : index
    %6 = memref.load %arg3[%c0_4, %c0_5] : memref<1x1xf32, #tpu.memory_space<smem>>
    %7 = arith.mulf %5, %5 : vector<128x128xf32>
    %8 = vector.shape_cast %7 : vector<128x128xf32> to vector<1x128x128xf32>
    %cst = arith.constant dense<0.000000e+00> : vector<1xf32>
    %9 = vector.multi_reduction <add>, %8, %cst [1, 2] : vector<1x128x128xf32> to vector<1xf32>
    %10 = vector.shape_cast %9 : vector<1xf32> to vector<1x1x1xf32>
    %11 = vector.extract %10[0, 0, 0] : f32 from vector<1x1x1xf32>
    %12 = arith.addf %6, %11 : f32
    %c0_6 = arith.constant 0 : index
    %c0_7 = arith.constant 0 : index
    %13 = memref.load %arg3[%c0_6, %c0_7] : memref<1x1xf32, #tpu.memory_space<smem>>
    memref.store %12, %arg3[%c0_6, %c0_7] : memref<1x1xf32, #tpu.memory_space<smem>>
    return
  }
  func.func @transform_0(%arg0: i32) -> (i32, i32) {
    %c0_i32 = arith.constant 0 : i32
    %c0_i32_0 = arith.constant 0 : i32
    return %arg0, %c0_i32 : i32, i32
  }
  func.func @transform_1(%arg0: i32) -> (i32, i32) {
    %c0_i32 = arith.constant 0 : i32
    %c0_i32_0 = arith.constant 0 : i32
    return %arg0, %c0_i32 : i32, i32
  }
  func.func @transform_2(%arg0: i32) -> (i32, i32) {
    %c0_i32 = arith.constant 0 : i32
    %c0_i32_0 = arith.constant 0 : i32
    %c0_i32_1 = arith.constant 0 : i32
    return %c0_i32, %c0_i32_0 : i32, i32
  }
}

module attributes {stable_mosaic.version = 11 : i64} {
  func.func @_sse_kernel(%arg0: i32, %arg1: memref<256x128xf32, #tpu.memory_space<vmem>>, %arg2: memref<256x128xf32, #tpu.memory_space<vmem>>, %arg3: memref<1x1xf32, #tpu.memory_space<smem>>) attributes {dimension_semantics = [#tpu.dimension_semantics<arbitrary>], iteration_bounds = array<i64: 1>, scalar_prefetch = 0 : i64, scratch_operands = 0 : i64, tpu.core_type = #tpu.core_type<tc>, window_params = [{transform_indices = @transform_0, window_bounds = array<i64: 256, 128>}, {transform_indices = @transform_1, window_bounds = array<i64: 256, 128>}, {transform_indices = @transform_2, window_bounds = array<i64: 1, 1>}]} {
    %c0_i32 = arith.constant 0 : i32
    %0 = arith.cmpi eq, %arg0, %c0_i32 : i32
    %1 = arith.extui %0 : i1 to i32
    %c0_i32_0 = arith.constant 0 : i32
    %2 = arith.cmpi ne, %1, %c0_i32_0 : i32
    scf.if %2 {
      %cst_8 = arith.constant 0.000000e+00 : f32
      %c0_9 = arith.constant 0 : index
      %c0_10 = arith.constant 0 : index
      %14 = memref.load %arg3[%c0_9, %c0_10] : memref<1x1xf32, #tpu.memory_space<smem>>
      memref.store %cst_8, %arg3[%c0_9, %c0_10] : memref<1x1xf32, #tpu.memory_space<smem>>
    } else {
    }
    %c0 = arith.constant 0 : index
    %c0_1 = arith.constant 0 : index
    %3 = vector.load %arg1[%c0, %c0_1] : memref<256x128xf32, #tpu.memory_space<vmem>>, vector<256x128xf32>
    %c0_2 = arith.constant 0 : index
    %c0_3 = arith.constant 0 : index
    %4 = vector.load %arg2[%c0_2, %c0_3] : memref<256x128xf32, #tpu.memory_space<vmem>>, vector<256x128xf32>
    %5 = arith.subf %3, %4 : vector<256x128xf32>
    %c0_4 = arith.constant 0 : index
    %c0_5 = arith.constant 0 : index
    %6 = memref.load %arg3[%c0_4, %c0_5] : memref<1x1xf32, #tpu.memory_space<smem>>
    %7 = arith.mulf %5, %5 : vector<256x128xf32>
    %8 = vector.shape_cast %7 : vector<256x128xf32> to vector<1x256x128xf32>
    %cst = arith.constant dense<0.000000e+00> : vector<1xf32>
    %9 = vector.multi_reduction <add>, %8, %cst [1, 2] : vector<1x256x128xf32> to vector<1xf32>
    %10 = vector.shape_cast %9 : vector<1xf32> to vector<1x1x1xf32>
    %11 = vector.extract %10[0, 0, 0] : f32 from vector<1x1x1xf32>
    %12 = arith.addf %6, %11 : f32
    %c0_6 = arith.constant 0 : index
    %c0_7 = arith.constant 0 : index
    %13 = memref.load %arg3[%c0_6, %c0_7] : memref<1x1xf32, #tpu.memory_space<smem>>
    memref.store %12, %arg3[%c0_6, %c0_7] : memref<1x1xf32, #tpu.memory_space<smem>>
    return
  }
  func.func @transform_0(%arg0: i32) -> (i32, i32) {
    %c0_i32 = arith.constant 0 : i32
    %c0_i32_0 = arith.constant 0 : i32
    return %arg0, %c0_i32 : i32, i32
  }
  func.func @transform_1(%arg0: i32) -> (i32, i32) {
    %c0_i32 = arith.constant 0 : i32
    %c0_i32_0 = arith.constant 0 : i32
    return %arg0, %c0_i32 : i32, i32
  }
  func.func @transform_2(%arg0: i32) -> (i32, i32) {
    %c0_i32 = arith.constant 0 : i32
    %c0_i32_0 = arith.constant 0 : i32
    %c0_i32_1 = arith.constant 0 : i32
    return %c0_i32, %c0_i32_0 : i32, i32
  }
}

module attributes {stable_mosaic.version = 11 : i64} {
  func.func @_sse_kernel(%arg0: i32, %arg1: memref<12x128xf32, #tpu.memory_space<vmem>>, %arg2: memref<12x128xf32, #tpu.memory_space<vmem>>, %arg3: memref<1x1xf32, #tpu.memory_space<smem>>) attributes {dimension_semantics = [#tpu.dimension_semantics<arbitrary>], iteration_bounds = array<i64: 1>, scalar_prefetch = 0 : i64, scratch_operands = 0 : i64, tpu.core_type = #tpu.core_type<tc>, window_params = [{transform_indices = @transform_0, window_bounds = array<i64: 12, 128>}, {transform_indices = @transform_1, window_bounds = array<i64: 12, 128>}, {transform_indices = @transform_2, window_bounds = array<i64: 1, 1>}]} {
    %c0_i32 = arith.constant 0 : i32
    %0 = arith.cmpi eq, %arg0, %c0_i32 : i32
    %1 = arith.extui %0 : i1 to i32
    %c0_i32_0 = arith.constant 0 : i32
    %2 = arith.cmpi ne, %1, %c0_i32_0 : i32
    scf.if %2 {
      %cst_8 = arith.constant 0.000000e+00 : f32
      %c0_9 = arith.constant 0 : index
      %c0_10 = arith.constant 0 : index
      %14 = memref.load %arg3[%c0_9, %c0_10] : memref<1x1xf32, #tpu.memory_space<smem>>
      memref.store %cst_8, %arg3[%c0_9, %c0_10] : memref<1x1xf32, #tpu.memory_space<smem>>
    } else {
    }
    %c0 = arith.constant 0 : index
    %c0_1 = arith.constant 0 : index
    %3 = vector.load %arg1[%c0, %c0_1] : memref<12x128xf32, #tpu.memory_space<vmem>>, vector<12x128xf32>
    %c0_2 = arith.constant 0 : index
    %c0_3 = arith.constant 0 : index
    %4 = vector.load %arg2[%c0_2, %c0_3] : memref<12x128xf32, #tpu.memory_space<vmem>>, vector<12x128xf32>
    %5 = arith.subf %3, %4 : vector<12x128xf32>
    %c0_4 = arith.constant 0 : index
    %c0_5 = arith.constant 0 : index
    %6 = memref.load %arg3[%c0_4, %c0_5] : memref<1x1xf32, #tpu.memory_space<smem>>
    %7 = arith.mulf %5, %5 : vector<12x128xf32>
    %8 = vector.shape_cast %7 : vector<12x128xf32> to vector<1x12x128xf32>
    %cst = arith.constant dense<0.000000e+00> : vector<1xf32>
    %9 = vector.multi_reduction <add>, %8, %cst [1, 2] : vector<1x12x128xf32> to vector<1xf32>
    %10 = vector.shape_cast %9 : vector<1xf32> to vector<1x1x1xf32>
    %11 = vector.extract %10[0, 0, 0] : f32 from vector<1x1x1xf32>
    %12 = arith.addf %6, %11 : f32
    %c0_6 = arith.constant 0 : index
    %c0_7 = arith.constant 0 : index
    %13 = memref.load %arg3[%c0_6, %c0_7] : memref<1x1xf32, #tpu.memory_space<smem>>
    memref.store %12, %arg3[%c0_6, %c0_7] : memref<1x1xf32, #tpu.memory_space<smem>>
    return
  }
  func.func @transform_0(%arg0: i32) -> (i32, i32) {
    %c0_i32 = arith.constant 0 : i32
    %c0_i32_0 = arith.constant 0 : i32
    return %arg0, %c0_i32 : i32, i32
  }
  func.func @transform_1(%arg0: i32) -> (i32, i32) {
    %c0_i32 = arith.constant 0 : i32
    %c0_i32_0 = arith.constant 0 : i32
    return %arg0, %c0_i32 : i32, i32
  }
  func.func @transform_2(%arg0: i32) -> (i32, i32) {
    %c0_i32 = arith.constant 0 : i32
    %c0_i32_0 = arith.constant 0 : i32
    %c0_i32_1 = arith.constant 0 : i32
    return %c0_i32, %c0_i32_0 : i32, i32
  }
}

</mosaic_0001>

<bundles_post_ra>
// kernel: vgg_mse.15
= control target key start
LH: loop header
LB: loop body
LE: loop exit
PB: predicated region body
PF: predicated region fallthrough
CT: control target
= control target key end

     0   :  { %s1018_s12 = smov 0   ;;  %s1020_s13 = smov 0   ;;  %s1335_s0 = inlined_call_operand.vmem [shape: f32[1024,27], index: 0, kind: input, shape index: {}]   ;;  %s1336_s1 = inlined_call_operand.vmem [shape: f32[27,64], index: 1, kind: input, shape index: {}]   ;;  %s1337_s2 = inlined_call_operand.vmem [shape: f32[1,64], index: 2, kind: input, shape index: {}]   ;;  %s1338_s3 = inlined_call_operand.vmem [shape: f32[1024,64], index: 3, kind: output, shape index: {}]  }
   0x1   :  { %s1022_s14 = smov 0  }
   0x2 LB: > { %s32_s15 = sadd.s32 1, %s991_s13  ;;  %p895_p0 = scmp.ge.s32.totalorder %s995_s14, 1  ;;  %s995_s14 = sphi %s1022_s14, %s13_s14   ;;  %s991_s13 = sphi %s1020_s13, %s1340_s13   ;;  %s987_s12 = sphi %s1018_s12, %s1339_s12  }
   0x3   : > { %p34_p1 = scmp.ge.s32.totalorder %s32_s15, 4  ;;  %p188_p2 = scmp.lt.s32.totalorder %s995_s14, 5 }
   0x5   : > { %s1342_s15 = smov (%p34_p1, %s32_s15), 0  ;;  %p189_p3 = pnand %p895_p0, %p188_p2 }
   0x6   : > { %s896_s20 = sshll.u32 (!%p189_p3), %s987_s12, 5 }
   0x7   : > { %192 = sbr.rel (%p189_p3) target bundleno = 226 (0xe2), region = 32  ;;  %p230_p4 = scmp.lt.s32.totalorder (!%p189_p3), %s896_s20, 127 }
   0xc   : > { %v363_v0 = vld [vmem:[%s1336_s1 + $0x18] sm:$0x7]  ;;  %vm461_vm0 = vcmask 1042432   ;;  %v362_v1 = vld [vmem:[%s1336_s1 + $0x10] sm:$0xff]  ;;  %v361_v2 = vld [vmem:[%s1336_s1 + $0x8] sm:$0xff]  ;;  %s1344_s20 = smov (!%p230_p4, %s896_s20), 127 }
   0xd   : > { %936 = vmatpush.msk.msra.mxu2 %vm461_vm0, %v363_v0  ;;  %937 = vmatpush.msk.msra.mxu3 %vm461_vm0, %v363_v0  ;;  %v360_v3 = vld [vmem:[%s1336_s1] sm:$0xff]  ;;  %s897_s25 = sshll.u32 %s1344_s20, 3  ;;  %vm364_vm1 = vcmask 220160   ;;  %vm263_vm2 = vcmask 523264   ;;  %v997_v20 = vmov 0.0  }
   0xe   : > { %900 = vmatpush.msk.msra.mxu0 %vm461_vm0, %v363_v0  ;;  %935 = vmatpush.msk.msra.mxu1 %vm461_vm0, %v363_v0  ;;  %s1056_s28 = scalar_lea.vmem %s1335_s0, %s897_s25  ;;  %264 = vst.msk [vmem:[#allocation2] sm:$0xff] %vm263_vm2, %v997_v20  ;;  %v1191_v51 = vld [vmem:[%s1337_s2] ss:$0 sm:$0xff]  ;;  %s1202_s6 = scalar_lea.vmem %s1338_s3, %s897_s25 }
   0xf   : > { %939 = vmatpush.msra.mxu2 %v362_v1  ;;  %940 = vmatpush.msra.mxu3 %v362_v1  ;;  %v344_v4 = vld [vmem:[%s1056_s28 + $0x80] sm:$0xff]  ;;  %v345_v8 = vld [vmem:[%s1056_s28 + $0x88] sm:$0xff]  ;;  %v346_v12 = vld [vmem:[%s1056_s28 + $0x90] sm:$0xff]  ;;  %265 = vst.msk [vmem:[#allocation2 + $0x8] sm:$0xff] %vm263_vm2, %v997_v20 }
  0x10   : > { %478 = vmatpush.msra.mxu0 %v362_v1  ;;  %938 = vmatpush.msra.mxu1 %v362_v1  ;;  %v352_v5 = vld [vmem:[%s1056_s28 + $0xc0] sm:$0xff]  ;;  %v353_v9 = vld [vmem:[%s1056_s28 + $0xc8] sm:$0xff]  ;;  %v354_v13 = vld [vmem:[%s1056_s28 + $0xd0] sm:$0xff]  ;;  %266 = vst.msk [vmem:[#allocation2 + $0x10] sm:$0xff] %vm263_vm2, %v997_v20 }
  0x11   : > { %942 = vmatpush.msra.mxu2 %v361_v2  ;;  %943 = vmatpush.msra.mxu3 %v361_v2  ;;  %v328_v6 = vld [vmem:[%s1056_s28] sm:$0xff]  ;;  %v329_v10 = vld [vmem:[%s1056_s28 + $0x8] sm:$0xff]  ;;  %v330_v14 = vld [vmem:[%s1056_s28 + $0x10] sm:$0xff]  ;;  %267 = vst.msk [vmem:[#allocation2 + $0x18] sm:$0xff] %vm263_vm2, %v997_v20 }
  0x12   : > { %479 = vmatpush.msra.mxu0 %v361_v2  ;;  %941 = vmatpush.msra.mxu1 %v361_v2  ;;  %v336_v7 = vld [vmem:[%s1056_s28 + $0x40] sm:$0xff]  ;;  %v337_v11 = vld [vmem:[%s1056_s28 + $0x48] sm:$0xff]  ;;  %v338_v15 = vld [vmem:[%s1056_s28 + $0x50] sm:$0xff]  ;;  %268 = vst.msk [vmem:[#allocation2 + $0x20] sm:$0xff] %vm263_vm2, %v997_v20 }
  0x13   : > { %945 = vmatpush.msra.mxu2 %v360_v3  ;;  %946 = vmatpush.msra.mxu3 %v360_v3  ;;  %v347_v16 = vld [vmem:[%s1056_s28 + $0x98] sm:$0xff]  ;;  %v348_v21 = vld [vmem:[%s1056_s28 + $0xa0] sm:$0xff]  ;;  %269 = vst.msk [vmem:[#allocation2 + $0x28] sm:$0xff] %vm263_vm2, %v997_v20  ;;  %v349_v25 = vld [vmem:[%s1056_s28 + $0xa8] sm:$0xff] }
  0x14   : > { %917 = vmatmul.msk.f32.vlgmr.msra.gmra.mxu2 %vm364_vm1, %v344_v4  ;;  %925 = vmatmul.msk.f32.vlgmr.msra.gmra.mxu3 %vm364_vm1, %v352_v5  ;;  %v355_v17 = vld [vmem:[%s1056_s28 + $0xd8] sm:$0xff]  ;;  %v356_v22 = vld [vmem:[%s1056_s28 + $0xe0] sm:$0xff]  ;;  %270 = vst.msk [vmem:[#allocation2 + $0x30] sm:$0xff] %vm263_vm2, %v997_v20  ;;  %v357_v26 = vld [vmem:[%s1056_s28 + $0xe8] sm:$0xff] }
  0x15   : > { %480 = vmatpush.msra.mxu0 %v360_v3  ;;  %944 = vmatpush.msra.mxu1 %v360_v3  ;;  %v331_v18 = vld [vmem:[%s1056_s28 + $0x18] sm:$0xff]  ;;  %v332_v23 = vld [vmem:[%s1056_s28 + $0x20] sm:$0xff]  ;;  %271 = vst.msk [vmem:[#allocation2 + $0x38] sm:$0xff] %vm263_vm2, %v997_v20  ;;  %v333_v27 = vld [vmem:[%s1056_s28 + $0x28] sm:$0xff] }
  0x16   : > { %901 = vmatmul.msk.f32.vlgmr.msra.gmra.mxu0 %vm364_vm1, %v328_v6  ;;  %909 = vmatmul.msk.f32.vlgmr.msra.gmra.mxu1 %vm364_vm1, %v336_v7  ;;  %v339_v19 = vld [vmem:[%s1056_s28 + $0x58] sm:$0xff]  ;;  %v340_v24 = vld [vmem:[%s1056_s28 + $0x60] sm:$0xff]  ;;  %272 = vst.msk [vmem:[#allocation2 + $0x40] sm:$0xff] %vm263_vm2, %v997_v20  ;;  %v341_v28 = vld [vmem:[%s1056_s28 + $0x68] sm:$0xff] }
  0x17   : > { %273 = vst.msk [vmem:[#allocation2 + $0x48] sm:$0xff] %vm263_vm2, %v997_v20  ;;  %v350_v29 = vld [vmem:[%s1056_s28 + $0xb0] sm:$0xff]  ;;  %v351_v33 = vld [vmem:[%s1056_s28 + $0xb8] sm:$0xff]  ;;  %v296_v37 = vld [vmem:[#allocation2] sm:$0xff] }
  0x18   : > { %274 = vst.msk [vmem:[#allocation2 + $0x50] sm:$0xff] %vm263_vm2, %v997_v20  ;;  %v358_v30 = vld [vmem:[%s1056_s28 + $0xf0] sm:$0xff]  ;;  %v359_v34 = vld [vmem:[%s1056_s28 + $0xf8] sm:$0xff]  ;;  %v297_v49 = vld [vmem:[#allocation2 + $0x8] sm:$0xff] }
  0x19   : > { %275 = vst.msk [vmem:[#allocation2 + $0x58] sm:$0xff] %vm263_vm2, %v997_v20  ;;  %v334_v31 = vld [vmem:[%s1056_s28 + $0x30] sm:$0xff]  ;;  %v335_v35 = vld [vmem:[%s1056_s28 + $0x38] sm:$0xff] }
  0x1a   : > { %276 = vst.msk [vmem:[#allocation2 + $0x60] sm:$0xff] %vm263_vm2, %v997_v20  ;;  %v342_v32 = vld [vmem:[%s1056_s28 + $0x70] sm:$0xff]  ;;  %v343_v36 = vld [vmem:[%s1056_s28 + $0x78] sm:$0xff] }
  0x1b   : > { %277 = vst.msk [vmem:[#allocation2 + $0x68] sm:$0xff] %vm263_vm2, %v997_v20  ;;  %v298_v5 = vld [vmem:[#allocation2 + $0x10] sm:$0xff] }
  0x1c   : > { %918 = vmatmul.msk.f32.gmra.mxu2 %vm364_vm1, %v345_v8  ;;  %926 = vmatmul.msk.f32.gmra.mxu3 %vm364_vm1, %v353_v9  ;;  %278 = vst.msk [vmem:[#allocation2 + $0x70] sm:$0xff] %vm263_vm2, %v997_v20 }
  0x1d   : > { %279 = vst.msk [vmem:[#allocation2 + $0x78] sm:$0xff] %vm263_vm2, %v997_v20  ;;  %v304_v38 = vld [vmem:[#allocation2 + $0x40] sm:$0xff] }
  0x1e   : > { %902 = vmatmul.msk.f32.gmra.mxu0 %vm364_vm1, %v329_v10  ;;  %910 = vmatmul.msk.f32.gmra.mxu1 %vm364_vm1, %v337_v11  ;;  %280 = vst.msk [vmem:[#allocation2 + $0x80] sm:$0xff] %vm263_vm2, %v997_v20  ;;  %v305_v50 = vld [vmem:[#allocation2 + $0x48] sm:$0xff] }
  0x1f   : > { %281 = vst.msk [vmem:[#allocation2 + $0x88] sm:$0xff] %vm263_vm2, %v997_v20  ;;  %v306_v8 = vld [vmem:[#allocation2 + $0x50] sm:$0xff] }
  0x20   : > { %282 = vst.msk [vmem:[#allocation2 + $0x90] sm:$0xff] %vm263_vm2, %v997_v20 }
  0x21   : > { %283 = vst.msk [vmem:[#allocation2 + $0x98] sm:$0xff] %vm263_vm2, %v997_v20 }
  0x22   : > { %284 = vst.msk [vmem:[#allocation2 + $0xa0] sm:$0xff] %vm263_vm2, %v997_v20 }
  0x23   : > { %285 = vst.msk [vmem:[#allocation2 + $0xa8] sm:$0xff] %vm263_vm2, %v997_v20 }
  0x24   : > { %919 = vmatmul.msk.f32.gmra.mxu2 %vm364_vm1, %v346_v12  ;;  %927 = vmatmul.msk.f32.gmra.mxu3 %vm364_vm1, %v354_v13  ;;  %286 = vst.msk [vmem:[#allocation2 + $0xb0] sm:$0xff] %vm263_vm2, %v997_v20 }
  0x25   : > { %287 = vst.msk [vmem:[#allocation2 + $0xb8] sm:$0xff] %vm263_vm2, %v997_v20  ;;  %v312_v43 = vld [vmem:[#allocation2 + $0x80] sm:$0xff] }
  0x26   : > { %903 = vmatmul.msk.f32.gmra.mxu0 %vm364_vm1, %v330_v14  ;;  %911 = vmatmul.msk.f32.gmra.mxu1 %vm364_vm1, %v338_v15  ;;  %288 = vst.msk [vmem:[#allocation2 + $0xc0] sm:$0xff] %vm263_vm2, %v997_v20  ;;  %v313_v57 = vld [vmem:[#allocation2 + $0x88] sm:$0xff] }
  0x27   : > { %289 = vst.msk [vmem:[#allocation2 + $0xc8] sm:$0xff] %vm263_vm2, %v997_v20 }
  0x28   : > { %290 = vst.msk [vmem:[#allocation2 + $0xd0] sm:$0xff] %vm263_vm2, %v997_v20 }
  0x29   : > { %291 = vst.msk [vmem:[#allocation2 + $0xd8] sm:$0xff] %vm263_vm2, %v997_v20 }
  0x2a   : > { %292 = vst.msk [vmem:[#allocation2 + $0xe0] sm:$0xff] %vm263_vm2, %v997_v20 }
  0x2b   : > { %293 = vst.msk [vmem:[#allocation2 + $0xe8] sm:$0xff] %vm263_vm2, %v997_v20 }
  0x2c   : > { %920 = vmatmul.msk.f32.gmra.mxu2 %vm364_vm1, %v347_v16  ;;  %928 = vmatmul.msk.f32.gmra.mxu3 %vm364_vm1, %v355_v17  ;;  %294 = vst.msk [vmem:[#allocation2 + $0xf0] sm:$0xff] %vm263_vm2, %v997_v20  ;;  %v314_v17 = vld [vmem:[#allocation2 + $0x90] sm:$0xff] }
  0x2d   : > { %295 = vst.msk [vmem:[#allocation2 + $0xf8] sm:$0xff] %vm263_vm2, %v997_v20  ;;  %v320_v44 = vld [vmem:[#allocation2 + $0xc0] sm:$0xff] }
  0x2e   : > { %904 = vmatmul.msk.f32.gmra.mxu0 %vm364_vm1, %v331_v18  ;;  %912 = vmatmul.msk.f32.gmra.mxu1 %vm364_vm1, %v339_v19  ;;  %v321_v60 = vld [vmem:[#allocation2 + $0xc8] sm:$0xff] }
  0x2f   : > { %v322_v20 = vld [vmem:[#allocation2 + $0xd0] sm:$0xff] }
  0x34   : > { %921 = vmatmul.msk.f32.gmra.mxu2 %vm364_vm1, %v348_v21  ;;  %929 = vmatmul.msk.f32.gmra.mxu3 %vm364_vm1, %v356_v22 }
  0x36   : > { %905 = vmatmul.msk.f32.gmra.mxu0 %vm364_vm1, %v332_v23  ;;  %913 = vmatmul.msk.f32.gmra.mxu1 %vm364_vm1, %v340_v24 }
  0x3c   : > { %922 = vmatmul.msk.f32.gmra.mxu2 %vm364_vm1, %v349_v25  ;;  %930 = vmatmul.msk.f32.gmra.mxu3 %vm364_vm1, %v357_v26 }
  0x3e   : > { %906 = vmatmul.msk.f32.gmra.mxu0 %vm364_vm1, %v333_v27  ;;  %914 = vmatmul.msk.f32.gmra.mxu1 %vm364_vm1, %v341_v28  ;;  %v299_v28 = vld [vmem:[#allocation2 + $0x18] sm:$0xff] }
  0x44   : > { %923 = vmatmul.msk.f32.gmra.mxu2 %vm364_vm1, %v350_v29  ;;  %931 = vmatmul.msk.f32.gmra.mxu3 %vm364_vm1, %v358_v30  ;;  %v307_v29 = vld [vmem:[#allocation2 + $0x58] sm:$0xff] }
  0x46   : > { %907 = vmatmul.msk.f32.gmra.mxu0 %vm364_vm1, %v334_v31  ;;  %915 = vmatmul.msk.f32.gmra.mxu1 %vm364_vm1, %v342_v32 }
  0x4c   : > { %924 = vmatmul.msk.f32.gmra.mxu2 %vm364_vm1, %v351_v33  ;;  %932 = vmatmul.msk.f32.gmra.mxu3 %vm364_vm1, %v359_v34 }
  0x4e   : > { %908 = vmatmul.msk.f32.gmra.mxu0 %vm364_vm1, %v335_v35  ;;  %916 = vmatmul.msk.f32.gmra.mxu1 %vm364_vm1, %v343_v36 }
  0x93   : > { %v482_v39 = vpop.f32.mrf.mxu0  ;;  %v506_v40 = vpop.f32.mrf.mxu1 }
  0x94   : > { %v578_v41 = vadd.f32 %v482_v39, %v296_v37  ;;  %v586_v42 = vadd.f32 %v506_v40, %v304_v38  ;;  %v315_v38 = vld [vmem:[#allocation2 + $0x98] sm:$0xff] }
  0x95   : > { %v323_v39 = vld [vmem:[#allocation2 + $0xd8] sm:$0xff] }
  0x96   : > { %611 = vst.msk [vmem:[#allocation2] sm:$0xff] %vm263_vm2, %v578_v41 }
  0x97   : > { %619 = vst.msk [vmem:[#allocation2 + $0x40] sm:$0xff] %vm263_vm2, %v586_v42  ;;  %v530_v45 = vpop.f32.mrf.mxu2  ;;  %v554_v46 = vpop.f32.mrf.mxu3 }
  0x98   : > { %v594_v47 = vadd.f32 %v530_v45, %v312_v43  ;;  %v602_v48 = vadd.f32 %v554_v46, %v320_v44 }
  0x9a   : > { %627 = vst.msk [vmem:[#allocation2 + $0x80] sm:$0xff] %vm263_vm2, %v594_v47 }
  0x9b   : > { %635 = vst.msk [vmem:[#allocation2 + $0xc0] sm:$0xff] %vm263_vm2, %v602_v48  ;;  %v485_v52 = vpop.f32.mrf.mxu0  ;;  %v509_v53 = vpop.f32.mrf.mxu1 }
  0x9c   : > { %v579_v54 = vadd.f32 %v485_v52, %v297_v49  ;;  %v587_v55 = vadd.f32 %v509_v53, %v305_v50  ;;  %v300_v50 = vld [vmem:[#allocation2 + $0x20] sm:$0xff] }
  0x9d   : > { %v646_v56 = vld [vmem:[#allocation2] sm:$0xff] }
  0x9e   : > { %v682_v58 = vadd.f32 %v1191_v51, %v646_v56  ;;  %v654_v59 = vld [vmem:[#allocation2 + $0x40] sm:$0xff]  ;;  %612 = vst.msk [vmem:[#allocation2 + $0x8] sm:$0xff] %vm263_vm2, %v579_v54 }
  0x9f   : > { %v690_v61 = vadd.f32 %v1191_v51, %v654_v59  ;;  %620 = vst.msk [vmem:[#allocation2 + $0x48] sm:$0xff] %vm263_vm2, %v587_v55  ;;  %v533_v62 = vpop.f32.mrf.mxu2  ;;  %v557_v63 = vpop.f32.mrf.mxu3  ;;  %v308_v52 = vld [vmem:[#allocation2 + $0x60] sm:$0xff] }
  0xa0   : > { %v714_v0 = vmax.f32 %v682_v58, 0.0  ;;  %v595_v1 = vadd.f32 %v533_v62, %v313_v57  ;;  %v603_v4 = vadd.f32 %v557_v63, %v321_v60 }
  0xa1   : > { %v722_v2 = vmax.f32 %v690_v61, 0.0  ;;  %v662_v3 = vld [vmem:[#allocation2 + $0x80] sm:$0xff] }
  0xa2   : > { %746 = vst.msk [vmem:[%s1202_s6] sm:$0xff] %vm263_vm2, %v714_v0  ;;  %v698_v6 = vadd.f32 %v1191_v51, %v662_v3  ;;  %v670_v7 = vld [vmem:[#allocation2 + $0xc0] sm:$0xff] }
  0xa3   : > { %754 = vst.msk [vmem:[%s1202_s6 + $0x40] sm:$0xff] %vm263_vm2, %v722_v2  ;;  %v706_v9 = vadd.f32 %v1191_v51, %v670_v7  ;;  %v488_v10 = vpop.f32.mrf.mxu0  ;;  %v512_v11 = vpop.f32.mrf.mxu1  ;;  %v316_v0 = vld [vmem:[#allocation2 + $0xa0] sm:$0xff] }
  0xa4   : > { %v730_v12 = vmax.f32 %v698_v6, 0.0  ;;  %628 = vst.msk [vmem:[#allocation2 + $0x88] sm:$0xff] %vm263_vm2, %v595_v1  ;;  %v580_v13 = vadd.f32 %v488_v10, %v298_v5  ;;  %v588_v16 = vadd.f32 %v512_v11, %v306_v8 }
  0xa5   : > { %v738_v14 = vmax.f32 %v706_v9, 0.0  ;;  %v647_v15 = vld [vmem:[#allocation2 + $0x8] sm:$0xff]  ;;  %636 = vst.msk [vmem:[#allocation2 + $0xc8] sm:$0xff] %vm263_vm2, %v603_v4  ;;  %v324_v4 = vld [vmem:[#allocation2 + $0xe0] sm:$0xff] }
  0xa6   : > { %762 = vst.msk [vmem:[%s1202_s6 + $0x80] sm:$0xff] %vm263_vm2, %v730_v12  ;;  %v683_v18 = vadd.f32 %v1191_v51, %v647_v15  ;;  %v655_v19 = vld [vmem:[#allocation2 + $0x48] sm:$0xff] }
  0xa7   : > { %770 = vst.msk [vmem:[%s1202_s6 + $0xc0] sm:$0xff] %vm263_vm2, %v738_v14  ;;  %v691_v21 = vadd.f32 %v1191_v51, %v655_v19  ;;  %v536_v22 = vpop.f32.mrf.mxu2  ;;  %v560_v23 = vpop.f32.mrf.mxu3  ;;  %v301_v14 = vld [vmem:[#allocation2 + $0x28] sm:$0xff] }
  0xa8   : > { %v715_v24 = vmax.f32 %v683_v18, 0.0  ;;  %613 = vst.msk [vmem:[#allocation2 + $0x10] sm:$0xff] %vm263_vm2, %v580_v13  ;;  %v596_v25 = vadd.f32 %v536_v22, %v314_v17  ;;  %v604_v27 = vadd.f32 %v560_v23, %v322_v20  ;;  %v309_v17 = vld [vmem:[#allocation2 + $0x68] sm:$0xff] }
  0xa9   : > { %v723_v26 = vmax.f32 %v691_v21, 0.0  ;;  %621 = vst.msk [vmem:[#allocation2 + $0x50] sm:$0xff] %vm263_vm2, %v588_v16 }
  0xaa   : > { %747 = vst.msk [vmem:[%s1202_s6 + $0x8] sm:$0xff] %vm263_vm2, %v715_v24 }
  0xab   : > { %755 = vst.msk [vmem:[%s1202_s6 + $0x48] sm:$0xff] %vm263_vm2, %v723_v26  ;;  %v663_v30 = vld [vmem:[#allocation2 + $0x88] sm:$0xff]  ;;  %v491_v31 = vpop.f32.mrf.mxu0  ;;  %v515_v32 = vpop.f32.mrf.mxu1 }
  0xac   : > { %v699_v33 = vadd.f32 %v1191_v51, %v663_v30  ;;  %v671_v34 = vld [vmem:[#allocation2 + $0xc8] sm:$0xff]  ;;  %629 = vst.msk [vmem:[#allocation2 + $0x90] sm:$0xff] %vm263_vm2, %v596_v25  ;;  %v581_v35 = vadd.f32 %v491_v31, %v299_v28  ;;  %v589_v36 = vadd.f32 %v515_v32, %v307_v29 }
  0xad   : > { %v707_v37 = vadd.f32 %v1191_v51, %v671_v34  ;;  %637 = vst.msk [vmem:[#allocation2 + $0xd0] sm:$0xff] %vm263_vm2, %v604_v27  ;;  %v317_v26 = vld [vmem:[#allocation2 + $0xa8] sm:$0xff] }
  0xae   : > { %v731_v40 = vmax.f32 %v699_v33, 0.0  ;;  %614 = vst.msk [vmem:[#allocation2 + $0x18] sm:$0xff] %vm263_vm2, %v581_v35  ;;  %v325_v29 = vld [vmem:[#allocation2 + $0xe8] sm:$0xff] }
  0xaf   : > { %v739_v41 = vmax.f32 %v707_v37, 0.0  ;;  %v648_v42 = vld [vmem:[#allocation2 + $0x10] sm:$0xff]  ;;  %622 = vst.msk [vmem:[#allocation2 + $0x58] sm:$0xff] %vm263_vm2, %v589_v36  ;;  %v539_v43 = vpop.f32.mrf.mxu2  ;;  %v563_v44 = vpop.f32.mrf.mxu3 }
  0xb0   : > { %763 = vst.msk [vmem:[%s1202_s6 + $0x88] sm:$0xff] %vm263_vm2, %v731_v40  ;;  %v684_v45 = vadd.f32 %v1191_v51, %v648_v42  ;;  %v656_v46 = vld [vmem:[#allocation2 + $0x50] sm:$0xff]  ;;  %v597_v47 = vadd.f32 %v539_v43, %v315_v38  ;;  %v605_v48 = vadd.f32 %v563_v44, %v323_v39 }
  0xb1   : > { %771 = vst.msk [vmem:[%s1202_s6 + $0xc8] sm:$0xff] %vm263_vm2, %v739_v41  ;;  %v692_v49 = vadd.f32 %v1191_v51, %v656_v46  ;;  %v302_v37 = vld [vmem:[#allocation2 + $0x30] sm:$0xff] }
  0xb2   : > { %v716_v53 = vmax.f32 %v684_v45, 0.0  ;;  %630 = vst.msk [vmem:[#allocation2 + $0x98] sm:$0xff] %vm263_vm2, %v597_v47  ;;  %v310_v38 = vld [vmem:[#allocation2 + $0x70] sm:$0xff] }
  0xb3   : > { %v724_v54 = vmax.f32 %v692_v49, 0.0  ;;  %v664_v55 = vld [vmem:[#allocation2 + $0x90] sm:$0xff]  ;;  %638 = vst.msk [vmem:[#allocation2 + $0xd8] sm:$0xff] %vm263_vm2, %v605_v48  ;;  %v494_v56 = vpop.f32.mrf.mxu0  ;;  %v518_v57 = vpop.f32.mrf.mxu1 }
  0xb4   : > { %748 = vst.msk [vmem:[%s1202_s6 + $0x10] sm:$0xff] %vm263_vm2, %v716_v53  ;;  %v700_v58 = vadd.f32 %v1191_v51, %v664_v55  ;;  %v672_v59 = vld [vmem:[#allocation2 + $0xd0] sm:$0xff]  ;;  %v582_v60 = vadd.f32 %v494_v56, %v300_v50  ;;  %v590_v61 = vadd.f32 %v518_v57, %v308_v52 }
  0xb5   : > { %756 = vst.msk [vmem:[%s1202_s6 + $0x50] sm:$0xff] %vm263_vm2, %v724_v54  ;;  %v708_v62 = vadd.f32 %v1191_v51, %v672_v59  ;;  %v649_v63 = vld [vmem:[#allocation2 + $0x18] sm:$0xff]  ;;  %v318_v47 = vld [vmem:[#allocation2 + $0xb0] sm:$0xff] }
  0xb6   : > { %v732_v1 = vmax.f32 %v700_v58, 0.0  ;;  %v685_v2 = vadd.f32 %v1191_v51, %v649_v63  ;;  %v657_v3 = vld [vmem:[#allocation2 + $0x58] sm:$0xff]  ;;  %615 = vst.msk [vmem:[#allocation2 + $0x20] sm:$0xff] %vm263_vm2, %v582_v60  ;;  %v326_v48 = vld [vmem:[#allocation2 + $0xf0] sm:$0xff] }
  0xb7   : > { %v740_v5 = vmax.f32 %v708_v62, 0.0  ;;  %v693_v6 = vadd.f32 %v1191_v51, %v657_v3  ;;  %623 = vst.msk [vmem:[#allocation2 + $0x60] sm:$0xff] %vm263_vm2, %v590_v61  ;;  %v542_v7 = vpop.f32.mrf.mxu2  ;;  %v566_v8 = vpop.f32.mrf.mxu3  ;;  %v303_v60 = vld [vmem:[#allocation2 + $0x38] sm:$0xff] }
  0xb8   : > { %764 = vst.msk [vmem:[%s1202_s6 + $0x90] sm:$0xff] %vm263_vm2, %v732_v1  ;;  %v717_v9 = vmax.f32 %v685_v2, 0.0  ;;  %v598_v10 = vadd.f32 %v542_v7, %v316_v0  ;;  %v606_v13 = vadd.f32 %v566_v8, %v324_v4  ;;  %v311_v61 = vld [vmem:[#allocation2 + $0x78] sm:$0xff] }
  0xb9   : > { %772 = vst.msk [vmem:[%s1202_s6 + $0xd0] sm:$0xff] %vm263_vm2, %v740_v5  ;;  %v725_v11 = vmax.f32 %v693_v6, 0.0  ;;  %v665_v12 = vld [vmem:[#allocation2 + $0x98] sm:$0xff] }
  0xba   : > { %749 = vst.msk [vmem:[%s1202_s6 + $0x18] sm:$0xff] %vm263_vm2, %v717_v9  ;;  %v701_v15 = vadd.f32 %v1191_v51, %v665_v12  ;;  %v673_v16 = vld [vmem:[#allocation2 + $0xd8] sm:$0xff] }
  0xbb   : > { %757 = vst.msk [vmem:[%s1202_s6 + $0x58] sm:$0xff] %vm263_vm2, %v725_v11  ;;  %v709_v18 = vadd.f32 %v1191_v51, %v673_v16  ;;  %v497_v19 = vpop.f32.mrf.mxu0  ;;  %v521_v20 = vpop.f32.mrf.mxu1  ;;  %v319_v9 = vld [vmem:[#allocation2 + $0xb8] sm:$0xff] }
  0xbc   : > { %v733_v21 = vmax.f32 %v701_v15, 0.0  ;;  %631 = vst.msk [vmem:[#allocation2 + $0xa0] sm:$0xff] %vm263_vm2, %v598_v10  ;;  %v583_v22 = vadd.f32 %v497_v19, %v301_v14  ;;  %v591_v25 = vadd.f32 %v521_v20, %v309_v17 }
  0xbd   : > { %v741_v23 = vmax.f32 %v709_v18, 0.0  ;;  %v650_v24 = vld [vmem:[#allocation2 + $0x20] sm:$0xff]  ;;  %639 = vst.msk [vmem:[#allocation2 + $0xe0] sm:$0xff] %vm263_vm2, %v606_v13  ;;  %v327_v13 = vld [vmem:[#allocation2 + $0xf8] sm:$0xff] }
  0xbe   : > { %765 = vst.msk [vmem:[%s1202_s6 + $0x98] sm:$0xff] %vm263_vm2, %v733_v21  ;;  %v686_v27 = vadd.f32 %v1191_v51, %v650_v24  ;;  %v658_v28 = vld [vmem:[#allocation2 + $0x60] sm:$0xff] }
  0xbf   : > { %773 = vst.msk [vmem:[%s1202_s6 + $0xd8] sm:$0xff] %vm263_vm2, %v741_v23  ;;  %v694_v30 = vadd.f32 %v1191_v51, %v658_v28  ;;  %v545_v31 = vpop.f32.mrf.mxu2  ;;  %v569_v32 = vpop.f32.mrf.mxu3 }
  0xc0   : > { %v718_v33 = vmax.f32 %v686_v27, 0.0  ;;  %616 = vst.msk [vmem:[#allocation2 + $0x28] sm:$0xff] %vm263_vm2, %v583_v22  ;;  %v599_v34 = vadd.f32 %v545_v31, %v317_v26  ;;  %v607_v36 = vadd.f32 %v569_v32, %v325_v29 }
  0xc1   : > { %v726_v35 = vmax.f32 %v694_v30, 0.0  ;;  %624 = vst.msk [vmem:[#allocation2 + $0x68] sm:$0xff] %vm263_vm2, %v591_v25 }
  0xc2   : > { %750 = vst.msk [vmem:[%s1202_s6 + $0x20] sm:$0xff] %vm263_vm2, %v718_v33 }
  0xc3   : > { %758 = vst.msk [vmem:[%s1202_s6 + $0x60] sm:$0xff] %vm263_vm2, %v726_v35  ;;  %v666_v39 = vld [vmem:[#allocation2 + $0xa0] sm:$0xff]  ;;  %v500_v40 = vpop.f32.mrf.mxu0  ;;  %v524_v41 = vpop.f32.mrf.mxu1 }
  0xc4   : > { %v702_v42 = vadd.f32 %v1191_v51, %v666_v39  ;;  %v674_v43 = vld [vmem:[#allocation2 + $0xe0] sm:$0xff]  ;;  %632 = vst.msk [vmem:[#allocation2 + $0xa8] sm:$0xff] %vm263_vm2, %v599_v34  ;;  %v584_v44 = vadd.f32 %v500_v40, %v302_v37  ;;  %v592_v45 = vadd.f32 %v524_v41, %v310_v38 }
  0xc5   : > { %v710_v46 = vadd.f32 %v1191_v51, %v674_v43  ;;  %640 = vst.msk [vmem:[#allocation2 + $0xe8] sm:$0xff] %vm263_vm2, %v607_v36 }
  0xc6   : > { %v734_v49 = vmax.f32 %v702_v42, 0.0  ;;  %617 = vst.msk [vmem:[#allocation2 + $0x30] sm:$0xff] %vm263_vm2, %v584_v44 }
  0xc7   : > { %v742_v50 = vmax.f32 %v710_v46, 0.0  ;;  %v651_v52 = vld [vmem:[#allocation2 + $0x28] sm:$0xff]  ;;  %625 = vst.msk [vmem:[#allocation2 + $0x70] sm:$0xff] %vm263_vm2, %v592_v45  ;;  %v548_v53 = vpop.f32.mrf.mxu2  ;;  %v572_v54 = vpop.f32.mrf.mxu3 }
  0xc8   : > { %766 = vst.msk [vmem:[%s1202_s6 + $0xa0] sm:$0xff] %vm263_vm2, %v734_v49  ;;  %v687_v55 = vadd.f32 %v1191_v51, %v651_v52  ;;  %v659_v56 = vld [vmem:[#allocation2 + $0x68] sm:$0xff]  ;;  %v600_v57 = vadd.f32 %v548_v53, %v318_v47  ;;  %v608_v58 = vadd.f32 %v572_v54, %v326_v48 }
  0xc9   : > { %774 = vst.msk [vmem:[%s1202_s6 + $0xe0] sm:$0xff] %vm263_vm2, %v742_v50  ;;  %v695_v59 = vadd.f32 %v1191_v51, %v659_v56 }
  0xca   : > { %v719_v62 = vmax.f32 %v687_v55, 0.0  ;;  %633 = vst.msk [vmem:[#allocation2 + $0xb0] sm:$0xff] %vm263_vm2, %v600_v57 }
  0xcb   : > { %v727_v63 = vmax.f32 %v695_v59, 0.0  ;;  %v667_v0 = vld [vmem:[#allocation2 + $0xa8] sm:$0xff]  ;;  %641 = vst.msk [vmem:[#allocation2 + $0xf0] sm:$0xff] %vm263_vm2, %v608_v58  ;;  %v503_v1 = vpop.f32.mrf.mxu0  ;;  %v527_v2 = vpop.f32.mrf.mxu1 }
  0xcc   : > { %751 = vst.msk [vmem:[%s1202_s6 + $0x28] sm:$0xff] %vm263_vm2, %v719_v62  ;;  %v703_v3 = vadd.f32 %v1191_v51, %v667_v0  ;;  %v675_v4 = vld [vmem:[#allocation2 + $0xe8] sm:$0xff]  ;;  %v585_v5 = vadd.f32 %v503_v1, %v303_v60  ;;  %v593_v6 = vadd.f32 %v527_v2, %v311_v61 }
  0xcd   : > { %759 = vst.msk [vmem:[%s1202_s6 + $0x68] sm:$0xff] %vm263_vm2, %v727_v63  ;;  %v711_v7 = vadd.f32 %v1191_v51, %v675_v4  ;;  %v652_v8 = vld [vmem:[#allocation2 + $0x30] sm:$0xff] }
  0xce   : > { %v735_v10 = vmax.f32 %v703_v3, 0.0  ;;  %v688_v11 = vadd.f32 %v1191_v51, %v652_v8  ;;  %v660_v12 = vld [vmem:[#allocation2 + $0x70] sm:$0xff]  ;;  %618 = vst.msk [vmem:[#allocation2 + $0x38] sm:$0xff] %vm263_vm2, %v585_v5 }
  0xcf   : > { %v743_v14 = vmax.f32 %v711_v7, 0.0  ;;  %v696_v15 = vadd.f32 %v1191_v51, %v660_v12  ;;  %626 = vst.msk [vmem:[#allocation2 + $0x78] sm:$0xff] %vm263_vm2, %v593_v6  ;;  %v551_v16 = vpop.f32.mrf.mxu2  ;;  %v575_v17 = vpop.f32.mrf.mxu3 }
  0xd0   : > { %767 = vst.msk [vmem:[%s1202_s6 + $0xa8] sm:$0xff] %vm263_vm2, %v735_v10  ;;  %v720_v18 = vmax.f32 %v688_v11, 0.0  ;;  %v601_v19 = vadd.f32 %v551_v16, %v319_v9  ;;  %v609_v22 = vadd.f32 %v575_v17, %v327_v13 }
  0xd1   : > { %775 = vst.msk [vmem:[%s1202_s6 + $0xe8] sm:$0xff] %vm263_vm2, %v743_v14  ;;  %v728_v20 = vmax.f32 %v696_v15, 0.0  ;;  %v668_v21 = vld [vmem:[#allocation2 + $0xb0] sm:$0xff] }
  0xd2   : > { %752 = vst.msk [vmem:[%s1202_s6 + $0x30] sm:$0xff] %vm263_vm2, %v720_v18  ;;  %v704_v23 = vadd.f32 %v1191_v51, %v668_v21  ;;  %v676_v24 = vld [vmem:[#allocation2 + $0xf0] sm:$0xff] }
  0xd3   : > { %760 = vst.msk [vmem:[%s1202_s6 + $0x70] sm:$0xff] %vm263_vm2, %v728_v20  ;;  %v712_v25 = vadd.f32 %v1191_v51, %v676_v24 }
  0xd4   : > { %v736_v26 = vmax.f32 %v704_v23, 0.0  ;;  %634 = vst.msk [vmem:[#allocation2 + $0xb8] sm:$0xff] %vm263_vm2, %v601_v19 }
  0xd5   : > { %v744_v27 = vmax.f32 %v712_v25, 0.0  ;;  %v653_v28 = vld [vmem:[#allocation2 + $0x38] sm:$0xff]  ;;  %642 = vst.msk [vmem:[#allocation2 + $0xf8] sm:$0xff] %vm263_vm2, %v609_v22 }
  0xd6   : > { %768 = vst.msk [vmem:[%s1202_s6 + $0xb0] sm:$0xff] %vm263_vm2, %v736_v26  ;;  %v689_v29 = vadd.f32 %v1191_v51, %v653_v28  ;;  %v661_v30 = vld [vmem:[#allocation2 + $0x78] sm:$0xff] }
  0xd7   : > { %776 = vst.msk [vmem:[%s1202_s6 + $0xf0] sm:$0xff] %vm263_vm2, %v744_v27  ;;  %v697_v31 = vadd.f32 %v1191_v51, %v661_v30 }
  0xd8   : > { %v721_v32 = vmax.f32 %v689_v29, 0.0 }
  0xd9   : > { %v729_v33 = vmax.f32 %v697_v31, 0.0 }
  0xda   : > { %753 = vst.msk [vmem:[%s1202_s6 + $0x38] sm:$0xff] %vm263_vm2, %v721_v32 }
  0xdb   : > { %761 = vst.msk [vmem:[%s1202_s6 + $0x78] sm:$0xff] %vm263_vm2, %v729_v33  ;;  %v669_v34 = vld [vmem:[#allocation2 + $0xb8] sm:$0xff] }
  0xdc   : > { %v705_v35 = vadd.f32 %v1191_v51, %v669_v34  ;;  %v677_v36 = vld [vmem:[#allocation2 + $0xf8] sm:$0xff] }
  0xdd   : > { %v713_v37 = vadd.f32 %v1191_v51, %v677_v36 }
  0xde   : > { %v737_v38 = vmax.f32 %v705_v35, 0.0 }
  0xdf   : > { %v745_v39 = vmax.f32 %v713_v37, 0.0 }
  0xe0   : > { %769 = vst.msk [vmem:[%s1202_s6 + $0xb8] sm:$0xff] %vm263_vm2, %v737_v38 }
  0xe1   : > { %777 = vst.msk [vmem:[%s1202_s6 + $0xf8] sm:$0xff] %vm263_vm2, %v745_v39 }
  0xe2 PF: > { %s13_s14 = sadd.s32 1, %s995_s14   ;;  %s1339_s12 = smov %s991_s13 }
  0xe3   : > { %p10_p5 = scmp.ge.s32.totalorder %s13_s14, 6   ;;  %s1340_s13 = smov %s1342_s15 }
  0xe5   :  { %12 = sbr.rel (!%p10_p5) target bundleno = 2 (0x2), region = 76 }

// kernel: vgg_mse.16
= control target key start
LH: loop header
LB: loop body
LE: loop exit
PB: predicated region body
PF: predicated region fallthrough
CT: control target
= control target key end

     0   :  { %s1709_s12 = smov 0   ;;  %s1711_s13 = smov 0   ;;  %s2452_s0 = inlined_call_operand.vmem [shape: f32[1024,576], index: 0, kind: input, shape index: {}]   ;;  %s2453_s1 = inlined_call_operand.vmem [shape: f32[576,64], index: 1, kind: input, shape index: {}]   ;;  %s2454_s2 = inlined_call_operand.vmem [shape: f32[1,64], index: 2, kind: input, shape index: {}]   ;;  %s2455_s3 = inlined_call_operand.vmem [shape: f32[1024,64], index: 3, kind: output, shape index: {}]  }
   0x1   :  { %s1713_s14 = smov 0  }
   0x2 LB: > { %s32_s15 = sadd.s32 1, %s1682_s13  ;;  %p1549_p0 = scmp.ge.s32.totalorder %s1686_s14, 1  ;;  %s1686_s14 = sphi %s1713_s14, %s13_s14   ;;  %s1682_s13 = sphi %s1711_s13, %s2457_s13   ;;  %s1678_s12 = sphi %s1709_s12, %s2456_s12  }
   0x3   : > { %p34_p1 = scmp.ge.s32.totalorder %s32_s15, 4  ;;  %p191_p2 = scmp.lt.s32.totalorder %s1686_s14, 5 }
   0x5   : > { %s2459_s15 = smov (%p34_p1, %s32_s15), 0  ;;  %p192_p3 = pnand %p1549_p0, %p191_p2 }
   0x6   : > { %s1550_s30 = sshll.u32 (!%p192_p3), %s1678_s12, 5 }
   0x7   : > { %195 = sbr.rel (%p192_p3) target bundleno = 509 (0x1fd), region = 32  ;;  %p236_p4 = scmp.lt.s32.totalorder (!%p192_p3), %s1550_s30, 127 }
   0xc   : > { %v511_v0 = vld [vmem:[%s2453_s1 + $0x78] sm:$0xff]  ;;  %v510_v1 = vld [vmem:[%s2453_s1 + $0x70] sm:$0xff]  ;;  %v509_v2 = vld [vmem:[%s2453_s1 + $0x68] sm:$0xff]  ;;  %s2461_s30 = smov (!%p236_p4, %s1550_s30), 127  ;;  %vm271_vm0 = vcmask 523264  }
   0xd   : > { %1588 = vmatpush.msra.mxu1 %v511_v0  ;;  %1589 = vmatpush.msra.mxu2 %v511_v0  ;;  %v508_v3 = vld [vmem:[%s2453_s1 + $0x60] sm:$0xff]  ;;  %v507_v4 = vld [vmem:[%s2453_s1 + $0x58] sm:$0xff]  ;;  %v506_v5 = vld [vmem:[%s2453_s1 + $0x50] sm:$0xff]  ;;  %s1636_s19 = smul.u32 40, %s2461_s30  ;;  %s1553_s7 = sshll.u32 %s2461_s30, 3 }
   0xe   : > { %1590 = vmatpush.msra.mxu3 %v511_v0  ;;  %665 = vmatpush.msra.mxu0 %v511_v0  ;;  %v505_v6 = vld [vmem:[%s2453_s1 + $0x48] sm:$0xff]  ;;  %v504_v7 = vld [vmem:[%s2453_s1 + $0x40] sm:$0xff]  ;;  %v503_v8 = vld [vmem:[%s2453_s1 + $0x38] sm:$0xff]  ;;  %s2223_s10 = scalar_lea.vmem %s2455_s3, %s1553_s7 }
   0xf   : > { %1591 = vmatpush.msra.mxu1 %v510_v1  ;;  %1592 = vmatpush.msra.mxu2 %v510_v1  ;;  %v502_v9 = vld [vmem:[%s2453_s1 + $0x30] sm:$0xff]  ;;  %v501_v10 = vld [vmem:[%s2453_s1 + $0x28] sm:$0xff]  ;;  %v500_v11 = vld [vmem:[%s2453_s1 + $0x20] sm:$0xff]  ;;  %s1781_s26 = scalar_lea.vmem %s2452_s0, %s1636_s19 }
  0x10   : > { %1593 = vmatpush.msra.mxu3 %v510_v1  ;;  %666 = vmatpush.msra.mxu0 %v510_v1  ;;  %v499_v12 = vld [vmem:[%s2453_s1 + $0x18] sm:$0xff]  ;;  %v498_v13 = vld [vmem:[%s2453_s1 + $0x10] sm:$0xff]  ;;  %v497_v14 = vld [vmem:[%s2453_s1 + $0x8] sm:$0xff] }
  0x11   : > { %1594 = vmatpush.msra.mxu1 %v509_v2  ;;  %1595 = vmatpush.msra.mxu2 %v509_v2  ;;  %v496_v15 = vld [vmem:[%s2453_s1] sm:$0xff]  ;;  %v543_v18 = vld [vmem:[%s2453_s1 + $0x178] sm:$0xff]  ;;  %v542_v22 = vld [vmem:[%s2453_s1 + $0x170] sm:$0xff] }
  0x12   : > { %1596 = vmatpush.msra.mxu3 %v509_v2  ;;  %667 = vmatpush.msra.mxu0 %v509_v2  ;;  %v376_v16 = vld [vmem:[%s1781_s26 + $0x140] sm:$0xff]  ;;  %v527_v20 = vld [vmem:[%s2453_s1 + $0xf8] sm:$0xff]  ;;  %v526_v23 = vld [vmem:[%s2453_s1 + $0xf0] sm:$0xff] }
  0x13   : > { %1597 = vmatpush.msra.mxu1 %v508_v3  ;;  %1598 = vmatpush.msra.mxu2 %v508_v3  ;;  %v416_v17 = vld [vmem:[%s1781_s26 + $0x280] sm:$0xff]  ;;  %v559_v21 = vld [vmem:[%s2453_s1 + $0x1f8] sm:$0xff]  ;;  %v558_v24 = vld [vmem:[%s2453_s1 + $0x1f0] sm:$0xff] }
  0x14   : > { %1599 = vmatpush.msra.mxu3 %v508_v3  ;;  %668 = vmatpush.msra.mxu0 %v508_v3  ;;  %v456_v19 = vld [vmem:[%s1781_s26 + $0x3c0] sm:$0xff]  ;;  %v541_v25 = vld [vmem:[%s2453_s1 + $0x168] sm:$0xff]  ;;  %v567_v29 = vld [vmem:[%s2453_s1 + $0x238] sm:$0xff] }
  0x15   : > { %1600 = vmatpush.msra.mxu1 %v507_v4  ;;  %1601 = vmatpush.msra.mxu2 %v507_v4  ;;  %v336_v26 = vld [vmem:[%s1781_s26] sm:$0xff]  ;;  %v525_v27 = vld [vmem:[%s2453_s1 + $0xe8] sm:$0xff]  ;;  %v539_v36 = vld [vmem:[%s2453_s1 + $0x158] sm:$0xff] }
  0x16   : > { %1602 = vmatpush.msra.mxu3 %v507_v4  ;;  %669 = vmatpush.msra.mxu0 %v507_v4  ;;  %v557_v28 = vld [vmem:[%s2453_s1 + $0x1e8] sm:$0xff]  ;;  %v540_v32 = vld [vmem:[%s2453_s1 + $0x160] sm:$0xff]  ;;  %v555_v37 = vld [vmem:[%s2453_s1 + $0x1d8] sm:$0xff] }
  0x17   : > { %1603 = vmatpush.msra.mxu1 %v506_v5  ;;  %1604 = vmatpush.msra.mxu2 %v506_v5  ;;  %v381_v30 = vld [vmem:[%s1781_s26 + $0x168] sm:$0xff]  ;;  %v556_v33 = vld [vmem:[%s2453_s1 + $0x1e0] sm:$0xff]  ;;  %v566_v38 = vld [vmem:[%s2453_s1 + $0x230] sm:$0xff] }
  0x18   : > { %1605 = vmatpush.msra.mxu3 %v506_v5  ;;  %670 = vmatpush.msra.mxu0 %v506_v5  ;;  %v421_v31 = vld [vmem:[%s1781_s26 + $0x2a8] sm:$0xff]  ;;  %v524_v35 = vld [vmem:[%s2453_s1 + $0xe0] sm:$0xff]  ;;  %v523_v39 = vld [vmem:[%s2453_s1 + $0xd8] sm:$0xff] }
  0x19   : > { %1606 = vmatpush.msra.mxu1 %v505_v6  ;;  %1607 = vmatpush.msra.mxu2 %v505_v6  ;;  %v461_v34 = vld [vmem:[%s1781_s26 + $0x3e8] sm:$0xff]  ;;  %v538_v40 = vld [vmem:[%s2453_s1 + $0x150] sm:$0xff]  ;;  %v536_v51 = vld [vmem:[%s2453_s1 + $0x140] sm:$0xff] }
  0x1a   : > { %1608 = vmatpush.msra.mxu3 %v505_v6  ;;  %671 = vmatpush.msra.mxu0 %v505_v6  ;;  %v554_v41 = vld [vmem:[%s2453_s1 + $0x1d0] sm:$0xff]  ;;  %v341_v42 = vld [vmem:[%s1781_s26 + $0x28] sm:$0xff]  ;;  %v552_v52 = vld [vmem:[%s2453_s1 + $0x1c0] sm:$0xff] }
  0x1b   : > { %1609 = vmatpush.msra.mxu1 %v504_v7  ;;  %1610 = vmatpush.msra.mxu2 %v504_v7  ;;  %v522_v43 = vld [vmem:[%s2453_s1 + $0xd0] sm:$0xff]  ;;  %v537_v44 = vld [vmem:[%s2453_s1 + $0x148] sm:$0xff]  ;;  %v520_v53 = vld [vmem:[%s2453_s1 + $0xc0] sm:$0xff] }
  0x1c   : > { %1611 = vmatpush.msra.mxu3 %v504_v7  ;;  %672 = vmatpush.msra.mxu0 %v504_v7  ;;  %v553_v45 = vld [vmem:[%s2453_s1 + $0x1c8] sm:$0xff]  ;;  %v386_v46 = vld [vmem:[%s1781_s26 + $0x190] sm:$0xff]  ;;  %v535_v54 = vld [vmem:[%s2453_s1 + $0x138] sm:$0xff] }
  0x1d   : > { %1612 = vmatpush.msra.mxu1 %v503_v8  ;;  %1613 = vmatpush.msra.mxu2 %v503_v8  ;;  %v426_v47 = vld [vmem:[%s1781_s26 + $0x2d0] sm:$0xff]  ;;  %v565_v48 = vld [vmem:[%s2453_s1 + $0x228] sm:$0xff]  ;;  %v564_v55 = vld [vmem:[%s2453_s1 + $0x220] sm:$0xff] }
  0x1e   : > { %1614 = vmatpush.msra.mxu3 %v503_v8  ;;  %673 = vmatpush.msra.mxu0 %v503_v8  ;;  %v521_v49 = vld [vmem:[%s2453_s1 + $0xc8] sm:$0xff]  ;;  %v466_v50 = vld [vmem:[%s1781_s26 + $0x410] sm:$0xff]  ;;  %v551_v56 = vld [vmem:[%s2453_s1 + $0x1b8] sm:$0xff] }
  0x1f   : > { %1615 = vmatpush.msra.mxu1 %v502_v9  ;;  %1616 = vmatpush.msra.mxu2 %v502_v9  ;;  %v519_v57 = vld [vmem:[%s2453_s1 + $0xb8] sm:$0xff]  ;;  %v346_v58 = vld [vmem:[%s1781_s26 + $0x50] sm:$0xff]  ;;  %v533_v0 = vld [vmem:[%s2453_s1 + $0x128] sm:$0xff] }
  0x20   : > { %1617 = vmatpush.msra.mxu3 %v502_v9  ;;  %674 = vmatpush.msra.mxu0 %v502_v9  ;;  %v534_v59 = vld [vmem:[%s2453_s1 + $0x130] sm:$0xff]  ;;  %v391_v62 = vld [vmem:[%s1781_s26 + $0x1b8] sm:$0xff]  ;;  %v549_v1 = vld [vmem:[%s2453_s1 + $0x1a8] sm:$0xff] }
  0x21   : > { %1618 = vmatpush.msra.mxu1 %v501_v10  ;;  %1619 = vmatpush.msra.mxu2 %v501_v10  ;;  %v550_v60 = vld [vmem:[%s2453_s1 + $0x1b0] sm:$0xff]  ;;  %v431_v63 = vld [vmem:[%s1781_s26 + $0x2f8] sm:$0xff]  ;;  %v517_v4 = vld [vmem:[%s2453_s1 + $0xa8] sm:$0xff] }
  0x22   : > { %1620 = vmatpush.msra.mxu3 %v501_v10  ;;  %675 = vmatpush.msra.mxu0 %v501_v10  ;;  %v518_v61 = vld [vmem:[%s2453_s1 + $0xb0] sm:$0xff]  ;;  %v471_v2 = vld [vmem:[%s1781_s26 + $0x438] sm:$0xff]  ;;  %v532_v5 = vld [vmem:[%s2453_s1 + $0x120] sm:$0xff] }
  0x23   : > { %1621 = vmatpush.msra.mxu1 %v500_v11  ;;  %1622 = vmatpush.msra.mxu2 %v500_v11  ;;  %v563_v3 = vld [vmem:[%s2453_s1 + $0x218] sm:$0xff]  ;;  %v548_v6 = vld [vmem:[%s2453_s1 + $0x1a0] sm:$0xff]  ;;  %v562_v7 = vld [vmem:[%s2453_s1 + $0x210] sm:$0xff] }
  0x24   : > { %1623 = vmatpush.msra.mxu3 %v500_v11  ;;  %676 = vmatpush.msra.mxu0 %v500_v11  ;;  %v516_v8 = vld [vmem:[%s2453_s1 + $0xa0] sm:$0xff]  ;;  %v531_v9 = vld [vmem:[%s2453_s1 + $0x118] sm:$0xff] }
  0x25   : > { %1624 = vmatpush.msra.mxu1 %v499_v12  ;;  %1625 = vmatpush.msra.mxu2 %v499_v12  ;;  %v351_v10 = vld [vmem:[%s1781_s26 + $0x78] sm:$0xff] }
  0x26   : > { %1626 = vmatpush.msra.mxu3 %v499_v12  ;;  %677 = vmatpush.msra.mxu0 %v499_v12  ;;  %v547_v11 = vld [vmem:[%s2453_s1 + $0x198] sm:$0xff] }
  0x27   : > { %1627 = vmatpush.msra.mxu1 %v498_v13  ;;  %1628 = vmatpush.msra.mxu2 %v498_v13  ;;  %v515_v12 = vld [vmem:[%s2453_s1 + $0x98] sm:$0xff] }
  0x28   : > { %1629 = vmatpush.msra.mxu3 %v498_v13  ;;  %678 = vmatpush.msra.mxu0 %v498_v13  ;;  %v530_v13 = vld [vmem:[%s2453_s1 + $0x110] sm:$0xff] }
  0x29   : > { %1630 = vmatpush.msra.mxu1 %v497_v14  ;;  %1631 = vmatpush.msra.mxu2 %v497_v14 }
  0x2a   : > { %1632 = vmatpush.msra.mxu3 %v497_v14  ;;  %679 = vmatpush.msra.mxu0 %v497_v14  ;;  %v396_v14 = vld [vmem:[%s1781_s26 + $0x1e0] sm:$0xff] }
  0x2b   : > { %1633 = vmatpush.msra.mxu1 %v496_v15  ;;  %1634 = vmatpush.msra.mxu2 %v496_v15 }
  0x2c   : > { %705 = vmatmul.f32.vlgmr.msra.gmra.mxu1 %v376_v16  ;;  %729 = vmatmul.f32.vlgmr.msra.gmra.mxu2 %v416_v17  ;;  %v546_v16 = vld [vmem:[%s2453_s1 + $0x190] sm:$0xff] }
  0x2d   : > { %891 = vmatpush.msrb.mxu2 %v543_v18  ;;  %1635 = vmatpush.msra.mxu3 %v496_v15  ;;  %v514_v17 = vld [vmem:[%s2453_s1 + $0x90] sm:$0xff]  ;;  %v476_v18 = vld [vmem:[%s1781_s26 + $0x460] sm:$0xff] }
  0x2e   : > { %753 = vmatmul.f32.vlgmr.msra.gmra.mxu3 %v456_v19  ;;  %778 = vmatpush.msrb.mxu1 %v527_v20  ;;  %v529_v19 = vld [vmem:[%s2453_s1 + $0x108] sm:$0xff] }
  0x2f   : > { %1004 = vmatpush.msrb.mxu3 %v559_v21  ;;  %892 = vmatpush.msrb.mxu2 %v542_v22  ;;  %v545_v20 = vld [vmem:[%s2453_s1 + $0x188] sm:$0xff] }
  0x30   : > { %779 = vmatpush.msrb.mxu1 %v526_v23  ;;  %680 = vmatpush.msra.mxu0 %v496_v15  ;;  %v436_v15 = vld [vmem:[%s1781_s26 + $0x320] sm:$0xff]  ;;  %v561_v21 = vld [vmem:[%s2453_s1 + $0x208] sm:$0xff] }
  0x31   : > { %1005 = vmatpush.msrb.mxu3 %v558_v24  ;;  %893 = vmatpush.msrb.mxu2 %v541_v25  ;;  %v513_v22 = vld [vmem:[%s2453_s1 + $0x88] sm:$0xff]  ;;  %v528_v23 = vld [vmem:[%s2453_s1 + $0x100] sm:$0xff] }
  0x32   : > { %681 = vmatmul.f32.vlgmr.msra.gmra.mxu0 %v336_v26  ;;  %780 = vmatpush.msrb.mxu1 %v525_v27  ;;  %v544_v24 = vld [vmem:[%s2453_s1 + $0x180] sm:$0xff] }
  0x33   : > { %1006 = vmatpush.msrb.mxu3 %v557_v28  ;;  %1125 = vmatpush.msrb.mxu0 %v567_v29  ;;  %v560_v25 = vld [vmem:[%s2453_s1 + $0x200] sm:$0xff]  ;;  %v401_v28 = vld [vmem:[%s1781_s26 + $0x208] sm:$0xff] }
  0x34   : > { %708 = vmatmul.f32.gmra.mxu1 %v381_v30  ;;  %732 = vmatmul.f32.gmra.mxu2 %v421_v31  ;;  %v356_v26 = vld [vmem:[%s1781_s26 + $0xa0] sm:$0xff]  ;;  %v441_v29 = vld [vmem:[%s1781_s26 + $0x348] sm:$0xff] }
  0x35   : > { %894 = vmatpush.msrb.mxu2 %v540_v32  ;;  %1007 = vmatpush.msrb.mxu3 %v556_v33  ;;  %v512_v27 = vld [vmem:[%s2453_s1 + $0x80] sm:$0xff]  ;;  %v481_v30 = vld [vmem:[%s1781_s26 + $0x488] sm:$0xff]  ;;  %v406_v32 = vld [vmem:[%s1781_s26 + $0x230] sm:$0xff] }
  0x36   : > { %756 = vmatmul.f32.gmra.mxu3 %v461_v34  ;;  %781 = vmatpush.msrb.mxu1 %v524_v35  ;;  %v361_v31 = vld [vmem:[%s1781_s26 + $0xc8] sm:$0xff]  ;;  %v446_v33 = vld [vmem:[%s1781_s26 + $0x370] sm:$0xff] }
  0x37   : > { %895 = vmatpush.msrb.mxu2 %v539_v36  ;;  %1008 = vmatpush.msrb.mxu3 %v555_v37  ;;  %v486_v34 = vld [vmem:[%s1781_s26 + $0x4b0] sm:$0xff]  ;;  %v411_v36 = vld [vmem:[%s1781_s26 + $0x258] sm:$0xff] }
  0x38   : > { %1126 = vmatpush.msrb.mxu0 %v566_v38  ;;  %782 = vmatpush.msrb.mxu1 %v523_v39  ;;  %v366_v35 = vld [vmem:[%s1781_s26 + $0xf0] sm:$0xff]  ;;  %v451_v37 = vld [vmem:[%s1781_s26 + $0x398] sm:$0xff] }
  0x39   : > { %896 = vmatpush.msrb.mxu2 %v538_v40  ;;  %1009 = vmatpush.msrb.mxu3 %v554_v41  ;;  %v491_v38 = vld [vmem:[%s1781_s26 + $0x4d8] sm:$0xff]  ;;  %v337_v40 = vld [vmem:[%s1781_s26 + $0x8] sm:$0xff]  ;;  %v338_v41 = vld [vmem:[%s1781_s26 + $0x10] sm:$0xff] }
  0x3a   : > { %684 = vmatmul.f32.gmra.mxu0 %v341_v42  ;;  %783 = vmatpush.msrb.mxu1 %v522_v43  ;;  %v371_v39 = vld [vmem:[%s1781_s26 + $0x118] sm:$0xff]  ;;  %v340_v43 = vld [vmem:[%s1781_s26 + $0x20] sm:$0xff] }
  0x3b   : > { %897 = vmatpush.msrb.mxu2 %v537_v44  ;;  %1010 = vmatpush.msrb.mxu3 %v553_v45  ;;  %v339_v42 = vld [vmem:[%s1781_s26 + $0x18] sm:$0xff]  ;;  %v342_v44 = vld [vmem:[%s1781_s26 + $0x30] sm:$0xff] }
  0x3c   : > { %711 = vmatmul.f32.gmra.mxu1 %v386_v46  ;;  %735 = vmatmul.f32.gmra.mxu2 %v426_v47  ;;  %v343_v45 = vld [vmem:[%s1781_s26 + $0x38] sm:$0xff]  ;;  %v344_v46 = vld [vmem:[%s1781_s26 + $0x40] sm:$0xff]  ;;  %v345_v47 = vld [vmem:[%s1781_s26 + $0x48] sm:$0xff] }
  0x3d   : > { %1127 = vmatpush.msrb.mxu0 %v565_v48  ;;  %784 = vmatpush.msrb.mxu1 %v521_v49  ;;  %v347_v48 = vld [vmem:[%s1781_s26 + $0x58] sm:$0xff]  ;;  %v348_v49 = vld [vmem:[%s1781_s26 + $0x60] sm:$0xff] }
  0x3e   : > { %759 = vmatmul.f32.gmra.mxu3 %v466_v50  ;;  %898 = vmatpush.msrb.mxu2 %v536_v51  ;;  %v349_v50 = vld [vmem:[%s1781_s26 + $0x68] sm:$0xff]  ;;  %v350_v51 = vld [vmem:[%s1781_s26 + $0x70] sm:$0xff] }
  0x3f   : > { %1011 = vmatpush.msrb.mxu3 %v552_v52  ;;  %785 = vmatpush.msrb.mxu1 %v520_v53  ;;  %v352_v52 = vld [vmem:[%s1781_s26 + $0x80] sm:$0xff]  ;;  %v353_v53 = vld [vmem:[%s1781_s26 + $0x88] sm:$0xff] }
  0x40   : > { %899 = vmatpush.msrb.mxu2 %v535_v54  ;;  %1128 = vmatpush.msrb.mxu0 %v564_v55  ;;  %v354_v54 = vld [vmem:[%s1781_s26 + $0x90] sm:$0xff]  ;;  %v355_v55 = vld [vmem:[%s1781_s26 + $0x98] sm:$0xff] }
  0x41   : > { %1012 = vmatpush.msrb.mxu3 %v551_v56  ;;  %786 = vmatpush.msrb.mxu1 %v519_v57  ;;  %v357_v56 = vld [vmem:[%s1781_s26 + $0xa8] sm:$0xff]  ;;  %v358_v57 = vld [vmem:[%s1781_s26 + $0xb0] sm:$0xff] }
  0x42   : > { %687 = vmatmul.f32.gmra.mxu0 %v346_v58  ;;  %900 = vmatpush.msrb.mxu2 %v534_v59  ;;  %v359_v58 = vld [vmem:[%s1781_s26 + $0xb8] sm:$0xff]  ;;  %v360_v59 = vld [vmem:[%s1781_s26 + $0xc0] sm:$0xff] }
  0x43   : > { %1013 = vmatpush.msrb.mxu3 %v550_v60  ;;  %787 = vmatpush.msrb.mxu1 %v518_v61  ;;  %v362_v60 = vld [vmem:[%s1781_s26 + $0xd0] sm:$0xff]  ;;  %v363_v61 = vld [vmem:[%s1781_s26 + $0xd8] sm:$0xff] }
  0x44   : > { %714 = vmatmul.f32.gmra.mxu1 %v391_v62  ;;  %738 = vmatmul.f32.gmra.mxu2 %v431_v63  ;;  %v364_v62 = vld [vmem:[%s1781_s26 + $0xe0] sm:$0xff]  ;;  %v365_v63 = vld [vmem:[%s1781_s26 + $0xe8] sm:$0xff] }
  0x45   : > { %901 = vmatpush.msrb.mxu2 %v533_v0  ;;  %1014 = vmatpush.msrb.mxu3 %v549_v1  ;;  %v367_v0 = vld [vmem:[%s1781_s26 + $0xf8] sm:$0xff]  ;;  %v368_v1 = vld [vmem:[%s1781_s26 + $0x100] sm:$0xff] }
  0x46   : > { %762 = vmatmul.f32.gmra.mxu3 %v471_v2  ;;  %1129 = vmatpush.msrb.mxu0 %v563_v3  ;;  %v369_v2 = vld [vmem:[%s1781_s26 + $0x108] sm:$0xff]  ;;  %v370_v3 = vld [vmem:[%s1781_s26 + $0x110] sm:$0xff] }
  0x47   : > { %788 = vmatpush.msrb.mxu1 %v517_v4  ;;  %902 = vmatpush.msrb.mxu2 %v532_v5  ;;  %v372_v4 = vld [vmem:[%s1781_s26 + $0x120] sm:$0xff]  ;;  %v373_v5 = vld [vmem:[%s1781_s26 + $0x128] sm:$0xff] }
  0x48   : > { %1015 = vmatpush.msrb.mxu3 %v548_v6  ;;  %1130 = vmatpush.msrb.mxu0 %v562_v7  ;;  %v374_v6 = vld [vmem:[%s1781_s26 + $0x130] sm:$0xff]  ;;  %v375_v7 = vld [vmem:[%s1781_s26 + $0x138] sm:$0xff] }
  0x49   : > { %789 = vmatpush.msrb.mxu1 %v516_v8  ;;  %903 = vmatpush.msrb.mxu2 %v531_v9  ;;  %v377_v9 = vld [vmem:[%s1781_s26 + $0x148] sm:$0xff] }
  0x4a   : > { %690 = vmatmul.f32.gmra.mxu0 %v351_v10  ;;  %1016 = vmatpush.msrb.mxu3 %v547_v11  ;;  %v378_v10 = vld [vmem:[%s1781_s26 + $0x150] sm:$0xff]  ;;  %v379_v11 = vld [vmem:[%s1781_s26 + $0x158] sm:$0xff] }
  0x4b   : > { %790 = vmatpush.msrb.mxu1 %v515_v12  ;;  %904 = vmatpush.msrb.mxu2 %v530_v13 }
  0x4c   : > { %717 = vmatmul.f32.gmra.mxu1 %v396_v14  ;;  %741 = vmatmul.f32.gmra.mxu2 %v436_v15  ;;  %v380_v14 = vld [vmem:[%s1781_s26 + $0x160] sm:$0xff] }
  0x4d   : > { %1017 = vmatpush.msrb.mxu3 %v546_v16  ;;  %791 = vmatpush.msrb.mxu1 %v514_v17  ;;  %v382_v17 = vld [vmem:[%s1781_s26 + $0x170] sm:$0xff] }
  0x4e   : > { %765 = vmatmul.f32.gmra.mxu3 %v476_v18  ;;  %905 = vmatpush.msrb.mxu2 %v529_v19  ;;  %v383_v18 = vld [vmem:[%s1781_s26 + $0x178] sm:$0xff]  ;;  %v384_v19 = vld [vmem:[%s1781_s26 + $0x180] sm:$0xff] }
  0x4f   : > { %1018 = vmatpush.msrb.mxu3 %v545_v20  ;;  %1131 = vmatpush.msrb.mxu0 %v561_v21 }
  0x50   : > { %792 = vmatpush.msrb.mxu1 %v513_v22  ;;  %906 = vmatpush.msrb.mxu2 %v528_v23  ;;  %v385_v22 = vld [vmem:[%s1781_s26 + $0x188] sm:$0xff] }
  0x51   : > { %1019 = vmatpush.msrb.mxu3 %v544_v24  ;;  %1132 = vmatpush.msrb.mxu0 %v560_v25  ;;  %v387_v25 = vld [vmem:[%s1781_s26 + $0x198] sm:$0xff] }
  0x52   : > { %693 = vmatmul.f32.gmra.mxu0 %v356_v26  ;;  %793 = vmatpush.msrb.mxu1 %v512_v27  ;;  %v388_v26 = vld [vmem:[%s1781_s26 + $0x1a0] sm:$0xff]  ;;  %v389_v27 = vld [vmem:[%s1781_s26 + $0x1a8] sm:$0xff] }
  0x54   : > { %720 = vmatmul.f32.gmra.mxu1 %v401_v28  ;;  %744 = vmatmul.f32.gmra.mxu2 %v441_v29 }
  0x56   : > { %768 = vmatmul.f32.gmra.mxu3 %v481_v30  ;;  %v390_v30 = vld [vmem:[%s1781_s26 + $0x1b0] sm:$0xff] }
  0x5a   : > { %696 = vmatmul.f32.gmra.mxu0 %v361_v31 }
  0x5c   : > { %723 = vmatmul.f32.gmra.mxu1 %v406_v32  ;;  %747 = vmatmul.f32.gmra.mxu2 %v446_v33  ;;  %v392_v33 = vld [vmem:[%s1781_s26 + $0x1c0] sm:$0xff] }
  0x5e   : > { %771 = vmatmul.f32.gmra.mxu3 %v486_v34  ;;  %v393_v34 = vld [vmem:[%s1781_s26 + $0x1c8] sm:$0xff] }
  0x62   : > { %699 = vmatmul.f32.gmra.mxu0 %v366_v35  ;;  %v394_v35 = vld [vmem:[%s1781_s26 + $0x1d0] sm:$0xff] }
  0x64   : > { %726 = vmatmul.f32.gmra.mxu1 %v411_v36  ;;  %750 = vmatmul.f32.gmra.mxu2 %v451_v37 }
  0x66   : > { %774 = vmatmul.f32.gmra.mxu3 %v491_v38  ;;  %v395_v38 = vld [vmem:[%s1781_s26 + $0x1d8] sm:$0xff] }
  0x6a   : > { %702 = vmatmul.f32.gmra.mxu0 %v371_v39 }
  0x6c   : > { %794 = vmatmul.f32.vlgmr.msrb.gmra.mxu1 %v337_v40  ;;  %907 = vmatmul.f32.vlgmr.msrb.gmra.mxu2 %v338_v41  ;;  %v397_v41 = vld [vmem:[%s1781_s26 + $0x1e8] sm:$0xff] }
  0x6e   : > { %1020 = vmatmul.f32.vlgmr.msrb.gmra.mxu3 %v339_v42  ;;  %v398_v42 = vld [vmem:[%s1781_s26 + $0x1f0] sm:$0xff] }
  0x72   : > { %1554 = vmatmul.msk.f32.vlgmr.msrb.gmra.mxu0 %vm271_vm0, %v340_v43  ;;  %v399_v43 = vld [vmem:[%s1781_s26 + $0x1f8] sm:$0xff] }
  0x74   : > { %797 = vmatmul.f32.gmra.mxu1 %v342_v44  ;;  %910 = vmatmul.f32.gmra.mxu2 %v343_v45  ;;  %v1688_v44 = vmov 0.0  }
  0x75   : > { %272 = vst.msk [vmem:[#allocation2] sm:$0xff] %vm271_vm0, %v1688_v44 }
  0x76   : > { %1023 = vmatmul.f32.gmra.mxu3 %v344_v46  ;;  %273 = vst.msk [vmem:[#allocation2 + $0x8] sm:$0xff] %vm271_vm0, %v1688_v44 }
  0x77   : > { %274 = vst.msk [vmem:[#allocation2 + $0x10] sm:$0xff] %vm271_vm0, %v1688_v44 }
  0x78   : > { %275 = vst.msk [vmem:[#allocation2 + $0x18] sm:$0xff] %vm271_vm0, %v1688_v44 }
  0x79   : > { %276 = vst.msk [vmem:[#allocation2 + $0x20] sm:$0xff] %vm271_vm0, %v1688_v44 }
  0x7a   : > { %1555 = vmatmul.msk.f32.gmra.mxu0 %vm271_vm0, %v345_v47  ;;  %v400_v47 = vld [vmem:[%s1781_s26 + $0x200] sm:$0xff]  ;;  %277 = vst.msk [vmem:[#allocation2 + $0x28] sm:$0xff] %vm271_vm0, %v1688_v44 }
  0x7b   : > { %278 = vst.msk [vmem:[#allocation2 + $0x30] sm:$0xff] %vm271_vm0, %v1688_v44 }
  0x7c   : > { %800 = vmatmul.f32.gmra.mxu1 %v347_v48  ;;  %913 = vmatmul.f32.gmra.mxu2 %v348_v49  ;;  %279 = vst.msk [vmem:[#allocation2 + $0x38] sm:$0xff] %vm271_vm0, %v1688_v44 }
  0x7d   : > { %280 = vst.msk [vmem:[#allocation2 + $0x40] sm:$0xff] %vm271_vm0, %v1688_v44 }
  0x7e   : > { %1026 = vmatmul.f32.gmra.mxu3 %v349_v50  ;;  %v402_v50 = vld [vmem:[%s1781_s26 + $0x210] sm:$0xff]  ;;  %281 = vst.msk [vmem:[#allocation2 + $0x48] sm:$0xff] %vm271_vm0, %v1688_v44 }
  0x7f   : > { %282 = vst.msk [vmem:[#allocation2 + $0x50] sm:$0xff] %vm271_vm0, %v1688_v44 }
  0x80   : > { %283 = vst.msk [vmem:[#allocation2 + $0x58] sm:$0xff] %vm271_vm0, %v1688_v44 }
  0x81   : > { %284 = vst.msk [vmem:[#allocation2 + $0x60] sm:$0xff] %vm271_vm0, %v1688_v44 }
  0x82   : > { %1556 = vmatmul.msk.f32.gmra.mxu0 %vm271_vm0, %v350_v51  ;;  %v403_v51 = vld [vmem:[%s1781_s26 + $0x218] sm:$0xff]  ;;  %285 = vst.msk [vmem:[#allocation2 + $0x68] sm:$0xff] %vm271_vm0, %v1688_v44 }
  0x83   : > { %286 = vst.msk [vmem:[#allocation2 + $0x70] sm:$0xff] %vm271_vm0, %v1688_v44 }
  0x84   : > { %803 = vmatmul.f32.gmra.mxu1 %v352_v52  ;;  %916 = vmatmul.f32.gmra.mxu2 %v353_v53  ;;  %v404_v52 = vld [vmem:[%s1781_s26 + $0x220] sm:$0xff]  ;;  %287 = vst.msk [vmem:[#allocation2 + $0x78] sm:$0xff] %vm271_vm0, %v1688_v44 }
  0x85   : > { %288 = vst.msk [vmem:[#allocation2 + $0x80] sm:$0xff] %vm271_vm0, %v1688_v44 }
  0x86   : > { %1029 = vmatmul.f32.gmra.mxu3 %v354_v54  ;;  %289 = vst.msk [vmem:[#allocation2 + $0x88] sm:$0xff] %vm271_vm0, %v1688_v44 }
  0x87   : > { %290 = vst.msk [vmem:[#allocation2 + $0x90] sm:$0xff] %vm271_vm0, %v1688_v44 }
  0x88   : > { %291 = vst.msk [vmem:[#allocation2 + $0x98] sm:$0xff] %vm271_vm0, %v1688_v44 }
  0x89   : > { %292 = vst.msk [vmem:[#allocation2 + $0xa0] sm:$0xff] %vm271_vm0, %v1688_v44 }
  0x8a   : > { %1557 = vmatmul.msk.f32.gmra.mxu0 %vm271_vm0, %v355_v55  ;;  %v405_v55 = vld [vmem:[%s1781_s26 + $0x228] sm:$0xff]  ;;  %293 = vst.msk [vmem:[#allocation2 + $0xa8] sm:$0xff] %vm271_vm0, %v1688_v44 }
  0x8b   : > { %294 = vst.msk [vmem:[#allocation2 + $0xb0] sm:$0xff] %vm271_vm0, %v1688_v44 }
  0x8c   : > { %806 = vmatmul.f32.gmra.mxu1 %v357_v56  ;;  %919 = vmatmul.f32.gmra.mxu2 %v358_v57  ;;  %295 = vst.msk [vmem:[#allocation2 + $0xb8] sm:$0xff] %vm271_vm0, %v1688_v44 }
  0x8d   : > { %296 = vst.msk [vmem:[#allocation2 + $0xc0] sm:$0xff] %vm271_vm0, %v1688_v44 }
  0x8e   : > { %1032 = vmatmul.f32.gmra.mxu3 %v359_v58  ;;  %v407_v58 = vld [vmem:[%s1781_s26 + $0x238] sm:$0xff]  ;;  %297 = vst.msk [vmem:[#allocation2 + $0xc8] sm:$0xff] %vm271_vm0, %v1688_v44 }
  0x8f   : > { %298 = vst.msk [vmem:[#allocation2 + $0xd0] sm:$0xff] %vm271_vm0, %v1688_v44 }
  0x90   : > { %299 = vst.msk [vmem:[#allocation2 + $0xd8] sm:$0xff] %vm271_vm0, %v1688_v44 }
  0x91   : > { %300 = vst.msk [vmem:[#allocation2 + $0xe0] sm:$0xff] %vm271_vm0, %v1688_v44 }
  0x92   : > { %1558 = vmatmul.msk.f32.gmra.mxu0 %vm271_vm0, %v360_v59  ;;  %v408_v59 = vld [vmem:[%s1781_s26 + $0x240] sm:$0xff]  ;;  %301 = vst.msk [vmem:[#allocation2 + $0xe8] sm:$0xff] %vm271_vm0, %v1688_v44 }
  0x93   : > { %302 = vst.msk [vmem:[#allocation2 + $0xf0] sm:$0xff] %vm271_vm0, %v1688_v44 }
  0x94   : > { %809 = vmatmul.f32.gmra.mxu1 %v362_v60  ;;  %922 = vmatmul.f32.gmra.mxu2 %v363_v61  ;;  %v409_v60 = vld [vmem:[%s1781_s26 + $0x248] sm:$0xff]  ;;  %303 = vst.msk [vmem:[#allocation2 + $0xf8] sm:$0xff] %vm271_vm0, %v1688_v44 }
  0x96   : > { %1035 = vmatmul.f32.gmra.mxu3 %v364_v62 }
  0x9a   : > { %1559 = vmatmul.msk.f32.gmra.mxu0 %vm271_vm0, %v365_v63  ;;  %v410_v63 = vld [vmem:[%s1781_s26 + $0x250] sm:$0xff] }
  0x9c   : > { %812 = vmatmul.f32.gmra.mxu1 %v367_v0  ;;  %925 = vmatmul.f32.gmra.mxu2 %v368_v1 }
  0x9e   : > { %1038 = vmatmul.f32.gmra.mxu3 %v369_v2  ;;  %v412_v2 = vld [vmem:[%s1781_s26 + $0x260] sm:$0xff] }
  0xa2   : > { %1560 = vmatmul.msk.f32.gmra.mxu0 %vm271_vm0, %v370_v3  ;;  %v413_v3 = vld [vmem:[%s1781_s26 + $0x268] sm:$0xff] }
  0xa4   : > { %815 = vmatmul.f32.gmra.mxu1 %v372_v4  ;;  %928 = vmatmul.f32.gmra.mxu2 %v373_v5  ;;  %v414_v4 = vld [vmem:[%s1781_s26 + $0x270] sm:$0xff] }
  0xa6   : > { %1041 = vmatmul.f32.gmra.mxu3 %v374_v6 }
  0xa9   : > { %v2025_v8 = vpop.f32.mrf.mxu1 }
  0xaa   : > { %1561 = vmatmul.msk.f32.gmra.mxu0 %vm271_vm0, %v375_v7  ;;  %v415_v7 = vld [vmem:[%s1781_s26 + $0x278] sm:$0xff] }
  0xac   : > { %818 = vmatmul.f32.gmra.mxu1 %v377_v9  ;;  %931 = vmatmul.f32.gmra.mxu2 %v378_v10 }
  0xae   : > { %1044 = vmatmul.f32.gmra.mxu3 %v379_v11  ;;  %v417_v11 = vld [vmem:[%s1781_s26 + $0x288] sm:$0xff] }
  0xaf   : > { %v2031_v12 = vpop.f32.mrf.mxu2  ;;  %v2033_v13 = vpop.f32.mrf.mxu0 }
  0xb1   : > { %v2036_v15 = vpop.f32.mrf.mxu1  ;;  %v2038_v16 = vpop.f32.mrf.mxu3 }
  0xb2   : > { %1562 = vmatmul.msk.f32.gmra.mxu0 %vm271_vm0, %v380_v14  ;;  %v418_v14 = vld [vmem:[%s1781_s26 + $0x290] sm:$0xff] }
  0xb4   : > { %821 = vmatmul.f32.gmra.mxu1 %v382_v17  ;;  %934 = vmatmul.f32.gmra.mxu2 %v383_v18  ;;  %v419_v17 = vld [vmem:[%s1781_s26 + $0x298] sm:$0xff] }
  0xb6   : > { %1047 = vmatmul.f32.gmra.mxu3 %v384_v19 }
  0xb7   : > { %v2044_v20 = vpop.f32.mrf.mxu2  ;;  %v2046_v21 = vpop.f32.mrf.mxu0 }
  0xb9   : > { %v2049_v23 = vpop.f32.mrf.mxu1  ;;  %v2051_v24 = vpop.f32.mrf.mxu3 }
  0xba   : > { %1563 = vmatmul.msk.f32.gmra.mxu0 %vm271_vm0, %v385_v22 }
  0xbc   : > { %824 = vmatmul.f32.gmra.mxu1 %v387_v25  ;;  %937 = vmatmul.f32.gmra.mxu2 %v388_v26  ;;  %v420_v25 = vld [vmem:[%s1781_s26 + $0x2a0] sm:$0xff] }
  0xbe   : > { %1050 = vmatmul.f32.gmra.mxu3 %v389_v27 }
  0xbf   : > { %v2057_v28 = vpop.f32.mrf.mxu2  ;;  %v2059_v29 = vpop.f32.mrf.mxu0 }
  0xc1   : > { %v2062_v31 = vpop.f32.mrf.mxu1  ;;  %v2064_v32 = vpop.f32.mrf.mxu3 }
  0xc2   : > { %1564 = vmatmul.msk.f32.gmra.mxu0 %vm271_vm0, %v390_v30 }
  0xc4   : > { %827 = vmatmul.f32.gmra.mxu1 %v392_v33  ;;  %940 = vmatmul.f32.gmra.mxu2 %v393_v34  ;;  %v422_v33 = vld [vmem:[%s1781_s26 + $0x2b0] sm:$0xff]  ;;  %v423_v34 = vld [vmem:[%s1781_s26 + $0x2b8] sm:$0xff] }
  0xc6   : > { %1053 = vmatmul.f32.gmra.mxu3 %v394_v35 }
  0xc7   : > { %v2070_v36 = vpop.f32.mrf.mxu2  ;;  %v2072_v37 = vpop.f32.mrf.mxu0 }
  0xc9   : > { %v2075_v39 = vpop.f32.mrf.mxu1  ;;  %v2077_v40 = vpop.f32.mrf.mxu3 }
  0xca   : > { %1565 = vmatmul.msk.f32.gmra.mxu0 %vm271_vm0, %v395_v38  ;;  %v304_v38 = vld [vmem:[#allocation2] sm:$0xff] }
  0xcc   : > { %830 = vmatmul.f32.gmra.mxu1 %v397_v41  ;;  %943 = vmatmul.f32.gmra.mxu2 %v398_v42  ;;  %v424_v41 = vld [vmem:[%s1781_s26 + $0x2c0] sm:$0xff] }
  0xce   : > { %1056 = vmatmul.f32.gmra.mxu3 %v399_v43 }
  0xcf   : > { %v2085_v45 = vpop.f32.mrf.mxu2  ;;  %v2087_v46 = vpop.f32.mrf.mxu0 }
  0xd1   : > { %v2094_v48 = vpop.f32.mrf.mxu1  ;;  %v2096_v49 = vpop.f32.mrf.mxu3 }
  0xd2   : > { %1566 = vmatmul.msk.f32.gmra.mxu0 %vm271_vm0, %v400_v47 }
  0xd4   : > { %833 = vmatmul.f32.gmra.mxu1 %v402_v50  ;;  %946 = vmatmul.f32.gmra.mxu2 %v403_v51  ;;  %v425_v50 = vld [vmem:[%s1781_s26 + $0x2c8] sm:$0xff] }
  0xd6   : > { %1059 = vmatmul.f32.gmra.mxu3 %v404_v52 }
  0xd7   : > { %v2114_v53 = vpop.f32.mrf.mxu2  ;;  %v2116_v54 = vpop.f32.mrf.mxu0 }
  0xd9   : > { %v2123_v56 = vpop.f32.mrf.mxu1  ;;  %v2125_v57 = vpop.f32.mrf.mxu3 }
  0xda   : > { %1567 = vmatmul.msk.f32.gmra.mxu0 %vm271_vm0, %v405_v55 }
  0xdc   : > { %836 = vmatmul.f32.gmra.mxu1 %v407_v58  ;;  %949 = vmatmul.f32.gmra.mxu2 %v408_v59  ;;  %v427_v58 = vld [vmem:[%s1781_s26 + $0x2d8] sm:$0xff]  ;;  %v428_v59 = vld [vmem:[%s1781_s26 + $0x2e0] sm:$0xff] }
  0xde   : > { %1062 = vmatmul.f32.gmra.mxu3 %v409_v60 }
  0xdf   : > { %v2143_v61 = vpop.f32.mrf.mxu2  ;;  %v2145_v62 = vpop.f32.mrf.mxu0 }
  0xe1   : > { %v2152_v0 = vpop.f32.mrf.mxu1  ;;  %v2154_v1 = vpop.f32.mrf.mxu3 }
  0xe2   : > { %1568 = vmatmul.msk.f32.gmra.mxu0 %vm271_vm0, %v410_v63  ;;  %v305_v63 = vld [vmem:[#allocation2 + $0x8] sm:$0xff] }
  0xe4   : > { %839 = vmatmul.f32.gmra.mxu1 %v412_v2  ;;  %952 = vmatmul.f32.gmra.mxu2 %v413_v3  ;;  %v429_v2 = vld [vmem:[%s1781_s26 + $0x2e8] sm:$0xff] }
  0xe6   : > { %1065 = vmatmul.f32.gmra.mxu3 %v414_v4 }
  0xe7   : > { %v2172_v5 = vpop.f32.mrf.mxu2  ;;  %v2174_v6 = vpop.f32.mrf.mxu0 }
  0xe9   : > { %v2181_v9 = vpop.f32.mrf.mxu3  ;;  %v795_v10 = vpop.f32.mrf.mxu1 }
  0xea   : > { %1569 = vmatmul.msk.f32.gmra.mxu0 %vm271_vm0, %v415_v7  ;;  %v796_v18 = vadd.f32 %v795_v10, %v2033_v13 }
  0xec   : > { %842 = vmatmul.f32.gmra.mxu1 %v417_v11  ;;  %955 = vmatmul.f32.gmra.mxu2 %v418_v14 }
  0xee   : > { %1068 = vmatmul.f32.gmra.mxu3 %v419_v17  ;;  %v430_v17 = vld [vmem:[%s1781_s26 + $0x2f0] sm:$0xff] }
  0xef   : > { %v908_v19 = vpop.f32.mrf.mxu2  ;;  %v1134_v22 = vpop.f32.mrf.mxu0 }
  0xf0   : > { %v909_v26 = vadd.f32 %v908_v19, %v796_v18 }
  0xf1   : > { %v798_v27 = vpop.f32.mrf.mxu1  ;;  %v1021_v30 = vpop.f32.mrf.mxu3 }
  0xf2   : > { %v1022_v35 = vadd.f32 %v1021_v30, %v909_v26  ;;  %1570 = vmatmul.msk.f32.gmra.mxu0 %vm271_vm0, %v420_v25  ;;  %v799_v13 = vadd.f32 %v798_v27, %v2046_v21  ;;  %v2213_v21 = vld [vmem:[%s2454_s2] ss:$0 sm:$0xff]  ;;  %v433_v26 = vld [vmem:[%s1781_s26 + $0x308] sm:$0xff] }
  0xf3   : > { %v432_v25 = vld [vmem:[%s1781_s26 + $0x300] sm:$0xff] }
  0xf4   : > { %v1135_v42 = vadd.f32 %v1134_v22, %v1022_v35  ;;  %845 = vmatmul.f32.gmra.mxu1 %v422_v33  ;;  %958 = vmatmul.f32.gmra.mxu2 %v423_v34  ;;  %v306_v33 = vld [vmem:[#allocation2 + $0x10] sm:$0xff] }
  0xf5   : > { %v434_v34 = vld [vmem:[%s1781_s26 + $0x310] sm:$0xff] }
  0xf6   : > { %v1230_v43 = vadd.f32 %v1135_v42, %v304_v38  ;;  %1071 = vmatmul.f32.gmra.mxu3 %v424_v41 }
  0xf7   : > { %v911_v44 = vpop.f32.mrf.mxu2  ;;  %v1137_v47 = vpop.f32.mrf.mxu0 }
  0xf8   : > { %1262 = vst.msk [vmem:[#allocation2] sm:$0xff] %vm271_vm0, %v1230_v43  ;;  %v912_v51 = vadd.f32 %v911_v44, %v799_v13  ;;  %v435_v44 = vld [vmem:[%s1781_s26 + $0x318] sm:$0xff] }
  0xf9   : > { %v801_v52 = vpop.f32.mrf.mxu1  ;;  %v1024_v55 = vpop.f32.mrf.mxu3 }
  0xfa   : > { %v1025_v60 = vadd.f32 %v1024_v55, %v912_v51  ;;  %1571 = vmatmul.msk.f32.gmra.mxu0 %vm271_vm0, %v425_v50  ;;  %v802_v4 = vadd.f32 %v801_v52, %v2059_v29  ;;  %v437_v55 = vld [vmem:[%s1781_s26 + $0x328] sm:$0xff] }
  0xfc   : > { %v1138_v3 = vadd.f32 %v1137_v47, %v1025_v60  ;;  %848 = vmatmul.f32.gmra.mxu1 %v427_v58  ;;  %961 = vmatmul.f32.gmra.mxu2 %v428_v59  ;;  %v438_v58 = vld [vmem:[%s1781_s26 + $0x330] sm:$0xff]  ;;  %v307_v60 = vld [vmem:[#allocation2 + $0x18] sm:$0xff] }
  0xfe   : > { %v1231_v7 = vadd.f32 %v1138_v3, %v305_v63  ;;  %1074 = vmatmul.f32.gmra.mxu3 %v429_v2  ;;  %v439_v63 = vld [vmem:[%s1781_s26 + $0x338] sm:$0xff] }
  0xff   : > { %v1297_v10 = vld [vmem:[#allocation2] sm:$0xff]  ;;  %v914_v11 = vpop.f32.mrf.mxu2  ;;  %v1140_v14 = vpop.f32.mrf.mxu0 }
 0x100   : > { %v1333_v18 = vadd.f32 %v2213_v21, %v1297_v10  ;;  %1263 = vst.msk [vmem:[#allocation2 + $0x8] sm:$0xff] %vm271_vm0, %v1231_v7  ;;  %v915_v19 = vadd.f32 %v914_v11, %v802_v4 }
 0x101   : > { %v804_v22 = vpop.f32.mrf.mxu1  ;;  %v1027_v29 = vpop.f32.mrf.mxu3 }
 0x102   : > { %v1365_v27 = vmax.f32 %v1333_v18, 0.0  ;;  %v1028_v30 = vadd.f32 %v1027_v29, %v915_v19  ;;  %1572 = vmatmul.msk.f32.gmra.mxu0 %vm271_vm0, %v430_v17  ;;  %v805_v38 = vadd.f32 %v804_v22, %v2072_v37  ;;  %v442_v29 = vld [vmem:[%s1781_s26 + $0x350] sm:$0xff] }
 0x104   : > { %1397 = vst.msk [vmem:[%s2223_s10] sm:$0xff] %vm271_vm0, %v1365_v27  ;;  %v1141_v35 = vadd.f32 %v1140_v14, %v1028_v30  ;;  %851 = vmatmul.f32.gmra.mxu1 %v432_v25  ;;  %964 = vmatmul.f32.gmra.mxu2 %v433_v26  ;;  %v440_v14 = vld [vmem:[%s1781_s26 + $0x340] sm:$0xff]  ;;  %v443_v25 = vld [vmem:[%s1781_s26 + $0x358] sm:$0xff] }
 0x105   : > { %v308_v27 = vld [vmem:[#allocation2 + $0x20] sm:$0xff] }
 0x106   : > { %v1232_v41 = vadd.f32 %v1141_v35, %v306_v33  ;;  %1077 = vmatmul.f32.gmra.mxu3 %v434_v34  ;;  %v444_v30 = vld [vmem:[%s1781_s26 + $0x360] sm:$0xff] }
 0x107   : > { %v1298_v42 = vld [vmem:[#allocation2 + $0x8] sm:$0xff]  ;;  %v917_v13 = vpop.f32.mrf.mxu2  ;;  %v1143_v43 = vpop.f32.mrf.mxu0 }
 0x108   : > { %v1334_v47 = vadd.f32 %v2213_v21, %v1298_v42  ;;  %1264 = vst.msk [vmem:[#allocation2 + $0x10] sm:$0xff] %vm271_vm0, %v1232_v41  ;;  %v918_v50 = vadd.f32 %v917_v13, %v805_v38  ;;  %v445_v13 = vld [vmem:[%s1781_s26 + $0x368] sm:$0xff] }
 0x109   : > { %v807_v51 = vpop.f32.mrf.mxu1  ;;  %v1030_v52 = vpop.f32.mrf.mxu3 }
 0x10a   : > { %v1366_v59 = vmax.f32 %v1334_v47, 0.0  ;;  %v1031_v37 = vadd.f32 %v1030_v52, %v918_v50  ;;  %1573 = vmatmul.msk.f32.gmra.mxu0 %vm271_vm0, %v435_v44  ;;  %v808_v3 = vadd.f32 %v807_v51, %v2087_v46  ;;  %v447_v51 = vld [vmem:[%s1781_s26 + $0x378] sm:$0xff]  ;;  %v448_v52 = vld [vmem:[%s1781_s26 + $0x380] sm:$0xff] }
 0x10c   : > { %1398 = vst.msk [vmem:[%s2223_s10 + $0x8] sm:$0xff] %vm271_vm0, %v1366_v59  ;;  %v1144_v2 = vadd.f32 %v1143_v43, %v1031_v37  ;;  %854 = vmatmul.f32.gmra.mxu1 %v437_v55  ;;  %967 = vmatmul.f32.gmra.mxu2 %v438_v58  ;;  %v309_v58 = vld [vmem:[#allocation2 + $0x28] sm:$0xff] }
 0x10d   : > { %v449_v59 = vld [vmem:[%s1781_s26 + $0x388] sm:$0xff] }
 0x10e   : > { %v1233_v4 = vadd.f32 %v1144_v2, %v307_v60  ;;  %1080 = vmatmul.f32.gmra.mxu3 %v439_v63 }
 0x10f   : > { %v1299_v7 = vld [vmem:[#allocation2 + $0x10] sm:$0xff]  ;;  %v920_v10 = vpop.f32.mrf.mxu2  ;;  %v1146_v11 = vpop.f32.mrf.mxu0 }
 0x110   : > { %v1335_v17 = vadd.f32 %v2213_v21, %v1299_v7  ;;  %1265 = vst.msk [vmem:[#allocation2 + $0x18] sm:$0xff] %vm271_vm0, %v1233_v4  ;;  %v921_v18 = vadd.f32 %v920_v10, %v808_v3  ;;  %v450_v7 = vld [vmem:[%s1781_s26 + $0x390] sm:$0xff] }
 0x111   : > { %v810_v19 = vpop.f32.mrf.mxu1  ;;  %v1033_v22 = vpop.f32.mrf.mxu3 }
 0x112   : > { %v1367_v26 = vmax.f32 %v1335_v17, 0.0  ;;  %v1034_v46 = vadd.f32 %v1033_v22, %v921_v18  ;;  %1574 = vmatmul.msk.f32.gmra.mxu0 %vm271_vm0, %v440_v14  ;;  %v811_v34 = vadd.f32 %v810_v19, %v2116_v54  ;;  %v452_v18 = vld [vmem:[%s1781_s26 + $0x3a0] sm:$0xff]  ;;  %v453_v19 = vld [vmem:[%s1781_s26 + $0x3a8] sm:$0xff] }
 0x114   : > { %1399 = vst.msk [vmem:[%s2223_s10 + $0x10] sm:$0xff] %vm271_vm0, %v1367_v26  ;;  %v1147_v33 = vadd.f32 %v1146_v11, %v1034_v46  ;;  %857 = vmatmul.f32.gmra.mxu1 %v442_v29  ;;  %970 = vmatmul.f32.gmra.mxu2 %v443_v25  ;;  %v310_v29 = vld [vmem:[#allocation2 + $0x30] sm:$0xff] }
 0x115   : > { %v454_v25 = vld [vmem:[%s1781_s26 + $0x3b0] sm:$0xff] }
 0x116   : > { %v1234_v35 = vadd.f32 %v1147_v33, %v308_v27  ;;  %1083 = vmatmul.f32.gmra.mxu3 %v444_v30 }
 0x117   : > { %v1300_v38 = vld [vmem:[#allocation2 + $0x18] sm:$0xff]  ;;  %v923_v41 = vpop.f32.mrf.mxu2  ;;  %v1149_v42 = vpop.f32.mrf.mxu0 }
 0x118   : > { %v1336_v43 = vadd.f32 %v2213_v21, %v1300_v38  ;;  %1266 = vst.msk [vmem:[#allocation2 + $0x20] sm:$0xff] %vm271_vm0, %v1234_v35  ;;  %v924_v44 = vadd.f32 %v923_v41, %v811_v34  ;;  %v455_v35 = vld [vmem:[%s1781_s26 + $0x3b8] sm:$0xff] }
 0x119   : > { %v813_v47 = vpop.f32.mrf.mxu1  ;;  %v1036_v50 = vpop.f32.mrf.mxu3 }
 0x11a   : > { %v1368_v55 = vmax.f32 %v1336_v43, 0.0  ;;  %v1037_v54 = vadd.f32 %v1036_v50, %v924_v44  ;;  %1575 = vmatmul.msk.f32.gmra.mxu0 %vm271_vm0, %v445_v13  ;;  %v814_v60 = vadd.f32 %v813_v47, %v2145_v62  ;;  %v457_v43 = vld [vmem:[%s1781_s26 + $0x3c8] sm:$0xff]  ;;  %v458_v44 = vld [vmem:[%s1781_s26 + $0x3d0] sm:$0xff]  ;;  %v311_v50 = vld [vmem:[#allocation2 + $0x38] sm:$0xff] }
 0x11c   : > { %1400 = vst.msk [vmem:[%s2223_s10 + $0x18] sm:$0xff] %vm271_vm0, %v1368_v55  ;;  %v1150_v37 = vadd.f32 %v1149_v42, %v1037_v54  ;;  %860 = vmatmul.f32.gmra.mxu1 %v447_v51  ;;  %973 = vmatmul.f32.gmra.mxu2 %v448_v52  ;;  %v459_v51 = vld [vmem:[%s1781_s26 + $0x3d8] sm:$0xff] }
 0x11e   : > { %v1235_v63 = vadd.f32 %v1150_v37, %v309_v58  ;;  %1086 = vmatmul.f32.gmra.mxu3 %v449_v59 }
 0x11f   : > { %v1301_v2 = vld [vmem:[#allocation2 + $0x20] sm:$0xff]  ;;  %v926_v3 = vpop.f32.mrf.mxu2  ;;  %v1152_v4 = vpop.f32.mrf.mxu0 }
 0x120   : > { %v1337_v10 = vadd.f32 %v2213_v21, %v1301_v2  ;;  %1267 = vst.msk [vmem:[#allocation2 + $0x28] sm:$0xff] %vm271_vm0, %v1235_v63  ;;  %v927_v11 = vadd.f32 %v926_v3, %v814_v60  ;;  %v460_v60 = vld [vmem:[%s1781_s26 + $0x3e0] sm:$0xff] }
 0x121   : > { %v816_v14 = vpop.f32.mrf.mxu1  ;;  %v1039_v17 = vpop.f32.mrf.mxu3 }
 0x122   : > { %v1369_v22 = vmax.f32 %v1337_v10, 0.0  ;;  %v1040_v62 = vadd.f32 %v1039_v17, %v927_v11  ;;  %1576 = vmatmul.msk.f32.gmra.mxu0 %vm271_vm0, %v450_v7  ;;  %v817_v46 = vadd.f32 %v816_v14, %v2174_v6  ;;  %v462_v7 = vld [vmem:[%s1781_s26 + $0x3f0] sm:$0xff]  ;;  %v463_v10 = vld [vmem:[%s1781_s26 + $0x3f8] sm:$0xff]  ;;  %v312_v14 = vld [vmem:[#allocation2 + $0x40] sm:$0xff] }
 0x123   : > { %v464_v17 = vld [vmem:[%s1781_s26 + $0x400] sm:$0xff] }
 0x124   : > { %1401 = vst.msk [vmem:[%s2223_s10 + $0x20] sm:$0xff] %vm271_vm0, %v1369_v22  ;;  %v1153_v26 = vadd.f32 %v1152_v4, %v1040_v62  ;;  %863 = vmatmul.f32.gmra.mxu1 %v452_v18  ;;  %976 = vmatmul.f32.gmra.mxu2 %v453_v19 }
 0x126   : > { %v1236_v27 = vadd.f32 %v1153_v26, %v310_v29  ;;  %1089 = vmatmul.f32.gmra.mxu3 %v454_v25  ;;  %v465_v26 = vld [vmem:[%s1781_s26 + $0x408] sm:$0xff] }
 0x127   : > { %v1302_v30 = vld [vmem:[#allocation2 + $0x28] sm:$0xff]  ;;  %v929_v33 = vpop.f32.mrf.mxu2  ;;  %v1155_v34 = vpop.f32.mrf.mxu0 }
 0x128   : > { %v1338_v38 = vadd.f32 %v2213_v21, %v1302_v30  ;;  %1268 = vst.msk [vmem:[#allocation2 + $0x30] sm:$0xff] %vm271_vm0, %v1236_v27  ;;  %v930_v41 = vadd.f32 %v929_v33, %v817_v46 }
 0x129   : > { %v819_v42 = vpop.f32.mrf.mxu1  ;;  %v1042_v13 = vpop.f32.mrf.mxu3 }
 0x12a   : > { %v1370_v47 = vmax.f32 %v1338_v38, 0.0  ;;  %v1043_v6 = vadd.f32 %v1042_v13, %v930_v41  ;;  %1577 = vmatmul.msk.f32.gmra.mxu0 %vm271_vm0, %v455_v35  ;;  %v820_v55 = vadd.f32 %v819_v42, %v2025_v8  ;;  %v468_v35 = vld [vmem:[%s1781_s26 + $0x420] sm:$0xff]  ;;  %v313_v41 = vld [vmem:[#allocation2 + $0x48] sm:$0xff] }
 0x12b   : > { %v469_v42 = vld [vmem:[%s1781_s26 + $0x428] sm:$0xff] }
 0x12c   : > { %1402 = vst.msk [vmem:[%s2223_s10 + $0x28] sm:$0xff] %vm271_vm0, %v1370_v47  ;;  %v1156_v52 = vadd.f32 %v1155_v34, %v1043_v6  ;;  %866 = vmatmul.f32.gmra.mxu1 %v457_v43  ;;  %979 = vmatmul.f32.gmra.mxu2 %v458_v44  ;;  %v467_v34 = vld [vmem:[%s1781_s26 + $0x418] sm:$0xff] }
 0x12e   : > { %v1237_v54 = vadd.f32 %v1156_v52, %v311_v50  ;;  %1092 = vmatmul.f32.gmra.mxu3 %v459_v51  ;;  %v470_v51 = vld [vmem:[%s1781_s26 + $0x430] sm:$0xff] }
 0x12f   : > { %v1303_v58 = vld [vmem:[#allocation2 + $0x30] sm:$0xff]  ;;  %v932_v59 = vpop.f32.mrf.mxu2  ;;  %v1158_v37 = vpop.f32.mrf.mxu0 }
 0x130   : > { %v1339_v63 = vadd.f32 %v2213_v21, %v1303_v58  ;;  %1269 = vst.msk [vmem:[#allocation2 + $0x38] sm:$0xff] %vm271_vm0, %v1237_v54  ;;  %v933_v2 = vadd.f32 %v932_v59, %v820_v55  ;;  %v472_v59 = vld [vmem:[%s1781_s26 + $0x440] sm:$0xff] }
 0x131   : > { %v822_v3 = vpop.f32.mrf.mxu1  ;;  %v1045_v4 = vpop.f32.mrf.mxu3 }
 0x132   : > { %v1371_v11 = vmax.f32 %v1339_v63, 0.0  ;;  %v1046_v8 = vadd.f32 %v1045_v4, %v933_v2  ;;  %1578 = vmatmul.msk.f32.gmra.mxu0 %vm271_vm0, %v460_v60  ;;  %v823_v19 = vadd.f32 %v822_v3, %v2036_v15  ;;  %v314_v63 = vld [vmem:[#allocation2 + $0x50] sm:$0xff] }
 0x133   : > { %v474_v2 = vld [vmem:[%s1781_s26 + $0x450] sm:$0xff] }
 0x134   : > { %1403 = vst.msk [vmem:[%s2223_s10 + $0x30] sm:$0xff] %vm271_vm0, %v1371_v11  ;;  %v1159_v18 = vadd.f32 %v1158_v37, %v1046_v8  ;;  %869 = vmatmul.f32.gmra.mxu1 %v462_v7  ;;  %982 = vmatmul.f32.gmra.mxu2 %v463_v10  ;;  %v473_v37 = vld [vmem:[%s1781_s26 + $0x448] sm:$0xff] }
 0x136   : > { %v1238_v22 = vadd.f32 %v1159_v18, %v312_v14  ;;  %1095 = vmatmul.f32.gmra.mxu3 %v464_v17  ;;  %v475_v14 = vld [vmem:[%s1781_s26 + $0x458] sm:$0xff] }
 0x137   : > { %v1304_v62 = vld [vmem:[#allocation2 + $0x38] sm:$0xff]  ;;  %v935_v29 = vpop.f32.mrf.mxu2  ;;  %v1161_v25 = vpop.f32.mrf.mxu0 }
 0x138   : > { %v1340_v46 = vadd.f32 %v2213_v21, %v1304_v62  ;;  %1270 = vst.msk [vmem:[#allocation2 + $0x40] sm:$0xff] %vm271_vm0, %v1238_v22  ;;  %v936_v27 = vadd.f32 %v935_v29, %v823_v19  ;;  %v477_v62 = vld [vmem:[%s1781_s26 + $0x468] sm:$0xff]  ;;  %v478_v29 = vld [vmem:[%s1781_s26 + $0x470] sm:$0xff] }
 0x139   : > { %v825_v30 = vpop.f32.mrf.mxu1  ;;  %v1048_v33 = vpop.f32.mrf.mxu3 }
 0x13a   : > { %v1372_v38 = vmax.f32 %v1340_v46, 0.0  ;;  %v1049_v15 = vadd.f32 %v1048_v33, %v936_v27  ;;  %1579 = vmatmul.msk.f32.gmra.mxu0 %vm271_vm0, %v465_v26  ;;  %v826_v43 = vadd.f32 %v825_v30, %v2049_v23  ;;  %v315_v26 = vld [vmem:[#allocation2 + $0x58] sm:$0xff] }
 0x13b   : > { %v479_v46 = vld [vmem:[%s1781_s26 + $0x478] sm:$0xff] }
 0x13c   : > { %1404 = vst.msk [vmem:[%s2223_s10 + $0x38] sm:$0xff] %vm271_vm0, %v1372_v38  ;;  %v1162_v13 = vadd.f32 %v1161_v25, %v1049_v15  ;;  %872 = vmatmul.f32.gmra.mxu1 %v467_v34  ;;  %985 = vmatmul.f32.gmra.mxu2 %v468_v35  ;;  %v480_v15 = vld [vmem:[%s1781_s26 + $0x480] sm:$0xff] }
 0x13e   : > { %v1239_v44 = vadd.f32 %v1162_v13, %v313_v41  ;;  %1098 = vmatmul.f32.gmra.mxu3 %v469_v42 }
 0x13f   : > { %v1305_v47 = vld [vmem:[#allocation2 + $0x40] sm:$0xff]  ;;  %v938_v6 = vpop.f32.mrf.mxu2  ;;  %v1164_v50 = vpop.f32.mrf.mxu0 }
 0x140   : > { %v1341_v52 = vadd.f32 %v2213_v21, %v1305_v47  ;;  %1271 = vst.msk [vmem:[#allocation2 + $0x48] sm:$0xff] %vm271_vm0, %v1239_v44  ;;  %v939_v55 = vadd.f32 %v938_v6, %v826_v43  ;;  %v482_v44 = vld [vmem:[%s1781_s26 + $0x490] sm:$0xff]  ;;  %v483_v47 = vld [vmem:[%s1781_s26 + $0x498] sm:$0xff] }
 0x141   : > { %v828_v54 = vpop.f32.mrf.mxu1  ;;  %v1051_v58 = vpop.f32.mrf.mxu3 }
 0x142   : > { %v1373_v60 = vmax.f32 %v1341_v52, 0.0  ;;  %v1052_v23 = vadd.f32 %v1051_v58, %v939_v55  ;;  %1580 = vmatmul.msk.f32.gmra.mxu0 %vm271_vm0, %v470_v51  ;;  %v829_v4 = vadd.f32 %v828_v54, %v2062_v31  ;;  %v484_v51 = vld [vmem:[%s1781_s26 + $0x4a0] sm:$0xff] }
 0x144   : > { %1405 = vst.msk [vmem:[%s2223_s10 + $0x40] sm:$0xff] %vm271_vm0, %v1373_v60  ;;  %v1165_v3 = vadd.f32 %v1164_v50, %v1052_v23  ;;  %875 = vmatmul.f32.gmra.mxu1 %v472_v59  ;;  %988 = vmatmul.f32.gmra.mxu2 %v473_v37  ;;  %v316_v50 = vld [vmem:[#allocation2 + $0x60] sm:$0xff]  ;;  %v485_v60 = vld [vmem:[%s1781_s26 + $0x4a8] sm:$0xff] }
 0x146   : > { %v1240_v7 = vadd.f32 %v1165_v3, %v314_v63  ;;  %1101 = vmatmul.f32.gmra.mxu3 %v474_v2 }
 0x147   : > { %v1306_v10 = vld [vmem:[#allocation2 + $0x48] sm:$0xff]  ;;  %v941_v11 = vpop.f32.mrf.mxu2  ;;  %v1167_v8 = vpop.f32.mrf.mxu0 }
 0x148   : > { %v1342_v17 = vadd.f32 %v2213_v21, %v1306_v10  ;;  %1272 = vst.msk [vmem:[#allocation2 + $0x50] sm:$0xff] %vm271_vm0, %v1240_v7  ;;  %v942_v18 = vadd.f32 %v941_v11, %v829_v4  ;;  %v487_v4 = vld [vmem:[%s1781_s26 + $0x4b8] sm:$0xff]  ;;  %v488_v7 = vld [vmem:[%s1781_s26 + $0x4c0] sm:$0xff]  ;;  %v317_v11 = vld [vmem:[#allocation2 + $0x68] sm:$0xff] }
 0x149   : > { %v831_v19 = vpop.f32.mrf.mxu1  ;;  %v1054_v22 = vpop.f32.mrf.mxu3 }
 0x14a   : > { %v1374_v25 = vmax.f32 %v1342_v17, 0.0  ;;  %v1055_v31 = vadd.f32 %v1054_v22, %v942_v18  ;;  %1581 = vmatmul.msk.f32.gmra.mxu0 %vm271_vm0, %v475_v14  ;;  %v832_v30 = vadd.f32 %v831_v19, %v2075_v39 }
 0x14c   : > { %1406 = vst.msk [vmem:[%s2223_s10 + $0x48] sm:$0xff] %vm271_vm0, %v1374_v25  ;;  %v1168_v27 = vadd.f32 %v1167_v8, %v1055_v31  ;;  %878 = vmatmul.f32.gmra.mxu1 %v477_v62  ;;  %991 = vmatmul.f32.gmra.mxu2 %v478_v29  ;;  %v489_v8 = vld [vmem:[%s1781_s26 + $0x4c8] sm:$0xff]  ;;  %v490_v29 = vld [vmem:[%s1781_s26 + $0x4d0] sm:$0xff] }
 0x14e   : > { %v1241_v33 = vadd.f32 %v1168_v27, %v315_v26  ;;  %1104 = vmatmul.f32.gmra.mxu3 %v479_v46  ;;  %v492_v27 = vld [vmem:[%s1781_s26 + $0x4e0] sm:$0xff] }
 0x14f   : > { %v1307_v34 = vld [vmem:[#allocation2 + $0x50] sm:$0xff]  ;;  %v944_v35 = vpop.f32.mrf.mxu2  ;;  %v1170_v38 = vpop.f32.mrf.mxu0 }
 0x150   : > { %v1343_v41 = vadd.f32 %v2213_v21, %v1307_v34  ;;  %1273 = vst.msk [vmem:[#allocation2 + $0x58] sm:$0xff] %vm271_vm0, %v1241_v33  ;;  %v945_v42 = vadd.f32 %v944_v35, %v832_v30  ;;  %v493_v30 = vld [vmem:[%s1781_s26 + $0x4e8] sm:$0xff]  ;;  %v318_v34 = vld [vmem:[#allocation2 + $0x70] sm:$0xff] }
 0x151   : > { %v834_v13 = vpop.f32.mrf.mxu1  ;;  %v1057_v43 = vpop.f32.mrf.mxu3  ;;  %v494_v35 = vld [vmem:[%s1781_s26 + $0x4f0] sm:$0xff] }
 0x152   : > { %v1375_v6 = vmax.f32 %v1343_v41, 0.0  ;;  %v1058_v39 = vadd.f32 %v1057_v43, %v945_v42  ;;  %1582 = vmatmul.msk.f32.gmra.mxu0 %vm271_vm0, %v480_v15  ;;  %v835_v55 = vadd.f32 %v834_v13, %v2094_v48 }
 0x154   : > { %1407 = vst.msk [vmem:[%s2223_s10 + $0x50] sm:$0xff] %vm271_vm0, %v1375_v6  ;;  %v1171_v52 = vadd.f32 %v1170_v38, %v1058_v39  ;;  %881 = vmatmul.f32.gmra.mxu1 %v482_v44  ;;  %994 = vmatmul.f32.gmra.mxu2 %v483_v47  ;;  %v495_v44 = vld [vmem:[%s1781_s26 + $0x4f8] sm:$0xff] }
 0x156   : > { %v1242_v54 = vadd.f32 %v1171_v52, %v316_v50  ;;  %1107 = vmatmul.f32.gmra.mxu3 %v484_v51 }
 0x157   : > { %v1308_v58 = vld [vmem:[#allocation2 + $0x58] sm:$0xff]  ;;  %v947_v59 = vpop.f32.mrf.mxu2  ;;  %v1173_v37 = vpop.f32.mrf.mxu0 }
 0x158   : > { %v1344_v23 = vadd.f32 %v2213_v21, %v1308_v58  ;;  %1274 = vst.msk [vmem:[#allocation2 + $0x60] sm:$0xff] %vm271_vm0, %v1242_v54  ;;  %v948_v63 = vadd.f32 %v947_v59, %v835_v55  ;;  %v319_v55 = vld [vmem:[#allocation2 + $0x78] sm:$0xff] }
 0x159   : > { %v837_v2 = vpop.f32.mrf.mxu1  ;;  %v1060_v3 = vpop.f32.mrf.mxu3 }
 0x15a   : > { %v1376_v10 = vmax.f32 %v1344_v23, 0.0  ;;  %v1061_v48 = vadd.f32 %v1060_v3, %v948_v63  ;;  %1583 = vmatmul.msk.f32.gmra.mxu0 %vm271_vm0, %v485_v60  ;;  %v838_v17 = vadd.f32 %v837_v2, %v2123_v56 }
 0x15c   : > { %1408 = vst.msk [vmem:[%s2223_s10 + $0x58] sm:$0xff] %vm271_vm0, %v1376_v10  ;;  %v1174_v14 = vadd.f32 %v1173_v37, %v1061_v48  ;;  %884 = vmatmul.f32.gmra.mxu1 %v487_v4  ;;  %997 = vmatmul.f32.gmra.mxu2 %v488_v7  ;;  %v320_v10 = vld [vmem:[#allocation2 + $0x80] sm:$0xff] }
 0x15e   : > { %v1243_v18 = vadd.f32 %v1174_v14, %v317_v11  ;;  %1110 = vmatmul.f32.gmra.mxu3 %v489_v8 }
 0x15f   : > { %v1309_v19 = vld [vmem:[#allocation2 + $0x60] sm:$0xff]  ;;  %v950_v22 = vpop.f32.mrf.mxu2  ;;  %v1176_v62 = vpop.f32.mrf.mxu0 }
 0x160   : > { %v1345_v25 = vadd.f32 %v2213_v21, %v1309_v19  ;;  %1275 = vst.msk [vmem:[#allocation2 + $0x68] sm:$0xff] %vm271_vm0, %v1243_v18  ;;  %v951_v31 = vadd.f32 %v950_v22, %v838_v17 }
 0x161   : > { %v840_v26 = vpop.f32.mrf.mxu1  ;;  %v1063_v46 = vpop.f32.mrf.mxu3 }
 0x162   : > { %v1377_v33 = vmax.f32 %v1345_v25, 0.0  ;;  %v1064_v56 = vadd.f32 %v1063_v46, %v951_v31  ;;  %1584 = vmatmul.msk.f32.gmra.mxu0 %vm271_vm0, %v490_v29  ;;  %v841_v15 = vadd.f32 %v840_v26, %v2152_v0  ;;  %v321_v31 = vld [vmem:[#allocation2 + $0x88] sm:$0xff] }
 0x164   : > { %1409 = vst.msk [vmem:[%s2223_s10 + $0x60] sm:$0xff] %vm271_vm0, %v1377_v33  ;;  %v1177_v38 = vadd.f32 %v1176_v62, %v1064_v56  ;;  %887 = vmatmul.f32.gmra.mxu1 %v492_v27  ;;  %1000 = vmatmul.f32.gmra.mxu2 %v493_v30 }
 0x166   : > { %v1244_v41 = vadd.f32 %v1177_v38, %v318_v34  ;;  %1113 = vmatmul.f32.gmra.mxu3 %v494_v35 }
 0x167   : > { %v1310_v42 = vld [vmem:[#allocation2 + $0x68] sm:$0xff]  ;;  %v953_v13 = vpop.f32.mrf.mxu2  ;;  %v1179_v43 = vpop.f32.mrf.mxu0 }
 0x168   : > { %v1346_v47 = vadd.f32 %v2213_v21, %v1310_v42  ;;  %1276 = vst.msk [vmem:[#allocation2 + $0x70] sm:$0xff] %vm271_vm0, %v1244_v41  ;;  %v954_v6 = vadd.f32 %v953_v13, %v841_v15  ;;  %v322_v42 = vld [vmem:[#allocation2 + $0x90] sm:$0xff] }
 0x169   : > { %v843_v39 = vpop.f32.mrf.mxu1  ;;  %v1066_v50 = vpop.f32.mrf.mxu3 }
 0x16a   : > { %v1378_v51 = vmax.f32 %v1346_v47, 0.0  ;;  %v1067_v52 = vadd.f32 %v1066_v50, %v954_v6  ;;  %1585 = vmatmul.msk.f32.gmra.mxu0 %vm271_vm0, %v495_v44  ;;  %v844_v54 = vadd.f32 %v843_v39, %v2031_v12 }
 0x16c   : > { %1410 = vst.msk [vmem:[%s2223_s10 + $0x68] sm:$0xff] %vm271_vm0, %v1378_v51  ;;  %v1180_v0 = vadd.f32 %v1179_v43, %v1067_v52 }
 0x16e   : > { %v1245_v58 = vadd.f32 %v1180_v0, %v319_v55 }
 0x16f   : > { %v1311_v59 = vld [vmem:[#allocation2 + $0x70] sm:$0xff]  ;;  %v956_v37 = vpop.f32.mrf.mxu2  ;;  %v1182_v60 = vpop.f32.mrf.mxu0 }
 0x170   : > { %v1347_v23 = vadd.f32 %v2213_v21, %v1311_v59  ;;  %1277 = vst.msk [vmem:[#allocation2 + $0x78] sm:$0xff] %vm271_vm0, %v1245_v58  ;;  %v957_v63 = vadd.f32 %v956_v37, %v844_v54  ;;  %v323_v54 = vld [vmem:[#allocation2 + $0x98] sm:$0xff] }
 0x171   : > { %v846_v2 = vpop.f32.mrf.mxu1  ;;  %v1069_v3 = vpop.f32.mrf.mxu3 }
 0x172   : > { %v1379_v4 = vmax.f32 %v1347_v23, 0.0  ;;  %v1070_v7 = vadd.f32 %v1069_v3, %v957_v63  ;;  %v847_v12 = vadd.f32 %v846_v2, %v2044_v20 }
 0x174   : > { %1411 = vst.msk [vmem:[%s2223_s10 + $0x70] sm:$0xff] %vm271_vm0, %v1379_v4  ;;  %v1183_v48 = vadd.f32 %v1182_v60, %v1070_v7 }
 0x176   : > { %v1246_v11 = vadd.f32 %v1183_v48, %v320_v10  ;;  %v324_v48 = vld [vmem:[#allocation2 + $0xa0] sm:$0xff] }
 0x177   : > { %v1312_v8 = vld [vmem:[#allocation2 + $0x78] sm:$0xff]  ;;  %v959_v14 = vpop.f32.mrf.mxu2  ;;  %v1185_v17 = vpop.f32.mrf.mxu0 }
 0x178   : > { %v1348_v18 = vadd.f32 %v2213_v21, %v1312_v8  ;;  %1278 = vst.msk [vmem:[#allocation2 + $0x80] sm:$0xff] %vm271_vm0, %v1246_v11  ;;  %v960_v19 = vadd.f32 %v959_v14, %v847_v12 }
 0x179   : > { %v849_v22 = vpop.f32.mrf.mxu1  ;;  %v1072_v62 = vpop.f32.mrf.mxu3 }
 0x17a   : > { %v1380_v29 = vmax.f32 %v1348_v18, 0.0  ;;  %v1073_v25 = vadd.f32 %v1072_v62, %v960_v19  ;;  %v850_v20 = vadd.f32 %v849_v22, %v2057_v28 }
 0x17c   : > { %1412 = vst.msk [vmem:[%s2223_s10 + $0x78] sm:$0xff] %vm271_vm0, %v1380_v29  ;;  %v1186_v26 = vadd.f32 %v1185_v17, %v1073_v25 }
 0x17e   : > { %v1247_v46 = vadd.f32 %v1186_v26, %v321_v31  ;;  %v325_v31 = vld [vmem:[#allocation2 + $0xa8] sm:$0xff] }
 0x17f   : > { %v1313_v27 = vld [vmem:[#allocation2 + $0x80] sm:$0xff]  ;;  %v962_v30 = vpop.f32.mrf.mxu2  ;;  %v1188_v33 = vpop.f32.mrf.mxu0 }
 0x180   : > { %v1349_v56 = vadd.f32 %v2213_v21, %v1313_v27  ;;  %1279 = vst.msk [vmem:[#allocation2 + $0x88] sm:$0xff] %vm271_vm0, %v1247_v46  ;;  %v963_v34 = vadd.f32 %v962_v30, %v850_v20 }
 0x181   : > { %v852_v35 = vpop.f32.mrf.mxu1  ;;  %v1075_v38 = vpop.f32.mrf.mxu3 }
 0x182   : > { %v1381_v15 = vmax.f32 %v1349_v56, 0.0  ;;  %v1076_v41 = vadd.f32 %v1075_v38, %v963_v34  ;;  %v853_v28 = vadd.f32 %v852_v35, %v2070_v36 }
 0x184   : > { %1413 = vst.msk [vmem:[%s2223_s10 + $0x80] sm:$0xff] %vm271_vm0, %v1381_v15  ;;  %v1189_v13 = vadd.f32 %v1188_v33, %v1076_v41  ;;  %v326_v41 = vld [vmem:[#allocation2 + $0xb0] sm:$0xff] }
 0x186   : > { %v1248_v43 = vadd.f32 %v1189_v13, %v322_v42 }
 0x187   : > { %v1314_v44 = vld [vmem:[#allocation2 + $0x88] sm:$0xff]  ;;  %v965_v47 = vpop.f32.mrf.mxu2  ;;  %v1191_v6 = vpop.f32.mrf.mxu0 }
 0x188   : > { %v1350_v39 = vadd.f32 %v2213_v21, %v1314_v44  ;;  %1280 = vst.msk [vmem:[#allocation2 + $0x90] sm:$0xff] %vm271_vm0, %v1248_v43  ;;  %v966_v50 = vadd.f32 %v965_v47, %v853_v28 }
 0x189   : > { %v855_v51 = vpop.f32.mrf.mxu1  ;;  %v1078_v52 = vpop.f32.mrf.mxu3 }
 0x18a   : > { %v1382_v55 = vmax.f32 %v1350_v39, 0.0  ;;  %v1079_v0 = vadd.f32 %v1078_v52, %v966_v50  ;;  %v856_v36 = vadd.f32 %v855_v51, %v2085_v45 }
 0x18c   : > { %1414 = vst.msk [vmem:[%s2223_s10 + $0x88] sm:$0xff] %vm271_vm0, %v1382_v55  ;;  %v1192_v58 = vadd.f32 %v1191_v6, %v1079_v0  ;;  %v327_v55 = vld [vmem:[#allocation2 + $0xb8] sm:$0xff] }
 0x18e   : > { %v1249_v59 = vadd.f32 %v1192_v58, %v323_v54 }
 0x18f   : > { %v1315_v37 = vld [vmem:[#allocation2 + $0x90] sm:$0xff]  ;;  %v968_v60 = vpop.f32.mrf.mxu2  ;;  %v1194_v23 = vpop.f32.mrf.mxu0 }
 0x190   : > { %v1351_v63 = vadd.f32 %v2213_v21, %v1315_v37  ;;  %1281 = vst.msk [vmem:[#allocation2 + $0x98] sm:$0xff] %vm271_vm0, %v1249_v59  ;;  %v969_v2 = vadd.f32 %v968_v60, %v856_v36 }
 0x191   : > { %v858_v3 = vpop.f32.mrf.mxu1  ;;  %v1081_v4 = vpop.f32.mrf.mxu3 }
 0x192   : > { %v1383_v7 = vmax.f32 %v1351_v63, 0.0  ;;  %v1082_v10 = vadd.f32 %v1081_v4, %v969_v2  ;;  %v859_v45 = vadd.f32 %v858_v3, %v2114_v53  ;;  %v328_v4 = vld [vmem:[#allocation2 + $0xc0] sm:$0xff] }
 0x194   : > { %1415 = vst.msk [vmem:[%s2223_s10 + $0x90] sm:$0xff] %vm271_vm0, %v1383_v7  ;;  %v1195_v12 = vadd.f32 %v1194_v23, %v1082_v10 }
 0x196   : > { %v1250_v11 = vadd.f32 %v1195_v12, %v324_v48 }
 0x197   : > { %v1316_v8 = vld [vmem:[#allocation2 + $0x98] sm:$0xff]  ;;  %v971_v14 = vpop.f32.mrf.mxu2  ;;  %v1197_v17 = vpop.f32.mrf.mxu0 }
 0x198   : > { %v1352_v18 = vadd.f32 %v2213_v21, %v1316_v8  ;;  %1282 = vst.msk [vmem:[#allocation2 + $0xa0] sm:$0xff] %vm271_vm0, %v1250_v11  ;;  %v972_v19 = vadd.f32 %v971_v14, %v859_v45 }
 0x199   : > { %v861_v22 = vpop.f32.mrf.mxu1  ;;  %v1084_v62 = vpop.f32.mrf.mxu3 }
 0x19a   : > { %v1384_v29 = vmax.f32 %v1352_v18, 0.0  ;;  %v1085_v25 = vadd.f32 %v1084_v62, %v972_v19  ;;  %v862_v53 = vadd.f32 %v861_v22, %v2143_v61  ;;  %v329_v22 = vld [vmem:[#allocation2 + $0xc8] sm:$0xff] }
 0x19c   : > { %1416 = vst.msk [vmem:[%s2223_s10 + $0x98] sm:$0xff] %vm271_vm0, %v1384_v29  ;;  %v1198_v26 = vadd.f32 %v1197_v17, %v1085_v25 }
 0x19e   : > { %v1251_v20 = vadd.f32 %v1198_v26, %v325_v31 }
 0x19f   : > { %v1317_v46 = vld [vmem:[#allocation2 + $0xa0] sm:$0xff]  ;;  %v974_v27 = vpop.f32.mrf.mxu2  ;;  %v1200_v30 = vpop.f32.mrf.mxu0 }
 0x1a0   : > { %v1353_v33 = vadd.f32 %v2213_v21, %v1317_v46  ;;  %1283 = vst.msk [vmem:[#allocation2 + $0xa8] sm:$0xff] %vm271_vm0, %v1251_v20  ;;  %v975_v56 = vadd.f32 %v974_v27, %v862_v53 }
 0x1a1   : > { %v864_v34 = vpop.f32.mrf.mxu1  ;;  %v1087_v35 = vpop.f32.mrf.mxu3 }
 0x1a2   : > { %v1385_v38 = vmax.f32 %v1353_v33, 0.0  ;;  %v1088_v15 = vadd.f32 %v1087_v35, %v975_v56  ;;  %v865_v61 = vadd.f32 %v864_v34, %v2172_v5  ;;  %v330_v56 = vld [vmem:[#allocation2 + $0xd0] sm:$0xff] }
 0x1a4   : > { %1417 = vst.msk [vmem:[%s2223_s10 + $0xa0] sm:$0xff] %vm271_vm0, %v1385_v38  ;;  %v1201_v42 = vadd.f32 %v1200_v30, %v1088_v15 }
 0x1a6   : > { %v1252_v13 = vadd.f32 %v1201_v42, %v326_v41 }
 0x1a7   : > { %v1318_v28 = vld [vmem:[#allocation2 + $0xa8] sm:$0xff]  ;;  %v977_v43 = vpop.f32.mrf.mxu2  ;;  %v1203_v44 = vpop.f32.mrf.mxu0 }
 0x1a8   : > { %v1354_v47 = vadd.f32 %v2213_v21, %v1318_v28  ;;  %1284 = vst.msk [vmem:[#allocation2 + $0xb0] sm:$0xff] %vm271_vm0, %v1252_v13  ;;  %v978_v6 = vadd.f32 %v977_v43, %v865_v61 }
 0x1a9   : > { %v867_v39 = vpop.f32.mrf.mxu1  ;;  %v1090_v50 = vpop.f32.mrf.mxu3 }
 0x1aa   : > { %v1386_v51 = vmax.f32 %v1354_v47, 0.0  ;;  %v1091_v52 = vadd.f32 %v1090_v50, %v978_v6  ;;  %v868_v5 = vadd.f32 %v867_v39, %v2038_v16  ;;  %v331_v47 = vld [vmem:[#allocation2 + $0xd8] sm:$0xff] }
 0x1ac   : > { %1418 = vst.msk [vmem:[%s2223_s10 + $0xa8] sm:$0xff] %vm271_vm0, %v1386_v51  ;;  %v1204_v0 = vadd.f32 %v1203_v44, %v1091_v52 }
 0x1ae   : > { %v1253_v54 = vadd.f32 %v1204_v0, %v327_v55 }
 0x1af   : > { %v1319_v58 = vld [vmem:[#allocation2 + $0xb0] sm:$0xff]  ;;  %v980_v36 = vpop.f32.mrf.mxu2  ;;  %v1206_v59 = vpop.f32.mrf.mxu0 }
 0x1b0   : > { %v1355_v37 = vadd.f32 %v2213_v21, %v1319_v58  ;;  %1285 = vst.msk [vmem:[#allocation2 + $0xb8] sm:$0xff] %vm271_vm0, %v1253_v54  ;;  %v981_v60 = vadd.f32 %v980_v36, %v868_v5 }
 0x1b1   : > { %v870_v23 = vpop.f32.mrf.mxu1  ;;  %v1093_v63 = vpop.f32.mrf.mxu3 }
 0x1b2   : > { %v1387_v2 = vmax.f32 %v1355_v37, 0.0  ;;  %v1094_v3 = vadd.f32 %v1093_v63, %v981_v60  ;;  %v871_v16 = vadd.f32 %v870_v23, %v2051_v24 }
 0x1b4   : > { %1419 = vst.msk [vmem:[%s2223_s10 + $0xb0] sm:$0xff] %vm271_vm0, %v1387_v2  ;;  %v1207_v7 = vadd.f32 %v1206_v59, %v1094_v3  ;;  %v332_v59 = vld [vmem:[#allocation2 + $0xe0] sm:$0xff] }
 0x1b6   : > { %v1254_v10 = vadd.f32 %v1207_v7, %v328_v4 }
 0x1b7   : > { %v1320_v48 = vld [vmem:[#allocation2 + $0xb8] sm:$0xff]  ;;  %v983_v12 = vpop.f32.mrf.mxu2  ;;  %v1209_v45 = vpop.f32.mrf.mxu0 }
 0x1b8   : > { %v1356_v11 = vadd.f32 %v2213_v21, %v1320_v48  ;;  %1286 = vst.msk [vmem:[#allocation2 + $0xc0] sm:$0xff] %vm271_vm0, %v1254_v10  ;;  %v984_v8 = vadd.f32 %v983_v12, %v871_v16  ;;  %v333_v12 = vld [vmem:[#allocation2 + $0xe8] sm:$0xff] }
 0x1b9   : > { %v873_v14 = vpop.f32.mrf.mxu1  ;;  %v1096_v17 = vpop.f32.mrf.mxu3 }
 0x1ba   : > { %v1388_v18 = vmax.f32 %v1356_v11, 0.0  ;;  %v1097_v19 = vadd.f32 %v1096_v17, %v984_v8  ;;  %v874_v24 = vadd.f32 %v873_v14, %v2064_v32 }
 0x1bc   : > { %1420 = vst.msk [vmem:[%s2223_s10 + $0xb8] sm:$0xff] %vm271_vm0, %v1388_v18  ;;  %v1210_v62 = vadd.f32 %v1209_v45, %v1097_v19 }
 0x1be   : > { %v1255_v29 = vadd.f32 %v1210_v62, %v329_v22 }
 0x1bf   : > { %v1321_v25 = vld [vmem:[#allocation2 + $0xc0] sm:$0xff]  ;;  %v986_v31 = vpop.f32.mrf.mxu2  ;;  %v1212_v26 = vpop.f32.mrf.mxu0 }
 0x1c0   : > { %v1357_v53 = vadd.f32 %v2213_v21, %v1321_v25  ;;  %1287 = vst.msk [vmem:[#allocation2 + $0xc8] sm:$0xff] %vm271_vm0, %v1255_v29  ;;  %v987_v20 = vadd.f32 %v986_v31, %v874_v24  ;;  %v334_v25 = vld [vmem:[#allocation2 + $0xf0] sm:$0xff] }
 0x1c1   : > { %v876_v46 = vpop.f32.mrf.mxu1  ;;  %v1099_v27 = vpop.f32.mrf.mxu3 }
 0x1c2   : > { %v1389_v30 = vmax.f32 %v1357_v53, 0.0  ;;  %v1100_v33 = vadd.f32 %v1099_v27, %v987_v20  ;;  %v877_v32 = vadd.f32 %v876_v46, %v2077_v40 }
 0x1c4   : > { %1421 = vst.msk [vmem:[%s2223_s10 + $0xc0] sm:$0xff] %vm271_vm0, %v1389_v30  ;;  %v1213_v34 = vadd.f32 %v1212_v26, %v1100_v33 }
 0x1c6   : > { %v1256_v35 = vadd.f32 %v1213_v34, %v330_v56 }
 0x1c7   : > { %v1322_v38 = vld [vmem:[#allocation2 + $0xc8] sm:$0xff]  ;;  %v989_v15 = vpop.f32.mrf.mxu2  ;;  %v1215_v41 = vpop.f32.mrf.mxu0 }
 0x1c8   : > { %v1358_v42 = vadd.f32 %v2213_v21, %v1322_v38  ;;  %1288 = vst.msk [vmem:[#allocation2 + $0xd0] sm:$0xff] %vm271_vm0, %v1256_v35  ;;  %v990_v61 = vadd.f32 %v989_v15, %v877_v32  ;;  %v335_v32 = vld [vmem:[#allocation2 + $0xf8] sm:$0xff] }
 0x1c9   : > { %v879_v13 = vpop.f32.mrf.mxu1  ;;  %v1102_v28 = vpop.f32.mrf.mxu3 }
 0x1ca   : > { %v1390_v43 = vmax.f32 %v1358_v42, 0.0  ;;  %v1103_v44 = vadd.f32 %v1102_v28, %v990_v61  ;;  %v880_v40 = vadd.f32 %v879_v13, %v2096_v49 }
 0x1cc   : > { %1422 = vst.msk [vmem:[%s2223_s10 + $0xc8] sm:$0xff] %vm271_vm0, %v1390_v43  ;;  %v1216_v6 = vadd.f32 %v1215_v41, %v1103_v44 }
 0x1ce   : > { %v1257_v39 = vadd.f32 %v1216_v6, %v331_v47 }
 0x1cf   : > { %v1323_v50 = vld [vmem:[#allocation2 + $0xd0] sm:$0xff]  ;;  %v992_v51 = vpop.f32.mrf.mxu2  ;;  %v1218_v52 = vpop.f32.mrf.mxu0 }
 0x1d0   : > { %v1359_v55 = vadd.f32 %v2213_v21, %v1323_v50  ;;  %1289 = vst.msk [vmem:[#allocation2 + $0xd8] sm:$0xff] %vm271_vm0, %v1257_v39  ;;  %v993_v0 = vadd.f32 %v992_v51, %v880_v40  ;;  %v1663_v21 = vld [vmem:[%s2454_s2] ss:$0 sm:$0xff] }
 0x1d1   : > { %v882_v5 = vpop.f32.mrf.mxu1  ;;  %v1105_v54 = vpop.f32.mrf.mxu3 }
 0x1d2   : > { %v1391_v58 = vmax.f32 %v1359_v55, 0.0  ;;  %v1106_v36 = vadd.f32 %v1105_v54, %v993_v0  ;;  %v883_v49 = vadd.f32 %v882_v5, %v2125_v57 }
 0x1d4   : > { %1423 = vst.msk [vmem:[%s2223_s10 + $0xd0] sm:$0xff] %vm271_vm0, %v1391_v58  ;;  %v1219_v37 = vadd.f32 %v1218_v52, %v1106_v36 }
 0x1d6   : > { %v1258_v60 = vadd.f32 %v1219_v37, %v332_v59 }
 0x1d7   : > { %v1324_v23 = vld [vmem:[#allocation2 + $0xd8] sm:$0xff]  ;;  %v995_v63 = vpop.f32.mrf.mxu2  ;;  %v1221_v2 = vpop.f32.mrf.mxu0 }
 0x1d8   : > { %v1360_v3 = vadd.f32 %v1663_v21, %v1324_v23  ;;  %1290 = vst.msk [vmem:[#allocation2 + $0xe0] sm:$0xff] %vm271_vm0, %v1258_v60  ;;  %v996_v4 = vadd.f32 %v995_v63, %v883_v49 }
 0x1d9   : > { %v885_v7 = vpop.f32.mrf.mxu1  ;;  %v1108_v16 = vpop.f32.mrf.mxu3 }
 0x1da   : > { %v1392_v10 = vmax.f32 %v1360_v3, 0.0  ;;  %v1109_v48 = vadd.f32 %v1108_v16, %v996_v4  ;;  %v886_v45 = vadd.f32 %v885_v7, %v2154_v1 }
 0x1dc   : > { %1424 = vst.msk [vmem:[%s2223_s10 + $0xd8] sm:$0xff] %vm271_vm0, %v1392_v10  ;;  %v1222_v57 = vadd.f32 %v1221_v2, %v1109_v48 }
 0x1de   : > { %v1259_v11 = vadd.f32 %v1222_v57, %v333_v12 }
 0x1df   : > { %v1325_v8 = vld [vmem:[#allocation2 + $0xe0] sm:$0xff]  ;;  %v998_v14 = vpop.f32.mrf.mxu2  ;;  %v1224_v17 = vpop.f32.mrf.mxu0 }
 0x1e0   : > { %v1361_v18 = vadd.f32 %v1663_v21, %v1325_v8  ;;  %1291 = vst.msk [vmem:[#allocation2 + $0xe8] sm:$0xff] %vm271_vm0, %v1259_v11  ;;  %v999_v19 = vadd.f32 %v998_v14, %v886_v45 }
 0x1e1   : > { %v1111_v22 = vpop.f32.mrf.mxu3  ;;  %v888_v29 = vpop.f32.mrf.mxu1 }
 0x1e2   : > { %v1393_v62 = vmax.f32 %v1361_v18, 0.0  ;;  %v1112_v24 = vadd.f32 %v1111_v22, %v999_v19  ;;  %v889_v26 = vadd.f32 %v888_v29, %v2181_v9 }
 0x1e4   : > { %1425 = vst.msk [vmem:[%s2223_s10 + $0xe0] sm:$0xff] %vm271_vm0, %v1393_v62  ;;  %v1225_v31 = vadd.f32 %v1224_v17, %v1112_v24 }
 0x1e6   : > { %v1260_v1 = vadd.f32 %v1225_v31, %v334_v25 }
 0x1e7   : > { %v1326_v53 = vld [vmem:[#allocation2 + $0xe8] sm:$0xff]  ;;  %v1001_v20 = vpop.f32.mrf.mxu2  ;;  %v1227_v33 = vpop.f32.mrf.mxu0 }
 0x1e8   : > { %v1362_v46 = vadd.f32 %v1663_v21, %v1326_v53  ;;  %1292 = vst.msk [vmem:[#allocation2 + $0xf0] sm:$0xff] %vm271_vm0, %v1260_v1  ;;  %v1002_v27 = vadd.f32 %v1001_v20, %v889_v26 }
 0x1e9   : > { %v1114_v30 = vpop.f32.mrf.mxu3 }
 0x1ea   : > { %v1394_v56 = vmax.f32 %v1362_v46, 0.0  ;;  %v1115_v34 = vadd.f32 %v1114_v30, %v1002_v27 }
 0x1ec   : > { %1426 = vst.msk [vmem:[%s2223_s10 + $0xe8] sm:$0xff] %vm271_vm0, %v1394_v56  ;;  %v1228_v35 = vadd.f32 %v1227_v33, %v1115_v34 }
 0x1ee   : > { %v1261_v38 = vadd.f32 %v1228_v35, %v335_v32 }
 0x1ef   : > { %v1327_v15 = vld [vmem:[#allocation2 + $0xf0] sm:$0xff] }
 0x1f0   : > { %v1363_v9 = vadd.f32 %v1663_v21, %v1327_v15  ;;  %1293 = vst.msk [vmem:[#allocation2 + $0xf8] sm:$0xff] %vm271_vm0, %v1261_v38 }
 0x1f2   : > { %v1395_v41 = vmax.f32 %v1363_v9, 0.0 }
 0x1f4   : > { %1427 = vst.msk [vmem:[%s2223_s10 + $0xf0] sm:$0xff] %vm271_vm0, %v1395_v41 }
 0x1f7   : > { %v1328_v42 = vld [vmem:[#allocation2 + $0xf8] sm:$0xff] }
 0x1f8   : > { %v1364_v61 = vadd.f32 %v1663_v21, %v1328_v42 }
 0x1fa   : > { %v1396_v13 = vmax.f32 %v1364_v61, 0.0 }
 0x1fc   : > { %1428 = vst.msk [vmem:[%s2223_s10 + $0xf8] sm:$0xff] %vm271_vm0, %v1396_v13 }
 0x1fd PF: > { %s13_s14 = sadd.s32 1, %s1686_s14   ;;  %s2456_s12 = smov %s1682_s13 }
 0x1fe   : > { %p10_p5 = scmp.ge.s32.totalorder %s13_s14, 6   ;;  %s2457_s13 = smov %s2459_s15 }
 0x200   :  { %12 = sbr.rel (!%p10_p5) target bundleno = 2 (0x2), region = 76 }

// kernel: vgg_mse.18
= control target key start
LH: loop header
LB: loop body
LE: loop exit
PB: predicated region body
PF: predicated region fallthrough
CT: control target
= control target key end

     0   :  { %vm314_vm0 = vcmask 523264   ;;  %s2237_s1 = inlined_call_operand.vmem [shape: f32[576,128], index: 1, kind: input, shape index: {}]   ;;  %s2238_s0 = inlined_call_operand.vmem [shape: f32[256,576], index: 0, kind: input, shape index: {}]   ;;  %s2239_s2 = inlined_call_operand.vmem [shape: f32[1,128], index: 2, kind: input, shape index: {}]   ;;  %s2240_s3 = inlined_call_operand.vmem [shape: f32[256,128], index: 3, kind: output, shape index: {}]  }
   0x1   :  { %v257_v0 = vld [vmem:[%s2237_s1 + $0x78] sm:$0xff]  ;;  %v256_v1 = vld [vmem:[%s2237_s1 + $0x70] sm:$0xff]  ;;  %v255_v2 = vld [vmem:[%s2237_s1 + $0x68] sm:$0xff] }
   0x2   :  { %1211 = vmatpush.msra.mxu1 %v257_v0  ;;  %1212 = vmatpush.msra.mxu2 %v257_v0  ;;  %v254_v3 = vld [vmem:[%s2237_s1 + $0x60] sm:$0xff]  ;;  %v253_v4 = vld [vmem:[%s2237_s1 + $0x58] sm:$0xff]  ;;  %v252_v5 = vld [vmem:[%s2237_s1 + $0x50] sm:$0xff] }
   0x3   :  { %1213 = vmatpush.msra.mxu3 %v257_v0  ;;  %411 = vmatpush.msra.mxu0 %v257_v0  ;;  %v251_v6 = vld [vmem:[%s2237_s1 + $0x48] sm:$0xff]  ;;  %v250_v7 = vld [vmem:[%s2237_s1 + $0x40] sm:$0xff]  ;;  %v249_v8 = vld [vmem:[%s2237_s1 + $0x38] sm:$0xff] }
   0x4   :  { %1214 = vmatpush.msra.mxu1 %v256_v1  ;;  %1215 = vmatpush.msra.mxu2 %v256_v1  ;;  %v248_v9 = vld [vmem:[%s2237_s1 + $0x30] sm:$0xff]  ;;  %v247_v10 = vld [vmem:[%s2237_s1 + $0x28] sm:$0xff]  ;;  %v246_v11 = vld [vmem:[%s2237_s1 + $0x20] sm:$0xff] }
   0x5   :  { %1216 = vmatpush.msra.mxu3 %v256_v1  ;;  %412 = vmatpush.msra.mxu0 %v256_v1  ;;  %v245_v12 = vld [vmem:[%s2237_s1 + $0x18] sm:$0xff]  ;;  %v244_v13 = vld [vmem:[%s2237_s1 + $0x10] sm:$0xff]  ;;  %v243_v14 = vld [vmem:[%s2237_s1 + $0x8] sm:$0xff] }
   0x6   :  { %1217 = vmatpush.msra.mxu1 %v255_v2  ;;  %1218 = vmatpush.msra.mxu2 %v255_v2  ;;  %v242_v15 = vld [vmem:[%s2237_s1] sm:$0xff]  ;;  %v289_v18 = vld [vmem:[%s2237_s1 + $0x178] sm:$0xff]  ;;  %v288_v22 = vld [vmem:[%s2237_s1 + $0x170] sm:$0xff] }
   0x7   :  { %1219 = vmatpush.msra.mxu3 %v255_v2  ;;  %413 = vmatpush.msra.mxu0 %v255_v2  ;;  %v122_v16 = vld [vmem:[%s2238_s0 + $0x140] sm:$0xff]  ;;  %v273_v20 = vld [vmem:[%s2237_s1 + $0xf8] sm:$0xff]  ;;  %v272_v23 = vld [vmem:[%s2237_s1 + $0xf0] sm:$0xff] }
   0x8   :  { %1220 = vmatpush.msra.mxu1 %v254_v3  ;;  %1221 = vmatpush.msra.mxu2 %v254_v3  ;;  %v162_v17 = vld [vmem:[%s2238_s0 + $0x280] sm:$0xff]  ;;  %v305_v21 = vld [vmem:[%s2237_s1 + $0x1f8] sm:$0xff]  ;;  %v304_v24 = vld [vmem:[%s2237_s1 + $0x1f0] sm:$0xff] }
   0x9   :  { %1222 = vmatpush.msra.mxu3 %v254_v3  ;;  %414 = vmatpush.msra.mxu0 %v254_v3  ;;  %v202_v19 = vld [vmem:[%s2238_s0 + $0x3c0] sm:$0xff]  ;;  %v287_v25 = vld [vmem:[%s2237_s1 + $0x168] sm:$0xff]  ;;  %v313_v29 = vld [vmem:[%s2237_s1 + $0x238] sm:$0xff] }
   0xa   :  { %1223 = vmatpush.msra.mxu1 %v253_v4  ;;  %1224 = vmatpush.msra.mxu2 %v253_v4  ;;  %v82_v26 = vld [vmem:[%s2238_s0] sm:$0xff]  ;;  %v271_v27 = vld [vmem:[%s2237_s1 + $0xe8] sm:$0xff]  ;;  %v285_v36 = vld [vmem:[%s2237_s1 + $0x158] sm:$0xff] }
   0xb   :  { %1225 = vmatpush.msra.mxu3 %v253_v4  ;;  %415 = vmatpush.msra.mxu0 %v253_v4  ;;  %v303_v28 = vld [vmem:[%s2237_s1 + $0x1e8] sm:$0xff]  ;;  %v286_v32 = vld [vmem:[%s2237_s1 + $0x160] sm:$0xff]  ;;  %v301_v37 = vld [vmem:[%s2237_s1 + $0x1d8] sm:$0xff] }
   0xc   :  { %1226 = vmatpush.msra.mxu1 %v252_v5  ;;  %1227 = vmatpush.msra.mxu2 %v252_v5  ;;  %v127_v30 = vld [vmem:[%s2238_s0 + $0x168] sm:$0xff]  ;;  %v302_v33 = vld [vmem:[%s2237_s1 + $0x1e0] sm:$0xff]  ;;  %v312_v38 = vld [vmem:[%s2237_s1 + $0x230] sm:$0xff] }
   0xd   :  { %1228 = vmatpush.msra.mxu3 %v252_v5  ;;  %416 = vmatpush.msra.mxu0 %v252_v5  ;;  %v167_v31 = vld [vmem:[%s2238_s0 + $0x2a8] sm:$0xff]  ;;  %v270_v35 = vld [vmem:[%s2237_s1 + $0xe0] sm:$0xff]  ;;  %v269_v39 = vld [vmem:[%s2237_s1 + $0xd8] sm:$0xff] }
   0xe   :  { %1229 = vmatpush.msra.mxu1 %v251_v6  ;;  %1230 = vmatpush.msra.mxu2 %v251_v6  ;;  %v207_v34 = vld [vmem:[%s2238_s0 + $0x3e8] sm:$0xff]  ;;  %v284_v40 = vld [vmem:[%s2237_s1 + $0x150] sm:$0xff]  ;;  %v282_v51 = vld [vmem:[%s2237_s1 + $0x140] sm:$0xff] }
   0xf   :  { %1231 = vmatpush.msra.mxu3 %v251_v6  ;;  %417 = vmatpush.msra.mxu0 %v251_v6  ;;  %v300_v41 = vld [vmem:[%s2237_s1 + $0x1d0] sm:$0xff]  ;;  %v87_v42 = vld [vmem:[%s2238_s0 + $0x28] sm:$0xff]  ;;  %v298_v52 = vld [vmem:[%s2237_s1 + $0x1c0] sm:$0xff] }
  0x10   :  { %1232 = vmatpush.msra.mxu1 %v250_v7  ;;  %1233 = vmatpush.msra.mxu2 %v250_v7  ;;  %v268_v43 = vld [vmem:[%s2237_s1 + $0xd0] sm:$0xff]  ;;  %v283_v44 = vld [vmem:[%s2237_s1 + $0x148] sm:$0xff]  ;;  %v266_v53 = vld [vmem:[%s2237_s1 + $0xc0] sm:$0xff] }
  0x11   :  { %1234 = vmatpush.msra.mxu3 %v250_v7  ;;  %418 = vmatpush.msra.mxu0 %v250_v7  ;;  %v299_v45 = vld [vmem:[%s2237_s1 + $0x1c8] sm:$0xff]  ;;  %v132_v46 = vld [vmem:[%s2238_s0 + $0x190] sm:$0xff]  ;;  %v281_v54 = vld [vmem:[%s2237_s1 + $0x138] sm:$0xff] }
  0x12   :  { %1235 = vmatpush.msra.mxu1 %v249_v8  ;;  %1236 = vmatpush.msra.mxu2 %v249_v8  ;;  %v172_v47 = vld [vmem:[%s2238_s0 + $0x2d0] sm:$0xff]  ;;  %v311_v48 = vld [vmem:[%s2237_s1 + $0x228] sm:$0xff]  ;;  %v310_v55 = vld [vmem:[%s2237_s1 + $0x220] sm:$0xff] }
  0x13   :  { %1237 = vmatpush.msra.mxu3 %v249_v8  ;;  %419 = vmatpush.msra.mxu0 %v249_v8  ;;  %v267_v49 = vld [vmem:[%s2237_s1 + $0xc8] sm:$0xff]  ;;  %v212_v50 = vld [vmem:[%s2238_s0 + $0x410] sm:$0xff]  ;;  %v297_v56 = vld [vmem:[%s2237_s1 + $0x1b8] sm:$0xff] }
  0x14   :  { %1238 = vmatpush.msra.mxu1 %v248_v9  ;;  %1239 = vmatpush.msra.mxu2 %v248_v9  ;;  %v265_v57 = vld [vmem:[%s2237_s1 + $0xb8] sm:$0xff]  ;;  %v92_v58 = vld [vmem:[%s2238_s0 + $0x50] sm:$0xff]  ;;  %v279_v0 = vld [vmem:[%s2237_s1 + $0x128] sm:$0xff] }
  0x15   :  { %1240 = vmatpush.msra.mxu3 %v248_v9  ;;  %420 = vmatpush.msra.mxu0 %v248_v9  ;;  %v280_v59 = vld [vmem:[%s2237_s1 + $0x130] sm:$0xff]  ;;  %v137_v62 = vld [vmem:[%s2238_s0 + $0x1b8] sm:$0xff]  ;;  %v295_v1 = vld [vmem:[%s2237_s1 + $0x1a8] sm:$0xff] }
  0x16   :  { %1241 = vmatpush.msra.mxu1 %v247_v10  ;;  %1242 = vmatpush.msra.mxu2 %v247_v10  ;;  %v296_v60 = vld [vmem:[%s2237_s1 + $0x1b0] sm:$0xff]  ;;  %v177_v63 = vld [vmem:[%s2238_s0 + $0x2f8] sm:$0xff]  ;;  %v263_v4 = vld [vmem:[%s2237_s1 + $0xa8] sm:$0xff] }
  0x17   :  { %1243 = vmatpush.msra.mxu3 %v247_v10  ;;  %421 = vmatpush.msra.mxu0 %v247_v10  ;;  %v264_v61 = vld [vmem:[%s2237_s1 + $0xb0] sm:$0xff]  ;;  %v217_v2 = vld [vmem:[%s2238_s0 + $0x438] sm:$0xff]  ;;  %v278_v5 = vld [vmem:[%s2237_s1 + $0x120] sm:$0xff] }
  0x18   :  { %1244 = vmatpush.msra.mxu1 %v246_v11  ;;  %1245 = vmatpush.msra.mxu2 %v246_v11  ;;  %v309_v3 = vld [vmem:[%s2237_s1 + $0x218] sm:$0xff]  ;;  %v294_v6 = vld [vmem:[%s2237_s1 + $0x1a0] sm:$0xff]  ;;  %v308_v7 = vld [vmem:[%s2237_s1 + $0x210] sm:$0xff] }
  0x19   :  { %1246 = vmatpush.msra.mxu3 %v246_v11  ;;  %422 = vmatpush.msra.mxu0 %v246_v11  ;;  %v262_v8 = vld [vmem:[%s2237_s1 + $0xa0] sm:$0xff]  ;;  %v277_v9 = vld [vmem:[%s2237_s1 + $0x118] sm:$0xff] }
  0x1a   :  { %1247 = vmatpush.msra.mxu1 %v245_v12  ;;  %1248 = vmatpush.msra.mxu2 %v245_v12  ;;  %v97_v10 = vld [vmem:[%s2238_s0 + $0x78] sm:$0xff] }
  0x1b   :  { %1249 = vmatpush.msra.mxu3 %v245_v12  ;;  %423 = vmatpush.msra.mxu0 %v245_v12  ;;  %v293_v11 = vld [vmem:[%s2237_s1 + $0x198] sm:$0xff] }
  0x1c   :  { %1250 = vmatpush.msra.mxu1 %v244_v13  ;;  %1251 = vmatpush.msra.mxu2 %v244_v13  ;;  %v261_v12 = vld [vmem:[%s2237_s1 + $0x98] sm:$0xff] }
  0x1d   :  { %1252 = vmatpush.msra.mxu3 %v244_v13  ;;  %424 = vmatpush.msra.mxu0 %v244_v13  ;;  %v276_v13 = vld [vmem:[%s2237_s1 + $0x110] sm:$0xff] }
  0x1e   :  { %1253 = vmatpush.msra.mxu1 %v243_v14  ;;  %1254 = vmatpush.msra.mxu2 %v243_v14 }
  0x1f   :  { %1255 = vmatpush.msra.mxu3 %v243_v14  ;;  %425 = vmatpush.msra.mxu0 %v243_v14  ;;  %v142_v14 = vld [vmem:[%s2238_s0 + $0x1e0] sm:$0xff] }
  0x20   :  { %1256 = vmatpush.msra.mxu1 %v242_v15  ;;  %1257 = vmatpush.msra.mxu2 %v242_v15 }
  0x21   :  { %451 = vmatmul.f32.vlgmr.msra.gmra.mxu1 %v122_v16  ;;  %475 = vmatmul.f32.vlgmr.msra.gmra.mxu2 %v162_v17  ;;  %v292_v16 = vld [vmem:[%s2237_s1 + $0x190] sm:$0xff] }
  0x22   :  { %637 = vmatpush.msrb.mxu2 %v289_v18  ;;  %1258 = vmatpush.msra.mxu3 %v242_v15  ;;  %v260_v17 = vld [vmem:[%s2237_s1 + $0x90] sm:$0xff]  ;;  %v222_v18 = vld [vmem:[%s2238_s0 + $0x460] sm:$0xff] }
  0x23   :  { %499 = vmatmul.f32.vlgmr.msra.gmra.mxu3 %v202_v19  ;;  %524 = vmatpush.msrb.mxu1 %v273_v20  ;;  %v275_v19 = vld [vmem:[%s2237_s1 + $0x108] sm:$0xff] }
  0x24   :  { %750 = vmatpush.msrb.mxu3 %v305_v21  ;;  %638 = vmatpush.msrb.mxu2 %v288_v22  ;;  %v291_v20 = vld [vmem:[%s2237_s1 + $0x188] sm:$0xff] }
  0x25   :  { %525 = vmatpush.msrb.mxu1 %v272_v23  ;;  %426 = vmatpush.msra.mxu0 %v242_v15  ;;  %v182_v15 = vld [vmem:[%s2238_s0 + $0x320] sm:$0xff]  ;;  %v307_v21 = vld [vmem:[%s2237_s1 + $0x208] sm:$0xff] }
  0x26   :  { %751 = vmatpush.msrb.mxu3 %v304_v24  ;;  %639 = vmatpush.msrb.mxu2 %v287_v25  ;;  %v259_v22 = vld [vmem:[%s2237_s1 + $0x88] sm:$0xff]  ;;  %v274_v23 = vld [vmem:[%s2237_s1 + $0x100] sm:$0xff] }
  0x27   :  { %427 = vmatmul.f32.vlgmr.msra.gmra.mxu0 %v82_v26  ;;  %526 = vmatpush.msrb.mxu1 %v271_v27  ;;  %v290_v24 = vld [vmem:[%s2237_s1 + $0x180] sm:$0xff] }
  0x28   :  { %752 = vmatpush.msrb.mxu3 %v303_v28  ;;  %871 = vmatpush.msrb.mxu0 %v313_v29  ;;  %v306_v25 = vld [vmem:[%s2237_s1 + $0x200] sm:$0xff]  ;;  %v147_v28 = vld [vmem:[%s2238_s0 + $0x208] sm:$0xff] }
  0x29   :  { %454 = vmatmul.f32.gmra.mxu1 %v127_v30  ;;  %478 = vmatmul.f32.gmra.mxu2 %v167_v31  ;;  %v102_v26 = vld [vmem:[%s2238_s0 + $0xa0] sm:$0xff]  ;;  %v187_v29 = vld [vmem:[%s2238_s0 + $0x348] sm:$0xff] }
  0x2a   :  { %640 = vmatpush.msrb.mxu2 %v286_v32  ;;  %753 = vmatpush.msrb.mxu3 %v302_v33  ;;  %v258_v27 = vld [vmem:[%s2237_s1 + $0x80] sm:$0xff]  ;;  %v227_v30 = vld [vmem:[%s2238_s0 + $0x488] sm:$0xff]  ;;  %v152_v32 = vld [vmem:[%s2238_s0 + $0x230] sm:$0xff] }
  0x2b   :  { %502 = vmatmul.f32.gmra.mxu3 %v207_v34  ;;  %527 = vmatpush.msrb.mxu1 %v270_v35  ;;  %v107_v31 = vld [vmem:[%s2238_s0 + $0xc8] sm:$0xff]  ;;  %v192_v33 = vld [vmem:[%s2238_s0 + $0x370] sm:$0xff] }
  0x2c   :  { %641 = vmatpush.msrb.mxu2 %v285_v36  ;;  %754 = vmatpush.msrb.mxu3 %v301_v37  ;;  %v232_v34 = vld [vmem:[%s2238_s0 + $0x4b0] sm:$0xff]  ;;  %v157_v36 = vld [vmem:[%s2238_s0 + $0x258] sm:$0xff] }
  0x2d   :  { %872 = vmatpush.msrb.mxu0 %v312_v38  ;;  %528 = vmatpush.msrb.mxu1 %v269_v39  ;;  %v112_v35 = vld [vmem:[%s2238_s0 + $0xf0] sm:$0xff]  ;;  %v197_v37 = vld [vmem:[%s2238_s0 + $0x398] sm:$0xff] }
  0x2e   :  { %642 = vmatpush.msrb.mxu2 %v284_v40  ;;  %755 = vmatpush.msrb.mxu3 %v300_v41  ;;  %v237_v38 = vld [vmem:[%s2238_s0 + $0x4d8] sm:$0xff]  ;;  %v83_v40 = vld [vmem:[%s2238_s0 + $0x8] sm:$0xff]  ;;  %v84_v41 = vld [vmem:[%s2238_s0 + $0x10] sm:$0xff] }
  0x2f   :  { %430 = vmatmul.f32.gmra.mxu0 %v87_v42  ;;  %529 = vmatpush.msrb.mxu1 %v268_v43  ;;  %v117_v39 = vld [vmem:[%s2238_s0 + $0x118] sm:$0xff]  ;;  %v86_v43 = vld [vmem:[%s2238_s0 + $0x20] sm:$0xff] }
  0x30   :  { %643 = vmatpush.msrb.mxu2 %v283_v44  ;;  %756 = vmatpush.msrb.mxu3 %v299_v45  ;;  %v85_v42 = vld [vmem:[%s2238_s0 + $0x18] sm:$0xff]  ;;  %v88_v44 = vld [vmem:[%s2238_s0 + $0x30] sm:$0xff] }
  0x31   :  { %457 = vmatmul.f32.gmra.mxu1 %v132_v46  ;;  %481 = vmatmul.f32.gmra.mxu2 %v172_v47  ;;  %v89_v45 = vld [vmem:[%s2238_s0 + $0x38] sm:$0xff]  ;;  %v90_v46 = vld [vmem:[%s2238_s0 + $0x40] sm:$0xff]  ;;  %v91_v47 = vld [vmem:[%s2238_s0 + $0x48] sm:$0xff] }
  0x32   :  { %873 = vmatpush.msrb.mxu0 %v311_v48  ;;  %530 = vmatpush.msrb.mxu1 %v267_v49  ;;  %v93_v48 = vld [vmem:[%s2238_s0 + $0x58] sm:$0xff]  ;;  %v94_v49 = vld [vmem:[%s2238_s0 + $0x60] sm:$0xff] }
  0x33   :  { %505 = vmatmul.f32.gmra.mxu3 %v212_v50  ;;  %644 = vmatpush.msrb.mxu2 %v282_v51  ;;  %v95_v50 = vld [vmem:[%s2238_s0 + $0x68] sm:$0xff]  ;;  %v96_v51 = vld [vmem:[%s2238_s0 + $0x70] sm:$0xff] }
  0x34   :  { %757 = vmatpush.msrb.mxu3 %v298_v52  ;;  %531 = vmatpush.msrb.mxu1 %v266_v53  ;;  %v98_v52 = vld [vmem:[%s2238_s0 + $0x80] sm:$0xff]  ;;  %v99_v53 = vld [vmem:[%s2238_s0 + $0x88] sm:$0xff] }
  0x35   :  { %645 = vmatpush.msrb.mxu2 %v281_v54  ;;  %874 = vmatpush.msrb.mxu0 %v310_v55  ;;  %v100_v54 = vld [vmem:[%s2238_s0 + $0x90] sm:$0xff]  ;;  %v101_v55 = vld [vmem:[%s2238_s0 + $0x98] sm:$0xff] }
  0x36   :  { %758 = vmatpush.msrb.mxu3 %v297_v56  ;;  %532 = vmatpush.msrb.mxu1 %v265_v57  ;;  %v103_v56 = vld [vmem:[%s2238_s0 + $0xa8] sm:$0xff]  ;;  %v104_v57 = vld [vmem:[%s2238_s0 + $0xb0] sm:$0xff] }
  0x37   :  { %433 = vmatmul.f32.gmra.mxu0 %v92_v58  ;;  %646 = vmatpush.msrb.mxu2 %v280_v59  ;;  %v105_v58 = vld [vmem:[%s2238_s0 + $0xb8] sm:$0xff]  ;;  %v106_v59 = vld [vmem:[%s2238_s0 + $0xc0] sm:$0xff] }
  0x38   :  { %759 = vmatpush.msrb.mxu3 %v296_v60  ;;  %533 = vmatpush.msrb.mxu1 %v264_v61  ;;  %v108_v60 = vld [vmem:[%s2238_s0 + $0xd0] sm:$0xff]  ;;  %v109_v61 = vld [vmem:[%s2238_s0 + $0xd8] sm:$0xff] }
  0x39   :  { %460 = vmatmul.f32.gmra.mxu1 %v137_v62  ;;  %484 = vmatmul.f32.gmra.mxu2 %v177_v63  ;;  %v110_v62 = vld [vmem:[%s2238_s0 + $0xe0] sm:$0xff]  ;;  %v111_v63 = vld [vmem:[%s2238_s0 + $0xe8] sm:$0xff] }
  0x3a   :  { %647 = vmatpush.msrb.mxu2 %v279_v0  ;;  %760 = vmatpush.msrb.mxu3 %v295_v1  ;;  %v113_v0 = vld [vmem:[%s2238_s0 + $0xf8] sm:$0xff]  ;;  %v114_v1 = vld [vmem:[%s2238_s0 + $0x100] sm:$0xff] }
  0x3b   :  { %508 = vmatmul.f32.gmra.mxu3 %v217_v2  ;;  %875 = vmatpush.msrb.mxu0 %v309_v3  ;;  %v115_v2 = vld [vmem:[%s2238_s0 + $0x108] sm:$0xff]  ;;  %v116_v3 = vld [vmem:[%s2238_s0 + $0x110] sm:$0xff] }
  0x3c   :  { %534 = vmatpush.msrb.mxu1 %v263_v4  ;;  %648 = vmatpush.msrb.mxu2 %v278_v5  ;;  %v118_v4 = vld [vmem:[%s2238_s0 + $0x120] sm:$0xff]  ;;  %v119_v5 = vld [vmem:[%s2238_s0 + $0x128] sm:$0xff] }
  0x3d   :  { %761 = vmatpush.msrb.mxu3 %v294_v6  ;;  %876 = vmatpush.msrb.mxu0 %v308_v7  ;;  %v120_v6 = vld [vmem:[%s2238_s0 + $0x130] sm:$0xff]  ;;  %v121_v7 = vld [vmem:[%s2238_s0 + $0x138] sm:$0xff] }
  0x3e   :  { %535 = vmatpush.msrb.mxu1 %v262_v8  ;;  %649 = vmatpush.msrb.mxu2 %v277_v9  ;;  %v123_v9 = vld [vmem:[%s2238_s0 + $0x148] sm:$0xff] }
  0x3f   :  { %436 = vmatmul.f32.gmra.mxu0 %v97_v10  ;;  %762 = vmatpush.msrb.mxu3 %v293_v11  ;;  %v124_v10 = vld [vmem:[%s2238_s0 + $0x150] sm:$0xff]  ;;  %v125_v11 = vld [vmem:[%s2238_s0 + $0x158] sm:$0xff] }
  0x40   :  { %536 = vmatpush.msrb.mxu1 %v261_v12  ;;  %650 = vmatpush.msrb.mxu2 %v276_v13 }
  0x41   :  { %463 = vmatmul.f32.gmra.mxu1 %v142_v14  ;;  %487 = vmatmul.f32.gmra.mxu2 %v182_v15  ;;  %v126_v14 = vld [vmem:[%s2238_s0 + $0x160] sm:$0xff] }
  0x42   :  { %763 = vmatpush.msrb.mxu3 %v292_v16  ;;  %537 = vmatpush.msrb.mxu1 %v260_v17  ;;  %v128_v17 = vld [vmem:[%s2238_s0 + $0x170] sm:$0xff] }
  0x43   :  { %511 = vmatmul.f32.gmra.mxu3 %v222_v18  ;;  %651 = vmatpush.msrb.mxu2 %v275_v19  ;;  %v129_v18 = vld [vmem:[%s2238_s0 + $0x178] sm:$0xff]  ;;  %v130_v19 = vld [vmem:[%s2238_s0 + $0x180] sm:$0xff] }
  0x44   :  { %764 = vmatpush.msrb.mxu3 %v291_v20  ;;  %877 = vmatpush.msrb.mxu0 %v307_v21 }
  0x45   :  { %538 = vmatpush.msrb.mxu1 %v259_v22  ;;  %652 = vmatpush.msrb.mxu2 %v274_v23  ;;  %v131_v22 = vld [vmem:[%s2238_s0 + $0x188] sm:$0xff] }
  0x46   :  { %765 = vmatpush.msrb.mxu3 %v290_v24  ;;  %878 = vmatpush.msrb.mxu0 %v306_v25  ;;  %v133_v25 = vld [vmem:[%s2238_s0 + $0x198] sm:$0xff] }
  0x47   :  { %439 = vmatmul.f32.gmra.mxu0 %v102_v26  ;;  %539 = vmatpush.msrb.mxu1 %v258_v27  ;;  %v134_v26 = vld [vmem:[%s2238_s0 + $0x1a0] sm:$0xff]  ;;  %v135_v27 = vld [vmem:[%s2238_s0 + $0x1a8] sm:$0xff] }
  0x49   :  { %466 = vmatmul.f32.gmra.mxu1 %v147_v28  ;;  %490 = vmatmul.f32.gmra.mxu2 %v187_v29 }
  0x4b   :  { %514 = vmatmul.f32.gmra.mxu3 %v227_v30  ;;  %v136_v30 = vld [vmem:[%s2238_s0 + $0x1b0] sm:$0xff] }
  0x4f   :  { %442 = vmatmul.f32.gmra.mxu0 %v107_v31 }
  0x51   :  { %469 = vmatmul.f32.gmra.mxu1 %v152_v32  ;;  %493 = vmatmul.f32.gmra.mxu2 %v192_v33  ;;  %v138_v33 = vld [vmem:[%s2238_s0 + $0x1c0] sm:$0xff] }
  0x53   :  { %517 = vmatmul.f32.gmra.mxu3 %v232_v34  ;;  %v139_v34 = vld [vmem:[%s2238_s0 + $0x1c8] sm:$0xff] }
  0x57   :  { %445 = vmatmul.f32.gmra.mxu0 %v112_v35  ;;  %v140_v35 = vld [vmem:[%s2238_s0 + $0x1d0] sm:$0xff] }
  0x59   :  { %472 = vmatmul.f32.gmra.mxu1 %v157_v36  ;;  %496 = vmatmul.f32.gmra.mxu2 %v197_v37 }
  0x5b   :  { %520 = vmatmul.f32.gmra.mxu3 %v237_v38  ;;  %v141_v38 = vld [vmem:[%s2238_s0 + $0x1d8] sm:$0xff] }
  0x5f   :  { %448 = vmatmul.f32.gmra.mxu0 %v117_v39 }
  0x61   :  { %540 = vmatmul.f32.vlgmr.msrb.gmra.mxu1 %v83_v40  ;;  %653 = vmatmul.f32.vlgmr.msrb.gmra.mxu2 %v84_v41  ;;  %v143_v41 = vld [vmem:[%s2238_s0 + $0x1e8] sm:$0xff] }
  0x63   :  { %766 = vmatmul.f32.vlgmr.msrb.gmra.mxu3 %v85_v42  ;;  %v144_v42 = vld [vmem:[%s2238_s0 + $0x1f0] sm:$0xff] }
  0x67   :  { %1179 = vmatmul.msk.f32.vlgmr.msrb.gmra.mxu0 %vm314_vm0, %v86_v43  ;;  %v145_v43 = vld [vmem:[%s2238_s0 + $0x1f8] sm:$0xff] }
  0x69   :  { %543 = vmatmul.f32.gmra.mxu1 %v88_v44  ;;  %656 = vmatmul.f32.gmra.mxu2 %v89_v45 }
  0x6b   :  { %769 = vmatmul.f32.gmra.mxu3 %v90_v46  ;;  %v146_v46 = vld [vmem:[%s2238_s0 + $0x200] sm:$0xff] }
  0x6f   :  { %1180 = vmatmul.msk.f32.gmra.mxu0 %vm314_vm0, %v91_v47 }
  0x71   :  { %546 = vmatmul.f32.gmra.mxu1 %v93_v48  ;;  %659 = vmatmul.f32.gmra.mxu2 %v94_v49  ;;  %v148_v49 = vld [vmem:[%s2238_s0 + $0x210] sm:$0xff] }
  0x73   :  { %772 = vmatmul.f32.gmra.mxu3 %v95_v50  ;;  %v149_v50 = vld [vmem:[%s2238_s0 + $0x218] sm:$0xff] }
  0x77   :  { %1181 = vmatmul.msk.f32.gmra.mxu0 %vm314_vm0, %v96_v51  ;;  %v150_v51 = vld [vmem:[%s2238_s0 + $0x220] sm:$0xff] }
  0x79   :  { %549 = vmatmul.f32.gmra.mxu1 %v98_v52  ;;  %662 = vmatmul.f32.gmra.mxu2 %v99_v53 }
  0x7b   :  { %775 = vmatmul.f32.gmra.mxu3 %v100_v54  ;;  %v151_v54 = vld [vmem:[%s2238_s0 + $0x228] sm:$0xff] }
  0x7f   :  { %1182 = vmatmul.msk.f32.gmra.mxu0 %vm314_vm0, %v101_v55 }
  0x81   :  { %552 = vmatmul.f32.gmra.mxu1 %v103_v56  ;;  %665 = vmatmul.f32.gmra.mxu2 %v104_v57  ;;  %v153_v57 = vld [vmem:[%s2238_s0 + $0x238] sm:$0xff] }
  0x83   :  { %778 = vmatmul.f32.gmra.mxu3 %v105_v58  ;;  %v154_v58 = vld [vmem:[%s2238_s0 + $0x240] sm:$0xff] }
  0x87   :  { %1183 = vmatmul.msk.f32.gmra.mxu0 %vm314_vm0, %v106_v59  ;;  %v155_v59 = vld [vmem:[%s2238_s0 + $0x248] sm:$0xff] }
  0x89   :  { %555 = vmatmul.f32.gmra.mxu1 %v108_v60  ;;  %668 = vmatmul.f32.gmra.mxu2 %v109_v61 }
  0x8b   :  { %781 = vmatmul.f32.gmra.mxu3 %v110_v62  ;;  %v156_v62 = vld [vmem:[%s2238_s0 + $0x250] sm:$0xff] }
  0x8f   :  { %1184 = vmatmul.msk.f32.gmra.mxu0 %vm314_vm0, %v111_v63 }
  0x91   :  { %558 = vmatmul.f32.gmra.mxu1 %v113_v0  ;;  %671 = vmatmul.f32.gmra.mxu2 %v114_v1  ;;  %v158_v1 = vld [vmem:[%s2238_s0 + $0x260] sm:$0xff] }
  0x93   :  { %784 = vmatmul.f32.gmra.mxu3 %v115_v2  ;;  %v159_v2 = vld [vmem:[%s2238_s0 + $0x268] sm:$0xff] }
  0x97   :  { %1185 = vmatmul.msk.f32.gmra.mxu0 %vm314_vm0, %v116_v3  ;;  %v160_v3 = vld [vmem:[%s2238_s0 + $0x270] sm:$0xff] }
  0x99   :  { %561 = vmatmul.f32.gmra.mxu1 %v118_v4  ;;  %674 = vmatmul.f32.gmra.mxu2 %v119_v5 }
  0x9b   :  { %787 = vmatmul.f32.gmra.mxu3 %v120_v6  ;;  %v161_v6 = vld [vmem:[%s2238_s0 + $0x278] sm:$0xff] }
  0x9e   :  { %v1695_v8 = vpop.f32.mrf.mxu1 }
  0x9f   :  { %1186 = vmatmul.msk.f32.gmra.mxu0 %vm314_vm0, %v121_v7 }
  0xa1   :  { %564 = vmatmul.f32.gmra.mxu1 %v123_v9  ;;  %677 = vmatmul.f32.gmra.mxu2 %v124_v10  ;;  %v163_v10 = vld [vmem:[%s2238_s0 + $0x288] sm:$0xff] }
  0xa3   :  { %790 = vmatmul.f32.gmra.mxu3 %v125_v11  ;;  %v164_v11 = vld [vmem:[%s2238_s0 + $0x290] sm:$0xff] }
  0xa4   :  { %v1707_v12 = vpop.f32.mrf.mxu2  ;;  %v1709_v13 = vpop.f32.mrf.mxu0 }
  0xa6   :  { %v1714_v15 = vpop.f32.mrf.mxu1  ;;  %v1716_v16 = vpop.f32.mrf.mxu3 }
  0xa7   :  { %1187 = vmatmul.msk.f32.gmra.mxu0 %vm314_vm0, %v126_v14  ;;  %v165_v14 = vld [vmem:[%s2238_s0 + $0x298] sm:$0xff] }
  0xa9   :  { %567 = vmatmul.f32.gmra.mxu1 %v128_v17  ;;  %680 = vmatmul.f32.gmra.mxu2 %v129_v18 }
  0xab   :  { %793 = vmatmul.f32.gmra.mxu3 %v130_v19 }
  0xac   :  { %v1728_v20 = vpop.f32.mrf.mxu2  ;;  %v1730_v21 = vpop.f32.mrf.mxu0 }
  0xae   :  { %v1735_v23 = vpop.f32.mrf.mxu1  ;;  %v1737_v24 = vpop.f32.mrf.mxu3 }
  0xaf   :  { %1188 = vmatmul.msk.f32.gmra.mxu0 %vm314_vm0, %v131_v22  ;;  %v166_v22 = vld [vmem:[%s2238_s0 + $0x2a0] sm:$0xff] }
  0xb1   :  { %570 = vmatmul.f32.gmra.mxu1 %v133_v25  ;;  %683 = vmatmul.f32.gmra.mxu2 %v134_v26 }
  0xb3   :  { %796 = vmatmul.f32.gmra.mxu3 %v135_v27 }
  0xb4   :  { %v1749_v28 = vpop.f32.mrf.mxu2  ;;  %v1751_v29 = vpop.f32.mrf.mxu0 }
  0xb6   :  { %v1756_v31 = vpop.f32.mrf.mxu1  ;;  %v1758_v32 = vpop.f32.mrf.mxu3 }
  0xb7   :  { %1189 = vmatmul.msk.f32.gmra.mxu0 %vm314_vm0, %v136_v30  ;;  %v168_v30 = vld [vmem:[%s2238_s0 + $0x2b0] sm:$0xff] }
  0xb9   :  { %573 = vmatmul.f32.gmra.mxu1 %v138_v33  ;;  %686 = vmatmul.f32.gmra.mxu2 %v139_v34  ;;  %v169_v33 = vld [vmem:[%s2238_s0 + $0x2b8] sm:$0xff] }
  0xbb   :  { %799 = vmatmul.f32.gmra.mxu3 %v140_v35  ;;  %v170_v35 = vld [vmem:[%s2238_s0 + $0x2c0] sm:$0xff] }
  0xbc   :  { %v1770_v36 = vpop.f32.mrf.mxu2  ;;  %v1772_v37 = vpop.f32.mrf.mxu0 }
  0xbe   :  { %v1777_v39 = vpop.f32.mrf.mxu1  ;;  %v1779_v40 = vpop.f32.mrf.mxu3 }
  0xbf   :  { %1190 = vmatmul.msk.f32.gmra.mxu0 %vm314_vm0, %v141_v38 }
  0xc1   :  { %576 = vmatmul.f32.gmra.mxu1 %v143_v41  ;;  %689 = vmatmul.f32.gmra.mxu2 %v144_v42 }
  0xc3   :  { %802 = vmatmul.f32.gmra.mxu3 %v145_v43 }
  0xc4   :  { %v1791_v44 = vpop.f32.mrf.mxu2  ;;  %v1793_v45 = vpop.f32.mrf.mxu0 }
  0xc6   :  { %v1798_v47 = vpop.f32.mrf.mxu1  ;;  %v1800_v48 = vpop.f32.mrf.mxu3 }
  0xc7   :  { %1191 = vmatmul.msk.f32.gmra.mxu0 %vm314_vm0, %v146_v46 }
  0xc9   :  { %579 = vmatmul.f32.gmra.mxu1 %v148_v49  ;;  %692 = vmatmul.f32.gmra.mxu2 %v149_v50  ;;  %v171_v49 = vld [vmem:[%s2238_s0 + $0x2c8] sm:$0xff] }
  0xcb   :  { %805 = vmatmul.f32.gmra.mxu3 %v150_v51 }
  0xcc   :  { %v1812_v52 = vpop.f32.mrf.mxu2  ;;  %v1814_v53 = vpop.f32.mrf.mxu0 }
  0xce   :  { %v1819_v55 = vpop.f32.mrf.mxu1  ;;  %v1821_v56 = vpop.f32.mrf.mxu3 }
  0xcf   :  { %1192 = vmatmul.msk.f32.gmra.mxu0 %vm314_vm0, %v151_v54 }
  0xd1   :  { %582 = vmatmul.f32.gmra.mxu1 %v153_v57  ;;  %695 = vmatmul.f32.gmra.mxu2 %v154_v58  ;;  %v173_v58 = vld [vmem:[%s2238_s0 + $0x2d8] sm:$0xff] }
  0xd3   :  { %808 = vmatmul.f32.gmra.mxu3 %v155_v59 }
  0xd4   :  { %v1833_v60 = vpop.f32.mrf.mxu2  ;;  %v1835_v61 = vpop.f32.mrf.mxu0 }
  0xd6   :  { %v1840_v63 = vpop.f32.mrf.mxu1  ;;  %v1842_v0 = vpop.f32.mrf.mxu3 }
  0xd7   :  { %1193 = vmatmul.msk.f32.gmra.mxu0 %vm314_vm0, %v156_v62  ;;  %v175_v62 = vld [vmem:[%s2238_s0 + $0x2e8] sm:$0xff] }
  0xd9   :  { %585 = vmatmul.f32.gmra.mxu1 %v158_v1  ;;  %698 = vmatmul.f32.gmra.mxu2 %v159_v2 }
  0xdb   :  { %811 = vmatmul.f32.gmra.mxu3 %v160_v3 }
  0xdc   :  { %v1854_v4 = vpop.f32.mrf.mxu2  ;;  %v1856_v5 = vpop.f32.mrf.mxu0 }
  0xde   :  { %v1861_v7 = vpop.f32.mrf.mxu3  ;;  %v541_v9 = vpop.f32.mrf.mxu1 }
  0xdf   :  { %1194 = vmatmul.msk.f32.gmra.mxu0 %vm314_vm0, %v161_v6  ;;  %v542_v17 = vadd.f32 %v541_v9, %v1709_v13  ;;  %v1886_v13 = vld [vmem:[%s2239_s2] ss:$0 sm:$0xff] }
  0xe1   :  { %588 = vmatmul.f32.gmra.mxu1 %v163_v10  ;;  %701 = vmatmul.f32.gmra.mxu2 %v164_v11  ;;  %v176_v10 = vld [vmem:[%s2238_s0 + $0x2f0] sm:$0xff] }
  0xe3   :  { %814 = vmatmul.f32.gmra.mxu3 %v165_v14 }
  0xe4   :  { %v654_v18 = vpop.f32.mrf.mxu2  ;;  %v880_v19 = vpop.f32.mrf.mxu0 }
  0xe5   :  { %v655_v25 = vadd.f32 %v654_v18, %v542_v17 }
  0xe6   :  { %v544_v26 = vpop.f32.mrf.mxu1  ;;  %v767_v27 = vpop.f32.mrf.mxu3 }
  0xe7   :  { %v768_v34 = vadd.f32 %v767_v27, %v655_v25  ;;  %1195 = vmatmul.msk.f32.gmra.mxu0 %vm314_vm0, %v166_v22  ;;  %v545_v41 = vadd.f32 %v544_v26, %v1730_v21  ;;  %v174_v21 = vld [vmem:[%s2238_s0 + $0x2e0] sm:$0xff]  ;;  %v180_v25 = vld [vmem:[%s2238_s0 + $0x310] sm:$0xff] }
  0xe9   :  { %v881_v38 = vadd.f32 %v880_v19, %v768_v34  ;;  %591 = vmatmul.f32.gmra.mxu1 %v168_v30  ;;  %704 = vmatmul.f32.gmra.mxu2 %v169_v33  ;;  %v178_v19 = vld [vmem:[%s2238_s0 + $0x300] sm:$0xff] }
  0xeb   :  { %v1079_v42 = vadd.f32 %v1886_v13, %v881_v38  ;;  %817 = vmatmul.f32.gmra.mxu3 %v170_v35  ;;  %v181_v35 = vld [vmem:[%s2238_s0 + $0x318] sm:$0xff] }
  0xec   :  { %v657_v43 = vpop.f32.mrf.mxu2  ;;  %v883_v46 = vpop.f32.mrf.mxu0 }
  0xed   :  { %v1111_v50 = vmax.f32 %v1079_v42, 0.0  ;;  %v658_v51 = vadd.f32 %v657_v43, %v545_v41 }
  0xee   :  { %v547_v54 = vpop.f32.mrf.mxu1  ;;  %v770_v57 = vpop.f32.mrf.mxu3 }
  0xef   :  { %1143 = vst [vmem:[%s2240_s3] sm:$0xff] %v1111_v50  ;;  %v771_v59 = vadd.f32 %v770_v57, %v658_v51  ;;  %1196 = vmatmul.msk.f32.gmra.mxu0 %vm314_vm0, %v171_v49  ;;  %v548_v2 = vadd.f32 %v547_v54, %v1751_v29  ;;  %v179_v29 = vld [vmem:[%s2238_s0 + $0x308] sm:$0xff]  ;;  %v185_v50 = vld [vmem:[%s2238_s0 + $0x338] sm:$0xff] }
  0xf1   :  { %v884_v1 = vadd.f32 %v883_v46, %v771_v59  ;;  %594 = vmatmul.f32.gmra.mxu1 %v173_v58  ;;  %707 = vmatmul.f32.gmra.mxu2 %v174_v21  ;;  %v183_v46 = vld [vmem:[%s2238_s0 + $0x328] sm:$0xff]  ;;  %v186_v59 = vld [vmem:[%s2238_s0 + $0x340] sm:$0xff] }
  0xf3   :  { %v1080_v3 = vadd.f32 %v1886_v13, %v884_v1  ;;  %820 = vmatmul.f32.gmra.mxu3 %v175_v62 }
  0xf4   :  { %v660_v6 = vpop.f32.mrf.mxu2  ;;  %v886_v9 = vpop.f32.mrf.mxu0 }
  0xf5   :  { %v1112_v11 = vmax.f32 %v1080_v3, 0.0  ;;  %v661_v14 = vadd.f32 %v660_v6, %v548_v2  ;;  %v188_v6 = vld [vmem:[%s2238_s0 + $0x350] sm:$0xff] }
  0xf6   :  { %v550_v17 = vpop.f32.mrf.mxu1  ;;  %v773_v18 = vpop.f32.mrf.mxu3 }
  0xf7   :  { %1144 = vst [vmem:[%s2240_s3 + $0x8] sm:$0xff] %v1112_v11  ;;  %v774_v22 = vadd.f32 %v773_v18, %v661_v14  ;;  %1197 = vmatmul.msk.f32.gmra.mxu0 %vm314_vm0, %v176_v10  ;;  %v551_v27 = vadd.f32 %v550_v17, %v1772_v37  ;;  %v184_v37 = vld [vmem:[%s2238_s0 + $0x330] sm:$0xff]  ;;  %v190_v10 = vld [vmem:[%s2238_s0 + $0x360] sm:$0xff] }
  0xf9   :  { %v887_v26 = vadd.f32 %v886_v9, %v774_v22  ;;  %597 = vmatmul.f32.gmra.mxu1 %v178_v19  ;;  %710 = vmatmul.f32.gmra.mxu2 %v179_v29  ;;  %v191_v29 = vld [vmem:[%s2238_s0 + $0x368] sm:$0xff] }
  0xfb   :  { %v1081_v30 = vadd.f32 %v1886_v13, %v887_v26  ;;  %823 = vmatmul.f32.gmra.mxu3 %v180_v25 }
  0xfc   :  { %v663_v33 = vpop.f32.mrf.mxu2  ;;  %v889_v34 = vpop.f32.mrf.mxu0 }
  0xfd   :  { %v1113_v38 = vmax.f32 %v1081_v30, 0.0  ;;  %v664_v41 = vadd.f32 %v663_v33, %v551_v27  ;;  %v193_v30 = vld [vmem:[%s2238_s0 + $0x378] sm:$0xff] }
  0xfe   :  { %v553_v42 = vpop.f32.mrf.mxu1  ;;  %v776_v43 = vpop.f32.mrf.mxu3 }
  0xff   :  { %1145 = vst [vmem:[%s2240_s3 + $0x10] sm:$0xff] %v1113_v38  ;;  %v777_v49 = vadd.f32 %v776_v43, %v664_v41  ;;  %1198 = vmatmul.msk.f32.gmra.mxu0 %vm314_vm0, %v181_v35  ;;  %v554_v54 = vadd.f32 %v553_v42, %v1793_v45  ;;  %v189_v45 = vld [vmem:[%s2238_s0 + $0x358] sm:$0xff] }
 0x101   :  { %v890_v51 = vadd.f32 %v889_v34, %v777_v49  ;;  %600 = vmatmul.f32.gmra.mxu1 %v183_v46  ;;  %713 = vmatmul.f32.gmra.mxu2 %v184_v37  ;;  %v195_v34 = vld [vmem:[%s2238_s0 + $0x388] sm:$0xff]  ;;  %v196_v46 = vld [vmem:[%s2238_s0 + $0x390] sm:$0xff] }
 0x103   :  { %v1082_v57 = vadd.f32 %v1886_v13, %v890_v51  ;;  %826 = vmatmul.f32.gmra.mxu3 %v185_v50 }
 0x104   :  { %v666_v58 = vpop.f32.mrf.mxu2  ;;  %v892_v21 = vpop.f32.mrf.mxu0 }
 0x105   :  { %v1114_v62 = vmax.f32 %v1082_v57, 0.0  ;;  %v667_v1 = vadd.f32 %v666_v58, %v554_v54  ;;  %v198_v54 = vld [vmem:[%s2238_s0 + $0x3a0] sm:$0xff]  ;;  %v200_v58 = vld [vmem:[%s2238_s0 + $0x3b0] sm:$0xff] }
 0x106   :  { %v556_v2 = vpop.f32.mrf.mxu1  ;;  %v779_v3 = vpop.f32.mrf.mxu3 }
 0x107   :  { %1146 = vst [vmem:[%s2240_s3 + $0x18] sm:$0xff] %v1114_v62  ;;  %v780_v9 = vadd.f32 %v779_v3, %v667_v1  ;;  %1199 = vmatmul.msk.f32.gmra.mxu0 %vm314_vm0, %v186_v59  ;;  %v557_v14 = vadd.f32 %v556_v2, %v1814_v53  ;;  %v194_v53 = vld [vmem:[%s2238_s0 + $0x380] sm:$0xff]  ;;  %v201_v3 = vld [vmem:[%s2238_s0 + $0x3b8] sm:$0xff] }
 0x109   :  { %v893_v11 = vadd.f32 %v892_v21, %v780_v9  ;;  %603 = vmatmul.f32.gmra.mxu1 %v188_v6  ;;  %716 = vmatmul.f32.gmra.mxu2 %v189_v45 }
 0x10b   :  { %v1083_v17 = vadd.f32 %v1886_v13, %v893_v11  ;;  %829 = vmatmul.f32.gmra.mxu3 %v190_v10  ;;  %v203_v11 = vld [vmem:[%s2238_s0 + $0x3c8] sm:$0xff] }
 0x10c   :  { %v669_v18 = vpop.f32.mrf.mxu2  ;;  %v895_v19 = vpop.f32.mrf.mxu0 }
 0x10d   :  { %v1115_v22 = vmax.f32 %v1083_v17, 0.0  ;;  %v670_v25 = vadd.f32 %v669_v18, %v557_v14  ;;  %v205_v17 = vld [vmem:[%s2238_s0 + $0x3d8] sm:$0xff] }
 0x10e   :  { %v559_v26 = vpop.f32.mrf.mxu1  ;;  %v782_v27 = vpop.f32.mrf.mxu3 }
 0x10f   :  { %1147 = vst [vmem:[%s2240_s3 + $0x20] sm:$0xff] %v1115_v22  ;;  %v783_v33 = vadd.f32 %v782_v27, %v670_v25  ;;  %1200 = vmatmul.msk.f32.gmra.mxu0 %vm314_vm0, %v191_v29  ;;  %v560_v38 = vadd.f32 %v559_v26, %v1835_v61  ;;  %v199_v61 = vld [vmem:[%s2238_s0 + $0x3a8] sm:$0xff]  ;;  %v206_v26 = vld [vmem:[%s2238_s0 + $0x3e0] sm:$0xff] }
 0x111   :  { %v896_v35 = vadd.f32 %v895_v19, %v783_v33  ;;  %606 = vmatmul.f32.gmra.mxu1 %v193_v30  ;;  %719 = vmatmul.f32.gmra.mxu2 %v194_v53 }
 0x113   :  { %v1084_v41 = vadd.f32 %v1886_v13, %v896_v35  ;;  %832 = vmatmul.f32.gmra.mxu3 %v195_v34  ;;  %v208_v34 = vld [vmem:[%s2238_s0 + $0x3f0] sm:$0xff] }
 0x114   :  { %v672_v42 = vpop.f32.mrf.mxu2  ;;  %v898_v43 = vpop.f32.mrf.mxu0 }
 0x115   :  { %v1116_v37 = vmax.f32 %v1084_v41, 0.0  ;;  %v673_v49 = vadd.f32 %v672_v42, %v560_v38  ;;  %v210_v38 = vld [vmem:[%s2238_s0 + $0x400] sm:$0xff] }
 0x116   :  { %v562_v50 = vpop.f32.mrf.mxu1  ;;  %v785_v51 = vpop.f32.mrf.mxu3 }
 0x117   :  { %1148 = vst [vmem:[%s2240_s3 + $0x28] sm:$0xff] %v1116_v37  ;;  %v786_v57 = vadd.f32 %v785_v51, %v673_v49  ;;  %1201 = vmatmul.msk.f32.gmra.mxu0 %vm314_vm0, %v196_v46  ;;  %v563_v59 = vadd.f32 %v562_v50, %v1856_v5  ;;  %v204_v5 = vld [vmem:[%s2238_s0 + $0x3d0] sm:$0xff]  ;;  %v211_v49 = vld [vmem:[%s2238_s0 + $0x408] sm:$0xff] }
 0x119   :  { %v899_v21 = vadd.f32 %v898_v43, %v786_v57  ;;  %609 = vmatmul.f32.gmra.mxu1 %v198_v54  ;;  %722 = vmatmul.f32.gmra.mxu2 %v199_v61  ;;  %v213_v57 = vld [vmem:[%s2238_s0 + $0x418] sm:$0xff] }
 0x11b   :  { %v1085_v62 = vadd.f32 %v1886_v13, %v899_v21  ;;  %835 = vmatmul.f32.gmra.mxu3 %v200_v58  ;;  %v215_v21 = vld [vmem:[%s2238_s0 + $0x428] sm:$0xff] }
 0x11c   :  { %v675_v1 = vpop.f32.mrf.mxu2  ;;  %v901_v2 = vpop.f32.mrf.mxu0 }
 0x11d   :  { %v1117_v6 = vmax.f32 %v1085_v62, 0.0  ;;  %v676_v45 = vadd.f32 %v675_v1, %v563_v59 }
 0x11e   :  { %v565_v9 = vpop.f32.mrf.mxu1  ;;  %v788_v10 = vpop.f32.mrf.mxu3 }
 0x11f   :  { %1149 = vst [vmem:[%s2240_s3 + $0x30] sm:$0xff] %v1117_v6  ;;  %v789_v14 = vadd.f32 %v788_v10, %v676_v45  ;;  %1202 = vmatmul.msk.f32.gmra.mxu0 %vm314_vm0, %v201_v3  ;;  %v566_v19 = vadd.f32 %v565_v9, %v1695_v8  ;;  %v209_v8 = vld [vmem:[%s2238_s0 + $0x3f8] sm:$0xff]  ;;  %v216_v6 = vld [vmem:[%s2238_s0 + $0x430] sm:$0xff] }
 0x121   :  { %v902_v18 = vadd.f32 %v901_v2, %v789_v14  ;;  %612 = vmatmul.f32.gmra.mxu1 %v203_v11  ;;  %725 = vmatmul.f32.gmra.mxu2 %v204_v5  ;;  %v218_v5 = vld [vmem:[%s2238_s0 + $0x440] sm:$0xff] }
 0x123   :  { %v1086_v29 = vadd.f32 %v1886_v13, %v902_v18  ;;  %838 = vmatmul.f32.gmra.mxu3 %v205_v17  ;;  %v220_v17 = vld [vmem:[%s2238_s0 + $0x450] sm:$0xff] }
 0x124   :  { %v678_v22 = vpop.f32.mrf.mxu2  ;;  %v904_v25 = vpop.f32.mrf.mxu0 }
 0x125   :  { %v1118_v27 = vmax.f32 %v1086_v29, 0.0  ;;  %v679_v30 = vadd.f32 %v678_v22, %v566_v19 }
 0x126   :  { %v568_v53 = vpop.f32.mrf.mxu1  ;;  %v791_v33 = vpop.f32.mrf.mxu3 }
 0x127   :  { %1150 = vst [vmem:[%s2240_s3 + $0x38] sm:$0xff] %v1118_v27  ;;  %v792_v35 = vadd.f32 %v791_v33, %v679_v30  ;;  %1203 = vmatmul.msk.f32.gmra.mxu0 %vm314_vm0, %v206_v26  ;;  %v569_v42 = vadd.f32 %v568_v53, %v1714_v15  ;;  %v214_v15 = vld [vmem:[%s2238_s0 + $0x420] sm:$0xff]  ;;  %v221_v26 = vld [vmem:[%s2238_s0 + $0x458] sm:$0xff] }
 0x129   :  { %v905_v41 = vadd.f32 %v904_v25, %v792_v35  ;;  %615 = vmatmul.f32.gmra.mxu1 %v208_v34  ;;  %728 = vmatmul.f32.gmra.mxu2 %v209_v8  ;;  %v223_v34 = vld [vmem:[%s2238_s0 + $0x468] sm:$0xff]  ;;  %v225_v35 = vld [vmem:[%s2238_s0 + $0x478] sm:$0xff] }
 0x12b   :  { %v1087_v43 = vadd.f32 %v1886_v13, %v905_v41  ;;  %841 = vmatmul.f32.gmra.mxu3 %v210_v38 }
 0x12c   :  { %v681_v46 = vpop.f32.mrf.mxu2  ;;  %v907_v37 = vpop.f32.mrf.mxu0 }
 0x12d   :  { %v1119_v50 = vmax.f32 %v1087_v43, 0.0  ;;  %v682_v51 = vadd.f32 %v681_v46, %v569_v42 }
 0x12e   :  { %v571_v54 = vpop.f32.mrf.mxu1  ;;  %v794_v61 = vpop.f32.mrf.mxu3 }
 0x12f   :  { %1151 = vst [vmem:[%s2240_s3 + $0x40] sm:$0xff] %v1119_v50  ;;  %v795_v58 = vadd.f32 %v794_v61, %v682_v51  ;;  %1204 = vmatmul.msk.f32.gmra.mxu0 %vm314_vm0, %v211_v49  ;;  %v572_v62 = vadd.f32 %v571_v54, %v1735_v23  ;;  %v219_v23 = vld [vmem:[%s2238_s0 + $0x448] sm:$0xff]  ;;  %v228_v61 = vld [vmem:[%s2238_s0 + $0x490] sm:$0xff] }
 0x131   :  { %v908_v59 = vadd.f32 %v907_v37, %v795_v58  ;;  %618 = vmatmul.f32.gmra.mxu1 %v213_v57  ;;  %731 = vmatmul.f32.gmra.mxu2 %v214_v15  ;;  %v226_v37 = vld [vmem:[%s2238_s0 + $0x480] sm:$0xff] }
 0x132   :  { %v230_v15 = vld [vmem:[%s2238_s0 + $0x4a0] sm:$0xff] }
 0x133   :  { %v1088_v1 = vadd.f32 %v1886_v13, %v908_v59  ;;  %844 = vmatmul.f32.gmra.mxu3 %v215_v21 }
 0x134   :  { %v684_v2 = vpop.f32.mrf.mxu2  ;;  %v910_v3 = vpop.f32.mrf.mxu0 }
 0x135   :  { %v1120_v45 = vmax.f32 %v1088_v1, 0.0  ;;  %v685_v9 = vadd.f32 %v684_v2, %v572_v62  ;;  %v231_v2 = vld [vmem:[%s2238_s0 + $0x4a8] sm:$0xff] }
 0x136   :  { %v574_v10 = vpop.f32.mrf.mxu1  ;;  %v797_v11 = vpop.f32.mrf.mxu3 }
 0x137   :  { %1152 = vst [vmem:[%s2240_s3 + $0x48] sm:$0xff] %v1120_v45  ;;  %v798_v14 = vadd.f32 %v797_v11, %v685_v9  ;;  %1205 = vmatmul.msk.f32.gmra.mxu0 %vm314_vm0, %v216_v6  ;;  %v575_v19 = vadd.f32 %v574_v10, %v1756_v31  ;;  %v224_v31 = vld [vmem:[%s2238_s0 + $0x470] sm:$0xff]  ;;  %v233_v10 = vld [vmem:[%s2238_s0 + $0x4b8] sm:$0xff] }
 0x139   :  { %v911_v18 = vadd.f32 %v910_v3, %v798_v14  ;;  %621 = vmatmul.f32.gmra.mxu1 %v218_v5  ;;  %734 = vmatmul.f32.gmra.mxu2 %v219_v23  ;;  %v235_v5 = vld [vmem:[%s2238_s0 + $0x4c8] sm:$0xff] }
 0x13b   :  { %v1089_v29 = vadd.f32 %v1886_v13, %v911_v18  ;;  %847 = vmatmul.f32.gmra.mxu3 %v220_v17 }
 0x13c   :  { %v687_v22 = vpop.f32.mrf.mxu2  ;;  %v913_v25 = vpop.f32.mrf.mxu0 }
 0x13d   :  { %v1121_v27 = vmax.f32 %v1089_v29, 0.0  ;;  %v688_v30 = vadd.f32 %v687_v22, %v575_v19  ;;  %v236_v29 = vld [vmem:[%s2238_s0 + $0x4d0] sm:$0xff] }
 0x13e   :  { %v577_v53 = vpop.f32.mrf.mxu1  ;;  %v800_v33 = vpop.f32.mrf.mxu3 }
 0x13f   :  { %1153 = vst [vmem:[%s2240_s3 + $0x50] sm:$0xff] %v1121_v27  ;;  %v801_v8 = vadd.f32 %v800_v33, %v688_v30  ;;  %1206 = vmatmul.msk.f32.gmra.mxu0 %vm314_vm0, %v221_v26  ;;  %v578_v41 = vadd.f32 %v577_v53, %v1777_v39  ;;  %v229_v39 = vld [vmem:[%s2238_s0 + $0x498] sm:$0xff]  ;;  %v238_v30 = vld [vmem:[%s2238_s0 + $0x4e0] sm:$0xff]  ;;  %v240_v33 = vld [vmem:[%s2238_s0 + $0x4f0] sm:$0xff] }
 0x141   :  { %v914_v38 = vadd.f32 %v913_v25, %v801_v8  ;;  %624 = vmatmul.f32.gmra.mxu1 %v223_v34  ;;  %737 = vmatmul.f32.gmra.mxu2 %v224_v31 }
 0x143   :  { %v1090_v42 = vadd.f32 %v1886_v13, %v914_v38  ;;  %850 = vmatmul.f32.gmra.mxu3 %v225_v35 }
 0x144   :  { %v690_v43 = vpop.f32.mrf.mxu2  ;;  %v916_v46 = vpop.f32.mrf.mxu0 }
 0x145   :  { %v1122_v49 = vmax.f32 %v1090_v42, 0.0  ;;  %v691_v50 = vadd.f32 %v690_v43, %v578_v41  ;;  %v241_v41 = vld [vmem:[%s2238_s0 + $0x4f8] sm:$0xff] }
 0x146   :  { %v580_v51 = vpop.f32.mrf.mxu1  ;;  %v803_v54 = vpop.f32.mrf.mxu3 }
 0x147   :  { %1154 = vst [vmem:[%s2240_s3 + $0x58] sm:$0xff] %v1122_v49  ;;  %v804_v57 = vadd.f32 %v803_v54, %v691_v50  ;;  %1207 = vmatmul.msk.f32.gmra.mxu0 %vm314_vm0, %v226_v37  ;;  %v581_v21 = vadd.f32 %v580_v51, %v1798_v47  ;;  %v234_v47 = vld [vmem:[%s2238_s0 + $0x4c0] sm:$0xff] }
 0x149   :  { %v917_v58 = vadd.f32 %v916_v46, %v804_v57  ;;  %627 = vmatmul.f32.gmra.mxu1 %v228_v61  ;;  %740 = vmatmul.f32.gmra.mxu2 %v229_v39 }
 0x14b   :  { %v1091_v59 = vadd.f32 %v1886_v13, %v917_v58  ;;  %853 = vmatmul.f32.gmra.mxu3 %v230_v15 }
 0x14c   :  { %v693_v62 = vpop.f32.mrf.mxu2  ;;  %v919_v1 = vpop.f32.mrf.mxu0 }
 0x14d   :  { %v1123_v3 = vmax.f32 %v1091_v59, 0.0  ;;  %v694_v6 = vadd.f32 %v693_v62, %v581_v21 }
 0x14e   :  { %v583_v45 = vpop.f32.mrf.mxu1  ;;  %v806_v9 = vpop.f32.mrf.mxu3 }
 0x14f   :  { %1155 = vst [vmem:[%s2240_s3 + $0x60] sm:$0xff] %v1123_v3  ;;  %v807_v11 = vadd.f32 %v806_v9, %v694_v6  ;;  %1208 = vmatmul.msk.f32.gmra.mxu0 %vm314_vm0, %v231_v2  ;;  %v584_v14 = vadd.f32 %v583_v45, %v1819_v55  ;;  %v239_v55 = vld [vmem:[%s2238_s0 + $0x4e8] sm:$0xff] }
 0x151   :  { %v920_v23 = vadd.f32 %v919_v1, %v807_v11  ;;  %630 = vmatmul.f32.gmra.mxu1 %v233_v10  ;;  %743 = vmatmul.f32.gmra.mxu2 %v234_v47 }
 0x153   :  { %v1092_v17 = vadd.f32 %v1886_v13, %v920_v23  ;;  %856 = vmatmul.f32.gmra.mxu3 %v235_v5 }
 0x154   :  { %v696_v18 = vpop.f32.mrf.mxu2  ;;  %v922_v19 = vpop.f32.mrf.mxu0 }
 0x155   :  { %v1124_v22 = vmax.f32 %v1092_v17, 0.0  ;;  %v697_v25 = vadd.f32 %v696_v18, %v584_v14 }
 0x156   :  { %v586_v26 = vpop.f32.mrf.mxu1  ;;  %v809_v27 = vpop.f32.mrf.mxu3 }
 0x157   :  { %1156 = vst [vmem:[%s2240_s3 + $0x68] sm:$0xff] %v1124_v22  ;;  %v810_v53 = vadd.f32 %v809_v27, %v697_v25  ;;  %1209 = vmatmul.msk.f32.gmra.mxu0 %vm314_vm0, %v236_v29  ;;  %v587_v31 = vadd.f32 %v586_v26, %v1840_v63 }
 0x159   :  { %v923_v34 = vadd.f32 %v922_v19, %v810_v53  ;;  %633 = vmatmul.f32.gmra.mxu1 %v238_v30  ;;  %746 = vmatmul.f32.gmra.mxu2 %v239_v55 }
 0x15b   :  { %v1093_v8 = vadd.f32 %v1886_v13, %v923_v34  ;;  %859 = vmatmul.f32.gmra.mxu3 %v240_v33 }
 0x15c   :  { %v699_v35 = vpop.f32.mrf.mxu2  ;;  %v925_v38 = vpop.f32.mrf.mxu0 }
 0x15d   :  { %v1125_v42 = vmax.f32 %v1093_v8, 0.0  ;;  %v700_v43 = vadd.f32 %v699_v35, %v587_v31 }
 0x15e   :  { %v589_v46 = vpop.f32.mrf.mxu1  ;;  %v812_v37 = vpop.f32.mrf.mxu3 }
 0x15f   :  { %1157 = vst [vmem:[%s2240_s3 + $0x70] sm:$0xff] %v1125_v42  ;;  %v813_v49 = vadd.f32 %v812_v37, %v700_v43  ;;  %1210 = vmatmul.msk.f32.gmra.mxu0 %vm314_vm0, %v241_v41  ;;  %v590_v50 = vadd.f32 %v589_v46, %v1707_v12 }
 0x161   :  { %v926_v63 = vadd.f32 %v925_v38, %v813_v49 }
 0x163   :  { %v1094_v51 = vadd.f32 %v1886_v13, %v926_v63 }
 0x164   :  { %v702_v54 = vpop.f32.mrf.mxu2  ;;  %v928_v61 = vpop.f32.mrf.mxu0 }
 0x165   :  { %v1126_v39 = vmax.f32 %v1094_v51, 0.0  ;;  %v703_v57 = vadd.f32 %v702_v54, %v590_v50 }
 0x166   :  { %v592_v15 = vpop.f32.mrf.mxu1  ;;  %v815_v58 = vpop.f32.mrf.mxu3 }
 0x167   :  { %1158 = vst [vmem:[%s2240_s3 + $0x78] sm:$0xff] %v1126_v39  ;;  %v816_v21 = vadd.f32 %v815_v58, %v703_v57  ;;  %v593_v62 = vadd.f32 %v592_v15, %v1728_v20 }
 0x169   :  { %v929_v59 = vadd.f32 %v928_v61, %v816_v21 }
 0x16b   :  { %v1095_v1 = vadd.f32 %v1886_v13, %v929_v59 }
 0x16c   :  { %v705_v2 = vpop.f32.mrf.mxu2  ;;  %v931_v12 = vpop.f32.mrf.mxu0 }
 0x16d   :  { %v1127_v3 = vmax.f32 %v1095_v1, 0.0  ;;  %v706_v6 = vadd.f32 %v705_v2, %v593_v62 }
 0x16e   :  { %v595_v45 = vpop.f32.mrf.mxu1  ;;  %v818_v9 = vpop.f32.mrf.mxu3 }
 0x16f   :  { %1159 = vst [vmem:[%s2240_s3 + $0x80] sm:$0xff] %v1127_v3  ;;  %v819_v10 = vadd.f32 %v818_v9, %v706_v6  ;;  %v596_v11 = vadd.f32 %v595_v45, %v1749_v28 }
 0x171   :  { %v932_v47 = vadd.f32 %v931_v12, %v819_v10 }
 0x173   :  { %v1096_v5 = vadd.f32 %v1886_v13, %v932_v47 }
 0x174   :  { %v708_v23 = vpop.f32.mrf.mxu2  ;;  %v934_v20 = vpop.f32.mrf.mxu0 }
 0x175   :  { %v1128_v14 = vmax.f32 %v1096_v5, 0.0  ;;  %v709_v17 = vadd.f32 %v708_v23, %v596_v11 }
 0x176   :  { %v598_v18 = vpop.f32.mrf.mxu1  ;;  %v821_v19 = vpop.f32.mrf.mxu3 }
 0x177   :  { %1160 = vst [vmem:[%s2240_s3 + $0x88] sm:$0xff] %v1128_v14  ;;  %v822_v29 = vadd.f32 %v821_v19, %v709_v17  ;;  %v599_v25 = vadd.f32 %v598_v18, %v1770_v36 }
 0x179   :  { %v935_v22 = vadd.f32 %v934_v20, %v822_v29 }
 0x17b   :  { %v1097_v26 = vadd.f32 %v1886_v13, %v935_v22 }
 0x17c   :  { %v711_v27 = vpop.f32.mrf.mxu2  ;;  %v937_v28 = vpop.f32.mrf.mxu0 }
 0x17d   :  { %v1129_v30 = vmax.f32 %v1097_v26, 0.0  ;;  %v712_v55 = vadd.f32 %v711_v27, %v599_v25 }
 0x17e   :  { %v601_v53 = vpop.f32.mrf.mxu1  ;;  %v824_v33 = vpop.f32.mrf.mxu3 }
 0x17f   :  { %1161 = vst [vmem:[%s2240_s3 + $0x90] sm:$0xff] %v1129_v30  ;;  %v825_v34 = vadd.f32 %v824_v33, %v712_v55  ;;  %v602_v8 = vadd.f32 %v601_v53, %v1791_v44 }
 0x181   :  { %v938_v31 = vadd.f32 %v937_v28, %v825_v34 }
 0x183   :  { %v1098_v35 = vadd.f32 %v1886_v13, %v938_v31 }
 0x184   :  { %v714_v38 = vpop.f32.mrf.mxu2  ;;  %v940_v36 = vpop.f32.mrf.mxu0 }
 0x185   :  { %v1130_v41 = vmax.f32 %v1098_v35, 0.0  ;;  %v715_v42 = vadd.f32 %v714_v38, %v602_v8 }
 0x186   :  { %v604_v43 = vpop.f32.mrf.mxu1  ;;  %v827_v46 = vpop.f32.mrf.mxu3 }
 0x187   :  { %1162 = vst [vmem:[%s2240_s3 + $0x98] sm:$0xff] %v1130_v41  ;;  %v828_v37 = vadd.f32 %v827_v46, %v715_v42  ;;  %v605_v63 = vadd.f32 %v604_v43, %v1812_v52 }
 0x189   :  { %v941_v49 = vadd.f32 %v940_v36, %v828_v37 }
 0x18b   :  { %v1099_v50 = vadd.f32 %v1886_v13, %v941_v49 }
 0x18c   :  { %v717_v51 = vpop.f32.mrf.mxu2  ;;  %v943_v44 = vpop.f32.mrf.mxu0 }
 0x18d   :  { %v1131_v54 = vmax.f32 %v1099_v50, 0.0  ;;  %v718_v61 = vadd.f32 %v717_v51, %v605_v63 }
 0x18e   :  { %v607_v39 = vpop.f32.mrf.mxu1  ;;  %v830_v57 = vpop.f32.mrf.mxu3 }
 0x18f   :  { %1163 = vst [vmem:[%s2240_s3 + $0xa0] sm:$0xff] %v1131_v54  ;;  %v831_v15 = vadd.f32 %v830_v57, %v718_v61  ;;  %v608_v21 = vadd.f32 %v607_v39, %v1833_v60 }
 0x191   :  { %v944_v58 = vadd.f32 %v943_v44, %v831_v15 }
 0x193   :  { %v1100_v59 = vadd.f32 %v1886_v13, %v944_v58 }
 0x194   :  { %v720_v62 = vpop.f32.mrf.mxu2  ;;  %v946_v52 = vpop.f32.mrf.mxu0 }
 0x195   :  { %v1132_v1 = vmax.f32 %v1100_v59, 0.0  ;;  %v721_v2 = vadd.f32 %v720_v62, %v608_v21 }
 0x196   :  { %v610_v12 = vpop.f32.mrf.mxu1  ;;  %v833_v3 = vpop.f32.mrf.mxu3 }
 0x197   :  { %1164 = vst [vmem:[%s2240_s3 + $0xa8] sm:$0xff] %v1132_v1  ;;  %v834_v6 = vadd.f32 %v833_v3, %v721_v2  ;;  %v611_v9 = vadd.f32 %v610_v12, %v1854_v4 }
 0x199   :  { %v947_v45 = vadd.f32 %v946_v52, %v834_v6 }
 0x19b   :  { %v1101_v10 = vadd.f32 %v1886_v13, %v947_v45 }
 0x19c   :  { %v723_v47 = vpop.f32.mrf.mxu2  ;;  %v949_v60 = vpop.f32.mrf.mxu0 }
 0x19d   :  { %v1133_v11 = vmax.f32 %v1101_v10, 0.0  ;;  %v724_v5 = vadd.f32 %v723_v47, %v611_v9 }
 0x19e   :  { %v613_v23 = vpop.f32.mrf.mxu1  ;;  %v836_v20 = vpop.f32.mrf.mxu3 }
 0x19f   :  { %1165 = vst [vmem:[%s2240_s3 + $0xb0] sm:$0xff] %v1133_v11  ;;  %v837_v14 = vadd.f32 %v836_v20, %v724_v5  ;;  %v614_v18 = vadd.f32 %v613_v23, %v1716_v16 }
 0x1a1   :  { %v950_v17 = vadd.f32 %v949_v60, %v837_v14 }
 0x1a3   :  { %v1102_v19 = vadd.f32 %v1886_v13, %v950_v17 }
 0x1a4   :  { %v726_v29 = vpop.f32.mrf.mxu2  ;;  %v952_v4 = vpop.f32.mrf.mxu0 }
 0x1a5   :  { %v1134_v22 = vmax.f32 %v1102_v19, 0.0  ;;  %v727_v25 = vadd.f32 %v726_v29, %v614_v18 }
 0x1a6   :  { %v616_v26 = vpop.f32.mrf.mxu1  ;;  %v839_v27 = vpop.f32.mrf.mxu3 }
 0x1a7   :  { %1166 = vst [vmem:[%s2240_s3 + $0xb8] sm:$0xff] %v1134_v22  ;;  %v840_v28 = vadd.f32 %v839_v27, %v727_v25  ;;  %v617_v55 = vadd.f32 %v616_v26, %v1737_v24 }
 0x1a9   :  { %v953_v30 = vadd.f32 %v952_v4, %v840_v28 }
 0x1ab   :  { %v1103_v53 = vadd.f32 %v1886_v13, %v953_v30 }
 0x1ac   :  { %v729_v33 = vpop.f32.mrf.mxu2  ;;  %v955_v16 = vpop.f32.mrf.mxu0 }
 0x1ad   :  { %v1135_v34 = vmax.f32 %v1103_v53, 0.0  ;;  %v730_v31 = vadd.f32 %v729_v33, %v617_v55 }
 0x1ae   :  { %v619_v8 = vpop.f32.mrf.mxu1  ;;  %v842_v35 = vpop.f32.mrf.mxu3 }
 0x1af   :  { %1167 = vst [vmem:[%s2240_s3 + $0xc0] sm:$0xff] %v1135_v34  ;;  %v843_v38 = vadd.f32 %v842_v35, %v730_v31  ;;  %v620_v41 = vadd.f32 %v619_v8, %v1758_v32 }
 0x1b1   :  { %v956_v36 = vadd.f32 %v955_v16, %v843_v38 }
 0x1b3   :  { %v1104_v42 = vadd.f32 %v1886_v13, %v956_v36 }
 0x1b4   :  { %v732_v43 = vpop.f32.mrf.mxu2  ;;  %v958_v24 = vpop.f32.mrf.mxu0 }
 0x1b5   :  { %v1136_v46 = vmax.f32 %v1104_v42, 0.0  ;;  %v733_v37 = vadd.f32 %v732_v43, %v620_v41 }
 0x1b6   :  { %v622_v49 = vpop.f32.mrf.mxu1  ;;  %v845_v63 = vpop.f32.mrf.mxu3 }
 0x1b7   :  { %1168 = vst [vmem:[%s2240_s3 + $0xc8] sm:$0xff] %v1136_v46  ;;  %v846_v50 = vadd.f32 %v845_v63, %v733_v37  ;;  %v623_v44 = vadd.f32 %v622_v49, %v1779_v40 }
 0x1b9   :  { %v959_v51 = vadd.f32 %v958_v24, %v846_v50 }
 0x1bb   :  { %v1105_v54 = vadd.f32 %v1886_v13, %v959_v51 }
 0x1bc   :  { %v735_v61 = vpop.f32.mrf.mxu2  ;;  %v961_v32 = vpop.f32.mrf.mxu0 }
 0x1bd   :  { %v1137_v39 = vmax.f32 %v1105_v54, 0.0  ;;  %v736_v57 = vadd.f32 %v735_v61, %v623_v44 }
 0x1be   :  { %v625_v15 = vpop.f32.mrf.mxu1  ;;  %v848_v58 = vpop.f32.mrf.mxu3 }
 0x1bf   :  { %1169 = vst [vmem:[%s2240_s3 + $0xd0] sm:$0xff] %v1137_v39  ;;  %v849_v21 = vadd.f32 %v848_v58, %v736_v57  ;;  %v626_v62 = vadd.f32 %v625_v15, %v1800_v48 }
 0x1c1   :  { %v962_v59 = vadd.f32 %v961_v32, %v849_v21 }
 0x1c3   :  { %v1106_v52 = vadd.f32 %v1886_v13, %v962_v59 }
 0x1c4   :  { %v738_v1 = vpop.f32.mrf.mxu2  ;;  %v964_v40 = vpop.f32.mrf.mxu0 }
 0x1c5   :  { %v1138_v2 = vmax.f32 %v1106_v52, 0.0  ;;  %v739_v12 = vadd.f32 %v738_v1, %v626_v62 }
 0x1c6   :  { %v628_v3 = vpop.f32.mrf.mxu1  ;;  %v851_v6 = vpop.f32.mrf.mxu3 }
 0x1c7   :  { %1170 = vst [vmem:[%s2240_s3 + $0xd8] sm:$0xff] %v1138_v2  ;;  %v852_v45 = vadd.f32 %v851_v6, %v739_v12  ;;  %v629_v10 = vadd.f32 %v628_v3, %v1821_v56 }
 0x1c9   :  { %v965_v9 = vadd.f32 %v964_v40, %v852_v45 }
 0x1cb   :  { %v1107_v47 = vadd.f32 %v1886_v13, %v965_v9 }
 0x1cc   :  { %v741_v60 = vpop.f32.mrf.mxu2  ;;  %v967_v48 = vpop.f32.mrf.mxu0 }
 0x1cd   :  { %v1139_v11 = vmax.f32 %v1107_v47, 0.0  ;;  %v742_v5 = vadd.f32 %v741_v60, %v629_v10 }
 0x1ce   :  { %v631_v23 = vpop.f32.mrf.mxu1  ;;  %v854_v20 = vpop.f32.mrf.mxu3 }
 0x1cf   :  { %1171 = vst [vmem:[%s2240_s3 + $0xe0] sm:$0xff] %v1139_v11  ;;  %v855_v14 = vadd.f32 %v854_v20, %v742_v5  ;;  %v632_v18 = vadd.f32 %v631_v23, %v1842_v0 }
 0x1d1   :  { %v968_v17 = vadd.f32 %v967_v48, %v855_v14 }
 0x1d3   :  { %v1108_v19 = vadd.f32 %v1886_v13, %v968_v17 }
 0x1d4   :  { %v744_v29 = vpop.f32.mrf.mxu2  ;;  %v970_v56 = vpop.f32.mrf.mxu0 }
 0x1d5   :  { %v1140_v4 = vmax.f32 %v1108_v19, 0.0  ;;  %v745_v22 = vadd.f32 %v744_v29, %v632_v18 }
 0x1d6   :  { %v857_v25 = vpop.f32.mrf.mxu3  ;;  %v634_v27 = vpop.f32.mrf.mxu1 }
 0x1d7   :  { %1172 = vst [vmem:[%s2240_s3 + $0xe8] sm:$0xff] %v1140_v4  ;;  %v858_v26 = vadd.f32 %v857_v25, %v745_v22  ;;  %v635_v30 = vadd.f32 %v634_v27, %v1861_v7 }
 0x1d9   :  { %v971_v28 = vadd.f32 %v970_v56, %v858_v26 }
 0x1db   :  { %v1109_v55 = vadd.f32 %v1886_v13, %v971_v28 }
 0x1dc   :  { %v747_v53 = vpop.f32.mrf.mxu2  ;;  %v973_v34 = vpop.f32.mrf.mxu0 }
 0x1dd   :  { %v1141_v0 = vmax.f32 %v1109_v55, 0.0  ;;  %v748_v33 = vadd.f32 %v747_v53, %v635_v30 }
 0x1de   :  { %v860_v16 = vpop.f32.mrf.mxu3 }
 0x1df   :  { %1173 = vst [vmem:[%s2240_s3 + $0xf0] sm:$0xff] %v1141_v0  ;;  %v861_v31 = vadd.f32 %v860_v16, %v748_v33 }
 0x1e1   :  { %v974_v8 = vadd.f32 %v973_v34, %v861_v31 }
 0x1e3   :  { %v1110_v35 = vadd.f32 %v1886_v13, %v974_v8 }
 0x1e5   :  { %v1142_v38 = vmax.f32 %v1110_v35, 0.0 }
 0x1e7   :  { %1174 = vst [vmem:[%s2240_s3 + $0xf8] sm:$0xff] %v1142_v38 }

// kernel: vgg_mse.19
= control target key start
LH: loop header
LB: loop body
LE: loop exit
PB: predicated region body
PF: predicated region fallthrough
CT: control target
= control target key end

     0   :  { %s1492_s12 = smov 0   ;;  %s1494_s13 = smov 0   ;;  %s2204_s0 = inlined_call_operand.vmem [shape: f32[256,1152], index: 0, kind: input, shape index: {}]   ;;  %s2205_s1 = inlined_call_operand.vmem [shape: f32[1152,128], index: 1, kind: input, shape index: {}]   ;;  %s2206_s2 = inlined_call_operand.vmem [shape: f32[1,128], index: 2, kind: input, shape index: {}]   ;;  %s2207_s3 = inlined_call_operand.vmem [shape: f32[256,128], index: 3, kind: output, shape index: {}]  }
   0x1   :  { %s1496_s14 = smov 0   ;;  %s1498_s15 = smov 0  }
   0x2   :  { %s1500_s16 = smov 0  }
   0x3 LB: > { %s25_s17 = sadd.s32 1, %s1465_s15  ;;  %p48_p1 = scmp.ne.s32.totalorder %s1457_s13, %s1453_s12  ;;  %s1469_s16 = sphi %s1500_s16, %s13_s16   ;;  %s1465_s15 = sphi %s1498_s15, %s2211_s15   ;;  %s1461_s14 = sphi %s1496_s14, %s2210_s14   ;;  %s1457_s13 = sphi %s1494_s13, %s2209_s13   ;;  %s1453_s12 = sphi %s1492_s12, %s2208_s12  }
   0x4   : > { %p26_p0 = scmp.ge.s32.totalorder %s25_s17, 3  ;;  %p49_p2 = scmp.eq.s32.totalorder %s1469_s16, 0 }
   0x5   : > { %s41_s19 = sadd.s32 1, %s1457_s13  ;;  %p1328_p5 = scmp.ge.s32.totalorder %s1469_s16, 3 }
   0x6   : > { %s2213_s17 = smov (%p26_p0, %s25_s17), 0  ;;  %p50_p3 = por %p49_p2, %p48_p1 }
   0x7   : > { %s37_s18 = ssub.s32 %s1465_s15, %s2213_s17  ;;  %162 = sbr.rel (%p1328_p5) target bundleno = 113 (0x71), region = 20 }
   0x8   : > { %p39_p4 = scmp.eq.s32.totalorder %s37_s18, 0 }
   0xa   : > { %s1527_s20 = scalar_select %p39_p4, %s1457_s13, %s41_s19  }
   0xc   : > { %165 = sbr.rel (!%p50_p3) target bundleno = 113 (0x71), region = 24  ;;  %s167_s21 = sand.u32 (%p50_p3), 1, %s1457_s13  }
   0xd   : > { %s1338_s22 = smul.u32 (%p50_p3), 24, %s1465_s15 }
   0xe   : > { %s1387_s23 = smul.u32 (%p50_p3), 768, %s167_s21 }
   0xf   : > { %s1535_s26 = scalar_lea.vmem (%p50_p3), %s2204_s0, %s1338_s22 }
  0x10   : > { %v188_v0 = vld [vmem:[%s1535_s26] sm:$0xff] (%p50_p3)  ;;  %v190_v1 = vld [vmem:[%s1535_s26 + $0x8] sm:$0xff] (%p50_p3)  ;;  %v192_v2 = vld [vmem:[%s1535_s26 + $0x10] sm:$0xff] (%p50_p3)  ;;  %s1540_s27 = scalar_lea.vmem (%p50_p3), [#allocation3], %s1387_s23 }
  0x11   : > { %189 = vst [vmem:[%s1540_s27] sm:$0xff] %v188_v0  ;;  %v194_v3 = vld [vmem:[%s1535_s26 + $0x48] sm:$0xff]  ;;  %v196_v4 = vld [vmem:[%s1535_s26 + $0x50] sm:$0xff]  ;;  %v198_v5 = vld [vmem:[%s1535_s26 + $0x58] sm:$0xff] }
  0x12   : > { %191 = vst [vmem:[%s1540_s27 + $0x8] sm:$0xff] %v190_v1  ;;  %v200_v6 = vld [vmem:[%s1535_s26 + $0x90] sm:$0xff]  ;;  %v202_v7 = vld [vmem:[%s1535_s26 + $0x98] sm:$0xff]  ;;  %v204_v8 = vld [vmem:[%s1535_s26 + $0xa0] sm:$0xff] }
  0x13   : > { %193 = vst [vmem:[%s1540_s27 + $0x10] sm:$0xff] %v192_v2  ;;  %v206_v9 = vld [vmem:[%s1535_s26 + $0xd8] sm:$0xff]  ;;  %v208_v10 = vld [vmem:[%s1535_s26 + $0xe0] sm:$0xff]  ;;  %v210_v11 = vld [vmem:[%s1535_s26 + $0xe8] sm:$0xff] }
  0x14   : > { %195 = vst [vmem:[%s1540_s27 + $0x18] sm:$0xff] %v194_v3  ;;  %v212_v12 = vld [vmem:[%s1535_s26 + $0x120] sm:$0xff]  ;;  %v214_v13 = vld [vmem:[%s1535_s26 + $0x128] sm:$0xff]  ;;  %v216_v14 = vld [vmem:[%s1535_s26 + $0x130] sm:$0xff] }
  0x15   : > { %197 = vst [vmem:[%s1540_s27 + $0x20] sm:$0xff] %v196_v4  ;;  %v218_v15 = vld [vmem:[%s1535_s26 + $0x168] sm:$0xff]  ;;  %v220_v16 = vld [vmem:[%s1535_s26 + $0x170] sm:$0xff]  ;;  %v222_v17 = vld [vmem:[%s1535_s26 + $0x178] sm:$0xff] }
  0x16   : > { %199 = vst [vmem:[%s1540_s27 + $0x28] sm:$0xff] %v198_v5  ;;  %v224_v18 = vld [vmem:[%s1535_s26 + $0x1b0] sm:$0xff]  ;;  %v226_v19 = vld [vmem:[%s1535_s26 + $0x1b8] sm:$0xff]  ;;  %v228_v20 = vld [vmem:[%s1535_s26 + $0x1c0] sm:$0xff] }
  0x17   : > { %201 = vst [vmem:[%s1540_s27 + $0x30] sm:$0xff] %v200_v6  ;;  %v230_v21 = vld [vmem:[%s1535_s26 + $0x1f8] sm:$0xff]  ;;  %v232_v22 = vld [vmem:[%s1535_s26 + $0x200] sm:$0xff]  ;;  %v234_v23 = vld [vmem:[%s1535_s26 + $0x208] sm:$0xff] }
  0x18   : > { %203 = vst [vmem:[%s1540_s27 + $0x38] sm:$0xff] %v202_v7  ;;  %v236_v24 = vld [vmem:[%s1535_s26 + $0x240] sm:$0xff]  ;;  %v238_v25 = vld [vmem:[%s1535_s26 + $0x248] sm:$0xff]  ;;  %v240_v26 = vld [vmem:[%s1535_s26 + $0x250] sm:$0xff] }
  0x19   : > { %205 = vst [vmem:[%s1540_s27 + $0x40] sm:$0xff] %v204_v8  ;;  %v242_v27 = vld [vmem:[%s1535_s26 + $0x288] sm:$0xff]  ;;  %v244_v28 = vld [vmem:[%s1535_s26 + $0x290] sm:$0xff]  ;;  %v246_v29 = vld [vmem:[%s1535_s26 + $0x298] sm:$0xff] }
  0x1a   : > { %207 = vst [vmem:[%s1540_s27 + $0x48] sm:$0xff] %v206_v9  ;;  %v248_v30 = vld [vmem:[%s1535_s26 + $0x2d0] sm:$0xff]  ;;  %v250_v31 = vld [vmem:[%s1535_s26 + $0x2d8] sm:$0xff]  ;;  %v252_v32 = vld [vmem:[%s1535_s26 + $0x2e0] sm:$0xff] }
  0x1b   : > { %209 = vst [vmem:[%s1540_s27 + $0x50] sm:$0xff] %v208_v10  ;;  %v254_v33 = vld [vmem:[%s1535_s26 + $0x318] sm:$0xff]  ;;  %v256_v34 = vld [vmem:[%s1535_s26 + $0x320] sm:$0xff]  ;;  %v258_v35 = vld [vmem:[%s1535_s26 + $0x328] sm:$0xff] }
  0x1c   : > { %211 = vst [vmem:[%s1540_s27 + $0x58] sm:$0xff] %v210_v11  ;;  %v260_v36 = vld [vmem:[%s1535_s26 + $0x360] sm:$0xff]  ;;  %v262_v37 = vld [vmem:[%s1535_s26 + $0x368] sm:$0xff]  ;;  %v264_v38 = vld [vmem:[%s1535_s26 + $0x370] sm:$0xff] }
  0x1d   : > { %213 = vst [vmem:[%s1540_s27 + $0x60] sm:$0xff] %v212_v12  ;;  %v266_v39 = vld [vmem:[%s1535_s26 + $0x3a8] sm:$0xff]  ;;  %v268_v40 = vld [vmem:[%s1535_s26 + $0x3b0] sm:$0xff]  ;;  %v270_v41 = vld [vmem:[%s1535_s26 + $0x3b8] sm:$0xff] }
  0x1e   : > { %215 = vst [vmem:[%s1540_s27 + $0x68] sm:$0xff] %v214_v13  ;;  %v272_v42 = vld [vmem:[%s1535_s26 + $0x3f0] sm:$0xff]  ;;  %v274_v43 = vld [vmem:[%s1535_s26 + $0x3f8] sm:$0xff]  ;;  %v276_v44 = vld [vmem:[%s1535_s26 + $0x400] sm:$0xff] }
  0x1f   : > { %217 = vst [vmem:[%s1540_s27 + $0x70] sm:$0xff] %v216_v14  ;;  %v278_v45 = vld [vmem:[%s1535_s26 + $0x438] sm:$0xff]  ;;  %v280_v46 = vld [vmem:[%s1535_s26 + $0x440] sm:$0xff]  ;;  %v282_v47 = vld [vmem:[%s1535_s26 + $0x448] sm:$0xff] }
  0x20   : > { %219 = vst [vmem:[%s1540_s27 + $0x78] sm:$0xff] %v218_v15  ;;  %v284_v48 = vld [vmem:[%s1535_s26 + $0x480] sm:$0xff]  ;;  %v286_v49 = vld [vmem:[%s1535_s26 + $0x488] sm:$0xff]  ;;  %v288_v50 = vld [vmem:[%s1535_s26 + $0x490] sm:$0xff] }
  0x21   : > { %221 = vst [vmem:[%s1540_s27 + $0x80] sm:$0xff] %v220_v16  ;;  %v290_v51 = vld [vmem:[%s1535_s26 + $0x4c8] sm:$0xff]  ;;  %v292_v52 = vld [vmem:[%s1535_s26 + $0x4d0] sm:$0xff]  ;;  %v294_v53 = vld [vmem:[%s1535_s26 + $0x4d8] sm:$0xff] }
  0x22   : > { %223 = vst [vmem:[%s1540_s27 + $0x88] sm:$0xff] %v222_v17  ;;  %v296_v54 = vld [vmem:[%s1535_s26 + $0x510] sm:$0xff]  ;;  %v298_v55 = vld [vmem:[%s1535_s26 + $0x518] sm:$0xff]  ;;  %v300_v56 = vld [vmem:[%s1535_s26 + $0x520] sm:$0xff] }
  0x23   : > { %225 = vst [vmem:[%s1540_s27 + $0x90] sm:$0xff] %v224_v18  ;;  %v302_v57 = vld [vmem:[%s1535_s26 + $0x558] sm:$0xff]  ;;  %v304_v58 = vld [vmem:[%s1535_s26 + $0x560] sm:$0xff]  ;;  %v306_v59 = vld [vmem:[%s1535_s26 + $0x568] sm:$0xff] }
  0x24   : > { %227 = vst [vmem:[%s1540_s27 + $0x98] sm:$0xff] %v226_v19  ;;  %v308_v60 = vld [vmem:[%s1535_s26 + $0x5a0] sm:$0xff]  ;;  %v310_v61 = vld [vmem:[%s1535_s26 + $0x5a8] sm:$0xff]  ;;  %v312_v62 = vld [vmem:[%s1535_s26 + $0x5b0] sm:$0xff] }
  0x25   : > { %229 = vst [vmem:[%s1540_s27 + $0xa0] sm:$0xff] %v228_v20  ;;  %v314_v63 = vld [vmem:[%s1535_s26 + $0x5e8] sm:$0xff]  ;;  %v316_v0 = vld [vmem:[%s1535_s26 + $0x5f0] sm:$0xff]  ;;  %v318_v1 = vld [vmem:[%s1535_s26 + $0x5f8] sm:$0xff] }
  0x26   : > { %231 = vst [vmem:[%s1540_s27 + $0xa8] sm:$0xff] %v230_v21  ;;  %v320_v2 = vld [vmem:[%s1535_s26 + $0x630] sm:$0xff]  ;;  %v322_v3 = vld [vmem:[%s1535_s26 + $0x638] sm:$0xff]  ;;  %v324_v4 = vld [vmem:[%s1535_s26 + $0x640] sm:$0xff] }
  0x27   : > { %233 = vst [vmem:[%s1540_s27 + $0xb0] sm:$0xff] %v232_v22  ;;  %v326_v5 = vld [vmem:[%s1535_s26 + $0x678] sm:$0xff]  ;;  %v328_v6 = vld [vmem:[%s1535_s26 + $0x680] sm:$0xff]  ;;  %v330_v7 = vld [vmem:[%s1535_s26 + $0x688] sm:$0xff] }
  0x28   : > { %235 = vst [vmem:[%s1540_s27 + $0xb8] sm:$0xff] %v234_v23  ;;  %v332_v8 = vld [vmem:[%s1535_s26 + $0x6c0] sm:$0xff]  ;;  %v334_v9 = vld [vmem:[%s1535_s26 + $0x6c8] sm:$0xff]  ;;  %v336_v10 = vld [vmem:[%s1535_s26 + $0x6d0] sm:$0xff] }
  0x29   : > { %237 = vst [vmem:[%s1540_s27 + $0xc0] sm:$0xff] %v236_v24  ;;  %v338_v11 = vld [vmem:[%s1535_s26 + $0x708] sm:$0xff]  ;;  %v340_v12 = vld [vmem:[%s1535_s26 + $0x710] sm:$0xff]  ;;  %v342_v13 = vld [vmem:[%s1535_s26 + $0x718] sm:$0xff] }
  0x2a   : > { %239 = vst [vmem:[%s1540_s27 + $0xc8] sm:$0xff] %v238_v25  ;;  %v344_v14 = vld [vmem:[%s1535_s26 + $0x750] sm:$0xff]  ;;  %v346_v15 = vld [vmem:[%s1535_s26 + $0x758] sm:$0xff]  ;;  %v348_v16 = vld [vmem:[%s1535_s26 + $0x760] sm:$0xff] }
  0x2b   : > { %241 = vst [vmem:[%s1540_s27 + $0xd0] sm:$0xff] %v240_v26  ;;  %v350_v17 = vld [vmem:[%s1535_s26 + $0x798] sm:$0xff]  ;;  %v352_v18 = vld [vmem:[%s1535_s26 + $0x7a0] sm:$0xff]  ;;  %v354_v19 = vld [vmem:[%s1535_s26 + $0x7a8] sm:$0xff] }
  0x2c   : > { %243 = vst [vmem:[%s1540_s27 + $0xd8] sm:$0xff] %v242_v27  ;;  %v356_v20 = vld [vmem:[%s1535_s26 + $0x7e0] sm:$0xff]  ;;  %v358_v21 = vld [vmem:[%s1535_s26 + $0x7e8] sm:$0xff]  ;;  %v360_v22 = vld [vmem:[%s1535_s26 + $0x7f0] sm:$0xff] }
  0x2d   : > { %245 = vst [vmem:[%s1540_s27 + $0xe0] sm:$0xff] %v244_v28  ;;  %v362_v23 = vld [vmem:[%s1535_s26 + $0x828] sm:$0xff]  ;;  %v364_v24 = vld [vmem:[%s1535_s26 + $0x830] sm:$0xff]  ;;  %v366_v25 = vld [vmem:[%s1535_s26 + $0x838] sm:$0xff] }
  0x2e   : > { %247 = vst [vmem:[%s1540_s27 + $0xe8] sm:$0xff] %v246_v29  ;;  %v368_v26 = vld [vmem:[%s1535_s26 + $0x870] sm:$0xff]  ;;  %v370_v27 = vld [vmem:[%s1535_s26 + $0x878] sm:$0xff]  ;;  %v372_v28 = vld [vmem:[%s1535_s26 + $0x880] sm:$0xff] }
  0x2f   : > { %249 = vst [vmem:[%s1540_s27 + $0xf0] sm:$0xff] %v248_v30  ;;  %v374_v29 = vld [vmem:[%s1535_s26 + $0x8b8] sm:$0xff]  ;;  %v376_v30 = vld [vmem:[%s1535_s26 + $0x8c0] sm:$0xff] }
  0x30   : > { %251 = vst [vmem:[%s1540_s27 + $0xf8] sm:$0xff] %v250_v31  ;;  %v378_v31 = vld [vmem:[%s1535_s26 + $0x8c8] sm:$0xff] }
  0x31   : > { %253 = vst [vmem:[%s1540_s27 + $0x100] sm:$0xff] %v252_v32 }
  0x32   : > { %255 = vst [vmem:[%s1540_s27 + $0x108] sm:$0xff] %v254_v33 }
  0x33   : > { %257 = vst [vmem:[%s1540_s27 + $0x110] sm:$0xff] %v256_v34 }
  0x34   : > { %259 = vst [vmem:[%s1540_s27 + $0x118] sm:$0xff] %v258_v35 }
  0x35   : > { %261 = vst [vmem:[%s1540_s27 + $0x120] sm:$0xff] %v260_v36 }
  0x36   : > { %263 = vst [vmem:[%s1540_s27 + $0x128] sm:$0xff] %v262_v37 }
  0x37   : > { %265 = vst [vmem:[%s1540_s27 + $0x130] sm:$0xff] %v264_v38 }
  0x38   : > { %267 = vst [vmem:[%s1540_s27 + $0x138] sm:$0xff] %v266_v39 }
  0x39   : > { %269 = vst [vmem:[%s1540_s27 + $0x140] sm:$0xff] %v268_v40 }
  0x3a   : > { %271 = vst [vmem:[%s1540_s27 + $0x148] sm:$0xff] %v270_v41 }
  0x3b   : > { %273 = vst [vmem:[%s1540_s27 + $0x150] sm:$0xff] %v272_v42 }
  0x3c   : > { %275 = vst [vmem:[%s1540_s27 + $0x158] sm:$0xff] %v274_v43 }
  0x3d   : > { %277 = vst [vmem:[%s1540_s27 + $0x160] sm:$0xff] %v276_v44 }
  0x3e   : > { %279 = vst [vmem:[%s1540_s27 + $0x168] sm:$0xff] %v278_v45 }
  0x3f   : > { %281 = vst [vmem:[%s1540_s27 + $0x170] sm:$0xff] %v280_v46 }
  0x40   : > { %283 = vst [vmem:[%s1540_s27 + $0x178] sm:$0xff] %v282_v47 }
  0x41   : > { %285 = vst [vmem:[%s1540_s27 + $0x180] sm:$0xff] %v284_v48 }
  0x42   : > { %287 = vst [vmem:[%s1540_s27 + $0x188] sm:$0xff] %v286_v49 }
  0x43   : > { %289 = vst [vmem:[%s1540_s27 + $0x190] sm:$0xff] %v288_v50 }
  0x44   : > { %291 = vst [vmem:[%s1540_s27 + $0x198] sm:$0xff] %v290_v51 }
  0x45   : > { %293 = vst [vmem:[%s1540_s27 + $0x1a0] sm:$0xff] %v292_v52 }
  0x46   : > { %295 = vst [vmem:[%s1540_s27 + $0x1a8] sm:$0xff] %v294_v53 }
  0x47   : > { %297 = vst [vmem:[%s1540_s27 + $0x1b0] sm:$0xff] %v296_v54 }
  0x48   : > { %299 = vst [vmem:[%s1540_s27 + $0x1b8] sm:$0xff] %v298_v55 }
  0x49   : > { %301 = vst [vmem:[%s1540_s27 + $0x1c0] sm:$0xff] %v300_v56 }
  0x4a   : > { %303 = vst [vmem:[%s1540_s27 + $0x1c8] sm:$0xff] %v302_v57 }
  0x4b   : > { %305 = vst [vmem:[%s1540_s27 + $0x1d0] sm:$0xff] %v304_v58 }
  0x4c   : > { %307 = vst [vmem:[%s1540_s27 + $0x1d8] sm:$0xff] %v306_v59 }
  0x4d   : > { %309 = vst [vmem:[%s1540_s27 + $0x1e0] sm:$0xff] %v308_v60 }
  0x4e   : > { %311 = vst [vmem:[%s1540_s27 + $0x1e8] sm:$0xff] %v310_v61 }
  0x4f   : > { %313 = vst [vmem:[%s1540_s27 + $0x1f0] sm:$0xff] %v312_v62 }
  0x50   : > { %315 = vst [vmem:[%s1540_s27 + $0x1f8] sm:$0xff] %v314_v63 }
  0x51   : > { %317 = vst [vmem:[%s1540_s27 + $0x200] sm:$0xff] %v316_v0 }
  0x52   : > { %319 = vst [vmem:[%s1540_s27 + $0x208] sm:$0xff] %v318_v1 }
  0x53   : > { %321 = vst [vmem:[%s1540_s27 + $0x210] sm:$0xff] %v320_v2 }
  0x54   : > { %323 = vst [vmem:[%s1540_s27 + $0x218] sm:$0xff] %v322_v3 }
  0x55   : > { %325 = vst [vmem:[%s1540_s27 + $0x220] sm:$0xff] %v324_v4 }
  0x56   : > { %327 = vst [vmem:[%s1540_s27 + $0x228] sm:$0xff] %v326_v5 }
  0x57   : > { %329 = vst [vmem:[%s1540_s27 + $0x230] sm:$0xff] %v328_v6 }
  0x58   : > { %331 = vst [vmem:[%s1540_s27 + $0x238] sm:$0xff] %v330_v7 }
  0x59   : > { %333 = vst [vmem:[%s1540_s27 + $0x240] sm:$0xff] %v332_v8 }
  0x5a   : > { %335 = vst [vmem:[%s1540_s27 + $0x248] sm:$0xff] %v334_v9 }
  0x5b   : > { %337 = vst [vmem:[%s1540_s27 + $0x250] sm:$0xff] %v336_v10 }
  0x5c   : > { %339 = vst [vmem:[%s1540_s27 + $0x258] sm:$0xff] %v338_v11 }
  0x5d   : > { %341 = vst [vmem:[%s1540_s27 + $0x260] sm:$0xff] %v340_v12 }
  0x5e   : > { %343 = vst [vmem:[%s1540_s27 + $0x268] sm:$0xff] %v342_v13 }
  0x5f   : > { %345 = vst [vmem:[%s1540_s27 + $0x270] sm:$0xff] %v344_v14 }
  0x60   : > { %347 = vst [vmem:[%s1540_s27 + $0x278] sm:$0xff] %v346_v15 }
  0x61   : > { %349 = vst [vmem:[%s1540_s27 + $0x280] sm:$0xff] %v348_v16 }
  0x62   : > { %351 = vst [vmem:[%s1540_s27 + $0x288] sm:$0xff] %v350_v17 }
  0x63   : > { %353 = vst [vmem:[%s1540_s27 + $0x290] sm:$0xff] %v352_v18 }
  0x64   : > { %355 = vst [vmem:[%s1540_s27 + $0x298] sm:$0xff] %v354_v19 }
  0x65   : > { %357 = vst [vmem:[%s1540_s27 + $0x2a0] sm:$0xff] %v356_v20 }
  0x66   : > { %359 = vst [vmem:[%s1540_s27 + $0x2a8] sm:$0xff] %v358_v21 }
  0x67   : > { %361 = vst [vmem:[%s1540_s27 + $0x2b0] sm:$0xff] %v360_v22 }
  0x68   : > { %363 = vst [vmem:[%s1540_s27 + $0x2b8] sm:$0xff] %v362_v23 }
  0x69   : > { %365 = vst [vmem:[%s1540_s27 + $0x2c0] sm:$0xff] %v364_v24 }
  0x6a   : > { %367 = vst [vmem:[%s1540_s27 + $0x2c8] sm:$0xff] %v366_v25 }
  0x6b   : > { %369 = vst [vmem:[%s1540_s27 + $0x2d0] sm:$0xff] %v368_v26 }
  0x6c   : > { %371 = vst [vmem:[%s1540_s27 + $0x2d8] sm:$0xff] %v370_v27 }
  0x6d   : > { %373 = vst [vmem:[%s1540_s27 + $0x2e0] sm:$0xff] %v372_v28 }
  0x6e   : > { %375 = vst [vmem:[%s1540_s27 + $0x2e8] sm:$0xff] %v374_v29 }
  0x6f   : > { %377 = vst [vmem:[%s1540_s27 + $0x2f0] sm:$0xff] %v376_v30 }
  0x70   : > { %379 = vst [vmem:[%s1540_s27 + $0x2f8] sm:$0xff] %v378_v31 }
  0x71 PF: > { %p1330_p6 = scmp.ge.s32.totalorder %s1469_s16, 1  ;;  %p396_p7 = scmp.lt.s32.totalorder %s1469_s16, 4 }
  0x73   : > { %p397_p8 = pnand %p1330_p6, %p396_p7 }
  0x74   : > { %s403_s28 = sand.u32 (!%p397_p8), 1, %s1453_s12   ;;  %s442_s29 = smul.u32 (!%p397_p8), 48, %s1461_s14 }
  0x75   : > { %400 = sbr.rel (%p397_p8) target bundleno = 551 (0x227), region = 51  ;;  %p1332_p10 = scmp.ne.s32.totalorder (!%p397_p8), %s1461_s14, 0 }
  0x76   : > { %s1388_s30 = smul.u32 (!%p397_p8), 768, %s403_s28  ;;  %p443_p9 = scmp.lt.s32.totalorder (!%p397_p8), %s442_s29, 143 }
  0x78   : > { %s1740_s8 = scalar_lea.vmem (!%p397_p8), [#allocation3], %s1388_s30 }
  0x7a   : > { %s2215_s29 = smov (!%p443_p9, %s442_s29), 143  ;;  %466 = sbr.rel (%p1332_p10) target bundleno = 160 (0xa0), region = 59 }
  0x7b   : > { %s1331_s4 = sshll.u32 %s2215_s29, 3 }
  0x7c   : > { %s1738_s7 = scalar_lea.vmem %s2205_s1, %s1331_s4 }
  0x7f   : > { %v1471_v32 = vmov 0.0  }
  0x80   : > { %467 = vst [vmem:[#allocation2 + $0xb0] sm:$0xff] %v1471_v32 }
  0x81   : > { %468 = vst [vmem:[#allocation2] sm:$0xff] %v1471_v32 }
  0x82   : > { %469 = vst [vmem:[#allocation2 + $0xd8] sm:$0xff] %v1471_v32 }
  0x83   : > { %470 = vst [vmem:[#allocation2 + $0x18] sm:$0xff] %v1471_v32 }
  0x84   : > { %471 = vst [vmem:[#allocation2 + $0x50] sm:$0xff] %v1471_v32 }
  0x85   : > { %472 = vst [vmem:[#allocation2 + $0x68] sm:$0xff] %v1471_v32 }
  0x86   : > { %473 = vst [vmem:[#allocation2 + $0x30] sm:$0xff] %v1471_v32 }
  0x87   : > { %474 = vst [vmem:[#allocation2 + $0x48] sm:$0xff] %v1471_v32 }
  0x88   : > { %475 = vst [vmem:[#allocation2 + $0x80] sm:$0xff] %v1471_v32 }
  0x89   : > { %476 = vst [vmem:[#allocation2 + $0x88] sm:$0xff] %v1471_v32 }
  0x8a   : > { %477 = vst [vmem:[#allocation2 + $0xe8] sm:$0xff] %v1471_v32 }
  0x8b   : > { %478 = vst [vmem:[#allocation2 + $0xb8] sm:$0xff] %v1471_v32 }
  0x8c   : > { %479 = vst [vmem:[#allocation2 + $0x60] sm:$0xff] %v1471_v32 }
  0x8d   : > { %480 = vst [vmem:[#allocation2 + $0xf0] sm:$0xff] %v1471_v32 }
  0x8e   : > { %481 = vst [vmem:[#allocation2 + $0x8] sm:$0xff] %v1471_v32 }
  0x8f   : > { %482 = vst [vmem:[#allocation2 + $0x78] sm:$0xff] %v1471_v32 }
  0x90   : > { %483 = vst [vmem:[#allocation2 + $0x38] sm:$0xff] %v1471_v32 }
  0x91   : > { %484 = vst [vmem:[#allocation2 + $0x58] sm:$0xff] %v1471_v32 }
  0x92   : > { %485 = vst [vmem:[#allocation2 + $0x40] sm:$0xff] %v1471_v32 }
  0x93   : > { %486 = vst [vmem:[#allocation2 + $0xc8] sm:$0xff] %v1471_v32 }
  0x94   : > { %487 = vst [vmem:[#allocation2 + $0xe0] sm:$0xff] %v1471_v32 }
  0x95   : > { %488 = vst [vmem:[#allocation2 + $0x90] sm:$0xff] %v1471_v32 }
  0x96   : > { %489 = vst [vmem:[#allocation2 + $0x70] sm:$0xff] %v1471_v32 }
  0x97   : > { %490 = vst [vmem:[#allocation2 + $0xc0] sm:$0xff] %v1471_v32 }
  0x98   : > { %491 = vst [vmem:[#allocation2 + $0xa8] sm:$0xff] %v1471_v32 }
  0x99   : > { %492 = vst [vmem:[#allocation2 + $0xd0] sm:$0xff] %v1471_v32 }
  0x9a   : > { %493 = vst [vmem:[#allocation2 + $0x10] sm:$0xff] %v1471_v32 }
  0x9b   : > { %494 = vst [vmem:[#allocation2 + $0x28] sm:$0xff] %v1471_v32 }
  0x9c   : > { %495 = vst [vmem:[#allocation2 + $0xa0] sm:$0xff] %v1471_v32 }
  0x9d   : > { %496 = vst [vmem:[#allocation2 + $0xf8] sm:$0xff] %v1471_v32 }
  0x9e   : > { %497 = vst [vmem:[#allocation2 + $0x20] sm:$0xff] %v1471_v32 }
  0x9f   : > { %498 = vst [vmem:[#allocation2 + $0x98] sm:$0xff] %v1471_v32 }
  0xa0 PF: > { %v642_v33 = vld [vmem:[%s1738_s7 + $0x78] sm:$0xff]  ;;  %v641_v35 = vld [vmem:[%s1738_s7 + $0x70] sm:$0xff]  ;;  %v640_v38 = vld [vmem:[%s1738_s7 + $0x68] sm:$0xff]  ;;  %p1333_p11 = scmp.ne.s32.totalorder %s1461_s14, 2 }
  0xa1   : > { %v1745_v34 = vld [vmem:[%s1738_s7 + $0x178] sm:$0xff]  ;;  %1339 = vmatpush.msra.mxu3 %v642_v33  ;;  %v1750_v36 = vld [vmem:[%s1738_s7 + $0x170] sm:$0xff]  ;;  %675 = vmatpush.msra.mxu0 %v642_v33  ;;  %v1758_v39 = vld [vmem:[%s1738_s7 + $0x168] sm:$0xff] }
  0xa2   : > { %901 = vmatpush.msra.mxu2 %v1745_v34  ;;  %v1753_v37 = vld [vmem:[%s1738_s7 + $0xf8] sm:$0xff]  ;;  %v1761_v40 = vld [vmem:[%s1738_s7 + $0xf0] sm:$0xff]  ;;  %v1765_v41 = vld [vmem:[%s1738_s7 + $0xe8] sm:$0xff] }
  0xa3   : > { %788 = vmatpush.msra.mxu1 %v1753_v37  ;;  %1340 = vmatpush.msra.mxu3 %v641_v35  ;;  %v639_v42 = vld [vmem:[%s1738_s7 + $0x60] sm:$0xff]  ;;  %v638_v45 = vld [vmem:[%s1738_s7 + $0x58] sm:$0xff]  ;;  %v637_v48 = vld [vmem:[%s1738_s7 + $0x50] sm:$0xff] }
  0xa4   : > { %902 = vmatpush.msra.mxu2 %v1750_v36  ;;  %676 = vmatpush.msra.mxu0 %v641_v35  ;;  %v1770_v43 = vld [vmem:[%s1738_s7 + $0x160] sm:$0xff]  ;;  %v1779_v46 = vld [vmem:[%s1738_s7 + $0x158] sm:$0xff]  ;;  %v1788_v49 = vld [vmem:[%s1738_s7 + $0x150] sm:$0xff] }
  0xa5   : > { %789 = vmatpush.msra.mxu1 %v1761_v40  ;;  %1341 = vmatpush.msra.mxu3 %v640_v38  ;;  %v1774_v44 = vld [vmem:[%s1738_s7 + $0xe0] sm:$0xff]  ;;  %v1783_v47 = vld [vmem:[%s1738_s7 + $0xd8] sm:$0xff]  ;;  %v1792_v50 = vld [vmem:[%s1738_s7 + $0xd0] sm:$0xff] }
  0xa6   : > { %903 = vmatpush.msra.mxu2 %v1758_v39  ;;  %677 = vmatpush.msra.mxu0 %v640_v38  ;;  %v636_v51 = vld [vmem:[%s1738_s7 + $0x48] sm:$0xff]  ;;  %v635_v54 = vld [vmem:[%s1738_s7 + $0x40] sm:$0xff]  ;;  %v634_v57 = vld [vmem:[%s1738_s7 + $0x38] sm:$0xff] }
  0xa7   : > { %790 = vmatpush.msra.mxu1 %v1765_v41  ;;  %1342 = vmatpush.msra.mxu3 %v639_v42  ;;  %v1797_v52 = vld [vmem:[%s1738_s7 + $0x148] sm:$0xff]  ;;  %v1806_v55 = vld [vmem:[%s1738_s7 + $0x140] sm:$0xff]  ;;  %v1815_v58 = vld [vmem:[%s1738_s7 + $0x138] sm:$0xff] }
  0xa8   : > { %904 = vmatpush.msra.mxu2 %v1770_v43  ;;  %678 = vmatpush.msra.mxu0 %v639_v42  ;;  %v1801_v53 = vld [vmem:[%s1738_s7 + $0xc8] sm:$0xff]  ;;  %v1810_v56 = vld [vmem:[%s1738_s7 + $0xc0] sm:$0xff]  ;;  %v1819_v59 = vld [vmem:[%s1738_s7 + $0xb8] sm:$0xff] }
  0xa9   : > { %791 = vmatpush.msra.mxu1 %v1774_v44  ;;  %1343 = vmatpush.msra.mxu3 %v638_v45  ;;  %v633_v60 = vld [vmem:[%s1738_s7 + $0x30] sm:$0xff]  ;;  %v632_v63 = vld [vmem:[%s1738_s7 + $0x28] sm:$0xff]  ;;  %v631_v2 = vld [vmem:[%s1738_s7 + $0x20] sm:$0xff] }
  0xaa   : > { %905 = vmatpush.msra.mxu2 %v1779_v46  ;;  %679 = vmatpush.msra.mxu0 %v638_v45  ;;  %v1824_v61 = vld [vmem:[%s1738_s7 + $0x130] sm:$0xff]  ;;  %v1833_v0 = vld [vmem:[%s1738_s7 + $0x128] sm:$0xff]  ;;  %v1842_v3 = vld [vmem:[%s1738_s7 + $0x120] sm:$0xff] }
  0xab   : > { %792 = vmatpush.msra.mxu1 %v1783_v47  ;;  %1344 = vmatpush.msra.mxu3 %v637_v48  ;;  %v1828_v62 = vld [vmem:[%s1738_s7 + $0xb0] sm:$0xff]  ;;  %v1837_v1 = vld [vmem:[%s1738_s7 + $0xa8] sm:$0xff]  ;;  %v1846_v4 = vld [vmem:[%s1738_s7 + $0xa0] sm:$0xff] }
  0xac   : > { %906 = vmatpush.msra.mxu2 %v1788_v49  ;;  %680 = vmatpush.msra.mxu0 %v637_v48  ;;  %v630_v5 = vld [vmem:[%s1738_s7 + $0x18] sm:$0xff]  ;;  %v629_v8 = vld [vmem:[%s1738_s7 + $0x10] sm:$0xff]  ;;  %v628_v11 = vld [vmem:[%s1738_s7 + $0x8] sm:$0xff] }
  0xad   : > { %793 = vmatpush.msra.mxu1 %v1792_v50  ;;  %1345 = vmatpush.msra.mxu3 %v636_v51  ;;  %v1851_v6 = vld [vmem:[%s1738_s7 + $0x118] sm:$0xff]  ;;  %v1860_v9 = vld [vmem:[%s1738_s7 + $0x110] sm:$0xff]  ;;  %v1869_v12 = vld [vmem:[%s1738_s7 + $0x108] sm:$0xff] }
  0xae   : > { %907 = vmatpush.msra.mxu2 %v1797_v52  ;;  %681 = vmatpush.msra.mxu0 %v636_v51  ;;  %v1855_v7 = vld [vmem:[%s1738_s7 + $0x98] sm:$0xff]  ;;  %v1864_v10 = vld [vmem:[%s1738_s7 + $0x90] sm:$0xff]  ;;  %v644_v13 = vld [vmem:[%s1738_s7 + $0x88] sm:$0xff] }
  0xaf   : > { %794 = vmatpush.msra.mxu1 %v1801_v53  ;;  %1346 = vmatpush.msra.mxu3 %v635_v54  ;;  %v627_v14 = vld [vmem:[%s1738_s7] sm:$0xff]  ;;  %v533_v17 = vld [vmem:[%s1740_s8 + $0x10] sm:$0xff]  ;;  %v532_v20 = vld [vmem:[%s1740_s8 + $0x8] sm:$0xff] }
  0xb0   : > { %908 = vmatpush.msra.mxu2 %v1806_v55  ;;  %682 = vmatpush.msra.mxu0 %v635_v54  ;;  %v1876_v15 = vld [vmem:[%s1738_s7 + $0x100] sm:$0xff]  ;;  %v606_v21 = vld [vmem:[%s1740_s8 + $0x258] sm:$0xff]  ;;  %v536_v22 = vld [vmem:[%s1740_s8 + $0x28] sm:$0xff] }
  0xb1   : > { %795 = vmatpush.msra.mxu1 %v1810_v56  ;;  %1347 = vmatpush.msra.mxu3 %v634_v57  ;;  %v603_v16 = vld [vmem:[%s1740_s8 + $0x240] sm:$0xff]  ;;  %v534_v23 = vld [vmem:[%s1740_s8 + $0x18] sm:$0xff]  ;;  %v609_v25 = vld [vmem:[%s1740_s8 + $0x270] sm:$0xff] }
  0xb2   : > { %909 = vmatpush.msra.mxu2 %v1815_v58  ;;  %683 = vmatpush.msra.mxu0 %v634_v57  ;;  %v643_v18 = vld [vmem:[%s1738_s7 + $0x80] sm:$0xff]  ;;  %v537_v27 = vld [vmem:[%s1740_s8 + $0x30] sm:$0xff]  ;;  %v538_v28 = vld [vmem:[%s1740_s8 + $0x38] sm:$0xff] }
  0xb3   : > { %796 = vmatpush.msra.mxu1 %v1819_v59  ;;  %1348 = vmatpush.msra.mxu3 %v633_v60  ;;  %v531_v19 = vld [vmem:[%s1740_s8] sm:$0xff]  ;;  %v612_v29 = vld [vmem:[%s1740_s8 + $0x288] sm:$0xff]  ;;  %v542_v30 = vld [vmem:[%s1740_s8 + $0x58] sm:$0xff] }
  0xb4   : > { %910 = vmatpush.msra.mxu2 %v1824_v61  ;;  %684 = vmatpush.msra.mxu0 %v633_v60  ;;  %v535_v24 = vld [vmem:[%s1740_s8 + $0x20] sm:$0xff]  ;;  %v540_v31 = vld [vmem:[%s1740_s8 + $0x48] sm:$0xff]  ;;  %v541_v32 = vld [vmem:[%s1740_s8 + $0x50] sm:$0xff] }
  0xb5   : > { %797 = vmatpush.msra.mxu1 %v1828_v62  ;;  %1349 = vmatpush.msra.mxu3 %v632_v63  ;;  %v539_v26 = vld [vmem:[%s1740_s8 + $0x40] sm:$0xff]  ;;  %v545_v35 = vld [vmem:[%s1740_s8 + $0x70] sm:$0xff]  ;;  %v544_v38 = vld [vmem:[%s1740_s8 + $0x68] sm:$0xff] }
  0xb6   : > { %911 = vmatpush.msra.mxu2 %v1833_v0  ;;  %685 = vmatpush.msra.mxu0 %v632_v63  ;;  %v615_v33 = vld [vmem:[%s1740_s8 + $0x2a0] sm:$0xff]  ;;  %v546_v42 = vld [vmem:[%s1740_s8 + $0x78] sm:$0xff]  ;;  %v624_v45 = vld [vmem:[%s1740_s8 + $0x2e8] sm:$0xff] }
  0xb7   : > { %798 = vmatpush.msra.mxu1 %v1837_v1  ;;  %1350 = vmatpush.msra.mxu3 %v631_v2  ;;  %v553_v48 = vld [vmem:[%s1740_s8 + $0xb0] sm:$0xff]  ;;  %v555_v51 = vld [vmem:[%s1740_s8 + $0xc0] sm:$0xff]  ;;  %v560_v54 = vld [vmem:[%s1740_s8 + $0xe8] sm:$0xff] }
  0xb8   : > { %912 = vmatpush.msra.mxu2 %v1842_v3  ;;  %686 = vmatpush.msra.mxu0 %v631_v2  ;;  %v610_v57 = vld [vmem:[%s1740_s8 + $0x278] sm:$0xff]  ;;  %v564_v63 = vld [vmem:[%s1740_s8 + $0x108] sm:$0xff]  ;;  %v569_v2 = vld [vmem:[%s1740_s8 + $0x130] sm:$0xff] }
  0xb9   : > { %799 = vmatpush.msra.mxu1 %v1846_v4  ;;  %1351 = vmatpush.msra.mxu3 %v630_v5  ;;  %v562_v60 = vld [vmem:[%s1740_s8 + $0xf8] sm:$0xff] }
  0xba   : > { %913 = vmatpush.msra.mxu2 %v1851_v6  ;;  %687 = vmatpush.msra.mxu0 %v630_v5  ;;  %v619_v5 = vld [vmem:[%s1740_s8 + $0x2c0] sm:$0xff] }
  0xbb   : > { %800 = vmatpush.msra.mxu1 %v1855_v7  ;;  %1352 = vmatpush.msra.mxu3 %v629_v8 }
  0xbc   : > { %914 = vmatpush.msra.mxu2 %v1860_v9  ;;  %688 = vmatpush.msra.mxu0 %v629_v8  ;;  %v571_v8 = vld [vmem:[%s1740_s8 + $0x140] sm:$0xff] }
  0xbd   : > { %801 = vmatpush.msra.mxu1 %v1864_v10  ;;  %1353 = vmatpush.msra.mxu3 %v628_v11 }
  0xbe   : > { %915 = vmatpush.msra.mxu2 %v1869_v12  ;;  %689 = vmatpush.msra.mxu0 %v628_v11  ;;  %v573_v11 = vld [vmem:[%s1740_s8 + $0x150] sm:$0xff] }
  0xbf   : > { %802 = vmatpush.msra.mxu1 %v644_v13  ;;  %1354 = vmatpush.msra.mxu3 %v627_v14 }
  0xc0   : > { %916 = vmatpush.msra.mxu2 %v1876_v15  ;;  %763 = vmatmul.f32.vlgmr.msra.gmra.mxu3 %v603_v16  ;;  %v577_v16 = vld [vmem:[%s1740_s8 + $0x170] sm:$0xff] }
  0xc1   : > { %917 = vmatmul.f32.vlgmr.msra.gmra.mxu2 %v533_v17  ;;  %1355 = vmatpush.msrb.mxu3 %v1753_v37  ;;  %v543_v37 = vld [vmem:[%s1740_s8 + $0x60] sm:$0xff]  ;;  %v581_v17 = vld [vmem:[%s1740_s8 + $0x190] sm:$0xff] }
  0xc2   : > { %690 = vmatpush.msra.mxu0 %v627_v14  ;;  %803 = vmatpush.msra.mxu1 %v643_v18  ;;  %v578_v14 = vld [vmem:[%s1740_s8 + $0x178] sm:$0xff] }
  0xc3   : > { %691 = vmatmul.f32.vlgmr.msra.gmra.mxu0 %v531_v19  ;;  %1356 = vmatpush.msrb.mxu3 %v1761_v40  ;;  %v618_v40 = vld [vmem:[%s1740_s8 + $0x2b8] sm:$0xff] }
  0xc4   : > { %804 = vmatmul.f32.vlgmr.msra.gmra.mxu1 %v532_v20  ;;  %v579_v20 = vld [vmem:[%s1740_s8 + $0x180] sm:$0xff] }
  0xc5   : > { %1357 = vmatpush.msrb.mxu3 %v1765_v41  ;;  %v548_v41 = vld [vmem:[%s1740_s8 + $0x88] sm:$0xff] }
  0xc7   : > { %1358 = vmatpush.msrb.mxu3 %v1774_v44  ;;  %v547_v44 = vld [vmem:[%s1740_s8 + $0x80] sm:$0xff] }
  0xc8   : > { %766 = vmatmul.f32.gmra.mxu3 %v606_v21 }
  0xc9   : > { %920 = vmatmul.f32.gmra.mxu2 %v536_v22  ;;  %1359 = vmatpush.msrb.mxu3 %v1783_v47  ;;  %v552_v47 = vld [vmem:[%s1740_s8 + $0xa8] sm:$0xff] }
  0xca   : > { %v580_v22 = vld [vmem:[%s1740_s8 + $0x188] sm:$0xff] }
  0xcb   : > { %694 = vmatmul.f32.gmra.mxu0 %v534_v23  ;;  %1360 = vmatpush.msrb.mxu3 %v1792_v50  ;;  %v557_v50 = vld [vmem:[%s1740_s8 + $0xd0] sm:$0xff] }
  0xcc   : > { %807 = vmatmul.f32.gmra.mxu1 %v535_v24 }
  0xcd   : > { %1361 = vmatpush.msrb.mxu3 %v1801_v53  ;;  %v607_v53 = vld [vmem:[%s1740_s8 + $0x260] sm:$0xff] }
  0xcf   : > { %1362 = vmatpush.msrb.mxu3 %v1810_v56  ;;  %v559_v56 = vld [vmem:[%s1740_s8 + $0xe0] sm:$0xff] }
  0xd0   : > { %769 = vmatmul.f32.gmra.mxu3 %v609_v25  ;;  %v499_v25 = vld [vmem:[#allocation2 + $0xb0] sm:$0xff] }
  0xd1   : > { %923 = vmatmul.f32.gmra.mxu2 %v539_v26  ;;  %1363 = vmatpush.msrb.mxu3 %v1819_v59  ;;  %v561_v59 = vld [vmem:[%s1740_s8 + $0xf0] sm:$0xff] }
  0xd3   : > { %697 = vmatmul.f32.gmra.mxu0 %v537_v27  ;;  %1364 = vmatpush.msrb.mxu3 %v1828_v62  ;;  %v566_v62 = vld [vmem:[%s1740_s8 + $0x118] sm:$0xff] }
  0xd4   : > { %810 = vmatmul.f32.gmra.mxu1 %v538_v28  ;;  %v584_v28 = vld [vmem:[%s1740_s8 + $0x1a8] sm:$0xff] }
  0xd5   : > { %1365 = vmatpush.msrb.mxu3 %v1837_v1  ;;  %v616_v1 = vld [vmem:[%s1740_s8 + $0x2a8] sm:$0xff] }
  0xd7   : > { %1366 = vmatpush.msrb.mxu3 %v1846_v4  ;;  %v568_v4 = vld [vmem:[%s1740_s8 + $0x128] sm:$0xff] }
  0xd8   : > { %772 = vmatmul.f32.gmra.mxu3 %v612_v29  ;;  %v608_v29 = vld [vmem:[%s1740_s8 + $0x268] sm:$0xff] }
  0xd9   : > { %926 = vmatmul.f32.gmra.mxu2 %v542_v30  ;;  %1367 = vmatpush.msrb.mxu3 %v1855_v7  ;;  %v570_v7 = vld [vmem:[%s1740_s8 + $0x138] sm:$0xff] }
  0xdb   : > { %700 = vmatmul.f32.gmra.mxu0 %v540_v31  ;;  %1368 = vmatpush.msrb.mxu3 %v1864_v10  ;;  %v575_v10 = vld [vmem:[%s1740_s8 + $0x160] sm:$0xff] }
  0xdc   : > { %813 = vmatmul.f32.gmra.mxu1 %v541_v32  ;;  %v582_v32 = vld [vmem:[%s1740_s8 + $0x198] sm:$0xff] }
  0xdd   : > { %1369 = vmatpush.msrb.mxu3 %v644_v13  ;;  %v625_v13 = vld [vmem:[%s1740_s8 + $0x2f0] sm:$0xff] }
  0xdf   : > { %1370 = vmatpush.msrb.mxu3 %v643_v18  ;;  %v605_v18 = vld [vmem:[%s1740_s8 + $0x250] sm:$0xff] }
  0xe0   : > { %775 = vmatmul.f32.gmra.mxu3 %v615_v33 }
  0xe1   : > { %929 = vmatmul.f32.gmra.mxu2 %v545_v35  ;;  %1371 = vmatpush.msra.mxu3 %v1745_v34  ;;  %v621_v34 = vld [vmem:[%s1740_s8 + $0x2d0] sm:$0xff]  ;;  %v583_v35 = vld [vmem:[%s1740_s8 + $0x1a0] sm:$0xff] }
  0xe3   : > { %703 = vmatmul.f32.gmra.mxu0 %v543_v37  ;;  %1372 = vmatpush.msra.mxu3 %v1750_v36  ;;  %v551_v36 = vld [vmem:[%s1740_s8 + $0xa0] sm:$0xff] }
  0xe4   : > { %816 = vmatmul.f32.gmra.mxu1 %v544_v38 }
  0xe5   : > { %1373 = vmatpush.msra.mxu3 %v1758_v39  ;;  %v549_v39 = vld [vmem:[%s1740_s8 + $0x90] sm:$0xff] }
  0xe7   : > { %1374 = vmatpush.msra.mxu3 %v1770_v43  ;;  %v550_v43 = vld [vmem:[%s1740_s8 + $0x98] sm:$0xff] }
  0xe8   : > { %778 = vmatmul.f32.gmra.mxu3 %v618_v40  ;;  %v500_v40 = vld [vmem:[#allocation2] sm:$0xff] }
  0xe9   : > { %932 = vmatmul.f32.gmra.mxu2 %v548_v41  ;;  %1375 = vmatpush.msra.mxu3 %v1779_v46  ;;  %v554_v46 = vld [vmem:[%s1740_s8 + $0xb8] sm:$0xff] }
  0xeb   : > { %706 = vmatmul.f32.gmra.mxu0 %v546_v42  ;;  %1376 = vmatpush.msra.mxu3 %v1788_v49  ;;  %v604_v49 = vld [vmem:[%s1740_s8 + $0x248] sm:$0xff] }
  0xec   : > { %819 = vmatmul.f32.gmra.mxu1 %v547_v44  ;;  %v587_v44 = vld [vmem:[%s1740_s8 + $0x1c0] sm:$0xff] }
  0xed   : > { %1377 = vmatpush.msra.mxu3 %v1797_v52  ;;  %v556_v52 = vld [vmem:[%s1740_s8 + $0xc8] sm:$0xff] }
  0xef   : > { %1378 = vmatpush.msra.mxu3 %v1806_v55  ;;  %v558_v55 = vld [vmem:[%s1740_s8 + $0xd8] sm:$0xff] }
  0xf0   : > { %781 = vmatmul.f32.gmra.mxu3 %v621_v34  ;;  %v611_v34 = vld [vmem:[%s1740_s8 + $0x280] sm:$0xff] }
  0xf1   : > { %935 = vmatmul.f32.gmra.mxu2 %v551_v36  ;;  %1379 = vmatpush.msra.mxu3 %v1815_v58  ;;  %v563_v58 = vld [vmem:[%s1740_s8 + $0x100] sm:$0xff] }
  0xf3   : > { %709 = vmatmul.f32.gmra.mxu0 %v549_v39  ;;  %1380 = vmatpush.msra.mxu3 %v1824_v61  ;;  %v613_v61 = vld [vmem:[%s1740_s8 + $0x290] sm:$0xff] }
  0xf4   : > { %822 = vmatmul.f32.gmra.mxu1 %v550_v43  ;;  %v585_v43 = vld [vmem:[%s1740_s8 + $0x1b0] sm:$0xff] }
  0xf5   : > { %1381 = vmatpush.msra.mxu3 %v1833_v0  ;;  %v565_v0 = vld [vmem:[%s1740_s8 + $0x110] sm:$0xff] }
  0xf7   : > { %1382 = vmatpush.msra.mxu3 %v1842_v3  ;;  %v567_v3 = vld [vmem:[%s1740_s8 + $0x120] sm:$0xff] }
  0xf8   : > { %784 = vmatmul.f32.gmra.mxu3 %v624_v45 }
  0xf9   : > { %938 = vmatmul.f32.gmra.mxu2 %v554_v46  ;;  %1383 = vmatpush.msra.mxu3 %v1851_v6  ;;  %v572_v6 = vld [vmem:[%s1740_s8 + $0x148] sm:$0xff]  ;;  %v586_v46 = vld [vmem:[%s1740_s8 + $0x1b8] sm:$0xff] }
  0xfb   : > { %712 = vmatmul.f32.gmra.mxu0 %v552_v47  ;;  %1384 = vmatpush.msra.mxu3 %v1860_v9  ;;  %v622_v9 = vld [vmem:[%s1740_s8 + $0x2d8] sm:$0xff] }
  0xfc   : > { %825 = vmatmul.f32.gmra.mxu1 %v553_v48 }
  0xfd   : > { %1385 = vmatpush.msra.mxu3 %v1869_v12  ;;  %v574_v12 = vld [vmem:[%s1740_s8 + $0x158] sm:$0xff] }
  0xff   : > { %1386 = vmatpush.msra.mxu3 %v1876_v15  ;;  %v576_v15 = vld [vmem:[%s1740_s8 + $0x168] sm:$0xff] }
 0x100   : > { %876 = vmatmul.f32.vlgmr.msrb.gmra.mxu3 %v604_v49  ;;  %v501_v49 = vld [vmem:[#allocation2 + $0xd8] sm:$0xff] }
 0x101   : > { %941 = vmatmul.f32.gmra.mxu2 %v557_v50 }
 0x103   : > { %715 = vmatmul.f32.gmra.mxu0 %v555_v51 }
 0x104   : > { %828 = vmatmul.f32.gmra.mxu1 %v556_v52  ;;  %v590_v52 = vld [vmem:[%s1740_s8 + $0x1d8] sm:$0xff] }
 0x108   : > { %879 = vmatmul.f32.gmra.mxu3 %v607_v53  ;;  %v614_v53 = vld [vmem:[%s1740_s8 + $0x298] sm:$0xff] }
 0x109   : > { %944 = vmatmul.f32.gmra.mxu2 %v560_v54 }
 0x10b   : > { %718 = vmatmul.f32.gmra.mxu0 %v558_v55 }
 0x10c   : > { %831 = vmatmul.f32.gmra.mxu1 %v559_v56  ;;  %v588_v56 = vld [vmem:[%s1740_s8 + $0x1c8] sm:$0xff] }
 0x110   : > { %882 = vmatmul.f32.gmra.mxu3 %v610_v57 }
 0x111   : > { %947 = vmatmul.f32.gmra.mxu2 %v563_v58  ;;  %v589_v58 = vld [vmem:[%s1740_s8 + $0x1d0] sm:$0xff] }
 0x113   : > { %721 = vmatmul.f32.gmra.mxu0 %v561_v59 }
 0x114   : > { %834 = vmatmul.f32.gmra.mxu1 %v562_v60 }
 0x118   : > { %885 = vmatmul.f32.gmra.mxu3 %v613_v61  ;;  %v502_v61 = vld [vmem:[#allocation2 + $0x18] sm:$0xff] }
 0x119   : > { %950 = vmatmul.f32.gmra.mxu2 %v566_v62 }
 0x11b   : > { %724 = vmatmul.f32.gmra.mxu0 %v564_v63 }
 0x11c   : > { %837 = vmatmul.f32.gmra.mxu1 %v565_v0  ;;  %v593_v0 = vld [vmem:[%s1740_s8 + $0x1f0] sm:$0xff] }
 0x120   : > { %888 = vmatmul.f32.gmra.mxu3 %v616_v1  ;;  %v617_v1 = vld [vmem:[%s1740_s8 + $0x2b0] sm:$0xff] }
 0x121   : > { %953 = vmatmul.f32.gmra.mxu2 %v569_v2 }
 0x123   : > { %727 = vmatmul.f32.gmra.mxu0 %v567_v3 }
 0x124   : > { %840 = vmatmul.f32.gmra.mxu1 %v568_v4  ;;  %v591_v4 = vld [vmem:[%s1740_s8 + $0x1e0] sm:$0xff] }
 0x128   : > { %891 = vmatmul.f32.gmra.mxu3 %v619_v5 }
 0x129   : > { %956 = vmatmul.f32.gmra.mxu2 %v572_v6  ;;  %v592_v6 = vld [vmem:[%s1740_s8 + $0x1e8] sm:$0xff] }
 0x12b   : > { %730 = vmatmul.f32.gmra.mxu0 %v570_v7 }
 0x12c   : > { %843 = vmatmul.f32.gmra.mxu1 %v571_v8 }
 0x130   : > { %894 = vmatmul.f32.gmra.mxu3 %v622_v9  ;;  %v503_v9 = vld [vmem:[#allocation2 + $0x50] sm:$0xff] }
 0x131   : > { %959 = vmatmul.f32.gmra.mxu2 %v575_v10 }
 0x133   : > { %733 = vmatmul.f32.gmra.mxu0 %v573_v11 }
 0x134   : > { %846 = vmatmul.f32.gmra.mxu1 %v574_v12  ;;  %v596_v12 = vld [vmem:[%s1740_s8 + $0x208] sm:$0xff] }
 0x138   : > { %897 = vmatmul.f32.gmra.mxu3 %v625_v13  ;;  %v620_v13 = vld [vmem:[%s1740_s8 + $0x2c8] sm:$0xff] }
 0x139   : > { %962 = vmatmul.f32.gmra.mxu2 %v578_v14 }
 0x13b   : > { %736 = vmatmul.f32.gmra.mxu0 %v576_v15 }
 0x13c   : > { %849 = vmatmul.f32.gmra.mxu1 %v577_v16  ;;  %v594_v16 = vld [vmem:[%s1740_s8 + $0x1f8] sm:$0xff] }
 0x140   : > { %v692_v19 = vpop.f32.mrf.mxu0  ;;  %989 = vmatmul.f32.vlgmr.msra.gmra.mxu3 %v605_v18  ;;  %v595_v18 = vld [vmem:[%s1740_s8 + $0x200] sm:$0xff] }
 0x141   : > { %965 = vmatmul.f32.gmra.mxu2 %v581_v17  ;;  %v805_v21 = vpop.f32.mrf.mxu1 }
 0x142   : > { %v806_v23 = vadd.f32 %v805_v21, %v692_v19  ;;  %v504_v21 = vld [vmem:[#allocation2 + $0x68] sm:$0xff] }
 0x143   : > { %739 = vmatmul.f32.gmra.mxu0 %v579_v20  ;;  %v1979_v24 = vpop.f32.mrf.mxu3 }
 0x144   : > { %v918_v26 = vpop.f32.mrf.mxu2  ;;  %852 = vmatmul.f32.gmra.mxu1 %v580_v22 }
 0x145   : > { %v919_v27 = vadd.f32 %v918_v26, %v806_v23  ;;  %v623_v26 = vld [vmem:[%s1740_s8 + $0x2e0] sm:$0xff] }
 0x147   : > { %v1014_v30 = vadd.f32 %v919_v27, %v499_v25  ;;  %v599_v25 = vld [vmem:[%s1740_s8 + $0x220] sm:$0xff] }
 0x148   : > { %v695_v31 = vpop.f32.mrf.mxu0  ;;  %992 = vmatmul.f32.gmra.mxu3 %v608_v29  ;;  %v597_v29 = vld [vmem:[%s1740_s8 + $0x210] sm:$0xff] }
 0x149   : > { %1046 = vst [vmem:[#allocation2 + $0xb0] sm:$0xff] %v1014_v30  ;;  %968 = vmatmul.f32.gmra.mxu2 %v584_v28  ;;  %v808_v33 = vpop.f32.mrf.mxu1 }
 0x14a   : > { %v809_v37 = vadd.f32 %v808_v33, %v695_v31  ;;  %v598_v31 = vld [vmem:[%s1740_s8 + $0x218] sm:$0xff] }
 0x14b   : > { %742 = vmatmul.f32.gmra.mxu0 %v582_v32  ;;  %v1985_v38 = vpop.f32.mrf.mxu3 }
 0x14c   : > { %v921_v41 = vpop.f32.mrf.mxu2  ;;  %855 = vmatmul.f32.gmra.mxu1 %v583_v35  ;;  %v505_v35 = vld [vmem:[#allocation2 + $0x30] sm:$0xff] }
 0x14d   : > { %v922_v42 = vadd.f32 %v921_v41, %v809_v37  ;;  %v602_v41 = vld [vmem:[%s1740_s8 + $0x238] sm:$0xff] }
 0x14f   : > { %v1015_v36 = vadd.f32 %v922_v42, %v500_v40  ;;  %v626_v42 = vld [vmem:[%s1740_s8 + $0x2f8] sm:$0xff] }
 0x150   : > { %v698_v39 = vpop.f32.mrf.mxu0  ;;  %995 = vmatmul.f32.gmra.mxu3 %v611_v34 }
 0x151   : > { %1047 = vst [vmem:[#allocation2] sm:$0xff] %v1015_v36  ;;  %971 = vmatmul.f32.gmra.mxu2 %v587_v44  ;;  %v811_v45 = vpop.f32.mrf.mxu1  ;;  %v600_v36 = vld [vmem:[%s1740_s8 + $0x228] sm:$0xff] }
 0x152   : > { %v812_v47 = vadd.f32 %v811_v45, %v698_v39 }
 0x153   : > { %745 = vmatmul.f32.gmra.mxu0 %v585_v43  ;;  %v1991_v48 = vpop.f32.mrf.mxu3  ;;  %v601_v43 = vld [vmem:[%s1740_s8 + $0x230] sm:$0xff] }
 0x154   : > { %v924_v50 = vpop.f32.mrf.mxu2  ;;  %858 = vmatmul.f32.gmra.mxu1 %v586_v46 }
 0x155   : > { %v925_v51 = vadd.f32 %v924_v50, %v812_v47  ;;  %v506_v47 = vld [vmem:[#allocation2 + $0x48] sm:$0xff] }
 0x157   : > { %v1016_v54 = vadd.f32 %v925_v51, %v501_v49 }
 0x158   : > { %v701_v55 = vpop.f32.mrf.mxu0  ;;  %998 = vmatmul.f32.gmra.mxu3 %v614_v53 }
 0x159   : > { %1048 = vst [vmem:[#allocation2 + $0xd8] sm:$0xff] %v1016_v54  ;;  %974 = vmatmul.f32.gmra.mxu2 %v590_v52  ;;  %v814_v57 = vpop.f32.mrf.mxu1 }
 0x15a   : > { %v815_v59 = vadd.f32 %v814_v57, %v701_v55 }
 0x15b   : > { %748 = vmatmul.f32.gmra.mxu0 %v588_v56  ;;  %v1997_v60 = vpop.f32.mrf.mxu3  ;;  %v507_v56 = vld [vmem:[#allocation2 + $0x80] sm:$0xff] }
 0x15c   : > { %v927_v62 = vpop.f32.mrf.mxu2  ;;  %861 = vmatmul.f32.gmra.mxu1 %v589_v58 }
 0x15d   : > { %v928_v63 = vadd.f32 %v927_v62, %v815_v59 }
 0x15f   : > { %v1017_v2 = vadd.f32 %v928_v63, %v502_v61 }
 0x160   : > { %v704_v3 = vpop.f32.mrf.mxu0  ;;  %1001 = vmatmul.f32.gmra.mxu3 %v617_v1  ;;  %v508_v1 = vld [vmem:[#allocation2 + $0x88] sm:$0xff] }
 0x161   : > { %1049 = vst [vmem:[#allocation2 + $0x18] sm:$0xff] %v1017_v2  ;;  %977 = vmatmul.f32.gmra.mxu2 %v593_v0  ;;  %v817_v5 = vpop.f32.mrf.mxu1 }
 0x162   : > { %v818_v7 = vadd.f32 %v817_v5, %v704_v3 }
 0x163   : > { %751 = vmatmul.f32.gmra.mxu0 %v591_v4  ;;  %v2003_v8 = vpop.f32.mrf.mxu3 }
 0x164   : > { %v930_v10 = vpop.f32.mrf.mxu2  ;;  %864 = vmatmul.f32.gmra.mxu1 %v592_v6 }
 0x165   : > { %v931_v11 = vadd.f32 %v930_v10, %v818_v7  ;;  %v509_v10 = vld [vmem:[#allocation2 + $0xe8] sm:$0xff] }
 0x167   : > { %v1018_v14 = vadd.f32 %v931_v11, %v503_v9 }
 0x168   : > { %v707_v15 = vpop.f32.mrf.mxu0  ;;  %1004 = vmatmul.f32.gmra.mxu3 %v620_v13 }
 0x169   : > { %1050 = vst [vmem:[#allocation2 + $0x50] sm:$0xff] %v1018_v14  ;;  %980 = vmatmul.f32.gmra.mxu2 %v596_v12  ;;  %v820_v17 = vpop.f32.mrf.mxu1 }
 0x16a   : > { %v821_v19 = vadd.f32 %v820_v17, %v707_v15 }
 0x16b   : > { %754 = vmatmul.f32.gmra.mxu0 %v594_v16  ;;  %v2009_v20 = vpop.f32.mrf.mxu3 }
 0x16c   : > { %v933_v22 = vpop.f32.mrf.mxu2  ;;  %867 = vmatmul.f32.gmra.mxu1 %v595_v18  ;;  %v510_v18 = vld [vmem:[#allocation2 + $0xb8] sm:$0xff] }
 0x16d   : > { %v934_v23 = vadd.f32 %v933_v22, %v821_v19 }
 0x16f   : > { %v1019_v27 = vadd.f32 %v934_v23, %v504_v21 }
 0x170   : > { %v710_v28 = vpop.f32.mrf.mxu0  ;;  %1007 = vmatmul.f32.gmra.mxu3 %v623_v26 }
 0x171   : > { %1051 = vst [vmem:[#allocation2 + $0x68] sm:$0xff] %v1019_v27  ;;  %983 = vmatmul.f32.gmra.mxu2 %v599_v25  ;;  %v823_v30 = vpop.f32.mrf.mxu1 }
 0x172   : > { %v824_v32 = vadd.f32 %v823_v30, %v710_v28  ;;  %v511_v28 = vld [vmem:[#allocation2 + $0x60] sm:$0xff] }
 0x173   : > { %757 = vmatmul.f32.gmra.mxu0 %v597_v29  ;;  %v2015_v33 = vpop.f32.mrf.mxu3 }
 0x174   : > { %v936_v37 = vpop.f32.mrf.mxu2  ;;  %870 = vmatmul.f32.gmra.mxu1 %v598_v31 }
 0x175   : > { %v937_v40 = vadd.f32 %v936_v37, %v824_v32 }
 0x177   : > { %v1020_v44 = vadd.f32 %v937_v40, %v505_v35 }
 0x178   : > { %v713_v34 = vpop.f32.mrf.mxu0  ;;  %1010 = vmatmul.f32.gmra.mxu3 %v626_v42 }
 0x179   : > { %1052 = vst [vmem:[#allocation2 + $0x30] sm:$0xff] %v1020_v44  ;;  %986 = vmatmul.f32.gmra.mxu2 %v602_v41  ;;  %v826_v39 = vpop.f32.mrf.mxu1  ;;  %v512_v41 = vld [vmem:[#allocation2 + $0xf0] sm:$0xff] }
 0x17a   : > { %v827_v45 = vadd.f32 %v826_v39, %v713_v34 }
 0x17b   : > { %760 = vmatmul.f32.gmra.mxu0 %v600_v36  ;;  %v2021_v46 = vpop.f32.mrf.mxu3 }
 0x17c   : > { %v939_v49 = vpop.f32.mrf.mxu2  ;;  %873 = vmatmul.f32.gmra.mxu1 %v601_v43 }
 0x17d   : > { %v940_v50 = vadd.f32 %v939_v49, %v827_v45 }
 0x17f   : > { %v1021_v51 = vadd.f32 %v940_v50, %v506_v47  ;;  %v513_v47 = vld [vmem:[#allocation2 + $0x8] sm:$0xff] }
 0x180   : > { %v716_v52 = vpop.f32.mrf.mxu0 }
 0x181   : > { %1053 = vst [vmem:[#allocation2 + $0x48] sm:$0xff] %v1021_v51  ;;  %v829_v53 = vpop.f32.mrf.mxu1 }
 0x182   : > { %v830_v54 = vadd.f32 %v829_v53, %v716_v52 }
 0x183   : > { %v2023_v55 = vpop.f32.mrf.mxu3 }
 0x184   : > { %v942_v57 = vpop.f32.mrf.mxu2 }
 0x185   : > { %v943_v58 = vadd.f32 %v942_v57, %v830_v54  ;;  %v514_v57 = vld [vmem:[#allocation2 + $0x78] sm:$0xff] }
 0x187   : > { %v1022_v59 = vadd.f32 %v943_v58, %v507_v56 }
 0x188   : > { %v719_v61 = vpop.f32.mrf.mxu0 }
 0x189   : > { %1054 = vst [vmem:[#allocation2 + $0x80] sm:$0xff] %v1022_v59  ;;  %v832_v62 = vpop.f32.mrf.mxu1 }
 0x18a   : > { %v833_v63 = vadd.f32 %v832_v62, %v719_v61 }
 0x18b   : > { %v2025_v0 = vpop.f32.mrf.mxu3 }
 0x18c   : > { %v945_v2 = vpop.f32.mrf.mxu2 }
 0x18d   : > { %v946_v3 = vadd.f32 %v945_v2, %v833_v63  ;;  %v878_v2 = vadd.f32 %v2023_v55, %v1979_v24 }
 0x18f   : > { %v1023_v4 = vadd.f32 %v946_v3, %v508_v1  ;;  %v515_v3 = vld [vmem:[#allocation2 + $0x38] sm:$0xff] }
 0x190   : > { %v722_v5 = vpop.f32.mrf.mxu0 }
 0x191   : > { %1055 = vst [vmem:[#allocation2 + $0x88] sm:$0xff] %v1023_v4  ;;  %v835_v6 = vpop.f32.mrf.mxu1 }
 0x192   : > { %v836_v7 = vadd.f32 %v835_v6, %v722_v5  ;;  %v523_v5 = vld [vmem:[#allocation2 + $0xa8] sm:$0xff] }
 0x193   : > { %v2027_v9 = vpop.f32.mrf.mxu3 }
 0x194   : > { %v948_v11 = vpop.f32.mrf.mxu2 }
 0x195   : > { %v949_v12 = vadd.f32 %v948_v11, %v836_v7 }
 0x197   : > { %v1024_v13 = vadd.f32 %v949_v12, %v509_v10 }
 0x198   : > { %v725_v14 = vpop.f32.mrf.mxu0 }
 0x199   : > { %1056 = vst [vmem:[#allocation2 + $0xe8] sm:$0xff] %v1024_v13  ;;  %v838_v15 = vpop.f32.mrf.mxu1 }
 0x19a   : > { %v839_v16 = vadd.f32 %v838_v15, %v725_v14 }
 0x19b   : > { %v2029_v17 = vpop.f32.mrf.mxu3 }
 0x19c   : > { %v951_v19 = vpop.f32.mrf.mxu2 }
 0x19d   : > { %v952_v21 = vadd.f32 %v951_v19, %v839_v16  ;;  %v881_v16 = vadd.f32 %v2025_v0, %v1985_v38 }
 0x19f   : > { %v1025_v22 = vadd.f32 %v952_v21, %v510_v18  ;;  %v516_v18 = vld [vmem:[#allocation2 + $0x58] sm:$0xff]  ;;  %v524_v21 = vld [vmem:[#allocation2 + $0xd0] sm:$0xff] }
 0x1a0   : > { %v728_v23 = vpop.f32.mrf.mxu0 }
 0x1a1   : > { %1057 = vst [vmem:[#allocation2 + $0xb8] sm:$0xff] %v1025_v22  ;;  %v841_v25 = vpop.f32.mrf.mxu1 }
 0x1a2   : > { %v842_v26 = vadd.f32 %v841_v25, %v728_v23 }
 0x1a3   : > { %v2031_v27 = vpop.f32.mrf.mxu3 }
 0x1a4   : > { %v954_v29 = vpop.f32.mrf.mxu2 }
 0x1a5   : > { %v955_v30 = vadd.f32 %v954_v29, %v842_v26 }
 0x1a7   : > { %v1026_v31 = vadd.f32 %v955_v30, %v511_v28  ;;  %v884_v30 = vadd.f32 %v2027_v9, %v1991_v48 }
 0x1a8   : > { %v731_v32 = vpop.f32.mrf.mxu0 }
 0x1a9   : > { %1058 = vst [vmem:[#allocation2 + $0x60] sm:$0xff] %v1026_v31  ;;  %v844_v35 = vpop.f32.mrf.mxu1  ;;  %v517_v31 = vld [vmem:[#allocation2 + $0x40] sm:$0xff] }
 0x1aa   : > { %v845_v37 = vadd.f32 %v844_v35, %v731_v32  ;;  %v525_v35 = vld [vmem:[#allocation2 + $0x10] sm:$0xff] }
 0x1ab   : > { %v2033_v40 = vpop.f32.mrf.mxu3 }
 0x1ac   : > { %v957_v42 = vpop.f32.mrf.mxu2 }
 0x1ad   : > { %v958_v44 = vadd.f32 %v957_v42, %v845_v37 }
 0x1af   : > { %v1027_v34 = vadd.f32 %v958_v44, %v512_v41 }
 0x1b0   : > { %v734_v36 = vpop.f32.mrf.mxu0 }
 0x1b1   : > { %1059 = vst [vmem:[#allocation2 + $0xf0] sm:$0xff] %v1027_v34  ;;  %v847_v39 = vpop.f32.mrf.mxu1 }
 0x1b2   : > { %v848_v43 = vadd.f32 %v847_v39, %v734_v36  ;;  %v887_v39 = vadd.f32 %v2029_v17, %v1997_v60 }
 0x1b3   : > { %v2035_v45 = vpop.f32.mrf.mxu3 }
 0x1b4   : > { %v960_v49 = vpop.f32.mrf.mxu2 }
 0x1b5   : > { %v961_v50 = vadd.f32 %v960_v49, %v848_v43  ;;  %v518_v43 = vld [vmem:[#allocation2 + $0xc8] sm:$0xff] }
 0x1b6   : > { %v526_v49 = vld [vmem:[#allocation2 + $0x28] sm:$0xff] }
 0x1b7   : > { %v1028_v51 = vadd.f32 %v961_v50, %v513_v47 }
 0x1b8   : > { %v737_v52 = vpop.f32.mrf.mxu0 }
 0x1b9   : > { %1060 = vst [vmem:[#allocation2 + $0x8] sm:$0xff] %v1028_v51  ;;  %v850_v53 = vpop.f32.mrf.mxu1 }
 0x1ba   : > { %v851_v54 = vadd.f32 %v850_v53, %v737_v52 }
 0x1bb   : > { %v2037_v56 = vpop.f32.mrf.mxu3 }
 0x1bc   : > { %v963_v58 = vpop.f32.mrf.mxu2 }
 0x1bd   : > { %v964_v59 = vadd.f32 %v963_v58, %v851_v54  ;;  %v890_v58 = vadd.f32 %v2031_v27, %v2003_v8 }
 0x1bf   : > { %v1029_v61 = vadd.f32 %v964_v59, %v514_v57  ;;  %v519_v59 = vld [vmem:[#allocation2 + $0xe0] sm:$0xff] }
 0x1c0   : > { %v740_v62 = vpop.f32.mrf.mxu0 }
 0x1c1   : > { %1061 = vst [vmem:[#allocation2 + $0x78] sm:$0xff] %v1029_v61  ;;  %v853_v63 = vpop.f32.mrf.mxu1 }
 0x1c2   : > { %v854_v1 = vadd.f32 %v853_v63, %v740_v62  ;;  %v527_v62 = vld [vmem:[#allocation2 + $0xa0] sm:$0xff] }
 0x1c3   : > { %v990_v6 = vpop.f32.mrf.mxu3 }
 0x1c4   : > { %v966_v4 = vpop.f32.mrf.mxu2  ;;  %v991_v10 = vadd.f32 %v990_v6, %v878_v2  ;;  %v893_v6 = vadd.f32 %v2033_v40, %v2009_v20 }
 0x1c5   : > { %v967_v7 = vadd.f32 %v966_v4, %v854_v1 }
 0x1c6   : > { %v1038_v12 = vadd.f32 %v991_v10, %v523_v5 }
 0x1c7   : > { %v1030_v11 = vadd.f32 %v967_v7, %v515_v3  ;;  %v520_v7 = vld [vmem:[#allocation2 + $0x90] sm:$0xff] }
 0x1c8   : > { %v743_v13 = vpop.f32.mrf.mxu0  ;;  %1070 = vst [vmem:[#allocation2 + $0xa8] sm:$0xff] %v1038_v12 }
 0x1c9   : > { %1062 = vst [vmem:[#allocation2 + $0x38] sm:$0xff] %v1030_v11  ;;  %v856_v14 = vpop.f32.mrf.mxu1  ;;  %v528_v11 = vld [vmem:[#allocation2 + $0xf8] sm:$0xff] }
 0x1ca   : > { %v857_v15 = vadd.f32 %v856_v14, %v743_v13 }
 0x1cb   : > { %v993_v24 = vpop.f32.mrf.mxu3 }
 0x1cc   : > { %v969_v19 = vpop.f32.mrf.mxu2  ;;  %v994_v22 = vadd.f32 %v993_v24, %v881_v16 }
 0x1cd   : > { %v970_v55 = vadd.f32 %v969_v19, %v857_v15  ;;  %v896_v19 = vadd.f32 %v2035_v45, %v2015_v33 }
 0x1ce   : > { %v1039_v25 = vadd.f32 %v994_v22, %v524_v21  ;;  %v521_v21 = vld [vmem:[#allocation2 + $0x70] sm:$0xff] }
 0x1cf   : > { %v1031_v23 = vadd.f32 %v970_v55, %v516_v18  ;;  %v529_v55 = vld [vmem:[#allocation2 + $0x20] sm:$0xff] }
 0x1d0   : > { %v746_v26 = vpop.f32.mrf.mxu0  ;;  %1071 = vst [vmem:[#allocation2 + $0xd0] sm:$0xff] %v1039_v25 }
 0x1d1   : > { %1063 = vst [vmem:[#allocation2 + $0x58] sm:$0xff] %v1031_v23  ;;  %v859_v28 = vpop.f32.mrf.mxu1 }
 0x1d2   : > { %v860_v29 = vadd.f32 %v859_v28, %v746_v26 }
 0x1d3   : > { %v996_v38 = vpop.f32.mrf.mxu3 }
 0x1d4   : > { %v972_v32 = vpop.f32.mrf.mxu2  ;;  %v997_v37 = vadd.f32 %v996_v38, %v884_v30  ;;  %v899_v30 = vadd.f32 %v2037_v56, %v2021_v46 }
 0x1d5   : > { %v973_v0 = vadd.f32 %v972_v32, %v860_v29 }
 0x1d6   : > { %v1040_v42 = vadd.f32 %v997_v37, %v525_v35  ;;  %v530_v35 = vld [vmem:[#allocation2 + $0x98] sm:$0xff] }
 0x1d7   : > { %v1032_v41 = vadd.f32 %v973_v0, %v517_v31  ;;  %v522_v31 = vld [vmem:[#allocation2 + $0xc0] sm:$0xff] }
 0x1d8   : > { %v749_v44 = vpop.f32.mrf.mxu0  ;;  %1072 = vst [vmem:[#allocation2 + $0x10] sm:$0xff] %v1040_v42 }
 0x1d9   : > { %1064 = vst [vmem:[#allocation2 + $0x40] sm:$0xff] %v1032_v41  ;;  %v862_v34 = vpop.f32.mrf.mxu1 }
 0x1da   : > { %v863_v36 = vadd.f32 %v862_v34, %v749_v44 }
 0x1db   : > { %v999_v48 = vpop.f32.mrf.mxu3 }
 0x1dc   : > { %v975_v47 = vpop.f32.mrf.mxu2  ;;  %v1000_v50 = vadd.f32 %v999_v48, %v887_v39 }
 0x1dd   : > { %v976_v9 = vadd.f32 %v975_v47, %v863_v36 }
 0x1de   : > { %v1041_v52 = vadd.f32 %v1000_v50, %v526_v49 }
 0x1df   : > { %v1033_v51 = vadd.f32 %v976_v9, %v518_v43 }
 0x1e0   : > { %v752_v53 = vpop.f32.mrf.mxu0  ;;  %1073 = vst [vmem:[#allocation2 + $0x28] sm:$0xff] %v1041_v52 }
 0x1e1   : > { %1065 = vst [vmem:[#allocation2 + $0xc8] sm:$0xff] %v1033_v51  ;;  %v865_v54 = vpop.f32.mrf.mxu1 }
 0x1e2   : > { %v866_v57 = vadd.f32 %v865_v54, %v752_v53 }
 0x1e3   : > { %v1002_v60 = vpop.f32.mrf.mxu3 }
 0x1e4   : > { %v978_v61 = vpop.f32.mrf.mxu2  ;;  %v1003_v63 = vadd.f32 %v1002_v60, %v890_v58 }
 0x1e5   : > { %v979_v17 = vadd.f32 %v978_v61, %v866_v57 }
 0x1e6   : > { %v1042_v2 = vadd.f32 %v1003_v63, %v527_v62 }
 0x1e7   : > { %v1034_v1 = vadd.f32 %v979_v17, %v519_v59 }
 0x1e8   : > { %v755_v3 = vpop.f32.mrf.mxu0  ;;  %1074 = vst [vmem:[#allocation2 + $0xa0] sm:$0xff] %v1042_v2 }
 0x1e9   : > { %1066 = vst [vmem:[#allocation2 + $0xe0] sm:$0xff] %v1034_v1  ;;  %v868_v4 = vpop.f32.mrf.mxu1 }
 0x1ea   : > { %v869_v5 = vadd.f32 %v868_v4, %v755_v3 }
 0x1eb   : > { %v1005_v8 = vpop.f32.mrf.mxu3 }
 0x1ec   : > { %v981_v10 = vpop.f32.mrf.mxu2  ;;  %v1006_v12 = vadd.f32 %v1005_v8, %v893_v6 }
 0x1ed   : > { %v982_v27 = vadd.f32 %v981_v10, %v869_v5 }
 0x1ee   : > { %v1043_v14 = vadd.f32 %v1006_v12, %v528_v11 }
 0x1ef   : > { %v1035_v13 = vadd.f32 %v982_v27, %v520_v7 }
 0x1f0   : > { %v758_v15 = vpop.f32.mrf.mxu0  ;;  %1075 = vst [vmem:[#allocation2 + $0xf8] sm:$0xff] %v1043_v14 }
 0x1f1   : > { %1067 = vst [vmem:[#allocation2 + $0x90] sm:$0xff] %v1035_v13  ;;  %v871_v16 = vpop.f32.mrf.mxu1 }
 0x1f2   : > { %v872_v18 = vadd.f32 %v871_v16, %v758_v15 }
 0x1f3   : > { %v1008_v20 = vpop.f32.mrf.mxu3 }
 0x1f4   : > { %v984_v24 = vpop.f32.mrf.mxu2  ;;  %v1009_v22 = vadd.f32 %v1008_v20, %v896_v19 }
 0x1f5   : > { %v985_v40 = vadd.f32 %v984_v24, %v872_v18 }
 0x1f6   : > { %v1044_v25 = vadd.f32 %v1009_v22, %v529_v55 }
 0x1f7   : > { %v1036_v23 = vadd.f32 %v985_v40, %v521_v21 }
 0x1f8   : > { %v761_v26 = vpop.f32.mrf.mxu0  ;;  %1076 = vst [vmem:[#allocation2 + $0x20] sm:$0xff] %v1044_v25 }
 0x1f9   : > { %1068 = vst [vmem:[#allocation2 + $0x70] sm:$0xff] %v1036_v23  ;;  %v874_v28 = vpop.f32.mrf.mxu1 }
 0x1fa   : > { %v875_v29 = vadd.f32 %v874_v28, %v761_v26 }
 0x1fb   : > { %v1011_v33 = vpop.f32.mrf.mxu3 }
 0x1fc   : > { %v987_v32 = vpop.f32.mrf.mxu2  ;;  %v1012_v38 = vadd.f32 %v1011_v33, %v899_v30 }
 0x1fd   : > { %v988_v45 = vadd.f32 %v987_v32, %v875_v29  ;;  %1081 = sbr.rel (%p1333_p11) target bundleno = 551 (0x227), region = 63 }
 0x1fe   : > { %v1045_v37 = vadd.f32 %v1012_v38, %v530_v35 }
 0x1ff   : > { %v1037_v0 = vadd.f32 %v988_v45, %v522_v31 }
 0x200   : > { %1077 = vst [vmem:[#allocation2 + $0x98] sm:$0xff] %v1045_v37 }
 0x201   : > { %1069 = vst [vmem:[#allocation2 + $0xc0] sm:$0xff] %v1037_v0 }
 0x202   : > { %v1082_v41 = vld [vmem:[#allocation2 + $0xb0] sm:$0xff]  ;;  %v2059_v42 = vld [vmem:[%s2206_s2] ss:$0 sm:$0xff]  ;;  %v1084_v56 = vld [vmem:[#allocation2 + $0xd8] sm:$0xff] }
 0x203   : > { %v1083_v46 = vld [vmem:[#allocation2] sm:$0xff]  ;;  %v1085_v44 = vld [vmem:[#allocation2 + $0x18] sm:$0xff]  ;;  %v1118_v34 = vadd.f32 %v2059_v42, %v1082_v41  ;;  %v1120_v39 = vadd.f32 %v2059_v42, %v1084_v56  ;;  %v1086_v47 = vld [vmem:[#allocation2 + $0x50] sm:$0xff] }
 0x204   : > { %v1119_v36 = vadd.f32 %v2059_v42, %v1083_v46  ;;  %v1121_v43 = vadd.f32 %v2059_v42, %v1085_v44  ;;  %v1087_v49 = vld [vmem:[#allocation2 + $0x68] sm:$0xff]  ;;  %v1088_v48 = vld [vmem:[#allocation2 + $0x30] sm:$0xff]  ;;  %v1122_v9 = vadd.f32 %v2059_v42, %v1086_v47  ;;  %v1090_v52 = vld [vmem:[#allocation2 + $0x80] sm:$0xff] }
 0x205   : > { %v1123_v50 = vadd.f32 %v2059_v42, %v1087_v49  ;;  %v1089_v51 = vld [vmem:[#allocation2 + $0x48] sm:$0xff]  ;;  %v1150_v53 = vmax.f32 %v1118_v34, 0.0  ;;  %v1152_v57 = vmax.f32 %v1120_v39, 0.0  ;;  %v1124_v58 = vadd.f32 %v2059_v42, %v1088_v48  ;;  %v1093_v1 = vld [vmem:[#allocation2 + $0xb8] sm:$0xff]  ;;  %v1094_v4 = vld [vmem:[#allocation2 + $0x60] sm:$0xff] }
 0x206   : > { %v1151_v54 = vmax.f32 %v1119_v36, 0.0  ;;  %v1091_v59 = vld [vmem:[#allocation2 + $0x88] sm:$0xff]  ;;  %v1153_v61 = vmax.f32 %v1121_v43, 0.0  ;;  %v1125_v62 = vadd.f32 %v2059_v42, %v1089_v51  ;;  %v1154_v17 = vmax.f32 %v1122_v9, 0.0  ;;  %v1095_v7 = vld [vmem:[#allocation2 + $0xf0] sm:$0xff]  ;;  %v1097_v13 = vld [vmem:[#allocation2 + $0x78] sm:$0xff] }
 0x207   : > { %v1092_v60 = vld [vmem:[#allocation2 + $0xe8] sm:$0xff]  ;;  %1182 = vst [vmem:[%s2207_s3] sm:$0xff] %v1150_v53  ;;  %v1126_v63 = vadd.f32 %v2059_v42, %v1090_v52  ;;  %v1155_v2 = vmax.f32 %v1123_v50, 0.0  ;;  %v1127_v3 = vadd.f32 %v2059_v42, %v1091_v59  ;;  %v1156_v5 = vmax.f32 %v1124_v58, 0.0  ;;  %v1098_v16 = vld [vmem:[#allocation2 + $0x38] sm:$0xff]  ;;  %v1100_v20 = vld [vmem:[#allocation2 + $0x40] sm:$0xff] }
 0x208   : > { %1183 = vst [vmem:[%s2207_s3 + $0x8] sm:$0xff] %v1151_v54  ;;  %v1128_v6 = vadd.f32 %v2059_v42, %v1092_v60  ;;  %v1157_v10 = vmax.f32 %v1125_v62, 0.0  ;;  %v1129_v11 = vadd.f32 %v2059_v42, %v1093_v1  ;;  %v1096_v8 = vld [vmem:[#allocation2 + $0x8] sm:$0xff]  ;;  %v1130_v12 = vadd.f32 %v2059_v42, %v1094_v4  ;;  %v1099_v21 = vld [vmem:[#allocation2 + $0x58] sm:$0xff]  ;;  %v1102_v28 = vld [vmem:[#allocation2 + $0xe0] sm:$0xff] }
 0x209   : > { %1184 = vst [vmem:[%s2207_s3 + $0x10] sm:$0xff] %v1152_v57  ;;  %v1158_v27 = vmax.f32 %v1126_v63, 0.0  ;;  %v1159_v14 = vmax.f32 %v1127_v3, 0.0  ;;  %v1131_v15 = vadd.f32 %v2059_v42, %v1095_v7  ;;  %v1132_v19 = vadd.f32 %v2059_v42, %v1096_v8  ;;  %v1101_v23 = vld [vmem:[#allocation2 + $0xc8] sm:$0xff]  ;;  %v1103_v31 = vld [vmem:[#allocation2 + $0x90] sm:$0xff]  ;;  %v1105_v0 = vld [vmem:[#allocation2 + $0xc0] sm:$0xff] }
 0x20a   : > { %1185 = vst [vmem:[%s2207_s3 + $0x18] sm:$0xff] %v1153_v61  ;;  %v1160_v18 = vmax.f32 %v1128_v6, 0.0  ;;  %v1161_v24 = vmax.f32 %v1129_v11, 0.0  ;;  %v1133_v55 = vadd.f32 %v2059_v42, %v1097_v13  ;;  %v1162_v40 = vmax.f32 %v1130_v12, 0.0  ;;  %v1104_v33 = vld [vmem:[#allocation2 + $0x70] sm:$0xff]  ;;  %v1106_v46 = vld [vmem:[#allocation2 + $0xa8] sm:$0xff] }
 0x20b   : > { %1186 = vst [vmem:[%s2207_s3 + $0x20] sm:$0xff] %v1154_v17  ;;  %v1134_v22 = vadd.f32 %v2059_v42, %v1098_v16  ;;  %v1163_v25 = vmax.f32 %v1131_v15, 0.0  ;;  %v1135_v26 = vadd.f32 %v2059_v42, %v1099_v21  ;;  %v1164_v29 = vmax.f32 %v1132_v19, 0.0  ;;  %v1107_v34 = vld [vmem:[#allocation2 + $0xd0] sm:$0xff]  ;;  %v1109_v48 = vld [vmem:[#allocation2 + $0x28] sm:$0xff]  ;;  %v1110_v51 = vld [vmem:[#allocation2 + $0xa0] sm:$0xff] }
 0x20c   : > { %1187 = vst [vmem:[%s2207_s3 + $0x28] sm:$0xff] %v1155_v2  ;;  %v1136_v30 = vadd.f32 %v2059_v42, %v1100_v20  ;;  %v1165_v32 = vmax.f32 %v1133_v55, 0.0  ;;  %v1137_v35 = vadd.f32 %v2059_v42, %v1101_v23  ;;  %v1138_v38 = vadd.f32 %v2059_v42, %v1102_v28  ;;  %v1108_v43 = vld [vmem:[#allocation2 + $0x10] sm:$0xff]  ;;  %v1111_v54 = vld [vmem:[#allocation2 + $0xf8] sm:$0xff]  ;;  %v1112_v59 = vld [vmem:[#allocation2 + $0x20] sm:$0xff] }
 0x20d   : > { %1188 = vst [vmem:[%s2207_s3 + $0x30] sm:$0xff] %v1156_v5  ;;  %v1166_v45 = vmax.f32 %v1134_v22, 0.0  ;;  %v1167_v37 = vmax.f32 %v1135_v26, 0.0  ;;  %v1139_v41 = vadd.f32 %v2059_v42, %v1103_v31  ;;  %v1140_v44 = vadd.f32 %v2059_v42, %v1104_v33  ;;  %v1113_v60 = vld [vmem:[#allocation2 + $0x98] sm:$0xff] }
 0x20e   : > { %1189 = vst [vmem:[%s2207_s3 + $0x38] sm:$0xff] %v1157_v10  ;;  %v1168_v56 = vmax.f32 %v1136_v30, 0.0  ;;  %v1169_v36 = vmax.f32 %v1137_v35, 0.0  ;;  %v1141_v39 = vadd.f32 %v2059_v42, %v1105_v0  ;;  %v1170_v47 = vmax.f32 %v1138_v38, 0.0 }
 0x20f   : > { %1190 = vst [vmem:[%s2207_s3 + $0x40] sm:$0xff] %v1158_v27  ;;  %v1142_v49 = vadd.f32 %v2059_v42, %v1106_v46  ;;  %v1171_v9 = vmax.f32 %v1139_v41, 0.0  ;;  %v1143_v50 = vadd.f32 %v2059_v42, %v1107_v34  ;;  %v1172_v52 = vmax.f32 %v1140_v44, 0.0 }
 0x210   : > { %1191 = vst [vmem:[%s2207_s3 + $0x48] sm:$0xff] %v1159_v14  ;;  %v1144_v53 = vadd.f32 %v2059_v42, %v1108_v43  ;;  %v1173_v57 = vmax.f32 %v1141_v39, 0.0  ;;  %v1145_v58 = vadd.f32 %v2059_v42, %v1109_v48  ;;  %v1146_v62 = vadd.f32 %v2059_v42, %v1110_v51 }
 0x211   : > { %1192 = vst [vmem:[%s2207_s3 + $0x50] sm:$0xff] %v1160_v18  ;;  %v1174_v61 = vmax.f32 %v1142_v49, 0.0  ;;  %v1175_v17 = vmax.f32 %v1143_v50, 0.0  ;;  %v1147_v63 = vadd.f32 %v2059_v42, %v1111_v54  ;;  %v1148_v2 = vadd.f32 %v2059_v42, %v1112_v59 }
 0x212   : > { %1193 = vst [vmem:[%s2207_s3 + $0x58] sm:$0xff] %v1161_v24  ;;  %v1176_v1 = vmax.f32 %v1144_v53, 0.0  ;;  %v1177_v3 = vmax.f32 %v1145_v58, 0.0  ;;  %v1149_v4 = vadd.f32 %v2059_v42, %v1113_v60  ;;  %v1178_v5 = vmax.f32 %v1146_v62, 0.0 }
 0x213   : > { %1194 = vst [vmem:[%s2207_s3 + $0x60] sm:$0xff] %v1162_v40  ;;  %v1179_v6 = vmax.f32 %v1147_v63, 0.0  ;;  %v1180_v7 = vmax.f32 %v1148_v2, 0.0 }
 0x214   : > { %1195 = vst [vmem:[%s2207_s3 + $0x68] sm:$0xff] %v1163_v25  ;;  %v1181_v42 = vmax.f32 %v1149_v4, 0.0 }
 0x215   : > { %1196 = vst [vmem:[%s2207_s3 + $0x70] sm:$0xff] %v1164_v29 }
 0x216   : > { %1197 = vst [vmem:[%s2207_s3 + $0x78] sm:$0xff] %v1165_v32 }
 0x217   : > { %1198 = vst [vmem:[%s2207_s3 + $0x80] sm:$0xff] %v1166_v45 }
 0x218   : > { %1199 = vst [vmem:[%s2207_s3 + $0x88] sm:$0xff] %v1167_v37 }
 0x219   : > { %1200 = vst [vmem:[%s2207_s3 + $0x90] sm:$0xff] %v1168_v56 }
 0x21a   : > { %1201 = vst [vmem:[%s2207_s3 + $0x98] sm:$0xff] %v1169_v36 }
 0x21b   : > { %1202 = vst [vmem:[%s2207_s3 + $0xa0] sm:$0xff] %v1170_v47 }
 0x21c   : > { %1203 = vst [vmem:[%s2207_s3 + $0xa8] sm:$0xff] %v1171_v9 }
 0x21d   : > { %1204 = vst [vmem:[%s2207_s3 + $0xb0] sm:$0xff] %v1172_v52 }
 0x21e   : > { %1205 = vst [vmem:[%s2207_s3 + $0xb8] sm:$0xff] %v1173_v57 }
 0x21f   : > { %1206 = vst [vmem:[%s2207_s3 + $0xc0] sm:$0xff] %v1174_v61 }
 0x220   : > { %1207 = vst [vmem:[%s2207_s3 + $0xc8] sm:$0xff] %v1175_v17 }
 0x221   : > { %1208 = vst [vmem:[%s2207_s3 + $0xd0] sm:$0xff] %v1176_v1 }
 0x222   : > { %1209 = vst [vmem:[%s2207_s3 + $0xd8] sm:$0xff] %v1177_v3 }
 0x223   : > { %1210 = vst [vmem:[%s2207_s3 + $0xe0] sm:$0xff] %v1178_v5 }
 0x224   : > { %1211 = vst [vmem:[%s2207_s3 + $0xe8] sm:$0xff] %v1179_v6 }
 0x225   : > { %1212 = vst [vmem:[%s2207_s3 + $0xf0] sm:$0xff] %v1180_v7 }
 0x226   : > { %1213 = vst [vmem:[%s2207_s3 + $0xf8] sm:$0xff] %v1181_v42 }
 0x227 PF: > { %s13_s16 = sadd.s32 1, %s1469_s16   ;;  %s2208_s12 = smov %s1457_s13 }
 0x228   : > { %p10_p12 = scmp.ge.s32.totalorder %s13_s16, 5   ;;  %s2209_s13 = smov %s1527_s20 }
 0x229   : > { %s2210_s14 = smov %s1465_s15  ;;  %s2211_s15 = smov %s2213_s17 }
 0x22a   :  { %12 = sbr.rel (!%p10_p12) target bundleno = 3 (0x3), region = 104 }

// kernel: vgg_mse.21
= control target key start
LH: loop header
LB: loop body
LE: loop exit
PB: predicated region body
PF: predicated region fallthrough
CT: control target
= control target key end

     0   :  { %s1120_s12 = smov 0   ;;  %s1122_s13 = smov 0   ;;  %s1494_s0 = inlined_call_operand.vmem [shape: f32[64,1152], index: 0, kind: input, shape index: {}]   ;;  %s1495_s1 = inlined_call_operand.vmem [shape: f32[1152,256], index: 1, kind: input, shape index: {}]   ;;  %s1496_s2 = inlined_call_operand.vmem [shape: f32[1,256], index: 2, kind: input, shape index: {}]   ;;  %s1497_s3 = inlined_call_operand.vmem [shape: f32[64,256], index: 3, kind: output, shape index: {}]  }
   0x1   :  { %s1124_s14 = smov 0   ;;  %s1126_s15 = smov 0  }
   0x2   :  { %s1128_s16 = smov 0  }
   0x3 LB: > { %s25_s17 = sadd.s32 1, %s1093_s15  ;;  %p48_p1 = scmp.ne.s32.totalorder %s1085_s13, %s1081_s12  ;;  %s1097_s16 = sphi %s1128_s16, %s13_s16   ;;  %s1093_s15 = sphi %s1126_s15, %s1501_s15   ;;  %s1089_s14 = sphi %s1124_s14, %s1500_s14   ;;  %s1085_s13 = sphi %s1122_s13, %s1499_s13   ;;  %s1081_s12 = sphi %s1120_s12, %s1498_s12  }
   0x4   : > { %p26_p0 = scmp.ge.s32.totalorder %s25_s17, 3  ;;  %p49_p2 = scmp.eq.s32.totalorder %s1097_s16, 0 }
   0x5   : > { %s41_s19 = sadd.s32 1, %s1085_s13  ;;  %p971_p5 = scmp.ge.s32.totalorder %s1097_s16, 3 }
   0x6   : > { %s1503_s17 = smov (%p26_p0, %s25_s17), 0  ;;  %p50_p3 = por %p49_p2, %p48_p1 }
   0x7   : > { %s37_s18 = ssub.s32 %s1093_s15, %s1503_s17  ;;  %164 = sbr.rel (%p971_p5) target bundleno = 41 (0x29), region = 20 }
   0x8   : > { %p39_p4 = scmp.eq.s32.totalorder %s37_s18, 0 }
   0xa   : > { %s1155_s20 = scalar_select %p39_p4, %s1085_s13, %s41_s19  }
   0xc   : > { %167 = sbr.rel (!%p50_p3) target bundleno = 41 (0x29), region = 24  ;;  %s169_s21 = sand.u32 (%p50_p3), 1, %s1085_s13  }
   0xd   : > { %s982_s22 = smul.u32 (%p50_p3), 24, %s1093_s15 }
   0xe   : > { %s1016_s23 = smul.u32 (%p50_p3), 192, %s169_s21 }
   0xf   : > { %s1163_s26 = scalar_lea.vmem (%p50_p3), %s1494_s0, %s982_s22 }
  0x10   : > { %v190_v0 = vld [vmem:[%s1163_s26] sm:$0xff] (%p50_p3)  ;;  %v192_v1 = vld [vmem:[%s1163_s26 + $0x8] sm:$0xff] (%p50_p3)  ;;  %v194_v2 = vld [vmem:[%s1163_s26 + $0x10] sm:$0xff] (%p50_p3)  ;;  %s1168_s27 = scalar_lea.vmem (%p50_p3), [#allocation3], %s1016_s23 }
  0x11   : > { %191 = vst [vmem:[%s1168_s27] sm:$0xff] %v190_v0  ;;  %v196_v3 = vld [vmem:[%s1163_s26 + $0x48] sm:$0xff]  ;;  %v198_v4 = vld [vmem:[%s1163_s26 + $0x50] sm:$0xff]  ;;  %v200_v5 = vld [vmem:[%s1163_s26 + $0x58] sm:$0xff] }
  0x12   : > { %193 = vst [vmem:[%s1168_s27 + $0x8] sm:$0xff] %v192_v1  ;;  %v202_v6 = vld [vmem:[%s1163_s26 + $0x90] sm:$0xff]  ;;  %v204_v7 = vld [vmem:[%s1163_s26 + $0x98] sm:$0xff]  ;;  %v206_v8 = vld [vmem:[%s1163_s26 + $0xa0] sm:$0xff] }
  0x13   : > { %195 = vst [vmem:[%s1168_s27 + $0x10] sm:$0xff] %v194_v2  ;;  %v208_v9 = vld [vmem:[%s1163_s26 + $0xd8] sm:$0xff]  ;;  %v210_v10 = vld [vmem:[%s1163_s26 + $0xe0] sm:$0xff]  ;;  %v212_v11 = vld [vmem:[%s1163_s26 + $0xe8] sm:$0xff] }
  0x14   : > { %197 = vst [vmem:[%s1168_s27 + $0x18] sm:$0xff] %v196_v3  ;;  %v214_v12 = vld [vmem:[%s1163_s26 + $0x120] sm:$0xff]  ;;  %v216_v13 = vld [vmem:[%s1163_s26 + $0x128] sm:$0xff]  ;;  %v218_v14 = vld [vmem:[%s1163_s26 + $0x130] sm:$0xff] }
  0x15   : > { %199 = vst [vmem:[%s1168_s27 + $0x20] sm:$0xff] %v198_v4  ;;  %v220_v15 = vld [vmem:[%s1163_s26 + $0x168] sm:$0xff]  ;;  %v222_v16 = vld [vmem:[%s1163_s26 + $0x170] sm:$0xff]  ;;  %v224_v17 = vld [vmem:[%s1163_s26 + $0x178] sm:$0xff] }
  0x16   : > { %201 = vst [vmem:[%s1168_s27 + $0x28] sm:$0xff] %v200_v5  ;;  %v226_v18 = vld [vmem:[%s1163_s26 + $0x1b0] sm:$0xff]  ;;  %v228_v19 = vld [vmem:[%s1163_s26 + $0x1b8] sm:$0xff]  ;;  %v230_v20 = vld [vmem:[%s1163_s26 + $0x1c0] sm:$0xff] }
  0x17   : > { %203 = vst [vmem:[%s1168_s27 + $0x30] sm:$0xff] %v202_v6  ;;  %v232_v21 = vld [vmem:[%s1163_s26 + $0x1f8] sm:$0xff]  ;;  %v234_v22 = vld [vmem:[%s1163_s26 + $0x200] sm:$0xff]  ;;  %v236_v23 = vld [vmem:[%s1163_s26 + $0x208] sm:$0xff] }
  0x18   : > { %205 = vst [vmem:[%s1168_s27 + $0x38] sm:$0xff] %v204_v7 }
  0x19   : > { %207 = vst [vmem:[%s1168_s27 + $0x40] sm:$0xff] %v206_v8 }
  0x1a   : > { %209 = vst [vmem:[%s1168_s27 + $0x48] sm:$0xff] %v208_v9 }
  0x1b   : > { %211 = vst [vmem:[%s1168_s27 + $0x50] sm:$0xff] %v210_v10 }
  0x1c   : > { %213 = vst [vmem:[%s1168_s27 + $0x58] sm:$0xff] %v212_v11 }
  0x1d   : > { %215 = vst [vmem:[%s1168_s27 + $0x60] sm:$0xff] %v214_v12 }
  0x1e   : > { %217 = vst [vmem:[%s1168_s27 + $0x68] sm:$0xff] %v216_v13 }
  0x1f   : > { %219 = vst [vmem:[%s1168_s27 + $0x70] sm:$0xff] %v218_v14 }
  0x20   : > { %221 = vst [vmem:[%s1168_s27 + $0x78] sm:$0xff] %v220_v15 }
  0x21   : > { %223 = vst [vmem:[%s1168_s27 + $0x80] sm:$0xff] %v222_v16 }
  0x22   : > { %225 = vst [vmem:[%s1168_s27 + $0x88] sm:$0xff] %v224_v17 }
  0x23   : > { %227 = vst [vmem:[%s1168_s27 + $0x90] sm:$0xff] %v226_v18 }
  0x24   : > { %229 = vst [vmem:[%s1168_s27 + $0x98] sm:$0xff] %v228_v19 }
  0x25   : > { %231 = vst [vmem:[%s1168_s27 + $0xa0] sm:$0xff] %v230_v20 }
  0x26   : > { %233 = vst [vmem:[%s1168_s27 + $0xa8] sm:$0xff] %v232_v21 }
  0x27   : > { %235 = vst [vmem:[%s1168_s27 + $0xb0] sm:$0xff] %v234_v22 }
  0x28   : > { %237 = vst [vmem:[%s1168_s27 + $0xb8] sm:$0xff] %v236_v23 }
  0x29 PF: > { %p973_p6 = scmp.ge.s32.totalorder %s1097_s16, 1  ;;  %p257_p7 = scmp.lt.s32.totalorder %s1097_s16, 4 }
  0x2b   : > { %p258_p8 = pnand %p973_p6, %p257_p7 }
  0x2c   : > { %s264_s28 = sand.u32 (!%p258_p8), 1, %s1081_s12   ;;  %s308_s29 = smul.u32 (!%p258_p8), 48, %s1089_s14 }
  0x2d   : > { %261 = sbr.rel (%p258_p8) target bundleno = 360 (0x168), region = 51  ;;  %p976_p10 = scmp.ne.s32.totalorder (!%p258_p8), %s1089_s14, 0 }
  0x2e   : > { %s1017_s30 = smul.u32 (!%p258_p8), 192, %s264_s28  ;;  %p310_p9 = scmp.lt.s32.totalorder (!%p258_p8), %s308_s29, 143 }
  0x30   : > { %s1224_s8 = scalar_lea.vmem (!%p258_p8), [#allocation3], %s1017_s30 }
  0x32   : > { %s1505_s29 = smov (!%p310_p9, %s308_s29), 143  ;;  %340 = sbr.rel (%p976_p10) target bundleno = 72 (0x48), region = 59 }
  0x33   : > { %s983_s4 = sshll.u32 %s1505_s29, 4 }
  0x34   : > { %s1222_s7 = scalar_lea.vmem %s1495_s1, %s983_s4 }
  0x37   : > { %v1099_v24 = vmov 0.0  }
  0x38   : > { %341 = vst [vmem:[#allocation2 + $0x30] sm:$0xff] %v1099_v24 }
  0x39   : > { %342 = vst [vmem:[#allocation2] sm:$0xff] %v1099_v24 }
  0x3a   : > { %343 = vst [vmem:[#allocation2 + $0x58] sm:$0xff] %v1099_v24 }
  0x3b   : > { %344 = vst [vmem:[#allocation2 + $0x18] sm:$0xff] %v1099_v24 }
  0x3c   : > { %345 = vst [vmem:[#allocation2 + $0x50] sm:$0xff] %v1099_v24 }
  0x3d   : > { %346 = vst [vmem:[#allocation2 + $0x68] sm:$0xff] %v1099_v24 }
  0x3e   : > { %347 = vst [vmem:[#allocation2 + $0x8] sm:$0xff] %v1099_v24 }
  0x3f   : > { %348 = vst [vmem:[#allocation2 + $0x48] sm:$0xff] %v1099_v24 }
  0x40   : > { %349 = vst [vmem:[#allocation2 + $0x40] sm:$0xff] %v1099_v24 }
  0x41   : > { %350 = vst [vmem:[#allocation2 + $0x20] sm:$0xff] %v1099_v24 }
  0x42   : > { %351 = vst [vmem:[#allocation2 + $0x10] sm:$0xff] %v1099_v24 }
  0x43   : > { %352 = vst [vmem:[#allocation2 + $0x38] sm:$0xff] %v1099_v24 }
  0x44   : > { %353 = vst [vmem:[#allocation2 + $0x60] sm:$0xff] %v1099_v24 }
  0x45   : > { %354 = vst [vmem:[#allocation2 + $0x70] sm:$0xff] %v1099_v24 }
  0x46   : > { %355 = vst [vmem:[#allocation2 + $0x78] sm:$0xff] %v1099_v24 }
  0x47   : > { %356 = vst [vmem:[#allocation2 + $0x28] sm:$0xff] %v1099_v24 }
  0x48 PF: > { %v427_v25 = vld [vmem:[%s1222_s7 + $0xf0] sm:$0xff]  ;;  %v425_v27 = vld [vmem:[%s1222_s7 + $0xe0] sm:$0xff]  ;;  %v1263_v58 = vld [vmem:[%s1224_s8 + $0x68] sm:$0xff]  ;;  %p977_p11 = scmp.ne.s32.totalorder %s1089_s14, 2 }
  0x49   : > { %v459_v26 = vld [vmem:[%s1222_s7 + $0x1f0] sm:$0xff]  ;;  %984 = vmatpush.msra.mxu2 %v427_v25  ;;  %v457_v28 = vld [vmem:[%s1222_s7 + $0x1e0] sm:$0xff]  ;;  %493 = vmatpush.msra.mxu0 %v427_v25  ;;  %v428_v59 = vld [vmem:[%s1222_s7 + $0xf8] sm:$0xff] }
  0x4a   : > { %1000 = vmatpush.msra.mxu3 %v459_v26  ;;  %v423_v29 = vld [vmem:[%s1222_s7 + $0xd0] sm:$0xff]  ;;  %534 = vmatpush.msra.mxu1 %v459_v26  ;;  %v421_v31 = vld [vmem:[%s1222_s7 + $0xc0] sm:$0xff]  ;;  %v426_v61 = vld [vmem:[%s1222_s7 + $0xe8] sm:$0xff] }
  0x4b   : > { %v455_v30 = vld [vmem:[%s1222_s7 + $0x1d0] sm:$0xff]  ;;  %985 = vmatpush.msra.mxu2 %v425_v27  ;;  %v453_v32 = vld [vmem:[%s1222_s7 + $0x1c0] sm:$0xff]  ;;  %494 = vmatpush.msra.mxu0 %v425_v27  ;;  %v1275_v0 = vld [vmem:[%s1224_s8 + $0x8] sm:$0xff] }
  0x4c   : > { %1001 = vmatpush.msra.mxu3 %v457_v28  ;;  %535 = vmatpush.msra.mxu1 %v457_v28  ;;  %v419_v33 = vld [vmem:[%s1222_s7 + $0xb0] sm:$0xff]  ;;  %v417_v35 = vld [vmem:[%s1222_s7 + $0xa0] sm:$0xff]  ;;  %v424_v1 = vld [vmem:[%s1222_s7 + $0xd8] sm:$0xff] }
  0x4d   : > { %986 = vmatpush.msra.mxu2 %v423_v29  ;;  %v451_v34 = vld [vmem:[%s1222_s7 + $0x1b0] sm:$0xff]  ;;  %495 = vmatpush.msra.mxu0 %v423_v29  ;;  %v449_v36 = vld [vmem:[%s1222_s7 + $0x1a0] sm:$0xff]  ;;  %v460_v3 = vld [vmem:[%s1222_s7 + $0x1f8] sm:$0xff] }
  0x4e   : > { %1002 = vmatpush.msra.mxu3 %v455_v30  ;;  %536 = vmatpush.msra.mxu1 %v455_v30  ;;  %v415_v37 = vld [vmem:[%s1222_s7 + $0x90] sm:$0xff]  ;;  %v413_v39 = vld [vmem:[%s1222_s7 + $0x80] sm:$0xff]  ;;  %v492_v4 = vld [vmem:[%s1222_s7 + $0x2f8] sm:$0xff] }
  0x4f   : > { %987 = vmatpush.msra.mxu2 %v421_v31  ;;  %496 = vmatpush.msra.mxu0 %v421_v31  ;;  %v447_v38 = vld [vmem:[%s1222_s7 + $0x190] sm:$0xff]  ;;  %v445_v40 = vld [vmem:[%s1222_s7 + $0x180] sm:$0xff]  ;;  %v422_v5 = vld [vmem:[%s1222_s7 + $0xc8] sm:$0xff] }
  0x50   : > { %1003 = vmatpush.msra.mxu3 %v453_v32  ;;  %537 = vmatpush.msra.mxu1 %v453_v32  ;;  %v411_v41 = vld [vmem:[%s1222_s7 + $0x70] sm:$0xff]  ;;  %v409_v43 = vld [vmem:[%s1222_s7 + $0x60] sm:$0xff]  ;;  %v1286_v7 = vld [vmem:[%s1224_s8 + $0x78] sm:$0xff] }
  0x51   : > { %988 = vmatpush.msra.mxu2 %v419_v33  ;;  %497 = vmatpush.msra.mxu0 %v419_v33  ;;  %v443_v42 = vld [vmem:[%s1222_s7 + $0x170] sm:$0xff]  ;;  %v441_v44 = vld [vmem:[%s1222_s7 + $0x160] sm:$0xff]  ;;  %v420_v9 = vld [vmem:[%s1222_s7 + $0xb8] sm:$0xff] }
  0x52   : > { %1004 = vmatpush.msra.mxu3 %v451_v34  ;;  %538 = vmatpush.msra.mxu1 %v451_v34  ;;  %v407_v45 = vld [vmem:[%s1222_s7 + $0x50] sm:$0xff]  ;;  %v405_v47 = vld [vmem:[%s1222_s7 + $0x40] sm:$0xff]  ;;  %v458_v10 = vld [vmem:[%s1222_s7 + $0x1e8] sm:$0xff] }
  0x53   : > { %989 = vmatpush.msra.mxu2 %v417_v35  ;;  %498 = vmatpush.msra.mxu0 %v417_v35  ;;  %v439_v46 = vld [vmem:[%s1222_s7 + $0x150] sm:$0xff]  ;;  %v437_v48 = vld [vmem:[%s1222_s7 + $0x140] sm:$0xff]  ;;  %v490_v12 = vld [vmem:[%s1222_s7 + $0x2e8] sm:$0xff] }
  0x54   : > { %1005 = vmatpush.msra.mxu3 %v449_v36  ;;  %539 = vmatpush.msra.mxu1 %v449_v36  ;;  %v403_v49 = vld [vmem:[%s1222_s7 + $0x30] sm:$0xff]  ;;  %v401_v51 = vld [vmem:[%s1222_s7 + $0x20] sm:$0xff]  ;;  %v418_v13 = vld [vmem:[%s1222_s7 + $0xa8] sm:$0xff] }
  0x55   : > { %990 = vmatpush.msra.mxu2 %v415_v37  ;;  %499 = vmatpush.msra.mxu0 %v415_v37  ;;  %v435_v50 = vld [vmem:[%s1222_s7 + $0x130] sm:$0xff]  ;;  %v433_v52 = vld [vmem:[%s1222_s7 + $0x120] sm:$0xff]  ;;  %v456_v14 = vld [vmem:[%s1222_s7 + $0x1d8] sm:$0xff] }
  0x56   : > { %1006 = vmatpush.msra.mxu3 %v447_v38  ;;  %540 = vmatpush.msra.mxu1 %v447_v38  ;;  %v399_v53 = vld [vmem:[%s1222_s7 + $0x10] sm:$0xff]  ;;  %v397_v55 = vld [vmem:[%s1222_s7] sm:$0xff]  ;;  %v488_v16 = vld [vmem:[%s1222_s7 + $0x2d8] sm:$0xff] }
  0x57   : > { %991 = vmatpush.msra.mxu2 %v413_v39  ;;  %500 = vmatpush.msra.mxu0 %v413_v39  ;;  %v431_v54 = vld [vmem:[%s1222_s7 + $0x110] sm:$0xff]  ;;  %v429_v56 = vld [vmem:[%s1222_s7 + $0x100] sm:$0xff]  ;;  %v416_v17 = vld [vmem:[%s1222_s7 + $0x98] sm:$0xff] }
  0x58   : > { %1007 = vmatpush.msra.mxu3 %v445_v40  ;;  %541 = vmatpush.msra.mxu1 %v445_v40  ;;  %v1260_v57 = vld [vmem:[%s1224_s8 + $0x60] sm:$0xff]  ;;  %v491_v60 = vld [vmem:[%s1222_s7 + $0x2f0] sm:$0xff]  ;;  %v454_v18 = vld [vmem:[%s1222_s7 + $0x1c8] sm:$0xff] }
  0x59   : > { %992 = vmatpush.msra.mxu2 %v411_v41  ;;  %501 = vmatpush.msra.mxu0 %v411_v41  ;;  %v489_v62 = vld [vmem:[%s1222_s7 + $0x2e0] sm:$0xff]  ;;  %v487_v2 = vld [vmem:[%s1222_s7 + $0x2d0] sm:$0xff]  ;;  %v1305_v20 = vld [vmem:[%s1224_s8 + $0x18] sm:$0xff] }
  0x5a   : > { %1008 = vmatpush.msra.mxu3 %v443_v42  ;;  %542 = vmatpush.msra.mxu1 %v443_v42  ;;  %v1272_v63 = vld [vmem:[%s1224_s8] sm:$0xff]  ;;  %v483_v11 = vld [vmem:[%s1222_s7 + $0x2b0] sm:$0xff]  ;;  %v414_v22 = vld [vmem:[%s1222_s7 + $0x88] sm:$0xff] }
  0x5b   : > { %993 = vmatpush.msra.mxu2 %v409_v43  ;;  %502 = vmatpush.msra.mxu0 %v409_v43  ;;  %v485_v6 = vld [vmem:[%s1222_s7 + $0x2c0] sm:$0xff]  ;;  %v479_v19 = vld [vmem:[%s1222_s7 + $0x290] sm:$0xff]  ;;  %v452_v23 = vld [vmem:[%s1222_s7 + $0x1b8] sm:$0xff] }
  0x5c   : > { %1009 = vmatpush.msra.mxu3 %v441_v44  ;;  %543 = vmatpush.msra.mxu1 %v441_v44  ;;  %v1289_v8 = vld [vmem:[%s1224_s8 + $0x80] sm:$0xff]  ;;  %v486_v24 = vld [vmem:[%s1222_s7 + $0x2c8] sm:$0xff]  ;;  %v1316_v26 = vld [vmem:[%s1224_s8 + $0x98] sm:$0xff] }
  0x5d   : > { %994 = vmatpush.msra.mxu2 %v407_v45  ;;  %503 = vmatpush.msra.mxu0 %v407_v45  ;;  %v481_v15 = vld [vmem:[%s1222_s7 + $0x2a0] sm:$0xff]  ;;  %v1320_v27 = vld [vmem:[%s1224_s8 + $0x90] sm:$0xff]  ;;  %v412_v28 = vld [vmem:[%s1222_s7 + $0x78] sm:$0xff] }
  0x5e   : > { %1010 = vmatpush.msra.mxu3 %v439_v46  ;;  %544 = vmatpush.msra.mxu1 %v439_v46  ;;  %v1308_v21 = vld [vmem:[%s1224_s8 + $0x20] sm:$0xff]  ;;  %v450_v29 = vld [vmem:[%s1222_s7 + $0x1a8] sm:$0xff]  ;;  %v484_v30 = vld [vmem:[%s1222_s7 + $0x2b8] sm:$0xff] }
  0x5f   : > { %995 = vmatpush.msra.mxu2 %v405_v47  ;;  %504 = vmatpush.msra.mxu0 %v405_v47  ;;  %v477_v25 = vld [vmem:[%s1222_s7 + $0x280] sm:$0xff]  ;;  %v475_v31 = vld [vmem:[%s1222_s7 + $0x270] sm:$0xff]  ;;  %v410_v32 = vld [vmem:[%s1222_s7 + $0x68] sm:$0xff] }
  0x60   : > { %1011 = vmatpush.msra.mxu3 %v437_v48  ;;  %545 = vmatpush.msra.mxu1 %v437_v48  ;;  %v448_v33 = vld [vmem:[%s1222_s7 + $0x198] sm:$0xff]  ;;  %v482_v34 = vld [vmem:[%s1222_s7 + $0x2a8] sm:$0xff]  ;;  %v473_v35 = vld [vmem:[%s1222_s7 + $0x260] sm:$0xff] }
  0x61   : > { %996 = vmatpush.msra.mxu2 %v403_v49  ;;  %505 = vmatpush.msra.mxu0 %v403_v49  ;;  %v408_v36 = vld [vmem:[%s1222_s7 + $0x58] sm:$0xff]  ;;  %v446_v37 = vld [vmem:[%s1222_s7 + $0x188] sm:$0xff]  ;;  %v471_v39 = vld [vmem:[%s1222_s7 + $0x250] sm:$0xff] }
  0x62   : > { %1012 = vmatpush.msra.mxu3 %v435_v50  ;;  %546 = vmatpush.msra.mxu1 %v435_v50  ;;  %v480_v38 = vld [vmem:[%s1222_s7 + $0x298] sm:$0xff]  ;;  %v1337_v40 = vld [vmem:[%s1224_s8 + $0x30] sm:$0xff]  ;;  %v406_v42 = vld [vmem:[%s1222_s7 + $0x48] sm:$0xff] }
  0x63   : > { %997 = vmatpush.msra.mxu2 %v401_v51  ;;  %506 = vmatpush.msra.mxu0 %v401_v51  ;;  %v1340_v41 = vld [vmem:[%s1224_s8 + $0x38] sm:$0xff]  ;;  %v478_v44 = vld [vmem:[%s1222_s7 + $0x288] sm:$0xff]  ;;  %v469_v45 = vld [vmem:[%s1222_s7 + $0x240] sm:$0xff] }
  0x64   : > { %1013 = vmatpush.msra.mxu3 %v433_v52  ;;  %547 = vmatpush.msra.mxu1 %v433_v52  ;;  %v444_v43 = vld [vmem:[%s1222_s7 + $0x178] sm:$0xff]  ;;  %v1348_v46 = vld [vmem:[%s1224_s8 + $0xb0] sm:$0xff]  ;;  %v1352_v47 = vld [vmem:[%s1224_s8 + $0xa8] sm:$0xff] }
  0x65   : > { %998 = vmatpush.msra.mxu2 %v399_v53  ;;  %507 = vmatpush.msra.mxu0 %v399_v53  ;;  %v404_v48 = vld [vmem:[%s1222_s7 + $0x38] sm:$0xff]  ;;  %v442_v49 = vld [vmem:[%s1222_s7 + $0x168] sm:$0xff]  ;;  %v467_v51 = vld [vmem:[%s1222_s7 + $0x230] sm:$0xff] }
  0x66   : > { %1014 = vmatpush.msra.mxu3 %v431_v54  ;;  %548 = vmatpush.msra.mxu1 %v431_v54  ;;  %v476_v50 = vld [vmem:[%s1222_s7 + $0x278] sm:$0xff]  ;;  %v402_v52 = vld [vmem:[%s1222_s7 + $0x28] sm:$0xff] }
  0x67   : > { %999 = vmatpush.msra.mxu2 %v397_v55  ;;  %508 = vmatpush.msra.mxu0 %v397_v55  ;;  %v440_v53 = vld [vmem:[%s1222_s7 + $0x158] sm:$0xff]  ;;  %v474_v54 = vld [vmem:[%s1222_s7 + $0x268] sm:$0xff]  ;;  %v465_v55 = vld [vmem:[%s1222_s7 + $0x220] sm:$0xff] }
  0x68   : > { %1015 = vmatpush.msra.mxu3 %v429_v56  ;;  %521 = vmatmul.f32.vlgmr.msra.gmra.mxu2 %v1260_v57 }
  0x69   : > { %562 = vmatmul.f32.vlgmr.msra.gmra.mxu3 %v1263_v58  ;;  %575 = vmatpush.msrb.mxu2 %v491_v60  ;;  %v472_v60 = vld [vmem:[%s1222_s7 + $0x258] sm:$0xff] }
  0x6a   : > { %616 = vmatpush.msrb.mxu3 %v428_v59  ;;  %549 = vmatpush.msra.mxu1 %v429_v56  ;;  %v400_v56 = vld [vmem:[%s1222_s7 + $0x18] sm:$0xff]  ;;  %v438_v59 = vld [vmem:[%s1222_s7 + $0x148] sm:$0xff] }
  0x6b   : > { %576 = vmatpush.msrb.mxu2 %v489_v62  ;;  %509 = vmatmul.f32.vlgmr.msra.gmra.mxu0 %v1272_v63  ;;  %v382_v62 = vld [vmem:[%s1224_s8 + $0x48] sm:$0xff] }
  0x6c   : > { %617 = vmatpush.msrb.mxu3 %v426_v61  ;;  %550 = vmatmul.f32.vlgmr.msra.gmra.mxu1 %v1275_v0  ;;  %v463_v61 = vld [vmem:[%s1222_s7 + $0x210] sm:$0xff] }
  0x6d   : > { %577 = vmatpush.msrb.mxu2 %v487_v2  ;;  %657 = vmatpush.msrb.mxu0 %v460_v3  ;;  %v398_v2 = vld [vmem:[%s1222_s7 + $0x8] sm:$0xff]  ;;  %v436_v3 = vld [vmem:[%s1222_s7 + $0x138] sm:$0xff] }
  0x6e   : > { %618 = vmatpush.msrb.mxu3 %v424_v1  ;;  %698 = vmatpush.msrb.mxu1 %v492_v4  ;;  %v383_v1 = vld [vmem:[%s1224_s8 + $0x50] sm:$0xff]  ;;  %v470_v4 = vld [vmem:[%s1222_s7 + $0x248] sm:$0xff] }
  0x6f   : > { %578 = vmatpush.msrb.mxu2 %v485_v6  ;;  %658 = vmatpush.msrb.mxu0 %v458_v10  ;;  %v375_v6 = vld [vmem:[%s1224_s8 + $0x10] sm:$0xff]  ;;  %v468_v10 = vld [vmem:[%s1222_s7 + $0x238] sm:$0xff] }
  0x70   : > { %619 = vmatpush.msrb.mxu3 %v422_v5  ;;  %524 = vmatmul.f32.gmra.mxu2 %v1286_v7  ;;  %v461_v5 = vld [vmem:[%s1222_s7 + $0x200] sm:$0xff] }
  0x71   : > { %565 = vmatmul.f32.gmra.mxu3 %v1289_v8  ;;  %579 = vmatpush.msrb.mxu2 %v483_v11  ;;  %v432_v11 = vld [vmem:[%s1222_s7 + $0x118] sm:$0xff] }
  0x72   : > { %620 = vmatpush.msrb.mxu3 %v420_v9  ;;  %699 = vmatpush.msrb.mxu1 %v490_v12  ;;  %v434_v9 = vld [vmem:[%s1222_s7 + $0x128] sm:$0xff] }
  0x73   : > { %659 = vmatpush.msrb.mxu0 %v456_v14  ;;  %580 = vmatpush.msrb.mxu2 %v481_v15  ;;  %v466_v12 = vld [vmem:[%s1222_s7 + $0x228] sm:$0xff]  ;;  %v464_v14 = vld [vmem:[%s1222_s7 + $0x218] sm:$0xff] }
  0x74   : > { %621 = vmatpush.msrb.mxu3 %v418_v13  ;;  %700 = vmatpush.msrb.mxu1 %v488_v16  ;;  %v430_v13 = vld [vmem:[%s1222_s7 + $0x108] sm:$0xff] }
  0x75   : > { %660 = vmatpush.msrb.mxu0 %v454_v18  ;;  %581 = vmatpush.msrb.mxu2 %v479_v19  ;;  %v462_v15 = vld [vmem:[%s1222_s7 + $0x208] sm:$0xff]  ;;  %v393_v19 = vld [vmem:[%s1224_s8 + $0xa0] sm:$0xff] }
  0x76   : > { %622 = vmatpush.msrb.mxu3 %v416_v17  ;;  %512 = vmatmul.f32.gmra.mxu0 %v1305_v20  ;;  %v378_v16 = vld [vmem:[%s1224_s8 + $0x28] sm:$0xff]  ;;  %v384_v17 = vld [vmem:[%s1224_s8 + $0x58] sm:$0xff] }
  0x77   : > { %553 = vmatmul.f32.gmra.mxu1 %v1308_v21  ;;  %661 = vmatpush.msrb.mxu0 %v452_v23  ;;  %v390_v18 = vld [vmem:[%s1224_s8 + $0x88] sm:$0xff] }
  0x78   : > { %623 = vmatpush.msrb.mxu3 %v414_v22  ;;  %701 = vmatpush.msrb.mxu1 %v486_v24 }
  0x79   : > { %582 = vmatpush.msrb.mxu2 %v477_v25  ;;  %568 = vmatmul.f32.gmra.mxu3 %v1316_v26 }
  0x7a   : > { %527 = vmatmul.f32.gmra.mxu2 %v1320_v27  ;;  %624 = vmatpush.msrb.mxu3 %v412_v28 }
  0x7b   : > { %662 = vmatpush.msrb.mxu0 %v450_v29  ;;  %702 = vmatpush.msrb.mxu1 %v484_v30 }
  0x7c   : > { %583 = vmatpush.msrb.mxu2 %v475_v31  ;;  %625 = vmatpush.msrb.mxu3 %v410_v32 }
  0x7d   : > { %663 = vmatpush.msrb.mxu0 %v448_v33  ;;  %703 = vmatpush.msrb.mxu1 %v482_v34 }
  0x7e   : > { %584 = vmatpush.msrb.mxu2 %v473_v35  ;;  %626 = vmatpush.msrb.mxu3 %v408_v36  ;;  %v357_v36 = vld [vmem:[#allocation2 + $0x30] sm:$0xff] }
  0x7f   : > { %664 = vmatpush.msrb.mxu0 %v446_v37  ;;  %704 = vmatpush.msrb.mxu1 %v480_v38 }
  0x80   : > { %585 = vmatpush.msrb.mxu2 %v471_v39  ;;  %515 = vmatmul.f32.gmra.mxu0 %v1337_v40 }
  0x81   : > { %556 = vmatmul.f32.gmra.mxu1 %v1340_v41  ;;  %627 = vmatpush.msrb.mxu3 %v406_v42 }
  0x82   : > { %665 = vmatpush.msrb.mxu0 %v444_v43  ;;  %705 = vmatpush.msrb.mxu1 %v478_v44 }
  0x83   : > { %586 = vmatpush.msrb.mxu2 %v469_v45  ;;  %571 = vmatmul.f32.gmra.mxu3 %v1348_v46 }
  0x84   : > { %530 = vmatmul.f32.gmra.mxu2 %v1352_v47  ;;  %628 = vmatpush.msrb.mxu3 %v404_v48  ;;  %v359_v48 = vld [vmem:[#allocation2 + $0x58] sm:$0xff] }
  0x85   : > { %666 = vmatpush.msrb.mxu0 %v442_v49  ;;  %706 = vmatpush.msrb.mxu1 %v476_v50 }
  0x86   : > { %587 = vmatpush.msrb.mxu2 %v467_v51  ;;  %629 = vmatpush.msrb.mxu3 %v402_v52  ;;  %v360_v52 = vld [vmem:[#allocation2 + $0x18] sm:$0xff] }
  0x87   : > { %667 = vmatpush.msrb.mxu0 %v440_v53  ;;  %707 = vmatpush.msrb.mxu1 %v474_v54 }
  0x88   : > { %588 = vmatpush.msrb.mxu2 %v465_v55  ;;  %630 = vmatpush.msrb.mxu3 %v400_v56 }
  0x89   : > { %668 = vmatpush.msrb.mxu0 %v438_v59  ;;  %708 = vmatpush.msrb.mxu1 %v472_v60 }
  0x8a   : > { %589 = vmatpush.msrb.mxu2 %v463_v61  ;;  %518 = vmatmul.f32.gmra.mxu0 %v382_v62 }
  0x8b   : > { %559 = vmatmul.f32.gmra.mxu1 %v383_v1  ;;  %631 = vmatpush.msrb.mxu3 %v398_v2 }
  0x8c   : > { %669 = vmatpush.msrb.mxu0 %v436_v3  ;;  %709 = vmatpush.msrb.mxu1 %v470_v4  ;;  %v362_v4 = vld [vmem:[#allocation2 + $0x68] sm:$0xff] }
  0x8d   : > { %590 = vmatpush.msrb.mxu2 %v461_v5  ;;  %632 = vmatmul.f32.vlgmr.msrb.gmra.mxu3 %v1272_v63  ;;  %v381_v63 = vld [vmem:[%s1224_s8 + $0x40] sm:$0xff] }
  0x8e   : > { %591 = vmatmul.f32.vlgmr.msrb.gmra.mxu2 %v375_v6  ;;  %670 = vmatpush.msrb.mxu0 %v434_v9 }
  0x8f   : > { %710 = vmatpush.msrb.mxu1 %v468_v10 }
  0x90   : > { %671 = vmatpush.msrb.mxu0 %v432_v11 }
  0x91   : > { %711 = vmatpush.msrb.mxu1 %v466_v12 }
  0x92   : > { %672 = vmatpush.msrb.mxu0 %v430_v13 }
  0x93   : > { %712 = vmatpush.msrb.mxu1 %v464_v14  ;;  %673 = vmatmul.f32.vlgmr.msrb.gmra.mxu0 %v1275_v0  ;;  %v387_v0 = vld [vmem:[%s1224_s8 + $0x70] sm:$0xff]  ;;  %v363_v14 = vld [vmem:[#allocation2 + $0x8] sm:$0xff] }
  0x95   : > { %713 = vmatpush.msrb.mxu1 %v462_v15  ;;  %635 = vmatmul.f32.gmra.mxu3 %v1305_v20  ;;  %v396_v20 = vld [vmem:[%s1224_s8 + $0xb8] sm:$0xff] }
  0x96   : > { %594 = vmatmul.f32.gmra.mxu2 %v378_v16  ;;  %714 = vmatmul.f32.vlgmr.msrb.gmra.mxu1 %v375_v6 }
  0x9b   : > { %676 = vmatmul.f32.gmra.mxu0 %v1308_v21 }
  0x9d   : > { %638 = vmatmul.f32.gmra.mxu3 %v1337_v40  ;;  %v358_v40 = vld [vmem:[#allocation2] sm:$0xff] }
  0x9e   : > { %597 = vmatmul.f32.gmra.mxu2 %v381_v63  ;;  %717 = vmatmul.f32.gmra.mxu1 %v378_v16 }
  0xa3   : > { %679 = vmatmul.f32.gmra.mxu0 %v1340_v41 }
  0xa5   : > { %641 = vmatmul.f32.gmra.mxu3 %v382_v62  ;;  %v361_v62 = vld [vmem:[#allocation2 + $0x50] sm:$0xff] }
  0xa6   : > { %600 = vmatmul.f32.gmra.mxu2 %v384_v17  ;;  %720 = vmatmul.f32.gmra.mxu1 %v381_v63 }
  0xab   : > { %682 = vmatmul.f32.gmra.mxu0 %v383_v1 }
  0xad   : > { %644 = vmatmul.f32.gmra.mxu3 %v1260_v57 }
  0xae   : > { %603 = vmatmul.f32.gmra.mxu2 %v387_v0  ;;  %723 = vmatmul.f32.gmra.mxu1 %v384_v17  ;;  %v364_v17 = vld [vmem:[#allocation2 + $0x48] sm:$0xff] }
  0xb3   : > { %685 = vmatmul.f32.gmra.mxu0 %v1263_v58 }
  0xb5   : > { %647 = vmatmul.f32.gmra.mxu3 %v1286_v7 }
  0xb6   : > { %606 = vmatmul.f32.gmra.mxu2 %v390_v18  ;;  %726 = vmatmul.f32.gmra.mxu1 %v387_v0 }
  0xbb   : > { %688 = vmatmul.f32.gmra.mxu0 %v1289_v8 }
  0xbd   : > { %650 = vmatmul.f32.gmra.mxu3 %v1320_v27 }
  0xbe   : > { %609 = vmatmul.f32.gmra.mxu2 %v393_v19  ;;  %729 = vmatmul.f32.gmra.mxu1 %v390_v18 }
  0xc3   : > { %691 = vmatmul.f32.gmra.mxu0 %v1316_v26 }
  0xc5   : > { %653 = vmatmul.f32.gmra.mxu3 %v1352_v47 }
  0xc6   : > { %612 = vmatmul.f32.gmra.mxu2 %v396_v20  ;;  %732 = vmatmul.f32.gmra.mxu1 %v393_v19 }
  0xcb   : > { %694 = vmatmul.f32.gmra.mxu0 %v1348_v46 }
  0xce   : > { %735 = vmatmul.f32.gmra.mxu1 %v396_v20 }
  0xe8   : > { %v510_v57 = vpop.f32.mrf.mxu0 }
  0xe9   : > { %v551_v8 = vpop.f32.mrf.mxu1 }
  0xea   : > { %v552_v33 = vadd.f32 %v551_v8, %v510_v57 }
  0xeb   : > { %v1403_v58 = vpop.f32.mrf.mxu2 }
  0xec   : > { %v1405_v7 = vpop.f32.mrf.mxu3 }
  0xed   : > { %v564_v57 = vadd.f32 %v1405_v7, %v1403_v58  ;;  %v367_v58 = vld [vmem:[#allocation2 + $0x10] sm:$0xff] }
  0xf3   : > { %v513_v21 = vpop.f32.mrf.mxu0  ;;  %v1407_v22 = vpop.f32.mrf.mxu2 }
  0xf4   : > { %v1409_v23 = vpop.f32.mrf.mxu3  ;;  %v554_v24 = vpop.f32.mrf.mxu1 }
  0xf5   : > { %v555_v45 = vadd.f32 %v554_v24, %v513_v21  ;;  %v365_v24 = vld [vmem:[#allocation2 + $0x40] sm:$0xff] }
  0xfc   : > { %v1411_v25 = vpop.f32.mrf.mxu3 }
  0xfd   : > { %v516_v26 = vpop.f32.mrf.mxu0  ;;  %v1413_v27 = vpop.f32.mrf.mxu2 }
  0xfe   : > { %v557_v28 = vpop.f32.mrf.mxu1 }
  0xff   : > { %v558_v59 = vadd.f32 %v557_v28, %v516_v26 }
 0x106   : > { %v1415_v29 = vpop.f32.mrf.mxu3 }
 0x107   : > { %v519_v30 = vpop.f32.mrf.mxu0  ;;  %v1417_v31 = vpop.f32.mrf.mxu2 }
 0x108   : > { %v560_v32 = vpop.f32.mrf.mxu1 }
 0x109   : > { %v561_v11 = vadd.f32 %v560_v32, %v519_v30  ;;  %v366_v32 = vld [vmem:[#allocation2 + $0x20] sm:$0xff] }
 0x110   : > { %v633_v34 = vpop.f32.mrf.mxu3  ;;  %v674_v35 = vpop.f32.mrf.mxu0 }
 0x111   : > { %v592_v37 = vpop.f32.mrf.mxu2  ;;  %v675_v38 = vadd.f32 %v674_v35, %v633_v34 }
 0x112   : > { %v593_v39 = vadd.f32 %v592_v37, %v552_v33  ;;  %v567_v37 = vadd.f32 %v1409_v23, %v1407_v22  ;;  %v369_v22 = vld [vmem:[#allocation2 + $0x60] sm:$0xff] }
 0x113   : > { %v715_v41 = vpop.f32.mrf.mxu1 }
 0x114   : > { %v739_v42 = vadd.f32 %v593_v39, %v357_v36  ;;  %v716_v43 = vadd.f32 %v715_v41, %v675_v38 }
 0x116   : > { %755 = vst [vmem:[#allocation2 + $0x30] sm:$0xff] %v739_v42  ;;  %v740_v44 = vadd.f32 %v716_v43, %v358_v40  ;;  %v368_v42 = vld [vmem:[#allocation2 + $0x38] sm:$0xff] }
 0x118   : > { %756 = vst [vmem:[#allocation2] sm:$0xff] %v740_v44  ;;  %v636_v46 = vpop.f32.mrf.mxu3  ;;  %v677_v47 = vpop.f32.mrf.mxu0 }
 0x119   : > { %v595_v49 = vpop.f32.mrf.mxu2  ;;  %v678_v50 = vadd.f32 %v677_v47, %v636_v46  ;;  %v570_v47 = vadd.f32 %v1411_v25, %v1413_v27  ;;  %v371_v25 = vld [vmem:[#allocation2 + $0x78] sm:$0xff] }
 0x11a   : > { %v596_v51 = vadd.f32 %v595_v49, %v555_v45 }
 0x11b   : > { %v718_v53 = vpop.f32.mrf.mxu1 }
 0x11c   : > { %v741_v54 = vadd.f32 %v596_v51, %v359_v48  ;;  %v719_v55 = vadd.f32 %v718_v53, %v678_v50 }
 0x11e   : > { %757 = vst [vmem:[#allocation2 + $0x58] sm:$0xff] %v741_v54  ;;  %v742_v56 = vadd.f32 %v719_v55, %v360_v52  ;;  %v370_v52 = vld [vmem:[#allocation2 + $0x70] sm:$0xff] }
 0x120   : > { %758 = vst [vmem:[#allocation2 + $0x18] sm:$0xff] %v742_v56  ;;  %v639_v60 = vpop.f32.mrf.mxu3  ;;  %v680_v61 = vpop.f32.mrf.mxu0 }
 0x121   : > { %v598_v1 = vpop.f32.mrf.mxu2  ;;  %v681_v2 = vadd.f32 %v680_v61, %v639_v60 }
 0x122   : > { %v599_v3 = vadd.f32 %v598_v1, %v558_v59  ;;  %v573_v59 = vadd.f32 %v1415_v29, %v1417_v31 }
 0x123   : > { %v721_v5 = vpop.f32.mrf.mxu1 }
 0x124   : > { %v743_v6 = vadd.f32 %v599_v3, %v361_v62  ;;  %v722_v9 = vadd.f32 %v721_v5, %v681_v2  ;;  %v372_v2 = vld [vmem:[#allocation2 + $0x28] sm:$0xff] }
 0x126   : > { %759 = vst [vmem:[#allocation2 + $0x50] sm:$0xff] %v743_v6  ;;  %v744_v10 = vadd.f32 %v722_v9, %v362_v4 }
 0x128   : > { %760 = vst [vmem:[#allocation2 + $0x68] sm:$0xff] %v744_v10  ;;  %v642_v12 = vpop.f32.mrf.mxu3  ;;  %v683_v13 = vpop.f32.mrf.mxu0 }
 0x129   : > { %v601_v15 = vpop.f32.mrf.mxu2  ;;  %v684_v16 = vadd.f32 %v683_v13, %v642_v12 }
 0x12a   : > { %v602_v63 = vadd.f32 %v601_v15, %v561_v11 }
 0x12b   : > { %v724_v0 = vpop.f32.mrf.mxu1 }
 0x12c   : > { %v745_v18 = vadd.f32 %v602_v63, %v363_v14  ;;  %v725_v19 = vadd.f32 %v724_v0, %v684_v16 }
 0x12e   : > { %761 = vst [vmem:[#allocation2 + $0x8] sm:$0xff] %v745_v18  ;;  %v746_v20 = vadd.f32 %v725_v19, %v364_v17 }
 0x130   : > { %762 = vst [vmem:[#allocation2 + $0x48] sm:$0xff] %v746_v20  ;;  %v645_v8 = vpop.f32.mrf.mxu3  ;;  %v686_v21 = vpop.f32.mrf.mxu0 }
 0x131   : > { %v604_v26 = vpop.f32.mrf.mxu2  ;;  %v687_v28 = vadd.f32 %v686_v21, %v645_v8 }
 0x132   : > { %v605_v30 = vadd.f32 %v604_v26, %v564_v57 }
 0x133   : > { %v727_v33 = vpop.f32.mrf.mxu1 }
 0x134   : > { %v747_v34 = vadd.f32 %v605_v30, %v365_v24  ;;  %v728_v35 = vadd.f32 %v727_v33, %v687_v28 }
 0x136   : > { %763 = vst [vmem:[#allocation2 + $0x40] sm:$0xff] %v747_v34  ;;  %v748_v36 = vadd.f32 %v728_v35, %v366_v32 }
 0x138   : > { %764 = vst [vmem:[#allocation2 + $0x20] sm:$0xff] %v748_v36  ;;  %v648_v38 = vpop.f32.mrf.mxu3  ;;  %v689_v39 = vpop.f32.mrf.mxu0 }
 0x139   : > { %v607_v7 = vpop.f32.mrf.mxu2  ;;  %v690_v40 = vadd.f32 %v689_v39, %v648_v38 }
 0x13a   : > { %v608_v41 = vadd.f32 %v607_v7, %v567_v37 }
 0x13b   : > { %v730_v43 = vpop.f32.mrf.mxu1 }
 0x13c   : > { %v749_v44 = vadd.f32 %v608_v41, %v367_v58  ;;  %v731_v45 = vadd.f32 %v730_v43, %v690_v40 }
 0x13e   : > { %765 = vst [vmem:[#allocation2 + $0x10] sm:$0xff] %v749_v44  ;;  %v750_v46 = vadd.f32 %v731_v45, %v368_v42 }
 0x140   : > { %766 = vst [vmem:[#allocation2 + $0x38] sm:$0xff] %v750_v46  ;;  %v651_v48 = vpop.f32.mrf.mxu3  ;;  %v692_v49 = vpop.f32.mrf.mxu0 }
 0x141   : > { %v610_v23 = vpop.f32.mrf.mxu2  ;;  %v693_v50 = vadd.f32 %v692_v49, %v651_v48 }
 0x142   : > { %v611_v51 = vadd.f32 %v610_v23, %v570_v47 }
 0x143   : > { %v733_v53 = vpop.f32.mrf.mxu1 }
 0x144   : > { %v751_v54 = vadd.f32 %v611_v51, %v369_v22  ;;  %v734_v55 = vadd.f32 %v733_v53, %v693_v50 }
 0x146   : > { %767 = vst [vmem:[#allocation2 + $0x60] sm:$0xff] %v751_v54  ;;  %v752_v56 = vadd.f32 %v734_v55, %v370_v52 }
 0x148   : > { %768 = vst [vmem:[#allocation2 + $0x70] sm:$0xff] %v752_v56  ;;  %v654_v60 = vpop.f32.mrf.mxu3  ;;  %v695_v61 = vpop.f32.mrf.mxu0 }
 0x149   : > { %v613_v27 = vpop.f32.mrf.mxu2  ;;  %v696_v62 = vadd.f32 %v695_v61, %v654_v60 }
 0x14a   : > { %v614_v1 = vadd.f32 %v613_v27, %v573_v59 }
 0x14b   : > { %v736_v3 = vpop.f32.mrf.mxu1 }
 0x14c   : > { %v753_v4 = vadd.f32 %v614_v1, %v371_v25  ;;  %v737_v5 = vadd.f32 %v736_v3, %v696_v62  ;;  %774 = sbr.rel (%p977_p11) target bundleno = 360 (0x168), region = 63 }
 0x14e   : > { %769 = vst [vmem:[#allocation2 + $0x78] sm:$0xff] %v753_v4  ;;  %v754_v6 = vadd.f32 %v737_v5, %v372_v2 }
 0x150   : > { %770 = vst [vmem:[#allocation2 + $0x28] sm:$0xff] %v754_v6 }
 0x151   : > { %v775_v9 = vld [vmem:[#allocation2 + $0x30] sm:$0xff]  ;;  %v791_v29 = vld [vmem:[%s1496_s2] sm:$0x3]  ;;  %v777_v12 = vld [vmem:[#allocation2 + $0x58] sm:$0xff] }
 0x152   : > { %v776_v31 = vld [vmem:[#allocation2] sm:$0xff]  ;;  %v793_v10 = vperm.slane %v791_v29, 0  ;;  %v794_v11 = vperm.slane %v791_v29, 1  ;;  %v778_v13 = vld [vmem:[#allocation2 + $0x18] sm:$0xff]  ;;  %v779_v14 = vld [vmem:[#allocation2 + $0x50] sm:$0xff] }
 0x153   : > { %v780_v15 = vld [vmem:[#allocation2 + $0x68] sm:$0xff]  ;;  %v783_v8 = vld [vmem:[#allocation2 + $0x40] sm:$0xff]  ;;  %v785_v34 = vld [vmem:[#allocation2 + $0x10] sm:$0xff] }
 0x154   : > { %v781_v16 = vld [vmem:[#allocation2 + $0x8] sm:$0xff]  ;;  %v797_v63 = vadd.f32 %v793_v10, %v775_v9  ;;  %v798_v17 = vadd.f32 %v794_v11, %v776_v31  ;;  %v799_v0 = vadd.f32 %v793_v10, %v777_v12  ;;  %v800_v18 = vadd.f32 %v794_v11, %v778_v13  ;;  %v784_v30 = vld [vmem:[#allocation2 + $0x20] sm:$0xff]  ;;  %v786_v37 = vld [vmem:[#allocation2 + $0x38] sm:$0xff] }
 0x155   : > { %v782_v19 = vld [vmem:[#allocation2 + $0x48] sm:$0xff]  ;;  %v801_v20 = vadd.f32 %v793_v10, %v779_v14  ;;  %v802_v57 = vadd.f32 %v794_v11, %v780_v15  ;;  %v803_v28 = vadd.f32 %v793_v10, %v781_v16  ;;  %v805_v36 = vadd.f32 %v793_v10, %v783_v8  ;;  %v787_v58 = vld [vmem:[#allocation2 + $0x60] sm:$0xff]  ;;  %v788_v41 = vld [vmem:[#allocation2 + $0x70] sm:$0xff] }
 0x156   : > { %v813_v21 = vmax.f32 %v797_v63, 0.0  ;;  %v814_v24 = vmax.f32 %v798_v17, 0.0  ;;  %v815_v26 = vmax.f32 %v799_v0, 0.0  ;;  %v816_v32 = vmax.f32 %v800_v18, 0.0  ;;  %v789_v44 = vld [vmem:[#allocation2 + $0x78] sm:$0xff] }
 0x157   : > { %v804_v33 = vadd.f32 %v794_v11, %v782_v19  ;;  %v817_v35 = vmax.f32 %v801_v20, 0.0  ;;  %v818_v38 = vmax.f32 %v802_v57, 0.0  ;;  %v806_v39 = vadd.f32 %v794_v11, %v784_v30  ;;  %v790_v47 = vld [vmem:[#allocation2 + $0x28] sm:$0xff] }
 0x158   : > { %829 = vst [vmem:[%s1497_s3] sm:$0xff] %v813_v21  ;;  %v819_v7 = vmax.f32 %v803_v28, 0.0  ;;  %v807_v40 = vadd.f32 %v793_v10, %v785_v34  ;;  %v808_v43 = vadd.f32 %v794_v11, %v786_v37  ;;  %v821_v45 = vmax.f32 %v805_v36, 0.0 }
 0x159   : > { %830 = vst [vmem:[%s1497_s3 + $0x8] sm:$0xff] %v814_v24  ;;  %v820_v42 = vmax.f32 %v804_v33, 0.0  ;;  %v809_v46 = vadd.f32 %v793_v10, %v787_v58  ;;  %v822_v48 = vmax.f32 %v806_v39, 0.0  ;;  %v810_v49 = vadd.f32 %v794_v11, %v788_v41 }
 0x15a   : > { %831 = vst [vmem:[%s1497_s3 + $0x10] sm:$0xff] %v815_v26  ;;  %v823_v22 = vmax.f32 %v807_v40, 0.0  ;;  %v811_v23 = vadd.f32 %v793_v10, %v789_v44  ;;  %v824_v50 = vmax.f32 %v808_v43, 0.0  ;;  %v812_v51 = vadd.f32 %v794_v11, %v790_v47 }
 0x15b   : > { %832 = vst [vmem:[%s1497_s3 + $0x18] sm:$0xff] %v816_v32  ;;  %v825_v52 = vmax.f32 %v809_v46, 0.0  ;;  %v826_v53 = vmax.f32 %v810_v49, 0.0 }
 0x15c   : > { %833 = vst [vmem:[%s1497_s3 + $0x20] sm:$0xff] %v817_v35  ;;  %v827_v54 = vmax.f32 %v811_v23, 0.0  ;;  %v828_v55 = vmax.f32 %v812_v51, 0.0 }
 0x15d   : > { %834 = vst [vmem:[%s1497_s3 + $0x28] sm:$0xff] %v818_v38 }
 0x15e   : > { %835 = vst [vmem:[%s1497_s3 + $0x30] sm:$0xff] %v819_v7 }
 0x15f   : > { %836 = vst [vmem:[%s1497_s3 + $0x38] sm:$0xff] %v820_v42 }
 0x160   : > { %837 = vst [vmem:[%s1497_s3 + $0x40] sm:$0xff] %v821_v45 }
 0x161   : > { %838 = vst [vmem:[%s1497_s3 + $0x48] sm:$0xff] %v822_v48 }
 0x162   : > { %839 = vst [vmem:[%s1497_s3 + $0x50] sm:$0xff] %v823_v22 }
 0x163   : > { %840 = vst [vmem:[%s1497_s3 + $0x58] sm:$0xff] %v824_v50 }
 0x164   : > { %841 = vst [vmem:[%s1497_s3 + $0x60] sm:$0xff] %v825_v52 }
 0x165   : > { %842 = vst [vmem:[%s1497_s3 + $0x68] sm:$0xff] %v826_v53 }
 0x166   : > { %843 = vst [vmem:[%s1497_s3 + $0x70] sm:$0xff] %v827_v54 }
 0x167   : > { %844 = vst [vmem:[%s1497_s3 + $0x78] sm:$0xff] %v828_v55 }
 0x168 PF: > { %s13_s16 = sadd.s32 1, %s1097_s16   ;;  %s1498_s12 = smov %s1085_s13 }
 0x169   : > { %p10_p12 = scmp.ge.s32.totalorder %s13_s16, 5   ;;  %s1499_s13 = smov %s1155_s20 }
 0x16a   : > { %s1500_s14 = smov %s1093_s15  ;;  %s1501_s15 = smov %s1503_s17 }
 0x16b   :  { %12 = sbr.rel (!%p10_p12) target bundleno = 3 (0x3), region = 104 }

// kernel: vgg_mse.22
= control target key start
LH: loop header
LB: loop body
LE: loop exit
PB: predicated region body
PF: predicated region fallthrough
CT: control target
= control target key end

     0   :  { %s1120_s12 = smov 0   ;;  %s1122_s13 = smov 0   ;;  %s1494_s0 = inlined_call_operand.vmem [shape: f32[64,2304], index: 0, kind: input, shape index: {}]   ;;  %s1495_s1 = inlined_call_operand.vmem [shape: f32[2304,256], index: 1, kind: input, shape index: {}]   ;;  %s1496_s2 = inlined_call_operand.vmem [shape: f32[1,256], index: 2, kind: input, shape index: {}]   ;;  %s1497_s3 = inlined_call_operand.vmem [shape: f32[64,256], index: 3, kind: output, shape index: {}]  }
   0x1   :  { %s1124_s14 = smov 0   ;;  %s1126_s15 = smov 0  }
   0x2   :  { %s1128_s16 = smov 0  }
   0x3 LB: > { %s25_s17 = sadd.s32 1, %s1093_s15  ;;  %p48_p1 = scmp.ne.s32.totalorder %s1085_s13, %s1081_s12  ;;  %s1097_s16 = sphi %s1128_s16, %s13_s16   ;;  %s1093_s15 = sphi %s1126_s15, %s1501_s15   ;;  %s1089_s14 = sphi %s1124_s14, %s1500_s14   ;;  %s1085_s13 = sphi %s1122_s13, %s1499_s13   ;;  %s1081_s12 = sphi %s1120_s12, %s1498_s12  }
   0x4   : > { %p26_p0 = scmp.ge.s32.totalorder %s25_s17, 6  ;;  %p49_p2 = scmp.eq.s32.totalorder %s1097_s16, 0 }
   0x5   : > { %s41_s19 = sadd.s32 1, %s1085_s13  ;;  %p971_p5 = scmp.ge.s32.totalorder %s1097_s16, 6 }
   0x6   : > { %s1503_s17 = smov (%p26_p0, %s25_s17), 0  ;;  %p50_p3 = por %p49_p2, %p48_p1 }
   0x7   : > { %s37_s18 = ssub.s32 %s1093_s15, %s1503_s17  ;;  %164 = sbr.rel (%p971_p5) target bundleno = 41 (0x29), region = 20 }
   0x8   : > { %p39_p4 = scmp.eq.s32.totalorder %s37_s18, 0 }
   0xa   : > { %s1155_s20 = scalar_select %p39_p4, %s1085_s13, %s41_s19  }
   0xc   : > { %167 = sbr.rel (!%p50_p3) target bundleno = 41 (0x29), region = 24  ;;  %s169_s21 = sand.u32 (%p50_p3), 1, %s1085_s13  }
   0xd   : > { %s982_s22 = smul.u32 (%p50_p3), 24, %s1093_s15 }
   0xe   : > { %s1016_s23 = smul.u32 (%p50_p3), 192, %s169_s21 }
   0xf   : > { %s1163_s26 = scalar_lea.vmem (%p50_p3), %s1494_s0, %s982_s22 }
  0x10   : > { %v190_v0 = vld [vmem:[%s1163_s26] sm:$0xff] (%p50_p3)  ;;  %v192_v1 = vld [vmem:[%s1163_s26 + $0x8] sm:$0xff] (%p50_p3)  ;;  %v194_v2 = vld [vmem:[%s1163_s26 + $0x10] sm:$0xff] (%p50_p3)  ;;  %s1168_s27 = scalar_lea.vmem (%p50_p3), [#allocation3], %s1016_s23 }
  0x11   : > { %191 = vst [vmem:[%s1168_s27] sm:$0xff] %v190_v0  ;;  %v196_v3 = vld [vmem:[%s1163_s26 + $0x90] sm:$0xff]  ;;  %v198_v4 = vld [vmem:[%s1163_s26 + $0x98] sm:$0xff]  ;;  %v200_v5 = vld [vmem:[%s1163_s26 + $0xa0] sm:$0xff] }
  0x12   : > { %193 = vst [vmem:[%s1168_s27 + $0x8] sm:$0xff] %v192_v1  ;;  %v202_v6 = vld [vmem:[%s1163_s26 + $0x120] sm:$0xff]  ;;  %v204_v7 = vld [vmem:[%s1163_s26 + $0x128] sm:$0xff]  ;;  %v206_v8 = vld [vmem:[%s1163_s26 + $0x130] sm:$0xff] }
  0x13   : > { %195 = vst [vmem:[%s1168_s27 + $0x10] sm:$0xff] %v194_v2  ;;  %v208_v9 = vld [vmem:[%s1163_s26 + $0x1b0] sm:$0xff]  ;;  %v210_v10 = vld [vmem:[%s1163_s26 + $0x1b8] sm:$0xff]  ;;  %v212_v11 = vld [vmem:[%s1163_s26 + $0x1c0] sm:$0xff] }
  0x14   : > { %197 = vst [vmem:[%s1168_s27 + $0x18] sm:$0xff] %v196_v3  ;;  %v214_v12 = vld [vmem:[%s1163_s26 + $0x240] sm:$0xff]  ;;  %v216_v13 = vld [vmem:[%s1163_s26 + $0x248] sm:$0xff]  ;;  %v218_v14 = vld [vmem:[%s1163_s26 + $0x250] sm:$0xff] }
  0x15   : > { %199 = vst [vmem:[%s1168_s27 + $0x20] sm:$0xff] %v198_v4  ;;  %v220_v15 = vld [vmem:[%s1163_s26 + $0x2d0] sm:$0xff]  ;;  %v222_v16 = vld [vmem:[%s1163_s26 + $0x2d8] sm:$0xff]  ;;  %v224_v17 = vld [vmem:[%s1163_s26 + $0x2e0] sm:$0xff] }
  0x16   : > { %201 = vst [vmem:[%s1168_s27 + $0x28] sm:$0xff] %v200_v5  ;;  %v226_v18 = vld [vmem:[%s1163_s26 + $0x360] sm:$0xff]  ;;  %v228_v19 = vld [vmem:[%s1163_s26 + $0x368] sm:$0xff]  ;;  %v230_v20 = vld [vmem:[%s1163_s26 + $0x370] sm:$0xff] }
  0x17   : > { %203 = vst [vmem:[%s1168_s27 + $0x30] sm:$0xff] %v202_v6  ;;  %v232_v21 = vld [vmem:[%s1163_s26 + $0x3f0] sm:$0xff]  ;;  %v234_v22 = vld [vmem:[%s1163_s26 + $0x3f8] sm:$0xff]  ;;  %v236_v23 = vld [vmem:[%s1163_s26 + $0x400] sm:$0xff] }
  0x18   : > { %205 = vst [vmem:[%s1168_s27 + $0x38] sm:$0xff] %v204_v7 }
  0x19   : > { %207 = vst [vmem:[%s1168_s27 + $0x40] sm:$0xff] %v206_v8 }
  0x1a   : > { %209 = vst [vmem:[%s1168_s27 + $0x48] sm:$0xff] %v208_v9 }
  0x1b   : > { %211 = vst [vmem:[%s1168_s27 + $0x50] sm:$0xff] %v210_v10 }
  0x1c   : > { %213 = vst [vmem:[%s1168_s27 + $0x58] sm:$0xff] %v212_v11 }
  0x1d   : > { %215 = vst [vmem:[%s1168_s27 + $0x60] sm:$0xff] %v214_v12 }
  0x1e   : > { %217 = vst [vmem:[%s1168_s27 + $0x68] sm:$0xff] %v216_v13 }
  0x1f   : > { %219 = vst [vmem:[%s1168_s27 + $0x70] sm:$0xff] %v218_v14 }
  0x20   : > { %221 = vst [vmem:[%s1168_s27 + $0x78] sm:$0xff] %v220_v15 }
  0x21   : > { %223 = vst [vmem:[%s1168_s27 + $0x80] sm:$0xff] %v222_v16 }
  0x22   : > { %225 = vst [vmem:[%s1168_s27 + $0x88] sm:$0xff] %v224_v17 }
  0x23   : > { %227 = vst [vmem:[%s1168_s27 + $0x90] sm:$0xff] %v226_v18 }
  0x24   : > { %229 = vst [vmem:[%s1168_s27 + $0x98] sm:$0xff] %v228_v19 }
  0x25   : > { %231 = vst [vmem:[%s1168_s27 + $0xa0] sm:$0xff] %v230_v20 }
  0x26   : > { %233 = vst [vmem:[%s1168_s27 + $0xa8] sm:$0xff] %v232_v21 }
  0x27   : > { %235 = vst [vmem:[%s1168_s27 + $0xb0] sm:$0xff] %v234_v22 }
  0x28   : > { %237 = vst [vmem:[%s1168_s27 + $0xb8] sm:$0xff] %v236_v23 }
  0x29 PF: > { %p973_p6 = scmp.ge.s32.totalorder %s1097_s16, 1  ;;  %p257_p7 = scmp.lt.s32.totalorder %s1097_s16, 7 }
  0x2b   : > { %p258_p8 = pnand %p973_p6, %p257_p7 }
  0x2c   : > { %s264_s28 = sand.u32 (!%p258_p8), 1, %s1081_s12   ;;  %s308_s29 = smul.u32 (!%p258_p8), 48, %s1089_s14 }
  0x2d   : > { %261 = sbr.rel (%p258_p8) target bundleno = 360 (0x168), region = 51  ;;  %p976_p10 = scmp.ne.s32.totalorder (!%p258_p8), %s1089_s14, 0 }
  0x2e   : > { %s1017_s30 = smul.u32 (!%p258_p8), 192, %s264_s28  ;;  %p310_p9 = scmp.lt.s32.totalorder (!%p258_p8), %s308_s29, 287 }
  0x30   : > { %s1224_s8 = scalar_lea.vmem (!%p258_p8), [#allocation3], %s1017_s30 }
  0x32   : > { %s1505_s29 = smov (!%p310_p9, %s308_s29), 287  ;;  %340 = sbr.rel (%p976_p10) target bundleno = 72 (0x48), region = 59 }
  0x33   : > { %s983_s4 = sshll.u32 %s1505_s29, 4 }
  0x34   : > { %s1222_s7 = scalar_lea.vmem %s1495_s1, %s983_s4 }
  0x37   : > { %v1099_v24 = vmov 0.0  }
  0x38   : > { %341 = vst [vmem:[#allocation2 + $0x30] sm:$0xff] %v1099_v24 }
  0x39   : > { %342 = vst [vmem:[#allocation2] sm:$0xff] %v1099_v24 }
  0x3a   : > { %343 = vst [vmem:[#allocation2 + $0x58] sm:$0xff] %v1099_v24 }
  0x3b   : > { %344 = vst [vmem:[#allocation2 + $0x18] sm:$0xff] %v1099_v24 }
  0x3c   : > { %345 = vst [vmem:[#allocation2 + $0x50] sm:$0xff] %v1099_v24 }
  0x3d   : > { %346 = vst [vmem:[#allocation2 + $0x68] sm:$0xff] %v1099_v24 }
  0x3e   : > { %347 = vst [vmem:[#allocation2 + $0x8] sm:$0xff] %v1099_v24 }
  0x3f   : > { %348 = vst [vmem:[#allocation2 + $0x48] sm:$0xff] %v1099_v24 }
  0x40   : > { %349 = vst [vmem:[#allocation2 + $0x40] sm:$0xff] %v1099_v24 }
  0x41   : > { %350 = vst [vmem:[#allocation2 + $0x20] sm:$0xff] %v1099_v24 }
  0x42   : > { %351 = vst [vmem:[#allocation2 + $0x10] sm:$0xff] %v1099_v24 }
  0x43   : > { %352 = vst [vmem:[#allocation2 + $0x38] sm:$0xff] %v1099_v24 }
  0x44   : > { %353 = vst [vmem:[#allocation2 + $0x60] sm:$0xff] %v1099_v24 }
  0x45   : > { %354 = vst [vmem:[#allocation2 + $0x70] sm:$0xff] %v1099_v24 }
  0x46   : > { %355 = vst [vmem:[#allocation2 + $0x78] sm:$0xff] %v1099_v24 }
  0x47   : > { %356 = vst [vmem:[#allocation2 + $0x28] sm:$0xff] %v1099_v24 }
  0x48 PF: > { %v427_v25 = vld [vmem:[%s1222_s7 + $0xf0] sm:$0xff]  ;;  %v425_v27 = vld [vmem:[%s1222_s7 + $0xe0] sm:$0xff]  ;;  %v1263_v58 = vld [vmem:[%s1224_s8 + $0x68] sm:$0xff]  ;;  %p977_p11 = scmp.ne.s32.totalorder %s1089_s14, 5 }
  0x49   : > { %v459_v26 = vld [vmem:[%s1222_s7 + $0x1f0] sm:$0xff]  ;;  %984 = vmatpush.msra.mxu2 %v427_v25  ;;  %v457_v28 = vld [vmem:[%s1222_s7 + $0x1e0] sm:$0xff]  ;;  %493 = vmatpush.msra.mxu0 %v427_v25  ;;  %v428_v59 = vld [vmem:[%s1222_s7 + $0xf8] sm:$0xff] }
  0x4a   : > { %1000 = vmatpush.msra.mxu3 %v459_v26  ;;  %v423_v29 = vld [vmem:[%s1222_s7 + $0xd0] sm:$0xff]  ;;  %534 = vmatpush.msra.mxu1 %v459_v26  ;;  %v421_v31 = vld [vmem:[%s1222_s7 + $0xc0] sm:$0xff]  ;;  %v426_v61 = vld [vmem:[%s1222_s7 + $0xe8] sm:$0xff] }
  0x4b   : > { %v455_v30 = vld [vmem:[%s1222_s7 + $0x1d0] sm:$0xff]  ;;  %985 = vmatpush.msra.mxu2 %v425_v27  ;;  %v453_v32 = vld [vmem:[%s1222_s7 + $0x1c0] sm:$0xff]  ;;  %494 = vmatpush.msra.mxu0 %v425_v27  ;;  %v1275_v0 = vld [vmem:[%s1224_s8 + $0x8] sm:$0xff] }
  0x4c   : > { %1001 = vmatpush.msra.mxu3 %v457_v28  ;;  %535 = vmatpush.msra.mxu1 %v457_v28  ;;  %v419_v33 = vld [vmem:[%s1222_s7 + $0xb0] sm:$0xff]  ;;  %v417_v35 = vld [vmem:[%s1222_s7 + $0xa0] sm:$0xff]  ;;  %v424_v1 = vld [vmem:[%s1222_s7 + $0xd8] sm:$0xff] }
  0x4d   : > { %986 = vmatpush.msra.mxu2 %v423_v29  ;;  %v451_v34 = vld [vmem:[%s1222_s7 + $0x1b0] sm:$0xff]  ;;  %495 = vmatpush.msra.mxu0 %v423_v29  ;;  %v449_v36 = vld [vmem:[%s1222_s7 + $0x1a0] sm:$0xff]  ;;  %v460_v3 = vld [vmem:[%s1222_s7 + $0x1f8] sm:$0xff] }
  0x4e   : > { %1002 = vmatpush.msra.mxu3 %v455_v30  ;;  %536 = vmatpush.msra.mxu1 %v455_v30  ;;  %v415_v37 = vld [vmem:[%s1222_s7 + $0x90] sm:$0xff]  ;;  %v413_v39 = vld [vmem:[%s1222_s7 + $0x80] sm:$0xff]  ;;  %v492_v4 = vld [vmem:[%s1222_s7 + $0x2f8] sm:$0xff] }
  0x4f   : > { %987 = vmatpush.msra.mxu2 %v421_v31  ;;  %496 = vmatpush.msra.mxu0 %v421_v31  ;;  %v447_v38 = vld [vmem:[%s1222_s7 + $0x190] sm:$0xff]  ;;  %v445_v40 = vld [vmem:[%s1222_s7 + $0x180] sm:$0xff]  ;;  %v422_v5 = vld [vmem:[%s1222_s7 + $0xc8] sm:$0xff] }
  0x50   : > { %1003 = vmatpush.msra.mxu3 %v453_v32  ;;  %537 = vmatpush.msra.mxu1 %v453_v32  ;;  %v411_v41 = vld [vmem:[%s1222_s7 + $0x70] sm:$0xff]  ;;  %v409_v43 = vld [vmem:[%s1222_s7 + $0x60] sm:$0xff]  ;;  %v1286_v7 = vld [vmem:[%s1224_s8 + $0x78] sm:$0xff] }
  0x51   : > { %988 = vmatpush.msra.mxu2 %v419_v33  ;;  %497 = vmatpush.msra.mxu0 %v419_v33  ;;  %v443_v42 = vld [vmem:[%s1222_s7 + $0x170] sm:$0xff]  ;;  %v441_v44 = vld [vmem:[%s1222_s7 + $0x160] sm:$0xff]  ;;  %v420_v9 = vld [vmem:[%s1222_s7 + $0xb8] sm:$0xff] }
  0x52   : > { %1004 = vmatpush.msra.mxu3 %v451_v34  ;;  %538 = vmatpush.msra.mxu1 %v451_v34  ;;  %v407_v45 = vld [vmem:[%s1222_s7 + $0x50] sm:$0xff]  ;;  %v405_v47 = vld [vmem:[%s1222_s7 + $0x40] sm:$0xff]  ;;  %v458_v10 = vld [vmem:[%s1222_s7 + $0x1e8] sm:$0xff] }
  0x53   : > { %989 = vmatpush.msra.mxu2 %v417_v35  ;;  %498 = vmatpush.msra.mxu0 %v417_v35  ;;  %v439_v46 = vld [vmem:[%s1222_s7 + $0x150] sm:$0xff]  ;;  %v437_v48 = vld [vmem:[%s1222_s7 + $0x140] sm:$0xff]  ;;  %v490_v12 = vld [vmem:[%s1222_s7 + $0x2e8] sm:$0xff] }
  0x54   : > { %1005 = vmatpush.msra.mxu3 %v449_v36  ;;  %539 = vmatpush.msra.mxu1 %v449_v36  ;;  %v403_v49 = vld [vmem:[%s1222_s7 + $0x30] sm:$0xff]  ;;  %v401_v51 = vld [vmem:[%s1222_s7 + $0x20] sm:$0xff]  ;;  %v418_v13 = vld [vmem:[%s1222_s7 + $0xa8] sm:$0xff] }
  0x55   : > { %990 = vmatpush.msra.mxu2 %v415_v37  ;;  %499 = vmatpush.msra.mxu0 %v415_v37  ;;  %v435_v50 = vld [vmem:[%s1222_s7 + $0x130] sm:$0xff]  ;;  %v433_v52 = vld [vmem:[%s1222_s7 + $0x120] sm:$0xff]  ;;  %v456_v14 = vld [vmem:[%s1222_s7 + $0x1d8] sm:$0xff] }
  0x56   : > { %1006 = vmatpush.msra.mxu3 %v447_v38  ;;  %540 = vmatpush.msra.mxu1 %v447_v38  ;;  %v399_v53 = vld [vmem:[%s1222_s7 + $0x10] sm:$0xff]  ;;  %v397_v55 = vld [vmem:[%s1222_s7] sm:$0xff]  ;;  %v488_v16 = vld [vmem:[%s1222_s7 + $0x2d8] sm:$0xff] }
  0x57   : > { %991 = vmatpush.msra.mxu2 %v413_v39  ;;  %500 = vmatpush.msra.mxu0 %v413_v39  ;;  %v431_v54 = vld [vmem:[%s1222_s7 + $0x110] sm:$0xff]  ;;  %v429_v56 = vld [vmem:[%s1222_s7 + $0x100] sm:$0xff]  ;;  %v416_v17 = vld [vmem:[%s1222_s7 + $0x98] sm:$0xff] }
  0x58   : > { %1007 = vmatpush.msra.mxu3 %v445_v40  ;;  %541 = vmatpush.msra.mxu1 %v445_v40  ;;  %v1260_v57 = vld [vmem:[%s1224_s8 + $0x60] sm:$0xff]  ;;  %v491_v60 = vld [vmem:[%s1222_s7 + $0x2f0] sm:$0xff]  ;;  %v454_v18 = vld [vmem:[%s1222_s7 + $0x1c8] sm:$0xff] }
  0x59   : > { %992 = vmatpush.msra.mxu2 %v411_v41  ;;  %501 = vmatpush.msra.mxu0 %v411_v41  ;;  %v489_v62 = vld [vmem:[%s1222_s7 + $0x2e0] sm:$0xff]  ;;  %v487_v2 = vld [vmem:[%s1222_s7 + $0x2d0] sm:$0xff]  ;;  %v1305_v20 = vld [vmem:[%s1224_s8 + $0x18] sm:$0xff] }
  0x5a   : > { %1008 = vmatpush.msra.mxu3 %v443_v42  ;;  %542 = vmatpush.msra.mxu1 %v443_v42  ;;  %v1272_v63 = vld [vmem:[%s1224_s8] sm:$0xff]  ;;  %v483_v11 = vld [vmem:[%s1222_s7 + $0x2b0] sm:$0xff]  ;;  %v414_v22 = vld [vmem:[%s1222_s7 + $0x88] sm:$0xff] }
  0x5b   : > { %993 = vmatpush.msra.mxu2 %v409_v43  ;;  %502 = vmatpush.msra.mxu0 %v409_v43  ;;  %v485_v6 = vld [vmem:[%s1222_s7 + $0x2c0] sm:$0xff]  ;;  %v479_v19 = vld [vmem:[%s1222_s7 + $0x290] sm:$0xff]  ;;  %v452_v23 = vld [vmem:[%s1222_s7 + $0x1b8] sm:$0xff] }
  0x5c   : > { %1009 = vmatpush.msra.mxu3 %v441_v44  ;;  %543 = vmatpush.msra.mxu1 %v441_v44  ;;  %v1289_v8 = vld [vmem:[%s1224_s8 + $0x80] sm:$0xff]  ;;  %v486_v24 = vld [vmem:[%s1222_s7 + $0x2c8] sm:$0xff]  ;;  %v1316_v26 = vld [vmem:[%s1224_s8 + $0x98] sm:$0xff] }
  0x5d   : > { %994 = vmatpush.msra.mxu2 %v407_v45  ;;  %503 = vmatpush.msra.mxu0 %v407_v45  ;;  %v481_v15 = vld [vmem:[%s1222_s7 + $0x2a0] sm:$0xff]  ;;  %v1320_v27 = vld [vmem:[%s1224_s8 + $0x90] sm:$0xff]  ;;  %v412_v28 = vld [vmem:[%s1222_s7 + $0x78] sm:$0xff] }
  0x5e   : > { %1010 = vmatpush.msra.mxu3 %v439_v46  ;;  %544 = vmatpush.msra.mxu1 %v439_v46  ;;  %v1308_v21 = vld [vmem:[%s1224_s8 + $0x20] sm:$0xff]  ;;  %v450_v29 = vld [vmem:[%s1222_s7 + $0x1a8] sm:$0xff]  ;;  %v484_v30 = vld [vmem:[%s1222_s7 + $0x2b8] sm:$0xff] }
  0x5f   : > { %995 = vmatpush.msra.mxu2 %v405_v47  ;;  %504 = vmatpush.msra.mxu0 %v405_v47  ;;  %v477_v25 = vld [vmem:[%s1222_s7 + $0x280] sm:$0xff]  ;;  %v475_v31 = vld [vmem:[%s1222_s7 + $0x270] sm:$0xff]  ;;  %v410_v32 = vld [vmem:[%s1222_s7 + $0x68] sm:$0xff] }
  0x60   : > { %1011 = vmatpush.msra.mxu3 %v437_v48  ;;  %545 = vmatpush.msra.mxu1 %v437_v48  ;;  %v448_v33 = vld [vmem:[%s1222_s7 + $0x198] sm:$0xff]  ;;  %v482_v34 = vld [vmem:[%s1222_s7 + $0x2a8] sm:$0xff]  ;;  %v473_v35 = vld [vmem:[%s1222_s7 + $0x260] sm:$0xff] }
  0x61   : > { %996 = vmatpush.msra.mxu2 %v403_v49  ;;  %505 = vmatpush.msra.mxu0 %v403_v49  ;;  %v408_v36 = vld [vmem:[%s1222_s7 + $0x58] sm:$0xff]  ;;  %v446_v37 = vld [vmem:[%s1222_s7 + $0x188] sm:$0xff]  ;;  %v471_v39 = vld [vmem:[%s1222_s7 + $0x250] sm:$0xff] }
  0x62   : > { %1012 = vmatpush.msra.mxu3 %v435_v50  ;;  %546 = vmatpush.msra.mxu1 %v435_v50  ;;  %v480_v38 = vld [vmem:[%s1222_s7 + $0x298] sm:$0xff]  ;;  %v1337_v40 = vld [vmem:[%s1224_s8 + $0x30] sm:$0xff]  ;;  %v406_v42 = vld [vmem:[%s1222_s7 + $0x48] sm:$0xff] }
  0x63   : > { %997 = vmatpush.msra.mxu2 %v401_v51  ;;  %506 = vmatpush.msra.mxu0 %v401_v51  ;;  %v1340_v41 = vld [vmem:[%s1224_s8 + $0x38] sm:$0xff]  ;;  %v478_v44 = vld [vmem:[%s1222_s7 + $0x288] sm:$0xff]  ;;  %v469_v45 = vld [vmem:[%s1222_s7 + $0x240] sm:$0xff] }
  0x64   : > { %1013 = vmatpush.msra.mxu3 %v433_v52  ;;  %547 = vmatpush.msra.mxu1 %v433_v52  ;;  %v444_v43 = vld [vmem:[%s1222_s7 + $0x178] sm:$0xff]  ;;  %v1348_v46 = vld [vmem:[%s1224_s8 + $0xb0] sm:$0xff]  ;;  %v1352_v47 = vld [vmem:[%s1224_s8 + $0xa8] sm:$0xff] }
  0x65   : > { %998 = vmatpush.msra.mxu2 %v399_v53  ;;  %507 = vmatpush.msra.mxu0 %v399_v53  ;;  %v404_v48 = vld [vmem:[%s1222_s7 + $0x38] sm:$0xff]  ;;  %v442_v49 = vld [vmem:[%s1222_s7 + $0x168] sm:$0xff]  ;;  %v467_v51 = vld [vmem:[%s1222_s7 + $0x230] sm:$0xff] }
  0x66   : > { %1014 = vmatpush.msra.mxu3 %v431_v54  ;;  %548 = vmatpush.msra.mxu1 %v431_v54  ;;  %v476_v50 = vld [vmem:[%s1222_s7 + $0x278] sm:$0xff]  ;;  %v402_v52 = vld [vmem:[%s1222_s7 + $0x28] sm:$0xff] }
  0x67   : > { %999 = vmatpush.msra.mxu2 %v397_v55  ;;  %508 = vmatpush.msra.mxu0 %v397_v55  ;;  %v440_v53 = vld [vmem:[%s1222_s7 + $0x158] sm:$0xff]  ;;  %v474_v54 = vld [vmem:[%s1222_s7 + $0x268] sm:$0xff]  ;;  %v465_v55 = vld [vmem:[%s1222_s7 + $0x220] sm:$0xff] }
  0x68   : > { %1015 = vmatpush.msra.mxu3 %v429_v56  ;;  %521 = vmatmul.f32.vlgmr.msra.gmra.mxu2 %v1260_v57 }
  0x69   : > { %562 = vmatmul.f32.vlgmr.msra.gmra.mxu3 %v1263_v58  ;;  %575 = vmatpush.msrb.mxu2 %v491_v60  ;;  %v472_v60 = vld [vmem:[%s1222_s7 + $0x258] sm:$0xff] }
  0x6a   : > { %616 = vmatpush.msrb.mxu3 %v428_v59  ;;  %549 = vmatpush.msra.mxu1 %v429_v56  ;;  %v400_v56 = vld [vmem:[%s1222_s7 + $0x18] sm:$0xff]  ;;  %v438_v59 = vld [vmem:[%s1222_s7 + $0x148] sm:$0xff] }
  0x6b   : > { %576 = vmatpush.msrb.mxu2 %v489_v62  ;;  %509 = vmatmul.f32.vlgmr.msra.gmra.mxu0 %v1272_v63  ;;  %v382_v62 = vld [vmem:[%s1224_s8 + $0x48] sm:$0xff] }
  0x6c   : > { %617 = vmatpush.msrb.mxu3 %v426_v61  ;;  %550 = vmatmul.f32.vlgmr.msra.gmra.mxu1 %v1275_v0  ;;  %v463_v61 = vld [vmem:[%s1222_s7 + $0x210] sm:$0xff] }
  0x6d   : > { %577 = vmatpush.msrb.mxu2 %v487_v2  ;;  %657 = vmatpush.msrb.mxu0 %v460_v3  ;;  %v398_v2 = vld [vmem:[%s1222_s7 + $0x8] sm:$0xff]  ;;  %v436_v3 = vld [vmem:[%s1222_s7 + $0x138] sm:$0xff] }
  0x6e   : > { %618 = vmatpush.msrb.mxu3 %v424_v1  ;;  %698 = vmatpush.msrb.mxu1 %v492_v4  ;;  %v383_v1 = vld [vmem:[%s1224_s8 + $0x50] sm:$0xff]  ;;  %v470_v4 = vld [vmem:[%s1222_s7 + $0x248] sm:$0xff] }
  0x6f   : > { %578 = vmatpush.msrb.mxu2 %v485_v6  ;;  %658 = vmatpush.msrb.mxu0 %v458_v10  ;;  %v375_v6 = vld [vmem:[%s1224_s8 + $0x10] sm:$0xff]  ;;  %v468_v10 = vld [vmem:[%s1222_s7 + $0x238] sm:$0xff] }
  0x70   : > { %619 = vmatpush.msrb.mxu3 %v422_v5  ;;  %524 = vmatmul.f32.gmra.mxu2 %v1286_v7  ;;  %v461_v5 = vld [vmem:[%s1222_s7 + $0x200] sm:$0xff] }
  0x71   : > { %565 = vmatmul.f32.gmra.mxu3 %v1289_v8  ;;  %579 = vmatpush.msrb.mxu2 %v483_v11  ;;  %v432_v11 = vld [vmem:[%s1222_s7 + $0x118] sm:$0xff] }
  0x72   : > { %620 = vmatpush.msrb.mxu3 %v420_v9  ;;  %699 = vmatpush.msrb.mxu1 %v490_v12  ;;  %v434_v9 = vld [vmem:[%s1222_s7 + $0x128] sm:$0xff] }
  0x73   : > { %659 = vmatpush.msrb.mxu0 %v456_v14  ;;  %580 = vmatpush.msrb.mxu2 %v481_v15  ;;  %v466_v12 = vld [vmem:[%s1222_s7 + $0x228] sm:$0xff]  ;;  %v464_v14 = vld [vmem:[%s1222_s7 + $0x218] sm:$0xff] }
  0x74   : > { %621 = vmatpush.msrb.mxu3 %v418_v13  ;;  %700 = vmatpush.msrb.mxu1 %v488_v16  ;;  %v430_v13 = vld [vmem:[%s1222_s7 + $0x108] sm:$0xff] }
  0x75   : > { %660 = vmatpush.msrb.mxu0 %v454_v18  ;;  %581 = vmatpush.msrb.mxu2 %v479_v19  ;;  %v462_v15 = vld [vmem:[%s1222_s7 + $0x208] sm:$0xff]  ;;  %v393_v19 = vld [vmem:[%s1224_s8 + $0xa0] sm:$0xff] }
  0x76   : > { %622 = vmatpush.msrb.mxu3 %v416_v17  ;;  %512 = vmatmul.f32.gmra.mxu0 %v1305_v20  ;;  %v378_v16 = vld [vmem:[%s1224_s8 + $0x28] sm:$0xff]  ;;  %v384_v17 = vld [vmem:[%s1224_s8 + $0x58] sm:$0xff] }
  0x77   : > { %553 = vmatmul.f32.gmra.mxu1 %v1308_v21  ;;  %661 = vmatpush.msrb.mxu0 %v452_v23  ;;  %v390_v18 = vld [vmem:[%s1224_s8 + $0x88] sm:$0xff] }
  0x78   : > { %623 = vmatpush.msrb.mxu3 %v414_v22  ;;  %701 = vmatpush.msrb.mxu1 %v486_v24 }
  0x79   : > { %582 = vmatpush.msrb.mxu2 %v477_v25  ;;  %568 = vmatmul.f32.gmra.mxu3 %v1316_v26 }
  0x7a   : > { %527 = vmatmul.f32.gmra.mxu2 %v1320_v27  ;;  %624 = vmatpush.msrb.mxu3 %v412_v28 }
  0x7b   : > { %662 = vmatpush.msrb.mxu0 %v450_v29  ;;  %702 = vmatpush.msrb.mxu1 %v484_v30 }
  0x7c   : > { %583 = vmatpush.msrb.mxu2 %v475_v31  ;;  %625 = vmatpush.msrb.mxu3 %v410_v32 }
  0x7d   : > { %663 = vmatpush.msrb.mxu0 %v448_v33  ;;  %703 = vmatpush.msrb.mxu1 %v482_v34 }
  0x7e   : > { %584 = vmatpush.msrb.mxu2 %v473_v35  ;;  %626 = vmatpush.msrb.mxu3 %v408_v36  ;;  %v357_v36 = vld [vmem:[#allocation2 + $0x30] sm:$0xff] }
  0x7f   : > { %664 = vmatpush.msrb.mxu0 %v446_v37  ;;  %704 = vmatpush.msrb.mxu1 %v480_v38 }
  0x80   : > { %585 = vmatpush.msrb.mxu2 %v471_v39  ;;  %515 = vmatmul.f32.gmra.mxu0 %v1337_v40 }
  0x81   : > { %556 = vmatmul.f32.gmra.mxu1 %v1340_v41  ;;  %627 = vmatpush.msrb.mxu3 %v406_v42 }
  0x82   : > { %665 = vmatpush.msrb.mxu0 %v444_v43  ;;  %705 = vmatpush.msrb.mxu1 %v478_v44 }
  0x83   : > { %586 = vmatpush.msrb.mxu2 %v469_v45  ;;  %571 = vmatmul.f32.gmra.mxu3 %v1348_v46 }
  0x84   : > { %530 = vmatmul.f32.gmra.mxu2 %v1352_v47  ;;  %628 = vmatpush.msrb.mxu3 %v404_v48  ;;  %v359_v48 = vld [vmem:[#allocation2 + $0x58] sm:$0xff] }
  0x85   : > { %666 = vmatpush.msrb.mxu0 %v442_v49  ;;  %706 = vmatpush.msrb.mxu1 %v476_v50 }
  0x86   : > { %587 = vmatpush.msrb.mxu2 %v467_v51  ;;  %629 = vmatpush.msrb.mxu3 %v402_v52  ;;  %v360_v52 = vld [vmem:[#allocation2 + $0x18] sm:$0xff] }
  0x87   : > { %667 = vmatpush.msrb.mxu0 %v440_v53  ;;  %707 = vmatpush.msrb.mxu1 %v474_v54 }
  0x88   : > { %588 = vmatpush.msrb.mxu2 %v465_v55  ;;  %630 = vmatpush.msrb.mxu3 %v400_v56 }
  0x89   : > { %668 = vmatpush.msrb.mxu0 %v438_v59  ;;  %708 = vmatpush.msrb.mxu1 %v472_v60 }
  0x8a   : > { %589 = vmatpush.msrb.mxu2 %v463_v61  ;;  %518 = vmatmul.f32.gmra.mxu0 %v382_v62 }
  0x8b   : > { %559 = vmatmul.f32.gmra.mxu1 %v383_v1  ;;  %631 = vmatpush.msrb.mxu3 %v398_v2 }
  0x8c   : > { %669 = vmatpush.msrb.mxu0 %v436_v3  ;;  %709 = vmatpush.msrb.mxu1 %v470_v4  ;;  %v362_v4 = vld [vmem:[#allocation2 + $0x68] sm:$0xff] }
  0x8d   : > { %590 = vmatpush.msrb.mxu2 %v461_v5  ;;  %632 = vmatmul.f32.vlgmr.msrb.gmra.mxu3 %v1272_v63  ;;  %v381_v63 = vld [vmem:[%s1224_s8 + $0x40] sm:$0xff] }
  0x8e   : > { %591 = vmatmul.f32.vlgmr.msrb.gmra.mxu2 %v375_v6  ;;  %670 = vmatpush.msrb.mxu0 %v434_v9 }
  0x8f   : > { %710 = vmatpush.msrb.mxu1 %v468_v10 }
  0x90   : > { %671 = vmatpush.msrb.mxu0 %v432_v11 }
  0x91   : > { %711 = vmatpush.msrb.mxu1 %v466_v12 }
  0x92   : > { %672 = vmatpush.msrb.mxu0 %v430_v13 }
  0x93   : > { %712 = vmatpush.msrb.mxu1 %v464_v14  ;;  %673 = vmatmul.f32.vlgmr.msrb.gmra.mxu0 %v1275_v0  ;;  %v387_v0 = vld [vmem:[%s1224_s8 + $0x70] sm:$0xff]  ;;  %v363_v14 = vld [vmem:[#allocation2 + $0x8] sm:$0xff] }
  0x95   : > { %713 = vmatpush.msrb.mxu1 %v462_v15  ;;  %635 = vmatmul.f32.gmra.mxu3 %v1305_v20  ;;  %v396_v20 = vld [vmem:[%s1224_s8 + $0xb8] sm:$0xff] }
  0x96   : > { %594 = vmatmul.f32.gmra.mxu2 %v378_v16  ;;  %714 = vmatmul.f32.vlgmr.msrb.gmra.mxu1 %v375_v6 }
  0x9b   : > { %676 = vmatmul.f32.gmra.mxu0 %v1308_v21 }
  0x9d   : > { %638 = vmatmul.f32.gmra.mxu3 %v1337_v40  ;;  %v358_v40 = vld [vmem:[#allocation2] sm:$0xff] }
  0x9e   : > { %597 = vmatmul.f32.gmra.mxu2 %v381_v63  ;;  %717 = vmatmul.f32.gmra.mxu1 %v378_v16 }
  0xa3   : > { %679 = vmatmul.f32.gmra.mxu0 %v1340_v41 }
  0xa5   : > { %641 = vmatmul.f32.gmra.mxu3 %v382_v62  ;;  %v361_v62 = vld [vmem:[#allocation2 + $0x50] sm:$0xff] }
  0xa6   : > { %600 = vmatmul.f32.gmra.mxu2 %v384_v17  ;;  %720 = vmatmul.f32.gmra.mxu1 %v381_v63 }
  0xab   : > { %682 = vmatmul.f32.gmra.mxu0 %v383_v1 }
  0xad   : > { %644 = vmatmul.f32.gmra.mxu3 %v1260_v57 }
  0xae   : > { %603 = vmatmul.f32.gmra.mxu2 %v387_v0  ;;  %723 = vmatmul.f32.gmra.mxu1 %v384_v17  ;;  %v364_v17 = vld [vmem:[#allocation2 + $0x48] sm:$0xff] }
  0xb3   : > { %685 = vmatmul.f32.gmra.mxu0 %v1263_v58 }
  0xb5   : > { %647 = vmatmul.f32.gmra.mxu3 %v1286_v7 }
  0xb6   : > { %606 = vmatmul.f32.gmra.mxu2 %v390_v18  ;;  %726 = vmatmul.f32.gmra.mxu1 %v387_v0 }
  0xbb   : > { %688 = vmatmul.f32.gmra.mxu0 %v1289_v8 }
  0xbd   : > { %650 = vmatmul.f32.gmra.mxu3 %v1320_v27 }
  0xbe   : > { %609 = vmatmul.f32.gmra.mxu2 %v393_v19  ;;  %729 = vmatmul.f32.gmra.mxu1 %v390_v18 }
  0xc3   : > { %691 = vmatmul.f32.gmra.mxu0 %v1316_v26 }
  0xc5   : > { %653 = vmatmul.f32.gmra.mxu3 %v1352_v47 }
  0xc6   : > { %612 = vmatmul.f32.gmra.mxu2 %v396_v20  ;;  %732 = vmatmul.f32.gmra.mxu1 %v393_v19 }
  0xcb   : > { %694 = vmatmul.f32.gmra.mxu0 %v1348_v46 }
  0xce   : > { %735 = vmatmul.f32.gmra.mxu1 %v396_v20 }
  0xe8   : > { %v510_v57 = vpop.f32.mrf.mxu0 }
  0xe9   : > { %v551_v8 = vpop.f32.mrf.mxu1 }
  0xea   : > { %v552_v33 = vadd.f32 %v551_v8, %v510_v57 }
  0xeb   : > { %v1403_v58 = vpop.f32.mrf.mxu2 }
  0xec   : > { %v1405_v7 = vpop.f32.mrf.mxu3 }
  0xed   : > { %v564_v57 = vadd.f32 %v1405_v7, %v1403_v58  ;;  %v367_v58 = vld [vmem:[#allocation2 + $0x10] sm:$0xff] }
  0xf3   : > { %v513_v21 = vpop.f32.mrf.mxu0  ;;  %v1407_v22 = vpop.f32.mrf.mxu2 }
  0xf4   : > { %v1409_v23 = vpop.f32.mrf.mxu3  ;;  %v554_v24 = vpop.f32.mrf.mxu1 }
  0xf5   : > { %v555_v45 = vadd.f32 %v554_v24, %v513_v21  ;;  %v365_v24 = vld [vmem:[#allocation2 + $0x40] sm:$0xff] }
  0xfc   : > { %v1411_v25 = vpop.f32.mrf.mxu3 }
  0xfd   : > { %v516_v26 = vpop.f32.mrf.mxu0  ;;  %v1413_v27 = vpop.f32.mrf.mxu2 }
  0xfe   : > { %v557_v28 = vpop.f32.mrf.mxu1 }
  0xff   : > { %v558_v59 = vadd.f32 %v557_v28, %v516_v26 }
 0x106   : > { %v1415_v29 = vpop.f32.mrf.mxu3 }
 0x107   : > { %v519_v30 = vpop.f32.mrf.mxu0  ;;  %v1417_v31 = vpop.f32.mrf.mxu2 }
 0x108   : > { %v560_v32 = vpop.f32.mrf.mxu1 }
 0x109   : > { %v561_v11 = vadd.f32 %v560_v32, %v519_v30  ;;  %v366_v32 = vld [vmem:[#allocation2 + $0x20] sm:$0xff] }
 0x110   : > { %v633_v34 = vpop.f32.mrf.mxu3  ;;  %v674_v35 = vpop.f32.mrf.mxu0 }
 0x111   : > { %v592_v37 = vpop.f32.mrf.mxu2  ;;  %v675_v38 = vadd.f32 %v674_v35, %v633_v34 }
 0x112   : > { %v593_v39 = vadd.f32 %v592_v37, %v552_v33  ;;  %v567_v37 = vadd.f32 %v1409_v23, %v1407_v22  ;;  %v369_v22 = vld [vmem:[#allocation2 + $0x60] sm:$0xff] }
 0x113   : > { %v715_v41 = vpop.f32.mrf.mxu1 }
 0x114   : > { %v739_v42 = vadd.f32 %v593_v39, %v357_v36  ;;  %v716_v43 = vadd.f32 %v715_v41, %v675_v38 }
 0x116   : > { %755 = vst [vmem:[#allocation2 + $0x30] sm:$0xff] %v739_v42  ;;  %v740_v44 = vadd.f32 %v716_v43, %v358_v40  ;;  %v368_v42 = vld [vmem:[#allocation2 + $0x38] sm:$0xff] }
 0x118   : > { %756 = vst [vmem:[#allocation2] sm:$0xff] %v740_v44  ;;  %v636_v46 = vpop.f32.mrf.mxu3  ;;  %v677_v47 = vpop.f32.mrf.mxu0 }
 0x119   : > { %v595_v49 = vpop.f32.mrf.mxu2  ;;  %v678_v50 = vadd.f32 %v677_v47, %v636_v46  ;;  %v570_v47 = vadd.f32 %v1411_v25, %v1413_v27  ;;  %v371_v25 = vld [vmem:[#allocation2 + $0x78] sm:$0xff] }
 0x11a   : > { %v596_v51 = vadd.f32 %v595_v49, %v555_v45 }
 0x11b   : > { %v718_v53 = vpop.f32.mrf.mxu1 }
 0x11c   : > { %v741_v54 = vadd.f32 %v596_v51, %v359_v48  ;;  %v719_v55 = vadd.f32 %v718_v53, %v678_v50 }
 0x11e   : > { %757 = vst [vmem:[#allocation2 + $0x58] sm:$0xff] %v741_v54  ;;  %v742_v56 = vadd.f32 %v719_v55, %v360_v52  ;;  %v370_v52 = vld [vmem:[#allocation2 + $0x70] sm:$0xff] }
 0x120   : > { %758 = vst [vmem:[#allocation2 + $0x18] sm:$0xff] %v742_v56  ;;  %v639_v60 = vpop.f32.mrf.mxu3  ;;  %v680_v61 = vpop.f32.mrf.mxu0 }
 0x121   : > { %v598_v1 = vpop.f32.mrf.mxu2  ;;  %v681_v2 = vadd.f32 %v680_v61, %v639_v60 }
 0x122   : > { %v599_v3 = vadd.f32 %v598_v1, %v558_v59  ;;  %v573_v59 = vadd.f32 %v1415_v29, %v1417_v31 }
 0x123   : > { %v721_v5 = vpop.f32.mrf.mxu1 }
 0x124   : > { %v743_v6 = vadd.f32 %v599_v3, %v361_v62  ;;  %v722_v9 = vadd.f32 %v721_v5, %v681_v2  ;;  %v372_v2 = vld [vmem:[#allocation2 + $0x28] sm:$0xff] }
 0x126   : > { %759 = vst [vmem:[#allocation2 + $0x50] sm:$0xff] %v743_v6  ;;  %v744_v10 = vadd.f32 %v722_v9, %v362_v4 }
 0x128   : > { %760 = vst [vmem:[#allocation2 + $0x68] sm:$0xff] %v744_v10  ;;  %v642_v12 = vpop.f32.mrf.mxu3  ;;  %v683_v13 = vpop.f32.mrf.mxu0 }
 0x129   : > { %v601_v15 = vpop.f32.mrf.mxu2  ;;  %v684_v16 = vadd.f32 %v683_v13, %v642_v12 }
 0x12a   : > { %v602_v63 = vadd.f32 %v601_v15, %v561_v11 }
 0x12b   : > { %v724_v0 = vpop.f32.mrf.mxu1 }
 0x12c   : > { %v745_v18 = vadd.f32 %v602_v63, %v363_v14  ;;  %v725_v19 = vadd.f32 %v724_v0, %v684_v16 }
 0x12e   : > { %761 = vst [vmem:[#allocation2 + $0x8] sm:$0xff] %v745_v18  ;;  %v746_v20 = vadd.f32 %v725_v19, %v364_v17 }
 0x130   : > { %762 = vst [vmem:[#allocation2 + $0x48] sm:$0xff] %v746_v20  ;;  %v645_v8 = vpop.f32.mrf.mxu3  ;;  %v686_v21 = vpop.f32.mrf.mxu0 }
 0x131   : > { %v604_v26 = vpop.f32.mrf.mxu2  ;;  %v687_v28 = vadd.f32 %v686_v21, %v645_v8 }
 0x132   : > { %v605_v30 = vadd.f32 %v604_v26, %v564_v57 }
 0x133   : > { %v727_v33 = vpop.f32.mrf.mxu1 }
 0x134   : > { %v747_v34 = vadd.f32 %v605_v30, %v365_v24  ;;  %v728_v35 = vadd.f32 %v727_v33, %v687_v28 }
 0x136   : > { %763 = vst [vmem:[#allocation2 + $0x40] sm:$0xff] %v747_v34  ;;  %v748_v36 = vadd.f32 %v728_v35, %v366_v32 }
 0x138   : > { %764 = vst [vmem:[#allocation2 + $0x20] sm:$0xff] %v748_v36  ;;  %v648_v38 = vpop.f32.mrf.mxu3  ;;  %v689_v39 = vpop.f32.mrf.mxu0 }
 0x139   : > { %v607_v7 = vpop.f32.mrf.mxu2  ;;  %v690_v40 = vadd.f32 %v689_v39, %v648_v38 }
 0x13a   : > { %v608_v41 = vadd.f32 %v607_v7, %v567_v37 }
 0x13b   : > { %v730_v43 = vpop.f32.mrf.mxu1 }
 0x13c   : > { %v749_v44 = vadd.f32 %v608_v41, %v367_v58  ;;  %v731_v45 = vadd.f32 %v730_v43, %v690_v40 }
 0x13e   : > { %765 = vst [vmem:[#allocation2 + $0x10] sm:$0xff] %v749_v44  ;;  %v750_v46 = vadd.f32 %v731_v45, %v368_v42 }
 0x140   : > { %766 = vst [vmem:[#allocation2 + $0x38] sm:$0xff] %v750_v46  ;;  %v651_v48 = vpop.f32.mrf.mxu3  ;;  %v692_v49 = vpop.f32.mrf.mxu0 }
 0x141   : > { %v610_v23 = vpop.f32.mrf.mxu2  ;;  %v693_v50 = vadd.f32 %v692_v49, %v651_v48 }
 0x142   : > { %v611_v51 = vadd.f32 %v610_v23, %v570_v47 }
 0x143   : > { %v733_v53 = vpop.f32.mrf.mxu1 }
 0x144   : > { %v751_v54 = vadd.f32 %v611_v51, %v369_v22  ;;  %v734_v55 = vadd.f32 %v733_v53, %v693_v50 }
 0x146   : > { %767 = vst [vmem:[#allocation2 + $0x60] sm:$0xff] %v751_v54  ;;  %v752_v56 = vadd.f32 %v734_v55, %v370_v52 }
 0x148   : > { %768 = vst [vmem:[#allocation2 + $0x70] sm:$0xff] %v752_v56  ;;  %v654_v60 = vpop.f32.mrf.mxu3  ;;  %v695_v61 = vpop.f32.mrf.mxu0 }
 0x149   : > { %v613_v27 = vpop.f32.mrf.mxu2  ;;  %v696_v62 = vadd.f32 %v695_v61, %v654_v60 }
 0x14a   : > { %v614_v1 = vadd.f32 %v613_v27, %v573_v59 }
 0x14b   : > { %v736_v3 = vpop.f32.mrf.mxu1 }
 0x14c   : > { %v753_v4 = vadd.f32 %v614_v1, %v371_v25  ;;  %v737_v5 = vadd.f32 %v736_v3, %v696_v62  ;;  %774 = sbr.rel (%p977_p11) target bundleno = 360 (0x168), region = 63 }
 0x14e   : > { %769 = vst [vmem:[#allocation2 + $0x78] sm:$0xff] %v753_v4  ;;  %v754_v6 = vadd.f32 %v737_v5, %v372_v2 }
 0x150   : > { %770 = vst [vmem:[#allocation2 + $0x28] sm:$0xff] %v754_v6 }
 0x151   : > { %v775_v9 = vld [vmem:[#allocation2 + $0x30] sm:$0xff]  ;;  %v791_v29 = vld [vmem:[%s1496_s2] sm:$0x3]  ;;  %v777_v12 = vld [vmem:[#allocation2 + $0x58] sm:$0xff] }
 0x152   : > { %v776_v31 = vld [vmem:[#allocation2] sm:$0xff]  ;;  %v793_v10 = vperm.slane %v791_v29, 0  ;;  %v794_v11 = vperm.slane %v791_v29, 1  ;;  %v778_v13 = vld [vmem:[#allocation2 + $0x18] sm:$0xff]  ;;  %v779_v14 = vld [vmem:[#allocation2 + $0x50] sm:$0xff] }
 0x153   : > { %v780_v15 = vld [vmem:[#allocation2 + $0x68] sm:$0xff]  ;;  %v783_v8 = vld [vmem:[#allocation2 + $0x40] sm:$0xff]  ;;  %v785_v34 = vld [vmem:[#allocation2 + $0x10] sm:$0xff] }
 0x154   : > { %v781_v16 = vld [vmem:[#allocation2 + $0x8] sm:$0xff]  ;;  %v797_v63 = vadd.f32 %v793_v10, %v775_v9  ;;  %v798_v17 = vadd.f32 %v794_v11, %v776_v31  ;;  %v799_v0 = vadd.f32 %v793_v10, %v777_v12  ;;  %v800_v18 = vadd.f32 %v794_v11, %v778_v13  ;;  %v784_v30 = vld [vmem:[#allocation2 + $0x20] sm:$0xff]  ;;  %v786_v37 = vld [vmem:[#allocation2 + $0x38] sm:$0xff] }
 0x155   : > { %v782_v19 = vld [vmem:[#allocation2 + $0x48] sm:$0xff]  ;;  %v801_v20 = vadd.f32 %v793_v10, %v779_v14  ;;  %v802_v57 = vadd.f32 %v794_v11, %v780_v15  ;;  %v803_v28 = vadd.f32 %v793_v10, %v781_v16  ;;  %v805_v36 = vadd.f32 %v793_v10, %v783_v8  ;;  %v787_v58 = vld [vmem:[#allocation2 + $0x60] sm:$0xff]  ;;  %v788_v41 = vld [vmem:[#allocation2 + $0x70] sm:$0xff] }
 0x156   : > { %v813_v21 = vmax.f32 %v797_v63, 0.0  ;;  %v814_v24 = vmax.f32 %v798_v17, 0.0  ;;  %v815_v26 = vmax.f32 %v799_v0, 0.0  ;;  %v816_v32 = vmax.f32 %v800_v18, 0.0  ;;  %v789_v44 = vld [vmem:[#allocation2 + $0x78] sm:$0xff] }
 0x157   : > { %v804_v33 = vadd.f32 %v794_v11, %v782_v19  ;;  %v817_v35 = vmax.f32 %v801_v20, 0.0  ;;  %v818_v38 = vmax.f32 %v802_v57, 0.0  ;;  %v806_v39 = vadd.f32 %v794_v11, %v784_v30  ;;  %v790_v47 = vld [vmem:[#allocation2 + $0x28] sm:$0xff] }
 0x158   : > { %829 = vst [vmem:[%s1497_s3] sm:$0xff] %v813_v21  ;;  %v819_v7 = vmax.f32 %v803_v28, 0.0  ;;  %v807_v40 = vadd.f32 %v793_v10, %v785_v34  ;;  %v808_v43 = vadd.f32 %v794_v11, %v786_v37  ;;  %v821_v45 = vmax.f32 %v805_v36, 0.0 }
 0x159   : > { %830 = vst [vmem:[%s1497_s3 + $0x8] sm:$0xff] %v814_v24  ;;  %v820_v42 = vmax.f32 %v804_v33, 0.0  ;;  %v809_v46 = vadd.f32 %v793_v10, %v787_v58  ;;  %v822_v48 = vmax.f32 %v806_v39, 0.0  ;;  %v810_v49 = vadd.f32 %v794_v11, %v788_v41 }
 0x15a   : > { %831 = vst [vmem:[%s1497_s3 + $0x10] sm:$0xff] %v815_v26  ;;  %v823_v22 = vmax.f32 %v807_v40, 0.0  ;;  %v811_v23 = vadd.f32 %v793_v10, %v789_v44  ;;  %v824_v50 = vmax.f32 %v808_v43, 0.0  ;;  %v812_v51 = vadd.f32 %v794_v11, %v790_v47 }
 0x15b   : > { %832 = vst [vmem:[%s1497_s3 + $0x18] sm:$0xff] %v816_v32  ;;  %v825_v52 = vmax.f32 %v809_v46, 0.0  ;;  %v826_v53 = vmax.f32 %v810_v49, 0.0 }
 0x15c   : > { %833 = vst [vmem:[%s1497_s3 + $0x20] sm:$0xff] %v817_v35  ;;  %v827_v54 = vmax.f32 %v811_v23, 0.0  ;;  %v828_v55 = vmax.f32 %v812_v51, 0.0 }
 0x15d   : > { %834 = vst [vmem:[%s1497_s3 + $0x28] sm:$0xff] %v818_v38 }
 0x15e   : > { %835 = vst [vmem:[%s1497_s3 + $0x30] sm:$0xff] %v819_v7 }
 0x15f   : > { %836 = vst [vmem:[%s1497_s3 + $0x38] sm:$0xff] %v820_v42 }
 0x160   : > { %837 = vst [vmem:[%s1497_s3 + $0x40] sm:$0xff] %v821_v45 }
 0x161   : > { %838 = vst [vmem:[%s1497_s3 + $0x48] sm:$0xff] %v822_v48 }
 0x162   : > { %839 = vst [vmem:[%s1497_s3 + $0x50] sm:$0xff] %v823_v22 }
 0x163   : > { %840 = vst [vmem:[%s1497_s3 + $0x58] sm:$0xff] %v824_v50 }
 0x164   : > { %841 = vst [vmem:[%s1497_s3 + $0x60] sm:$0xff] %v825_v52 }
 0x165   : > { %842 = vst [vmem:[%s1497_s3 + $0x68] sm:$0xff] %v826_v53 }
 0x166   : > { %843 = vst [vmem:[%s1497_s3 + $0x70] sm:$0xff] %v827_v54 }
 0x167   : > { %844 = vst [vmem:[%s1497_s3 + $0x78] sm:$0xff] %v828_v55 }
 0x168 PF: > { %s13_s16 = sadd.s32 1, %s1097_s16   ;;  %s1498_s12 = smov %s1085_s13 }
 0x169   : > { %p10_p12 = scmp.ge.s32.totalorder %s13_s16, 8   ;;  %s1499_s13 = smov %s1155_s20 }
 0x16a   : > { %s1500_s14 = smov %s1093_s15  ;;  %s1501_s15 = smov %s1503_s17 }
 0x16b   :  { %12 = sbr.rel (!%p10_p12) target bundleno = 3 (0x3), region = 104 }

// kernel: vgg_mse.25
= control target key start
LH: loop header
LB: loop body
LE: loop exit
PB: predicated region body
PF: predicated region fallthrough
CT: control target
= control target key end

     0   :  { %s1653_s0 = inlined_call_operand.vmem [shape: f32[16,2304], index: 0, kind: input, shape index: {}]   ;;  %s1654_s1 = inlined_call_operand.vmem [shape: f32[2304,512], index: 1, kind: input, shape index: {}]   ;;  %s1655_s2 = inlined_call_operand.vmem [shape: f32[1,512], index: 2, kind: input, shape index: {}]   ;;  %s1656_s3 = inlined_call_operand.vmem [shape: f32[16,512], index: 3, kind: output, shape index: {}]  }
   0x1   :  { %1658 = sst [smem:[#allocation7_spill]] %s1653_s0 }
   0x2   :  { %1659 = sst [smem:[#allocation8_spill]] %s1654_s1 }
   0x3   :  { %s1165_s12 = smov 0   ;;  %s1167_s13 = smov 0  }
   0x4   :  { %s1169_s14 = smov 0   ;;  %s1171_s15 = smov 0  }
   0x5   :  { %s1173_s16 = smov 0   ;;  %s1175_s17 = smov 0  }
   0x6   :  { %s1177_s18 = smov 0   ;;  %s1179_s19 = smov 0  }
   0x7   :  { %s1181_s20 = smov 0   ;;  %s1183_s21 = smov 0  }
   0x8   :  { %s1185_s22 = smov 0  }
   0x9 LB: > { %s910_s23 = sadd.s32 4294967295, %s1142_s22   ;;  %s25_s24 = sadd.s32 1, %s1134_s20  ;;  %s1142_s22 = sphi %s1185_s22, %s13_s22   ;;  %s1138_s21 = sphi %s1183_s21, %s1676_s21   ;;  %s1134_s20 = sphi %s1181_s20, %s1675_s20   ;;  %s1130_s19 = sphi %s1179_s19, %s1674_s19   ;;  %s1126_s18 = sphi %s1177_s18, %s1673_s18   ;;  %s1122_s17 = sphi %s1175_s17, %s1672_s17   ;;  %s1118_s16 = sphi %s1173_s16, %s1671_s16   ;;  %s1114_s15 = sphi %s1171_s15, %s1670_s15   ;;  %s1110_s14 = sphi %s1169_s14, %s1669_s14   ;;  %s1106_s13 = sphi %s1167_s13, %s1668_s13   ;;  %s1102_s12 = sphi %s1165_s12, %s1667_s12  }
   0xa   : > { %p26_p0 = scmp.ge.s32.totalorder %s25_s24, 6  ;;  %s28_s25 = sadd.s32 1, %s1138_s21 }
   0xb   : > { %s41_s26 = sadd.s32 1, %s1122_s17  ;;  %p48_p1 = scmp.ne.s32.totalorder %s1122_s17, %s1118_s16 }
   0xc   : > { %s1678_s24 = smov (%p26_p0, %s25_s24), 0  ;;  %s1680_s25 = smov (!%p26_p0, %s28_s25), %s1138_s21 }
   0xd   : > { %s37_s27 = ssub.s32 %s1134_s20, %s1678_s24  ;;  %p49_p2 = scmp.eq.s32.totalorder %s1142_s22, 0 }
   0xe   : > { %p30_p3 = scmp.ge.s32.totalorder %s1680_s25, 2  ;;  %p39_p4 = scmp.eq.s32.totalorder %s37_s27, 0 }
   0xf   : > { %p1232_p5 = por %p49_p2, %p48_p1  ;;  %s69_s29 = sadd.s32 1, %s1114_s15 }
  0x10   : > { %s1682_s25 = smov (%p30_p3, %s1680_s25), 0  ;;  %p76_p6 = scmp.ne.s32.totalorder %s1114_s15, %s1110_s14 }
  0x11   : > { %1661 = sst [smem:[#allocation6_spill]] %s1682_s25  ;;  %s65_s4 = ssub.s32 %s1138_s21, %s1682_s25 }
  0x12   : > { %s1240_s30 = scalar_select %p39_p4, %s1122_s17, %s41_s26  }
  0x13   : > { %s66_s5 = sor.u32 %s65_s4, %s37_s27  ;;  %p121_p7 = scmp.eq.s32.totalorder %s65_s4, 0 }
  0x14   : > { %p67_p8 = scmp.eq.s32.totalorder %s66_s5, 0  ;;  %p1246_p9 = por %p76_p6, %p49_p2 }
  0x15   : > { %s123_s7 = sadd.s32 1, %s1106_s13  ;;  %p133_p10 = scmp.ne.s32.totalorder %s1106_s13, %s1102_s12 }
  0x16   : > { %s1254_s8 = scalar_select %p67_p8, %s1114_s15, %s69_s29  }
  0x17   : > { %s1257_s9 = scalar_select %p121_p7, %s1106_s13, %s123_s7  }
  0x18   : > { %p134_p11 = scmp.eq.s32.totalorder %s910_s23, 11  ;;  %p913_p13 = scmp.ge.s32.totalorder %s1142_s22, 12 }
  0x1a   : > { %p1259_p12 = por %p134_p11, %p133_p10  ;;  %156 = sbr.rel (%p913_p13) target bundleno = 152 (0x98), region = 16 }
  0x1f   : > { %159 = sbr.rel (!%p1232_p5) target bundleno = 46 (0x2e), region = 20  ;;  %s161_s11 = sand.u32 (%p1232_p5), 1, %s1122_s17  }
  0x20   : > { %s928_s26 = smul.u32 (%p1232_p5), 24, %s1134_s20  ;;  %s1664_s0 = sld [smem:[#allocation7_spill]] (%p1232_p5) }
  0x21   : > { %s963_s27 = smul.u32 (%p1232_p5), 48, %s161_s11 }
  0x23   : > { %s163_s23 = scalar_lea.vmem (%p1232_p5), [#allocation3], %s963_s27 }
  0x26   : > { %s169_s5 = scalar_lea.vmem %s1664_s0, %s928_s26 }
  0x27   : > { %v182_v0 = vld [vmem:[%s169_s5] sm:$0xff]  ;;  %v184_v1 = vld [vmem:[%s169_s5 + $0x8] sm:$0xff]  ;;  %v186_v2 = vld [vmem:[%s169_s5 + $0x10] sm:$0xff] }
  0x28   : > { %183 = vst [vmem:[%s163_s23] sm:$0xff] %v182_v0  ;;  %v188_v3 = vld [vmem:[%s169_s5 + $0x90] sm:$0xff]  ;;  %v190_v4 = vld [vmem:[%s169_s5 + $0x98] sm:$0xff]  ;;  %v192_v5 = vld [vmem:[%s169_s5 + $0xa0] sm:$0xff] }
  0x29   : > { %185 = vst [vmem:[%s163_s23 + $0x8] sm:$0xff] %v184_v1 }
  0x2a   : > { %187 = vst [vmem:[%s163_s23 + $0x10] sm:$0xff] %v186_v2 }
  0x2b   : > { %189 = vst [vmem:[%s163_s23 + $0x18] sm:$0xff] %v188_v3 }
  0x2c   : > { %191 = vst [vmem:[%s163_s23 + $0x20] sm:$0xff] %v190_v4 }
  0x2d   : > { %193 = vst [vmem:[%s163_s23 + $0x28] sm:$0xff] %v192_v5 }
  0x2e PF: > { %199 = sbr.rel (!%p1246_p9) target bundleno = 152 (0x98), region = 43  ;;  %s201_s28 = sand.u32 (%p1246_p9), 1, %s1114_s15  }
  0x2f   : > { %s964_s7 = smul.u32 (%p1246_p9), 768, %s201_s28  ;;  %s915_s11 = sshll.u32 (%p1246_p9), %s1138_s21, 1 }
  0x30   : > { %s929_s26 = smul.u32 (%p1246_p9), 192, %s1134_s20  ;;  %s1665_s1 = sld [smem:[#allocation8_spill]] (%p1246_p9) }
  0x31   : > { %s1284_s6 = scalar_lea.vmem (%p1246_p9), [#allocation4], %s964_s7 }
  0x32   : > { %s207_s27 = sadd.s32 (%p1246_p9), %s929_s26, %s915_s11 }
  0x33   : > { %s917_s29 = sshll.u32 %s207_s27, 3 }
  0x36   : > { %s1279_s5 = scalar_lea.vmem %s1665_s1, %s917_s29 }
  0x37   : > { %v222_v6 = vld [vmem:[%s1279_s5] sm:$0xff]  ;;  %v224_v7 = vld [vmem:[%s1279_s5 + $0x8] sm:$0xff] }
  0x38   : > { %v226_v8 = vld [vmem:[%s1279_s5 + $0x20] sm:$0xff]  ;;  %223 = vst [vmem:[%s1284_s6] sm:$0xff] %v222_v6  ;;  %v228_v9 = vld [vmem:[%s1279_s5 + $0x28] sm:$0xff] }
  0x39   : > { %225 = vst [vmem:[%s1284_s6 + $0x8] sm:$0xff] %v224_v7  ;;  %v230_v10 = vld [vmem:[%s1279_s5 + $0x40] sm:$0xff]  ;;  %v232_v11 = vld [vmem:[%s1279_s5 + $0x48] sm:$0xff] }
  0x3a   : > { %227 = vst [vmem:[%s1284_s6 + $0x10] sm:$0xff] %v226_v8  ;;  %v234_v12 = vld [vmem:[%s1279_s5 + $0x60] sm:$0xff]  ;;  %v236_v13 = vld [vmem:[%s1279_s5 + $0x68] sm:$0xff] }
  0x3b   : > { %229 = vst [vmem:[%s1284_s6 + $0x18] sm:$0xff] %v228_v9  ;;  %v238_v14 = vld [vmem:[%s1279_s5 + $0x80] sm:$0xff]  ;;  %v240_v15 = vld [vmem:[%s1279_s5 + $0x88] sm:$0xff] }
  0x3c   : > { %231 = vst [vmem:[%s1284_s6 + $0x20] sm:$0xff] %v230_v10  ;;  %v242_v16 = vld [vmem:[%s1279_s5 + $0xa0] sm:$0xff]  ;;  %v244_v17 = vld [vmem:[%s1279_s5 + $0xa8] sm:$0xff] }
  0x3d   : > { %233 = vst [vmem:[%s1284_s6 + $0x28] sm:$0xff] %v232_v11  ;;  %v246_v18 = vld [vmem:[%s1279_s5 + $0xc0] sm:$0xff]  ;;  %v248_v19 = vld [vmem:[%s1279_s5 + $0xc8] sm:$0xff] }
  0x3e   : > { %235 = vst [vmem:[%s1284_s6 + $0x30] sm:$0xff] %v234_v12  ;;  %v250_v20 = vld [vmem:[%s1279_s5 + $0xe0] sm:$0xff]  ;;  %v252_v21 = vld [vmem:[%s1279_s5 + $0xe8] sm:$0xff] }
  0x3f   : > { %237 = vst [vmem:[%s1284_s6 + $0x38] sm:$0xff] %v236_v13  ;;  %v254_v22 = vld [vmem:[%s1279_s5 + $0x100] sm:$0xff]  ;;  %v256_v23 = vld [vmem:[%s1279_s5 + $0x108] sm:$0xff] }
  0x40   : > { %239 = vst [vmem:[%s1284_s6 + $0x40] sm:$0xff] %v238_v14  ;;  %v258_v24 = vld [vmem:[%s1279_s5 + $0x120] sm:$0xff]  ;;  %v260_v25 = vld [vmem:[%s1279_s5 + $0x128] sm:$0xff] }
  0x41   : > { %241 = vst [vmem:[%s1284_s6 + $0x48] sm:$0xff] %v240_v15  ;;  %v262_v26 = vld [vmem:[%s1279_s5 + $0x140] sm:$0xff]  ;;  %v264_v27 = vld [vmem:[%s1279_s5 + $0x148] sm:$0xff] }
  0x42   : > { %243 = vst [vmem:[%s1284_s6 + $0x50] sm:$0xff] %v242_v16  ;;  %v266_v28 = vld [vmem:[%s1279_s5 + $0x160] sm:$0xff]  ;;  %v268_v29 = vld [vmem:[%s1279_s5 + $0x168] sm:$0xff] }
  0x43   : > { %245 = vst [vmem:[%s1284_s6 + $0x58] sm:$0xff] %v244_v17  ;;  %v270_v30 = vld [vmem:[%s1279_s5 + $0x180] sm:$0xff]  ;;  %v272_v31 = vld [vmem:[%s1279_s5 + $0x188] sm:$0xff] }
  0x44   : > { %247 = vst [vmem:[%s1284_s6 + $0x60] sm:$0xff] %v246_v18  ;;  %v274_v32 = vld [vmem:[%s1279_s5 + $0x1a0] sm:$0xff]  ;;  %v276_v33 = vld [vmem:[%s1279_s5 + $0x1a8] sm:$0xff] }
  0x45   : > { %249 = vst [vmem:[%s1284_s6 + $0x68] sm:$0xff] %v248_v19  ;;  %v278_v34 = vld [vmem:[%s1279_s5 + $0x1c0] sm:$0xff]  ;;  %v280_v35 = vld [vmem:[%s1279_s5 + $0x1c8] sm:$0xff] }
  0x46   : > { %251 = vst [vmem:[%s1284_s6 + $0x70] sm:$0xff] %v250_v20  ;;  %v282_v36 = vld [vmem:[%s1279_s5 + $0x1e0] sm:$0xff]  ;;  %v284_v37 = vld [vmem:[%s1279_s5 + $0x1e8] sm:$0xff] }
  0x47   : > { %253 = vst [vmem:[%s1284_s6 + $0x78] sm:$0xff] %v252_v21  ;;  %v286_v38 = vld [vmem:[%s1279_s5 + $0x200] sm:$0xff]  ;;  %v288_v39 = vld [vmem:[%s1279_s5 + $0x208] sm:$0xff] }
  0x48   : > { %255 = vst [vmem:[%s1284_s6 + $0x80] sm:$0xff] %v254_v22  ;;  %v290_v40 = vld [vmem:[%s1279_s5 + $0x220] sm:$0xff]  ;;  %v292_v41 = vld [vmem:[%s1279_s5 + $0x228] sm:$0xff] }
  0x49   : > { %257 = vst [vmem:[%s1284_s6 + $0x88] sm:$0xff] %v256_v23  ;;  %v294_v42 = vld [vmem:[%s1279_s5 + $0x240] sm:$0xff]  ;;  %v296_v43 = vld [vmem:[%s1279_s5 + $0x248] sm:$0xff] }
  0x4a   : > { %259 = vst [vmem:[%s1284_s6 + $0x90] sm:$0xff] %v258_v24  ;;  %v298_v44 = vld [vmem:[%s1279_s5 + $0x260] sm:$0xff]  ;;  %v300_v45 = vld [vmem:[%s1279_s5 + $0x268] sm:$0xff] }
  0x4b   : > { %261 = vst [vmem:[%s1284_s6 + $0x98] sm:$0xff] %v260_v25  ;;  %v302_v46 = vld [vmem:[%s1279_s5 + $0x280] sm:$0xff]  ;;  %v304_v47 = vld [vmem:[%s1279_s5 + $0x288] sm:$0xff] }
  0x4c   : > { %263 = vst [vmem:[%s1284_s6 + $0xa0] sm:$0xff] %v262_v26  ;;  %v306_v48 = vld [vmem:[%s1279_s5 + $0x2a0] sm:$0xff]  ;;  %v308_v49 = vld [vmem:[%s1279_s5 + $0x2a8] sm:$0xff] }
  0x4d   : > { %265 = vst [vmem:[%s1284_s6 + $0xa8] sm:$0xff] %v264_v27  ;;  %v310_v50 = vld [vmem:[%s1279_s5 + $0x2c0] sm:$0xff]  ;;  %v312_v51 = vld [vmem:[%s1279_s5 + $0x2c8] sm:$0xff] }
  0x4e   : > { %267 = vst [vmem:[%s1284_s6 + $0xb0] sm:$0xff] %v266_v28  ;;  %v314_v52 = vld [vmem:[%s1279_s5 + $0x2e0] sm:$0xff]  ;;  %v316_v53 = vld [vmem:[%s1279_s5 + $0x2e8] sm:$0xff] }
  0x4f   : > { %269 = vst [vmem:[%s1284_s6 + $0xb8] sm:$0xff] %v268_v29  ;;  %v318_v54 = vld [vmem:[%s1279_s5 + $0x300] sm:$0xff]  ;;  %v320_v55 = vld [vmem:[%s1279_s5 + $0x308] sm:$0xff] }
  0x50   : > { %271 = vst [vmem:[%s1284_s6 + $0xc0] sm:$0xff] %v270_v30  ;;  %v322_v56 = vld [vmem:[%s1279_s5 + $0x320] sm:$0xff]  ;;  %v324_v57 = vld [vmem:[%s1279_s5 + $0x328] sm:$0xff] }
  0x51   : > { %273 = vst [vmem:[%s1284_s6 + $0xc8] sm:$0xff] %v272_v31  ;;  %v326_v58 = vld [vmem:[%s1279_s5 + $0x340] sm:$0xff]  ;;  %v328_v59 = vld [vmem:[%s1279_s5 + $0x348] sm:$0xff] }
  0x52   : > { %275 = vst [vmem:[%s1284_s6 + $0xd0] sm:$0xff] %v274_v32  ;;  %v330_v60 = vld [vmem:[%s1279_s5 + $0x360] sm:$0xff]  ;;  %v332_v61 = vld [vmem:[%s1279_s5 + $0x368] sm:$0xff] }
  0x53   : > { %277 = vst [vmem:[%s1284_s6 + $0xd8] sm:$0xff] %v276_v33  ;;  %v334_v62 = vld [vmem:[%s1279_s5 + $0x380] sm:$0xff]  ;;  %v336_v63 = vld [vmem:[%s1279_s5 + $0x388] sm:$0xff] }
  0x54   : > { %279 = vst [vmem:[%s1284_s6 + $0xe0] sm:$0xff] %v278_v34  ;;  %v338_v0 = vld [vmem:[%s1279_s5 + $0x3a0] sm:$0xff]  ;;  %v340_v1 = vld [vmem:[%s1279_s5 + $0x3a8] sm:$0xff] }
  0x55   : > { %281 = vst [vmem:[%s1284_s6 + $0xe8] sm:$0xff] %v280_v35  ;;  %v342_v2 = vld [vmem:[%s1279_s5 + $0x3c0] sm:$0xff]  ;;  %v344_v3 = vld [vmem:[%s1279_s5 + $0x3c8] sm:$0xff] }
  0x56   : > { %283 = vst [vmem:[%s1284_s6 + $0xf0] sm:$0xff] %v282_v36  ;;  %v346_v4 = vld [vmem:[%s1279_s5 + $0x3e0] sm:$0xff]  ;;  %v348_v5 = vld [vmem:[%s1279_s5 + $0x3e8] sm:$0xff] }
  0x57   : > { %285 = vst [vmem:[%s1284_s6 + $0xf8] sm:$0xff] %v284_v37  ;;  %v350_v6 = vld [vmem:[%s1279_s5 + $0x400] sm:$0xff]  ;;  %v352_v7 = vld [vmem:[%s1279_s5 + $0x408] sm:$0xff] }
  0x58   : > { %287 = vst [vmem:[%s1284_s6 + $0x100] sm:$0xff] %v286_v38  ;;  %v354_v8 = vld [vmem:[%s1279_s5 + $0x420] sm:$0xff]  ;;  %v356_v9 = vld [vmem:[%s1279_s5 + $0x428] sm:$0xff] }
  0x59   : > { %289 = vst [vmem:[%s1284_s6 + $0x108] sm:$0xff] %v288_v39  ;;  %v358_v10 = vld [vmem:[%s1279_s5 + $0x440] sm:$0xff]  ;;  %v360_v11 = vld [vmem:[%s1279_s5 + $0x448] sm:$0xff] }
  0x5a   : > { %291 = vst [vmem:[%s1284_s6 + $0x110] sm:$0xff] %v290_v40  ;;  %v362_v12 = vld [vmem:[%s1279_s5 + $0x460] sm:$0xff]  ;;  %v364_v13 = vld [vmem:[%s1279_s5 + $0x468] sm:$0xff] }
  0x5b   : > { %293 = vst [vmem:[%s1284_s6 + $0x118] sm:$0xff] %v292_v41  ;;  %v366_v14 = vld [vmem:[%s1279_s5 + $0x480] sm:$0xff]  ;;  %v368_v15 = vld [vmem:[%s1279_s5 + $0x488] sm:$0xff] }
  0x5c   : > { %295 = vst [vmem:[%s1284_s6 + $0x120] sm:$0xff] %v294_v42  ;;  %v370_v16 = vld [vmem:[%s1279_s5 + $0x4a0] sm:$0xff]  ;;  %v372_v17 = vld [vmem:[%s1279_s5 + $0x4a8] sm:$0xff] }
  0x5d   : > { %297 = vst [vmem:[%s1284_s6 + $0x128] sm:$0xff] %v296_v43  ;;  %v374_v18 = vld [vmem:[%s1279_s5 + $0x4c0] sm:$0xff]  ;;  %v376_v19 = vld [vmem:[%s1279_s5 + $0x4c8] sm:$0xff] }
  0x5e   : > { %299 = vst [vmem:[%s1284_s6 + $0x130] sm:$0xff] %v298_v44  ;;  %v378_v20 = vld [vmem:[%s1279_s5 + $0x4e0] sm:$0xff]  ;;  %v380_v21 = vld [vmem:[%s1279_s5 + $0x4e8] sm:$0xff] }
  0x5f   : > { %301 = vst [vmem:[%s1284_s6 + $0x138] sm:$0xff] %v300_v45  ;;  %v382_v22 = vld [vmem:[%s1279_s5 + $0x500] sm:$0xff]  ;;  %v384_v23 = vld [vmem:[%s1279_s5 + $0x508] sm:$0xff] }
  0x60   : > { %303 = vst [vmem:[%s1284_s6 + $0x140] sm:$0xff] %v302_v46  ;;  %v386_v24 = vld [vmem:[%s1279_s5 + $0x520] sm:$0xff]  ;;  %v388_v25 = vld [vmem:[%s1279_s5 + $0x528] sm:$0xff] }
  0x61   : > { %305 = vst [vmem:[%s1284_s6 + $0x148] sm:$0xff] %v304_v47  ;;  %v390_v26 = vld [vmem:[%s1279_s5 + $0x540] sm:$0xff]  ;;  %v392_v27 = vld [vmem:[%s1279_s5 + $0x548] sm:$0xff] }
  0x62   : > { %307 = vst [vmem:[%s1284_s6 + $0x150] sm:$0xff] %v306_v48  ;;  %v394_v28 = vld [vmem:[%s1279_s5 + $0x560] sm:$0xff]  ;;  %v396_v29 = vld [vmem:[%s1279_s5 + $0x568] sm:$0xff] }
  0x63   : > { %309 = vst [vmem:[%s1284_s6 + $0x158] sm:$0xff] %v308_v49  ;;  %v398_v30 = vld [vmem:[%s1279_s5 + $0x580] sm:$0xff]  ;;  %v400_v31 = vld [vmem:[%s1279_s5 + $0x588] sm:$0xff] }
  0x64   : > { %311 = vst [vmem:[%s1284_s6 + $0x160] sm:$0xff] %v310_v50  ;;  %v402_v32 = vld [vmem:[%s1279_s5 + $0x5a0] sm:$0xff]  ;;  %v404_v33 = vld [vmem:[%s1279_s5 + $0x5a8] sm:$0xff] }
  0x65   : > { %313 = vst [vmem:[%s1284_s6 + $0x168] sm:$0xff] %v312_v51  ;;  %v406_v34 = vld [vmem:[%s1279_s5 + $0x5c0] sm:$0xff]  ;;  %v408_v35 = vld [vmem:[%s1279_s5 + $0x5c8] sm:$0xff] }
  0x66   : > { %315 = vst [vmem:[%s1284_s6 + $0x170] sm:$0xff] %v314_v52  ;;  %v410_v36 = vld [vmem:[%s1279_s5 + $0x5e0] sm:$0xff]  ;;  %v412_v37 = vld [vmem:[%s1279_s5 + $0x5e8] sm:$0xff] }
  0x67   : > { %317 = vst [vmem:[%s1284_s6 + $0x178] sm:$0xff] %v316_v53 }
  0x68   : > { %319 = vst [vmem:[%s1284_s6 + $0x180] sm:$0xff] %v318_v54 }
  0x69   : > { %321 = vst [vmem:[%s1284_s6 + $0x188] sm:$0xff] %v320_v55 }
  0x6a   : > { %323 = vst [vmem:[%s1284_s6 + $0x190] sm:$0xff] %v322_v56 }
  0x6b   : > { %325 = vst [vmem:[%s1284_s6 + $0x198] sm:$0xff] %v324_v57 }
  0x6c   : > { %327 = vst [vmem:[%s1284_s6 + $0x1a0] sm:$0xff] %v326_v58 }
  0x6d   : > { %329 = vst [vmem:[%s1284_s6 + $0x1a8] sm:$0xff] %v328_v59 }
  0x6e   : > { %331 = vst [vmem:[%s1284_s6 + $0x1b0] sm:$0xff] %v330_v60 }
  0x6f   : > { %333 = vst [vmem:[%s1284_s6 + $0x1b8] sm:$0xff] %v332_v61 }
  0x70   : > { %335 = vst [vmem:[%s1284_s6 + $0x1c0] sm:$0xff] %v334_v62 }
  0x71   : > { %337 = vst [vmem:[%s1284_s6 + $0x1c8] sm:$0xff] %v336_v63 }
  0x72   : > { %339 = vst [vmem:[%s1284_s6 + $0x1d0] sm:$0xff] %v338_v0 }
  0x73   : > { %341 = vst [vmem:[%s1284_s6 + $0x1d8] sm:$0xff] %v340_v1 }
  0x74   : > { %343 = vst [vmem:[%s1284_s6 + $0x1e0] sm:$0xff] %v342_v2 }
  0x75   : > { %345 = vst [vmem:[%s1284_s6 + $0x1e8] sm:$0xff] %v344_v3 }
  0x76   : > { %347 = vst [vmem:[%s1284_s6 + $0x1f0] sm:$0xff] %v346_v4 }
  0x77   : > { %349 = vst [vmem:[%s1284_s6 + $0x1f8] sm:$0xff] %v348_v5 }
  0x78   : > { %351 = vst [vmem:[%s1284_s6 + $0x200] sm:$0xff] %v350_v6 }
  0x79   : > { %353 = vst [vmem:[%s1284_s6 + $0x208] sm:$0xff] %v352_v7 }
  0x7a   : > { %355 = vst [vmem:[%s1284_s6 + $0x210] sm:$0xff] %v354_v8 }
  0x7b   : > { %357 = vst [vmem:[%s1284_s6 + $0x218] sm:$0xff] %v356_v9 }
  0x7c   : > { %359 = vst [vmem:[%s1284_s6 + $0x220] sm:$0xff] %v358_v10 }
  0x7d   : > { %361 = vst [vmem:[%s1284_s6 + $0x228] sm:$0xff] %v360_v11 }
  0x7e   : > { %363 = vst [vmem:[%s1284_s6 + $0x230] sm:$0xff] %v362_v12 }
  0x7f   : > { %365 = vst [vmem:[%s1284_s6 + $0x238] sm:$0xff] %v364_v13 }
  0x80   : > { %367 = vst [vmem:[%s1284_s6 + $0x240] sm:$0xff] %v366_v14 }
  0x81   : > { %369 = vst [vmem:[%s1284_s6 + $0x248] sm:$0xff] %v368_v15 }
  0x82   : > { %371 = vst [vmem:[%s1284_s6 + $0x250] sm:$0xff] %v370_v16 }
  0x83   : > { %373 = vst [vmem:[%s1284_s6 + $0x258] sm:$0xff] %v372_v17 }
  0x84   : > { %375 = vst [vmem:[%s1284_s6 + $0x260] sm:$0xff] %v374_v18 }
  0x85   : > { %377 = vst [vmem:[%s1284_s6 + $0x268] sm:$0xff] %v376_v19 }
  0x86   : > { %379 = vst [vmem:[%s1284_s6 + $0x270] sm:$0xff] %v378_v20 }
  0x87   : > { %381 = vst [vmem:[%s1284_s6 + $0x278] sm:$0xff] %v380_v21 }
  0x88   : > { %383 = vst [vmem:[%s1284_s6 + $0x280] sm:$0xff] %v382_v22 }
  0x89   : > { %385 = vst [vmem:[%s1284_s6 + $0x288] sm:$0xff] %v384_v23 }
  0x8a   : > { %387 = vst [vmem:[%s1284_s6 + $0x290] sm:$0xff] %v386_v24 }
  0x8b   : > { %389 = vst [vmem:[%s1284_s6 + $0x298] sm:$0xff] %v388_v25 }
  0x8c   : > { %391 = vst [vmem:[%s1284_s6 + $0x2a0] sm:$0xff] %v390_v26 }
  0x8d   : > { %393 = vst [vmem:[%s1284_s6 + $0x2a8] sm:$0xff] %v392_v27 }
  0x8e   : > { %395 = vst [vmem:[%s1284_s6 + $0x2b0] sm:$0xff] %v394_v28 }
  0x8f   : > { %397 = vst [vmem:[%s1284_s6 + $0x2b8] sm:$0xff] %v396_v29 }
  0x90   : > { %399 = vst [vmem:[%s1284_s6 + $0x2c0] sm:$0xff] %v398_v30 }
  0x91   : > { %401 = vst [vmem:[%s1284_s6 + $0x2c8] sm:$0xff] %v400_v31 }
  0x92   : > { %403 = vst [vmem:[%s1284_s6 + $0x2d0] sm:$0xff] %v402_v32 }
  0x93   : > { %405 = vst [vmem:[%s1284_s6 + $0x2d8] sm:$0xff] %v404_v33 }
  0x94   : > { %407 = vst [vmem:[%s1284_s6 + $0x2e0] sm:$0xff] %v406_v34 }
  0x95   : > { %409 = vst [vmem:[%s1284_s6 + $0x2e8] sm:$0xff] %v408_v35 }
  0x96   : > { %411 = vst [vmem:[%s1284_s6 + $0x2f0] sm:$0xff] %v410_v36 }
  0x97   : > { %413 = vst [vmem:[%s1284_s6 + $0x2f8] sm:$0xff] %v412_v37 }
  0x98 PF: > { %p918_p0 = scmp.ge.s32.totalorder %s1142_s22, 1  ;;  %p426_p1 = scmp.lt.s32.totalorder %s1142_s22, 13 }
  0x9a   : > { %p427_p2 = pnand %p918_p0, %p426_p1 }
  0x9b   : > { %s433_s0 = sand.u32 (!%p427_p2), 1, %s1118_s16   ;;  %s440_s23 = sand.u32 (!%p427_p2), 1, %s1110_s14  }
  0x9c   : > { %430 = sbr.rel (%p427_p2) target bundleno = 401 (0x191), region = 70  ;;  %s467_s7 = sand.u32 (!%p427_p2), 1, %s1102_s12  }
  0x9d   : > { %s965_s28 = smul.u32 (!%p427_p2), 48, %s433_s0  ;;  %s919_s26 = sshll.u32 (!%p427_p2), %s467_s7, 5 }
  0x9e   : > { %s966_s11 = smul.u32 (!%p427_p2), 768, %s440_s23  ;;  %s920_s27 = sshll.u32 (!%p427_p2), %s1130_s19, 1 }
  0x9f   : > { %p475_p3 = scmp.lt.s32.totalorder (!%p427_p2), %s920_s27, 3  ;;  %s1487_s6 = scalar_lea.vmem (!%p427_p2), [#allocation3], %s965_s28 }
  0xa0   : > { %s1489_s1 = scalar_lea.vmem (!%p427_p2), [#allocation4], %s966_s11  ;;  %s1491_s25 = scalar_lea.vmem (!%p427_p2), [#allocation5], %s919_s26 }
  0xa1   : > { %s1684_s27 = smov (!%p475_p3, %s920_s27), 3  ;;  %p921_p4 = scmp.ne.s32.totalorder %s1126_s18, 0 }
  0xa2   : > { %s477_s5 = scalar_lea.vmem %s1655_s2, %s1684_s27 }
  0xa3   : > { %484 = sbr.rel (%p921_p4) target bundleno = 173 (0xad), region = 82 }
  0xa8   : > { %v1144_v38 = vmov 0.0  }
  0xa9   : > { %485 = vst [vmem:[#allocation2 + $0x10] sm:$0xff] %v1144_v38 }
  0xaa   : > { %486 = vst [vmem:[#allocation2] sm:$0xff] %v1144_v38 }
  0xab   : > { %487 = vst [vmem:[#allocation2 + $0x18] sm:$0xff] %v1144_v38 }
  0xac   : > { %488 = vst [vmem:[#allocation2 + $0x8] sm:$0xff] %v1144_v38 }
  0xad PF: > { %v529_v39 = vld [vmem:[%s1489_s1 + $0xf0] sm:$0xff]  ;;  %v527_v41 = vld [vmem:[%s1489_s1 + $0xe0] sm:$0xff]  ;;  %v530_v44 = vld [vmem:[%s1489_s1 + $0xf8] sm:$0xff]  ;;  %p922_p5 = scmp.ne.s32.totalorder %s1126_s18, 5 }
  0xae   : > { %v593_v40 = vld [vmem:[%s1489_s1 + $0x2f0] sm:$0xff]  ;;  %595 = vmatpush.msra.mxu0 %v529_v39  ;;  %v591_v43 = vld [vmem:[%s1489_s1 + $0x2e0] sm:$0xff]  ;;  %664 = vmatpush.msra.mxu3 %v530_v44  ;;  %v528_v48 = vld [vmem:[%s1489_s1 + $0xe8] sm:$0xff] }
  0xaf   : > { %641 = vmatpush.msra.mxu2 %v593_v40  ;;  %v561_v42 = vld [vmem:[%s1489_s1 + $0x1f0] sm:$0xff]  ;;  %v559_v46 = vld [vmem:[%s1489_s1 + $0x1e0] sm:$0xff]  ;;  %v526_v52 = vld [vmem:[%s1489_s1 + $0xd8] sm:$0xff] }
  0xb0   : > { %618 = vmatpush.msra.mxu1 %v561_v42  ;;  %v525_v45 = vld [vmem:[%s1489_s1 + $0xd0] sm:$0xff]  ;;  %596 = vmatpush.msra.mxu0 %v527_v41  ;;  %v523_v50 = vld [vmem:[%s1489_s1 + $0xc0] sm:$0xff]  ;;  %v524_v54 = vld [vmem:[%s1489_s1 + $0xc8] sm:$0xff] }
  0xb1   : > { %v589_v47 = vld [vmem:[%s1489_s1 + $0x2d0] sm:$0xff]  ;;  %642 = vmatpush.msra.mxu2 %v591_v43  ;;  %665 = vmatpush.msra.mxu3 %v528_v48  ;;  %v587_v51 = vld [vmem:[%s1489_s1 + $0x2c0] sm:$0xff]  ;;  %v522_v58 = vld [vmem:[%s1489_s1 + $0xb8] sm:$0xff] }
  0xb2   : > { %v557_v49 = vld [vmem:[%s1489_s1 + $0x1d0] sm:$0xff]  ;;  %619 = vmatpush.msra.mxu1 %v559_v46  ;;  %597 = vmatpush.msra.mxu0 %v525_v45  ;;  %v555_v53 = vld [vmem:[%s1489_s1 + $0x1c0] sm:$0xff]  ;;  %v520_v62 = vld [vmem:[%s1489_s1 + $0xa8] sm:$0xff] }
  0xb3   : > { %643 = vmatpush.msra.mxu2 %v589_v47  ;;  %666 = vmatpush.msra.mxu3 %v526_v52  ;;  %v521_v55 = vld [vmem:[%s1489_s1 + $0xb0] sm:$0xff]  ;;  %v519_v59 = vld [vmem:[%s1489_s1 + $0xa0] sm:$0xff]  ;;  %v518_v2 = vld [vmem:[%s1489_s1 + $0x98] sm:$0xff] }
  0xb4   : > { %620 = vmatpush.msra.mxu1 %v557_v49  ;;  %v585_v56 = vld [vmem:[%s1489_s1 + $0x2b0] sm:$0xff]  ;;  %598 = vmatpush.msra.mxu0 %v523_v50  ;;  %v583_v60 = vld [vmem:[%s1489_s1 + $0x2a0] sm:$0xff]  ;;  %v516_v6 = vld [vmem:[%s1489_s1 + $0x88] sm:$0xff] }
  0xb5   : > { %644 = vmatpush.msra.mxu2 %v587_v51  ;;  %v553_v57 = vld [vmem:[%s1489_s1 + $0x1b0] sm:$0xff]  ;;  %667 = vmatpush.msra.mxu3 %v524_v54  ;;  %v551_v61 = vld [vmem:[%s1489_s1 + $0x1a0] sm:$0xff]  ;;  %v514_v10 = vld [vmem:[%s1489_s1 + $0x78] sm:$0xff] }
  0xb6   : > { %621 = vmatpush.msra.mxu1 %v555_v53  ;;  %599 = vmatpush.msra.mxu0 %v521_v55  ;;  %v517_v63 = vld [vmem:[%s1489_s1 + $0x90] sm:$0xff]  ;;  %v515_v3 = vld [vmem:[%s1489_s1 + $0x80] sm:$0xff]  ;;  %v512_v14 = vld [vmem:[%s1489_s1 + $0x68] sm:$0xff] }
  0xb7   : > { %645 = vmatpush.msra.mxu2 %v585_v56  ;;  %668 = vmatpush.msra.mxu3 %v522_v58  ;;  %v581_v0 = vld [vmem:[%s1489_s1 + $0x290] sm:$0xff]  ;;  %v579_v4 = vld [vmem:[%s1489_s1 + $0x280] sm:$0xff]  ;;  %v510_v18 = vld [vmem:[%s1489_s1 + $0x58] sm:$0xff] }
  0xb8   : > { %622 = vmatpush.msra.mxu1 %v553_v57  ;;  %600 = vmatpush.msra.mxu0 %v519_v59  ;;  %v549_v1 = vld [vmem:[%s1489_s1 + $0x190] sm:$0xff]  ;;  %v547_v5 = vld [vmem:[%s1489_s1 + $0x180] sm:$0xff]  ;;  %v508_v22 = vld [vmem:[%s1489_s1 + $0x48] sm:$0xff] }
  0xb9   : > { %646 = vmatpush.msra.mxu2 %v583_v60  ;;  %669 = vmatpush.msra.mxu3 %v520_v62  ;;  %v513_v7 = vld [vmem:[%s1489_s1 + $0x70] sm:$0xff]  ;;  %v511_v11 = vld [vmem:[%s1489_s1 + $0x60] sm:$0xff]  ;;  %v506_v26 = vld [vmem:[%s1489_s1 + $0x38] sm:$0xff] }
  0xba   : > { %623 = vmatpush.msra.mxu1 %v551_v61  ;;  %601 = vmatpush.msra.mxu0 %v517_v63  ;;  %v577_v8 = vld [vmem:[%s1489_s1 + $0x270] sm:$0xff]  ;;  %v575_v12 = vld [vmem:[%s1489_s1 + $0x260] sm:$0xff]  ;;  %v504_v30 = vld [vmem:[%s1489_s1 + $0x28] sm:$0xff] }
  0xbb   : > { %647 = vmatpush.msra.mxu2 %v581_v0  ;;  %670 = vmatpush.msra.mxu3 %v518_v2  ;;  %v545_v9 = vld [vmem:[%s1489_s1 + $0x170] sm:$0xff]  ;;  %v543_v13 = vld [vmem:[%s1489_s1 + $0x160] sm:$0xff]  ;;  %v502_v34 = vld [vmem:[%s1489_s1 + $0x18] sm:$0xff] }
  0xbc   : > { %624 = vmatpush.msra.mxu1 %v549_v1  ;;  %602 = vmatpush.msra.mxu0 %v515_v3  ;;  %v509_v15 = vld [vmem:[%s1489_s1 + $0x50] sm:$0xff]  ;;  %v507_v19 = vld [vmem:[%s1489_s1 + $0x40] sm:$0xff]  ;;  %v562_v37 = vld [vmem:[%s1489_s1 + $0x1f8] sm:$0xff] }
  0xbd   : > { %648 = vmatpush.msra.mxu2 %v579_v4  ;;  %671 = vmatpush.msra.mxu3 %v516_v6  ;;  %v573_v16 = vld [vmem:[%s1489_s1 + $0x250] sm:$0xff]  ;;  %v571_v20 = vld [vmem:[%s1489_s1 + $0x240] sm:$0xff]  ;;  %v500_v39 = vld [vmem:[%s1489_s1 + $0x8] sm:$0xff] }
  0xbe   : > { %625 = vmatpush.msra.mxu1 %v547_v5  ;;  %603 = vmatpush.msra.mxu0 %v513_v7  ;;  %v541_v17 = vld [vmem:[%s1489_s1 + $0x150] sm:$0xff]  ;;  %v539_v21 = vld [vmem:[%s1489_s1 + $0x140] sm:$0xff]  ;;  %v560_v40 = vld [vmem:[%s1489_s1 + $0x1e8] sm:$0xff] }
  0xbf   : > { %649 = vmatpush.msra.mxu2 %v577_v8  ;;  %672 = vmatpush.msra.mxu3 %v514_v10  ;;  %v505_v23 = vld [vmem:[%s1489_s1 + $0x30] sm:$0xff]  ;;  %v503_v27 = vld [vmem:[%s1489_s1 + $0x20] sm:$0xff]  ;;  %v594_v41 = vld [vmem:[%s1489_s1 + $0x2f8] sm:$0xff] }
  0xc0   : > { %626 = vmatpush.msra.mxu1 %v545_v9  ;;  %604 = vmatpush.msra.mxu0 %v511_v11  ;;  %v569_v24 = vld [vmem:[%s1489_s1 + $0x230] sm:$0xff]  ;;  %v567_v28 = vld [vmem:[%s1489_s1 + $0x220] sm:$0xff]  ;;  %v558_v42 = vld [vmem:[%s1489_s1 + $0x1d8] sm:$0xff] }
  0xc1   : > { %650 = vmatpush.msra.mxu2 %v575_v12  ;;  %673 = vmatpush.msra.mxu3 %v512_v14  ;;  %v537_v25 = vld [vmem:[%s1489_s1 + $0x130] sm:$0xff]  ;;  %v535_v29 = vld [vmem:[%s1489_s1 + $0x120] sm:$0xff]  ;;  %v592_v43 = vld [vmem:[%s1489_s1 + $0x2e8] sm:$0xff] }
  0xc2   : > { %627 = vmatpush.msra.mxu1 %v543_v13  ;;  %605 = vmatpush.msra.mxu0 %v509_v15  ;;  %v501_v31 = vld [vmem:[%s1489_s1 + $0x10] sm:$0xff]  ;;  %v499_v35 = vld [vmem:[%s1489_s1] sm:$0xff]  ;;  %v556_v44 = vld [vmem:[%s1489_s1 + $0x1c8] sm:$0xff] }
  0xc3   : > { %651 = vmatpush.msra.mxu2 %v573_v16  ;;  %674 = vmatpush.msra.mxu3 %v510_v18  ;;  %v565_v32 = vld [vmem:[%s1489_s1 + $0x210] sm:$0xff]  ;;  %v563_v36 = vld [vmem:[%s1489_s1 + $0x200] sm:$0xff]  ;;  %v590_v45 = vld [vmem:[%s1489_s1 + $0x2d8] sm:$0xff] }
  0xc4   : > { %628 = vmatpush.msra.mxu1 %v541_v17  ;;  %606 = vmatpush.msra.mxu0 %v507_v19  ;;  %v533_v33 = vld [vmem:[%s1489_s1 + $0x110] sm:$0xff]  ;;  %v531_v38 = vld [vmem:[%s1489_s1 + $0x100] sm:$0xff]  ;;  %v554_v46 = vld [vmem:[%s1489_s1 + $0x1b8] sm:$0xff] }
  0xc5   : > { %652 = vmatpush.msra.mxu2 %v571_v20  ;;  %675 = vmatpush.msra.mxu3 %v508_v22  ;;  %v588_v47 = vld [vmem:[%s1489_s1 + $0x2c8] sm:$0xff]  ;;  %v586_v49 = vld [vmem:[%s1489_s1 + $0x2b8] sm:$0xff]  ;;  %v493_v54 = vld [vmem:[%s1487_s6] sm:$0xff] }
  0xc6   : > { %629 = vmatpush.msra.mxu1 %v539_v21  ;;  %607 = vmatpush.msra.mxu0 %v505_v23  ;;  %v552_v48 = vld [vmem:[%s1489_s1 + $0x1a8] sm:$0xff]  ;;  %v550_v50 = vld [vmem:[%s1489_s1 + $0x198] sm:$0xff]  ;;  %v1575_v55 = vld [vmem:[%s1487_s6 + $0x10] sm:$0xff] }
  0xc7   : > { %653 = vmatpush.msra.mxu2 %v569_v24  ;;  %676 = vmatpush.msra.mxu3 %v506_v26  ;;  %v584_v51 = vld [vmem:[%s1489_s1 + $0x2a8] sm:$0xff]  ;;  %v582_v53 = vld [vmem:[%s1489_s1 + $0x298] sm:$0xff]  ;;  %v497_v5 = vld [vmem:[%s1487_s6 + $0x20] sm:$0xff] }
  0xc8   : > { %630 = vmatpush.msra.mxu1 %v537_v25  ;;  %608 = vmatpush.msra.mxu0 %v503_v27  ;;  %v548_v52 = vld [vmem:[%s1489_s1 + $0x188] sm:$0xff]  ;;  %v546_v56 = vld [vmem:[%s1489_s1 + $0x178] sm:$0xff]  ;;  %v489_v16 = vld [vmem:[#allocation2 + $0x10] sm:$0xff] }
  0xc9   : > { %654 = vmatpush.msra.mxu2 %v567_v28  ;;  %677 = vmatpush.msra.mxu3 %v504_v30  ;;  %v580_v57 = vld [vmem:[%s1489_s1 + $0x288] sm:$0xff]  ;;  %v578_v60 = vld [vmem:[%s1489_s1 + $0x278] sm:$0xff] }
  0xca   : > { %631 = vmatpush.msra.mxu1 %v535_v29  ;;  %609 = vmatpush.msra.mxu0 %v501_v31  ;;  %v494_v58 = vld [vmem:[%s1487_s6 + $0x8] sm:$0xff]  ;;  %v496_v1 = vld [vmem:[%s1487_s6 + $0x18] sm:$0xff]  ;;  %v490_v31 = vld [vmem:[#allocation2] sm:$0xff] }
  0xcb   : > { %655 = vmatpush.msra.mxu2 %v565_v32  ;;  %678 = vmatpush.msra.mxu3 %v502_v34  ;;  %v544_v59 = vld [vmem:[%s1489_s1 + $0x168] sm:$0xff]  ;;  %v542_v61 = vld [vmem:[%s1489_s1 + $0x158] sm:$0xff] }
  0xcc   : > { %632 = vmatpush.msra.mxu1 %v533_v33  ;;  %610 = vmatpush.msra.mxu0 %v499_v35  ;;  %v576_v62 = vld [vmem:[%s1489_s1 + $0x268] sm:$0xff]  ;;  %v574_v0 = vld [vmem:[%s1489_s1 + $0x258] sm:$0xff] }
  0xcd   : > { %656 = vmatpush.msra.mxu2 %v563_v36  ;;  %679 = vmatpush.msra.mxu3 %v500_v39  ;;  %v540_v63 = vld [vmem:[%s1489_s1 + $0x148] sm:$0xff]  ;;  %v538_v3 = vld [vmem:[%s1489_s1 + $0x138] sm:$0xff] }
  0xce   : > { %687 = vmatpush.msrb.mxu0 %v562_v37  ;;  %633 = vmatpush.msra.mxu1 %v531_v38  ;;  %v498_v2 = vld [vmem:[%s1487_s6 + $0x28] sm:$0xff] }
  0xcf   : > { %931 = vmatpush.msrb.mxu2 %v562_v37  ;;  %947 = vmatpush.msrb.mxu3 %v594_v41  ;;  %v572_v4 = vld [vmem:[%s1489_s1 + $0x248] sm:$0xff]  ;;  %v570_v7 = vld [vmem:[%s1489_s1 + $0x238] sm:$0xff] }
  0xd0   : > { %688 = vmatpush.msrb.mxu0 %v560_v40  ;;  %710 = vmatpush.msrb.mxu1 %v594_v41  ;;  %v536_v6 = vld [vmem:[%s1489_s1 + $0x128] sm:$0xff]  ;;  %v534_v8 = vld [vmem:[%s1489_s1 + $0x118] sm:$0xff] }
  0xd1   : > { %932 = vmatpush.msrb.mxu2 %v560_v40  ;;  %948 = vmatpush.msrb.mxu3 %v592_v43  ;;  %v568_v9 = vld [vmem:[%s1489_s1 + $0x228] sm:$0xff]  ;;  %v566_v11 = vld [vmem:[%s1489_s1 + $0x218] sm:$0xff] }
  0xd2   : > { %689 = vmatpush.msrb.mxu0 %v558_v42  ;;  %711 = vmatpush.msrb.mxu1 %v592_v43  ;;  %v532_v10 = vld [vmem:[%s1489_s1 + $0x108] sm:$0xff]  ;;  %v491_v24 = vld [vmem:[#allocation2 + $0x18] sm:$0xff] }
  0xd3   : > { %933 = vmatpush.msrb.mxu2 %v558_v42  ;;  %949 = vmatpush.msrb.mxu3 %v590_v45  ;;  %v564_v12 = vld [vmem:[%s1489_s1 + $0x208] sm:$0xff] }
  0xd4   : > { %690 = vmatpush.msrb.mxu0 %v556_v44  ;;  %712 = vmatpush.msrb.mxu1 %v590_v45  ;;  %v492_v37 = vld [vmem:[#allocation2 + $0x8] sm:$0xff] }
  0xd5   : > { %934 = vmatpush.msrb.mxu2 %v556_v44  ;;  %950 = vmatpush.msrb.mxu3 %v588_v47 }
  0xd6   : > { %691 = vmatpush.msrb.mxu0 %v554_v46  ;;  %713 = vmatpush.msrb.mxu1 %v588_v47 }
  0xd7   : > { %935 = vmatpush.msrb.mxu2 %v554_v46  ;;  %951 = vmatpush.msrb.mxu3 %v586_v49 }
  0xd8   : > { %692 = vmatpush.msrb.mxu0 %v552_v48  ;;  %714 = vmatpush.msrb.mxu1 %v586_v49 }
  0xd9   : > { %936 = vmatpush.msrb.mxu2 %v552_v48  ;;  %952 = vmatpush.msrb.mxu3 %v584_v51 }
  0xda   : > { %693 = vmatpush.msrb.mxu0 %v550_v50  ;;  %715 = vmatpush.msrb.mxu1 %v584_v51 }
  0xdb   : > { %937 = vmatpush.msrb.mxu2 %v550_v50  ;;  %953 = vmatpush.msrb.mxu3 %v582_v53 }
  0xdc   : > { %694 = vmatpush.msrb.mxu0 %v548_v52  ;;  %716 = vmatpush.msrb.mxu1 %v582_v53 }
  0xdd   : > { %938 = vmatpush.msrb.mxu2 %v548_v52  ;;  %611 = vmatmul.f32.vlgmr.msra.gmra.mxu0 %v493_v54 }
  0xde   : > { %657 = vmatmul.f32.vlgmr.msra.gmra.mxu2 %v1575_v55  ;;  %695 = vmatpush.msrb.mxu0 %v546_v56 }
  0xdf   : > { %939 = vmatpush.msrb.mxu2 %v546_v56  ;;  %717 = vmatpush.msrb.mxu1 %v580_v57 }
  0xe0   : > { %954 = vmatpush.msrb.mxu3 %v580_v57  ;;  %634 = vmatmul.f32.vlgmr.msra.gmra.mxu1 %v494_v58 }
  0xe1   : > { %680 = vmatmul.f32.vlgmr.msra.gmra.mxu3 %v493_v54  ;;  %696 = vmatpush.msrb.mxu0 %v544_v59 }
  0xe2   : > { %940 = vmatpush.msrb.mxu2 %v544_v59  ;;  %718 = vmatpush.msrb.mxu1 %v578_v60 }
  0xe3   : > { %955 = vmatpush.msrb.mxu3 %v578_v60  ;;  %697 = vmatpush.msrb.mxu0 %v542_v61 }
  0xe4   : > { %941 = vmatpush.msrb.mxu2 %v542_v61  ;;  %719 = vmatpush.msrb.mxu1 %v576_v62 }
  0xe5   : > { %956 = vmatpush.msrb.mxu3 %v576_v62  ;;  %698 = vmatpush.msrb.mxu0 %v540_v63 }
  0xe6   : > { %942 = vmatpush.msrb.mxu2 %v540_v63  ;;  %720 = vmatpush.msrb.mxu1 %v574_v0 }
  0xe7   : > { %957 = vmatpush.msrb.mxu3 %v574_v0  ;;  %614 = vmatmul.f32.gmra.mxu0 %v496_v1 }
  0xe8   : > { %660 = vmatmul.f32.gmra.mxu2 %v498_v2  ;;  %699 = vmatpush.msrb.mxu0 %v538_v3 }
  0xe9   : > { %943 = vmatpush.msrb.mxu2 %v538_v3  ;;  %721 = vmatpush.msrb.mxu1 %v572_v4 }
  0xea   : > { %958 = vmatpush.msrb.mxu3 %v572_v4  ;;  %637 = vmatmul.f32.gmra.mxu1 %v497_v5 }
  0xeb   : > { %683 = vmatmul.f32.gmra.mxu3 %v496_v1  ;;  %700 = vmatpush.msrb.mxu0 %v536_v6 }
  0xec   : > { %944 = vmatpush.msrb.mxu2 %v536_v6  ;;  %722 = vmatpush.msrb.mxu1 %v570_v7 }
  0xed   : > { %959 = vmatpush.msrb.mxu3 %v570_v7  ;;  %701 = vmatpush.msrb.mxu0 %v534_v8 }
  0xee   : > { %945 = vmatpush.msrb.mxu2 %v534_v8  ;;  %723 = vmatpush.msrb.mxu1 %v568_v9 }
  0xef   : > { %960 = vmatpush.msrb.mxu3 %v568_v9  ;;  %702 = vmatpush.msrb.mxu0 %v532_v10 }
  0xf0   : > { %946 = vmatpush.msrb.mxu2 %v532_v10  ;;  %724 = vmatpush.msrb.mxu1 %v566_v11 }
  0xf1   : > { %961 = vmatpush.msrb.mxu3 %v566_v11  ;;  %703 = vmatmul.f32.vlgmr.msrb.gmra.mxu0 %v494_v58 }
  0xf2   : > { %706 = vmatmul.f32.vlgmr.msrb.gmra.mxu2 %v497_v5  ;;  %725 = vmatpush.msrb.mxu1 %v564_v12 }
  0xf3   : > { %962 = vmatpush.msrb.mxu3 %v564_v12  ;;  %726 = vmatmul.f32.vlgmr.msrb.gmra.mxu1 %v1575_v55 }
  0xf4   : > { %729 = vmatmul.f32.vlgmr.msrb.gmra.mxu3 %v498_v2 }
 0x15a   : > { %v612_v13 = vpop.f32.mrf.mxu0 }
 0x15d   : > { %v635_v14 = vpop.f32.mrf.mxu1 }
 0x15e   : > { %v636_v15 = vadd.f32 %v635_v14, %v612_v13 }
 0x161   : > { %v658_v17 = vpop.f32.mrf.mxu2 }
 0x162   : > { %v659_v18 = vadd.f32 %v658_v17, %v636_v15 }
 0x164   : > { %v733_v19 = vadd.f32 %v659_v18, %v489_v16  ;;  %v681_v20 = vpop.f32.mrf.mxu3  ;;  %v615_v21 = vpop.f32.mrf.mxu0 }
 0x166   : > { %737 = vst [vmem:[#allocation2 + $0x10] sm:$0xff] %v733_v19 }
 0x167   : > { %v638_v22 = vpop.f32.mrf.mxu1 }
 0x168   : > { %v639_v23 = vadd.f32 %v638_v22, %v615_v21 }
 0x16b   : > { %v661_v25 = vpop.f32.mrf.mxu2 }
 0x16c   : > { %v662_v26 = vadd.f32 %v661_v25, %v639_v23 }
 0x16e   : > { %v735_v27 = vadd.f32 %v662_v26, %v491_v24  ;;  %v684_v28 = vpop.f32.mrf.mxu3  ;;  %v704_v29 = vpop.f32.mrf.mxu0 }
 0x16f   : > { %v705_v30 = vadd.f32 %v704_v29, %v681_v20 }
 0x170   : > { %739 = vst [vmem:[#allocation2 + $0x18] sm:$0xff] %v735_v27  ;;  %v727_v32 = vpop.f32.mrf.mxu1 }
 0x171   : > { %v728_v33 = vadd.f32 %v727_v32, %v705_v30 }
 0x173   : > { %v734_v34 = vadd.f32 %v728_v33, %v490_v31 }
 0x175   : > { %v707_v35 = vpop.f32.mrf.mxu2  ;;  %738 = vst [vmem:[#allocation2] sm:$0xff] %v734_v34 }
 0x176   : > { %v708_v36 = vadd.f32 %v707_v35, %v684_v28 }
 0x177   : > { %v730_v38 = vpop.f32.mrf.mxu3 }
 0x178   : > { %v731_v39 = vadd.f32 %v730_v38, %v708_v36  ;;  %744 = sbr.rel (%p922_p5) target bundleno = 393 (0x189), region = 86 }
 0x17a   : > { %v736_v40 = vadd.f32 %v731_v39, %v492_v37 }
 0x17c   : > { %740 = vst [vmem:[#allocation2 + $0x8] sm:$0xff] %v736_v40 }
 0x17d   : > { %v745_v41 = vld [vmem:[#allocation2 + $0x10] sm:$0xff]  ;;  %v749_v42 = vld [vmem:[%s477_s5] sm:$0x3]  ;;  %v747_v46 = vld [vmem:[#allocation2 + $0x18] sm:$0xff] }
 0x17e   : > { %v746_v43 = vld [vmem:[#allocation2] sm:$0xff]  ;;  %v751_v44 = vperm.slane %v749_v42, 0  ;;  %v752_v45 = vperm.slane %v749_v42, 1 }
 0x180   : > { %v755_v48 = vadd.f32 %v751_v44, %v745_v41  ;;  %v756_v49 = vadd.f32 %v752_v45, %v746_v43  ;;  %v757_v50 = vadd.f32 %v751_v44, %v747_v46 }
 0x182   : > { %v759_v52 = vmax.f32 %v755_v48, 0.0  ;;  %v760_v53 = vmax.f32 %v756_v49, 0.0  ;;  %v761_v54 = vmax.f32 %v757_v50, 0.0 }
 0x183   : > { %v748_v47 = vld [vmem:[#allocation2 + $0x8] sm:$0xff] }
 0x184   : > { %v758_v51 = vadd.f32 %v752_v45, %v748_v47  ;;  %763 = vst [vmem:[%s1491_s25] sm:$0xff] %v759_v52 }
 0x185   : > { %764 = vst [vmem:[%s1491_s25 + $0x8] sm:$0xff] %v760_v53 }
 0x186   : > { %v762_v55 = vmax.f32 %v758_v51, 0.0  ;;  %765 = vst [vmem:[%s1491_s25 + $0x10] sm:$0xff] %v761_v54 }
 0x188   : > { %766 = vst [vmem:[%s1491_s25 + $0x18] sm:$0xff] %v762_v55 }
 0x189 PF: > { %773 = sbr.rel (!%p1259_p12) target bundleno = 401 (0x191), region = 90  ;;  %s930_s14 = sshll.u32 (%p1259_p12), %s1130_s19, 4 }
 0x18a   : > { %s779_s0 = scalar_lea.vmem (%p1259_p12), %s1656_s3, %s930_s14 }
 0x18b   : > { %v792_v56 = vld [vmem:[%s1491_s25] sm:$0xff] (%p1259_p12) }
 0x18c   : > { %v794_v57 = vld [vmem:[%s1491_s25 + $0x8] sm:$0xff] (%p1259_p12)  ;;  %793 = vst [vmem:[%s779_s0] sm:$0xff] (%p1259_p12), %v792_v56 }
 0x18d   : > { %v796_v58 = vld [vmem:[%s1491_s25 + $0x10] sm:$0xff] (%p1259_p12)  ;;  %795 = vst [vmem:[%s779_s0 + $0x8] sm:$0xff] (%p1259_p12), %v794_v57 }
 0x18e   : > { %797 = vst [vmem:[%s779_s0 + $0x20] sm:$0xff] %v796_v58 }
 0x18f   : > { %v798_v59 = vld [vmem:[%s1491_s25 + $0x18] sm:$0xff] }
 0x190   : > { %799 = vst [vmem:[%s779_s0 + $0x28] sm:$0xff] %v798_v59 }
 0x191 PF: > { %s13_s22 = sadd.s32 1, %s1142_s22   ;;  %s1666_s10 = sld [smem:[#allocation6_spill]] }
 0x192   : > { %p10_p6 = scmp.ge.s32.totalorder %s13_s22, 14   ;;  %s1667_s12 = smov %s1106_s13 }
 0x193   : > { %s1668_s13 = smov %s1257_s9  ;;  %s1669_s14 = smov %s1114_s15 }
 0x194   : > { %s1670_s15 = smov %s1254_s8  ;;  %s1671_s16 = smov %s1122_s17 }
 0x195   : > { %s1672_s17 = smov %s1240_s30  ;;  %s1673_s18 = smov %s1134_s20 }
 0x196   : > { %s1674_s19 = smov %s1138_s21  ;;  %s1675_s20 = smov %s1678_s24 }
 0x197   : > { %s1676_s21 = smov %s1666_s10  ;;  %12 = sbr.rel (!%p10_p6) target bundleno = 9 (0x9), region = 155 }

// kernel: vgg_mse.24
= control target key start
LH: loop header
LB: loop body
LE: loop exit
PB: predicated region body
PF: predicated region fallthrough
CT: control target
= control target key end

     0   :  { %s170_s0 = inlined_call_operand.vmem [shape: f32[64,128], index: 0, kind: input, shape index: {}]   ;;  %s171_s1 = inlined_call_operand.vmem [shape: f32[64,128], index: 1, kind: input, shape index: {}]   ;;  %s172_s2 = inlined_call_operand.hbm [shape: f32[1,1], index: 2, kind: output, shape index: {}]  }
   0x1   :  { %v18_v0 = vld [vmem:[%s170_s0] sm:$0xff]  ;;  %v19_v1 = vld [vmem:[%s170_s0 + $0x8] sm:$0xff]  ;;  %v20_v2 = vld [vmem:[%s170_s0 + $0x10] sm:$0xff] }
   0x2   :  { %v21_v3 = vld [vmem:[%s170_s0 + $0x18] sm:$0xff]  ;;  %v22_v4 = vld [vmem:[%s170_s0 + $0x20] sm:$0xff]  ;;  %v27_v6 = vld [vmem:[%s171_s1 + $0x8] sm:$0xff] }
   0x3   :  { %v26_v5 = vld [vmem:[%s171_s1] sm:$0xff]  ;;  %v28_v7 = vld [vmem:[%s171_s1 + $0x10] sm:$0xff]  ;;  %v29_v8 = vld [vmem:[%s171_s1 + $0x18] sm:$0xff]  ;;  %v35_v11 = vsub.f32 %v19_v1, %v27_v6 }
   0x4   :  { %v34_v9 = vsub.f32 %v18_v0, %v26_v5  ;;  %v30_v10 = vld [vmem:[%s171_s1 + $0x20] sm:$0xff]  ;;  %v36_v12 = vsub.f32 %v20_v2, %v28_v7  ;;  %v37_v13 = vsub.f32 %v21_v3, %v29_v8  ;;  %v23_v14 = vld [vmem:[%s170_s0 + $0x28] sm:$0xff] }
   0x5   :  { %v31_v15 = vld [vmem:[%s171_s1 + $0x28] sm:$0xff] }
   0x6   :  { %v43_v16 = vmul.f32 %v34_v9, %v34_v9 }
   0x7   :  { %7 = vsyncpa [#allocation3], 0  ;;  %v38_v17 = vsub.f32 %v22_v4, %v30_v10  ;;  %v44_v18 = vmul.f32 %v35_v11, %v35_v11  ;;  %v45_v19 = vmul.f32 %v36_v12, %v36_v12  ;;  %v24_v20 = vld [vmem:[%s170_s0 + $0x30] sm:$0xff]  ;;  %v39_v22 = vsub.f32 %v23_v14, %v31_v15  ;;  %v25_v25 = vld [vmem:[%s170_s0 + $0x38] sm:$0xff]  ;;  %s75_s13 = sshll.u32 %s172_s2, 4  ;;  %s103_s15 = smov [#allocation2]   ;;  %s76_s13 = int_to_ptr.hbm [resolvable:$true] %s75_s13 }
   0x8   :  { %v32_v21 = vld [vmem:[%s171_s1 + $0x30] sm:$0xff]  ;;  %v46_v23 = vmul.f32 %v37_v13, %v37_v13  ;;  %v33_v26 = vld [vmem:[%s171_s1 + $0x38] sm:$0xff] }
   0x9   :  { %v51_v24 = vadd.f32 %v44_v18, %v43_v16  ;;  %v40_v27 = vsub.f32 %v24_v20, %v32_v21  ;;  %v47_v28 = vmul.f32 %v38_v17, %v38_v17  ;;  %v41_v30 = vsub.f32 %v25_v25, %v33_v26 }
   0xa   :  { %v48_v31 = vmul.f32 %v39_v22, %v39_v22 }
   0xb   :  { %v52_v29 = vadd.f32 %v51_v24, %v45_v19  ;;  %v49_v33 = vmul.f32 %v40_v27, %v40_v27  ;;  %v50_v35 = vmul.f32 %v41_v30, %v41_v30 }
   0xd   :  { %v53_v32 = vadd.f32 %v52_v29, %v46_v23 }
   0xf   :  { %v54_v34 = vadd.f32 %v53_v32, %v47_v28 }
  0x11   :  { %v55_v36 = vadd.f32 %v54_v34, %v48_v31 }
  0x13   :  { %v56_v37 = vadd.f32 %v55_v36, %v49_v33 }
  0x15   :  { %v57_v38 = vadd.f32 %v56_v37, %v50_v35 }
  0x17   :  { %58 = vadd.xlane.f32.xlu0 %v57_v38 }
  0x8a   :  { %v59_v39 = vpop.xlane.xlu0 %58 }
  0x8b   :  { %v60_v40 = vrot.slane %v59_v39, 4 }
  0x8d   :  { %v61_v41 = vadd.f32 %v60_v40, %v59_v39 }
  0x8f   :  { %v62_v42 = vrot.slane %v61_v41, 2 }
  0x91   :  { %v63_v43 = vadd.f32 %v62_v42, %v61_v41 }
  0x93   :  { %v64_v44 = vrot.slane %v63_v43, 1 }
  0x95   :  { %v65_v45 = vadd.f32 %v64_v44, %v63_v43 }
  0x97   :  { %85 = vpush %v65_v45 }
  0xc8   :  { %s86_s14 = spop %85 }
  0xc9   :  { %69 = sst [smem:[#allocation2]] %s86_s14 }
  0xca   :  { %78 = dma.smem_to_hbm %s103_s15, 16, %s76_s13, [#allocation3]  }
  0xcb   :  { %101 = dma.done.wait [#allocation3], 16  }
  0xcc   :  { %102 = vsyncadd [#allocation3], 4294967280 }
  0xcd   :  { %83 = sfence }
  0xce   :  { %84 = vsyncpa [#allocation3], 1 }

// kernel: vgg_mse.26
= control target key start
LH: loop header
LB: loop body
LE: loop exit
PB: predicated region body
PF: predicated region fallthrough
CT: control target
= control target key end

     0   :  { %s1881_s0 = inlined_call_operand.vmem [shape: f32[16,4608], index: 0, kind: input, shape index: {}]   ;;  %s1882_s1 = inlined_call_operand.vmem [shape: f32[4608,512], index: 1, kind: input, shape index: {}]   ;;  %s1883_s2 = inlined_call_operand.vmem [shape: f32[1,512], index: 2, kind: input, shape index: {}]   ;;  %s1884_s3 = inlined_call_operand.vmem [shape: f32[16,512], index: 3, kind: output, shape index: {}]  }
   0x1   :  { %1886 = sst [smem:[#allocation7_spill]] %s1881_s0 }
   0x2   :  { %1887 = sst [smem:[#allocation8_spill]] %s1882_s1 }
   0x3   :  { %s1283_s12 = smov 0   ;;  %s1285_s13 = smov 0  }
   0x4   :  { %s1287_s14 = smov 0   ;;  %s1289_s15 = smov 0  }
   0x5   :  { %s1291_s16 = smov 0   ;;  %s1293_s17 = smov 0  }
   0x6   :  { %s1295_s18 = smov 0   ;;  %s1297_s19 = smov 0  }
   0x7   :  { %s1299_s20 = smov 0   ;;  %s1301_s21 = smov 0  }
   0x8   :  { %s1303_s22 = smov 0  }
   0x9 LB: > { %s1058_s23 = sadd.s32 4294967295, %s1260_s22   ;;  %s25_s24 = sadd.s32 1, %s1252_s20  ;;  %s1260_s22 = sphi %s1303_s22, %s13_s22   ;;  %s1256_s21 = sphi %s1301_s21, %s1904_s21   ;;  %s1252_s20 = sphi %s1299_s20, %s1903_s20   ;;  %s1248_s19 = sphi %s1297_s19, %s1902_s19   ;;  %s1244_s18 = sphi %s1295_s18, %s1901_s18   ;;  %s1240_s17 = sphi %s1293_s17, %s1900_s17   ;;  %s1236_s16 = sphi %s1291_s16, %s1899_s16   ;;  %s1232_s15 = sphi %s1289_s15, %s1898_s15   ;;  %s1228_s14 = sphi %s1287_s14, %s1897_s14   ;;  %s1224_s13 = sphi %s1285_s13, %s1896_s13   ;;  %s1220_s12 = sphi %s1283_s12, %s1895_s12  }
   0xa   : > { %p26_p0 = scmp.ge.s32.totalorder %s25_s24, 9  ;;  %s28_s25 = sadd.s32 1, %s1256_s21 }
   0xb   : > { %s41_s26 = sadd.s32 1, %s1240_s17  ;;  %p48_p1 = scmp.ne.s32.totalorder %s1240_s17, %s1236_s16 }
   0xc   : > { %s1906_s24 = smov (%p26_p0, %s25_s24), 0  ;;  %s1908_s25 = smov (!%p26_p0, %s28_s25), %s1256_s21 }
   0xd   : > { %s37_s27 = ssub.s32 %s1252_s20, %s1906_s24  ;;  %p49_p2 = scmp.eq.s32.totalorder %s1260_s22, 0 }
   0xe   : > { %p30_p3 = scmp.ge.s32.totalorder %s1908_s25, 2  ;;  %p39_p4 = scmp.eq.s32.totalorder %s37_s27, 0 }
   0xf   : > { %p1350_p5 = por %p49_p2, %p48_p1  ;;  %s69_s29 = sadd.s32 1, %s1232_s15 }
  0x10   : > { %s1910_s25 = smov (%p30_p3, %s1908_s25), 0  ;;  %p76_p6 = scmp.ne.s32.totalorder %s1232_s15, %s1228_s14 }
  0x11   : > { %1889 = sst [smem:[#allocation6_spill]] %s1910_s25  ;;  %s65_s4 = ssub.s32 %s1256_s21, %s1910_s25 }
  0x12   : > { %s1358_s30 = scalar_select %p39_p4, %s1240_s17, %s41_s26  }
  0x13   : > { %s66_s5 = sor.u32 %s65_s4, %s37_s27  ;;  %p121_p7 = scmp.eq.s32.totalorder %s65_s4, 0 }
  0x14   : > { %p67_p8 = scmp.eq.s32.totalorder %s66_s5, 0  ;;  %p1364_p9 = por %p76_p6, %p49_p2 }
  0x15   : > { %s123_s7 = sadd.s32 1, %s1224_s13  ;;  %p133_p10 = scmp.ne.s32.totalorder %s1224_s13, %s1220_s12 }
  0x16   : > { %s1372_s8 = scalar_select %p67_p8, %s1232_s15, %s69_s29  }
  0x17   : > { %s1375_s9 = scalar_select %p121_p7, %s1224_s13, %s123_s7  }
  0x18   : > { %p134_p11 = scmp.eq.s32.totalorder %s1058_s23, 17  ;;  %p1061_p13 = scmp.ge.s32.totalorder %s1260_s22, 18 }
  0x1a   : > { %p1377_p12 = por %p134_p11, %p133_p10  ;;  %156 = sbr.rel (%p1061_p13) target bundleno = 187 (0xbb), region = 16 }
  0x1f   : > { %159 = sbr.rel (!%p1350_p5) target bundleno = 49 (0x31), region = 20  ;;  %s161_s11 = sand.u32 (%p1350_p5), 1, %s1240_s17  }
  0x20   : > { %s1082_s26 = sshll.u32 (%p1350_p5), %s1252_s20, 5  ;;  %s1062_s27 = sshll.u32 (%p1350_p5), %s161_s11, 6 }
  0x21   : > { %s1892_s0 = sld [smem:[#allocation7_spill]] (%p1350_p5)  ;;  %s163_s23 = scalar_lea.vmem (%p1350_p5), [#allocation3], %s1062_s27 }
  0x27   : > { %s169_s5 = scalar_lea.vmem %s1892_s0, %s1082_s26 }
  0x28   : > { %v182_v0 = vld [vmem:[%s169_s5] sm:$0xff]  ;;  %v184_v1 = vld [vmem:[%s169_s5 + $0x8] sm:$0xff]  ;;  %v186_v2 = vld [vmem:[%s169_s5 + $0x10] sm:$0xff] }
  0x29   : > { %183 = vst [vmem:[%s163_s23] sm:$0xff] %v182_v0  ;;  %v188_v3 = vld [vmem:[%s169_s5 + $0x18] sm:$0xff]  ;;  %v190_v4 = vld [vmem:[%s169_s5 + $0x120] sm:$0xff]  ;;  %v192_v5 = vld [vmem:[%s169_s5 + $0x128] sm:$0xff] }
  0x2a   : > { %185 = vst [vmem:[%s163_s23 + $0x8] sm:$0xff] %v184_v1  ;;  %v194_v6 = vld [vmem:[%s169_s5 + $0x130] sm:$0xff]  ;;  %v196_v7 = vld [vmem:[%s169_s5 + $0x138] sm:$0xff] }
  0x2b   : > { %187 = vst [vmem:[%s163_s23 + $0x10] sm:$0xff] %v186_v2 }
  0x2c   : > { %189 = vst [vmem:[%s163_s23 + $0x18] sm:$0xff] %v188_v3 }
  0x2d   : > { %191 = vst [vmem:[%s163_s23 + $0x20] sm:$0xff] %v190_v4 }
  0x2e   : > { %193 = vst [vmem:[%s163_s23 + $0x28] sm:$0xff] %v192_v5 }
  0x2f   : > { %195 = vst [vmem:[%s163_s23 + $0x30] sm:$0xff] %v194_v6 }
  0x30   : > { %197 = vst [vmem:[%s163_s23 + $0x38] sm:$0xff] %v196_v7 }
  0x31 PF: > { %203 = sbr.rel (!%p1364_p9) target bundleno = 187 (0xbb), region = 43  ;;  %s205_s28 = sand.u32 (%p1364_p9), 1, %s1232_s15  }
  0x32   : > { %s1067_s7 = sshll.u32 (%p1364_p9), %s1256_s21, 1  ;;  %s1065_s11 = sshll.u32 (%p1364_p9), %s205_s28, 10 }
  0x33   : > { %s1083_s26 = sshll.u32 (%p1364_p9), %s1252_s20, 8  ;;  %s1893_s1 = sld [smem:[#allocation8_spill]] (%p1364_p9) }
  0x34   : > { %s211_s27 = sadd.s32 (%p1364_p9), %s1083_s26, %s1067_s7  ;;  %s1402_s6 = scalar_lea.vmem (%p1364_p9), [#allocation4], %s1065_s11 }
  0x35   : > { %s1069_s29 = sshll.u32 (%p1364_p9), %s211_s27, 3 }
  0x39   : > { %s1397_s5 = scalar_lea.vmem %s1893_s1, %s1069_s29 }
  0x3a   : > { %v226_v8 = vld [vmem:[%s1397_s5] sm:$0xff]  ;;  %v228_v9 = vld [vmem:[%s1397_s5 + $0x8] sm:$0xff] }
  0x3b   : > { %v230_v10 = vld [vmem:[%s1397_s5 + $0x20] sm:$0xff]  ;;  %227 = vst [vmem:[%s1402_s6] sm:$0xff] %v226_v8  ;;  %v232_v11 = vld [vmem:[%s1397_s5 + $0x28] sm:$0xff] }
  0x3c   : > { %229 = vst [vmem:[%s1402_s6 + $0x8] sm:$0xff] %v228_v9  ;;  %v234_v12 = vld [vmem:[%s1397_s5 + $0x40] sm:$0xff]  ;;  %v236_v13 = vld [vmem:[%s1397_s5 + $0x48] sm:$0xff] }
  0x3d   : > { %231 = vst [vmem:[%s1402_s6 + $0x10] sm:$0xff] %v230_v10  ;;  %v238_v14 = vld [vmem:[%s1397_s5 + $0x60] sm:$0xff]  ;;  %v240_v15 = vld [vmem:[%s1397_s5 + $0x68] sm:$0xff] }
  0x3e   : > { %233 = vst [vmem:[%s1402_s6 + $0x18] sm:$0xff] %v232_v11  ;;  %v242_v16 = vld [vmem:[%s1397_s5 + $0x80] sm:$0xff]  ;;  %v244_v17 = vld [vmem:[%s1397_s5 + $0x88] sm:$0xff] }
  0x3f   : > { %235 = vst [vmem:[%s1402_s6 + $0x20] sm:$0xff] %v234_v12  ;;  %v246_v18 = vld [vmem:[%s1397_s5 + $0xa0] sm:$0xff]  ;;  %v248_v19 = vld [vmem:[%s1397_s5 + $0xa8] sm:$0xff] }
  0x40   : > { %237 = vst [vmem:[%s1402_s6 + $0x28] sm:$0xff] %v236_v13  ;;  %v250_v20 = vld [vmem:[%s1397_s5 + $0xc0] sm:$0xff]  ;;  %v252_v21 = vld [vmem:[%s1397_s5 + $0xc8] sm:$0xff] }
  0x41   : > { %239 = vst [vmem:[%s1402_s6 + $0x30] sm:$0xff] %v238_v14  ;;  %v254_v22 = vld [vmem:[%s1397_s5 + $0xe0] sm:$0xff]  ;;  %v256_v23 = vld [vmem:[%s1397_s5 + $0xe8] sm:$0xff] }
  0x42   : > { %241 = vst [vmem:[%s1402_s6 + $0x38] sm:$0xff] %v240_v15  ;;  %v258_v24 = vld [vmem:[%s1397_s5 + $0x100] sm:$0xff]  ;;  %v260_v25 = vld [vmem:[%s1397_s5 + $0x108] sm:$0xff] }
  0x43   : > { %243 = vst [vmem:[%s1402_s6 + $0x40] sm:$0xff] %v242_v16  ;;  %v262_v26 = vld [vmem:[%s1397_s5 + $0x120] sm:$0xff]  ;;  %v264_v27 = vld [vmem:[%s1397_s5 + $0x128] sm:$0xff] }
  0x44   : > { %245 = vst [vmem:[%s1402_s6 + $0x48] sm:$0xff] %v244_v17  ;;  %v266_v28 = vld [vmem:[%s1397_s5 + $0x140] sm:$0xff]  ;;  %v268_v29 = vld [vmem:[%s1397_s5 + $0x148] sm:$0xff] }
  0x45   : > { %247 = vst [vmem:[%s1402_s6 + $0x50] sm:$0xff] %v246_v18  ;;  %v270_v30 = vld [vmem:[%s1397_s5 + $0x160] sm:$0xff]  ;;  %v272_v31 = vld [vmem:[%s1397_s5 + $0x168] sm:$0xff] }
  0x46   : > { %249 = vst [vmem:[%s1402_s6 + $0x58] sm:$0xff] %v248_v19  ;;  %v274_v32 = vld [vmem:[%s1397_s5 + $0x180] sm:$0xff]  ;;  %v276_v33 = vld [vmem:[%s1397_s5 + $0x188] sm:$0xff] }
  0x47   : > { %251 = vst [vmem:[%s1402_s6 + $0x60] sm:$0xff] %v250_v20  ;;  %v278_v34 = vld [vmem:[%s1397_s5 + $0x1a0] sm:$0xff]  ;;  %v280_v35 = vld [vmem:[%s1397_s5 + $0x1a8] sm:$0xff] }
  0x48   : > { %253 = vst [vmem:[%s1402_s6 + $0x68] sm:$0xff] %v252_v21  ;;  %v282_v36 = vld [vmem:[%s1397_s5 + $0x1c0] sm:$0xff]  ;;  %v284_v37 = vld [vmem:[%s1397_s5 + $0x1c8] sm:$0xff] }
  0x49   : > { %255 = vst [vmem:[%s1402_s6 + $0x70] sm:$0xff] %v254_v22  ;;  %v286_v38 = vld [vmem:[%s1397_s5 + $0x1e0] sm:$0xff]  ;;  %v288_v39 = vld [vmem:[%s1397_s5 + $0x1e8] sm:$0xff] }
  0x4a   : > { %257 = vst [vmem:[%s1402_s6 + $0x78] sm:$0xff] %v256_v23  ;;  %v290_v40 = vld [vmem:[%s1397_s5 + $0x200] sm:$0xff]  ;;  %v292_v41 = vld [vmem:[%s1397_s5 + $0x208] sm:$0xff] }
  0x4b   : > { %259 = vst [vmem:[%s1402_s6 + $0x80] sm:$0xff] %v258_v24  ;;  %v294_v42 = vld [vmem:[%s1397_s5 + $0x220] sm:$0xff]  ;;  %v296_v43 = vld [vmem:[%s1397_s5 + $0x228] sm:$0xff] }
  0x4c   : > { %261 = vst [vmem:[%s1402_s6 + $0x88] sm:$0xff] %v260_v25  ;;  %v298_v44 = vld [vmem:[%s1397_s5 + $0x240] sm:$0xff]  ;;  %v300_v45 = vld [vmem:[%s1397_s5 + $0x248] sm:$0xff] }
  0x4d   : > { %263 = vst [vmem:[%s1402_s6 + $0x90] sm:$0xff] %v262_v26  ;;  %v302_v46 = vld [vmem:[%s1397_s5 + $0x260] sm:$0xff]  ;;  %v304_v47 = vld [vmem:[%s1397_s5 + $0x268] sm:$0xff] }
  0x4e   : > { %265 = vst [vmem:[%s1402_s6 + $0x98] sm:$0xff] %v264_v27  ;;  %v306_v48 = vld [vmem:[%s1397_s5 + $0x280] sm:$0xff]  ;;  %v308_v49 = vld [vmem:[%s1397_s5 + $0x288] sm:$0xff] }
  0x4f   : > { %267 = vst [vmem:[%s1402_s6 + $0xa0] sm:$0xff] %v266_v28  ;;  %v310_v50 = vld [vmem:[%s1397_s5 + $0x2a0] sm:$0xff]  ;;  %v312_v51 = vld [vmem:[%s1397_s5 + $0x2a8] sm:$0xff] }
  0x50   : > { %269 = vst [vmem:[%s1402_s6 + $0xa8] sm:$0xff] %v268_v29  ;;  %v314_v52 = vld [vmem:[%s1397_s5 + $0x2c0] sm:$0xff]  ;;  %v316_v53 = vld [vmem:[%s1397_s5 + $0x2c8] sm:$0xff] }
  0x51   : > { %271 = vst [vmem:[%s1402_s6 + $0xb0] sm:$0xff] %v270_v30  ;;  %v318_v54 = vld [vmem:[%s1397_s5 + $0x2e0] sm:$0xff]  ;;  %v320_v55 = vld [vmem:[%s1397_s5 + $0x2e8] sm:$0xff] }
  0x52   : > { %273 = vst [vmem:[%s1402_s6 + $0xb8] sm:$0xff] %v272_v31  ;;  %v322_v56 = vld [vmem:[%s1397_s5 + $0x300] sm:$0xff]  ;;  %v324_v57 = vld [vmem:[%s1397_s5 + $0x308] sm:$0xff] }
  0x53   : > { %275 = vst [vmem:[%s1402_s6 + $0xc0] sm:$0xff] %v274_v32  ;;  %v326_v58 = vld [vmem:[%s1397_s5 + $0x320] sm:$0xff]  ;;  %v328_v59 = vld [vmem:[%s1397_s5 + $0x328] sm:$0xff] }
  0x54   : > { %277 = vst [vmem:[%s1402_s6 + $0xc8] sm:$0xff] %v276_v33  ;;  %v330_v60 = vld [vmem:[%s1397_s5 + $0x340] sm:$0xff]  ;;  %v332_v61 = vld [vmem:[%s1397_s5 + $0x348] sm:$0xff] }
  0x55   : > { %279 = vst [vmem:[%s1402_s6 + $0xd0] sm:$0xff] %v278_v34  ;;  %v334_v62 = vld [vmem:[%s1397_s5 + $0x360] sm:$0xff]  ;;  %v336_v63 = vld [vmem:[%s1397_s5 + $0x368] sm:$0xff] }
  0x56   : > { %281 = vst [vmem:[%s1402_s6 + $0xd8] sm:$0xff] %v280_v35  ;;  %v338_v0 = vld [vmem:[%s1397_s5 + $0x380] sm:$0xff]  ;;  %v340_v1 = vld [vmem:[%s1397_s5 + $0x388] sm:$0xff] }
  0x57   : > { %283 = vst [vmem:[%s1402_s6 + $0xe0] sm:$0xff] %v282_v36  ;;  %v342_v2 = vld [vmem:[%s1397_s5 + $0x3a0] sm:$0xff]  ;;  %v344_v3 = vld [vmem:[%s1397_s5 + $0x3a8] sm:$0xff] }
  0x58   : > { %285 = vst [vmem:[%s1402_s6 + $0xe8] sm:$0xff] %v284_v37  ;;  %v346_v4 = vld [vmem:[%s1397_s5 + $0x3c0] sm:$0xff]  ;;  %v348_v5 = vld [vmem:[%s1397_s5 + $0x3c8] sm:$0xff] }
  0x59   : > { %287 = vst [vmem:[%s1402_s6 + $0xf0] sm:$0xff] %v286_v38  ;;  %v350_v6 = vld [vmem:[%s1397_s5 + $0x3e0] sm:$0xff]  ;;  %v352_v7 = vld [vmem:[%s1397_s5 + $0x3e8] sm:$0xff] }
  0x5a   : > { %289 = vst [vmem:[%s1402_s6 + $0xf8] sm:$0xff] %v288_v39  ;;  %v354_v8 = vld [vmem:[%s1397_s5 + $0x400] sm:$0xff]  ;;  %v356_v9 = vld [vmem:[%s1397_s5 + $0x408] sm:$0xff] }
  0x5b   : > { %291 = vst [vmem:[%s1402_s6 + $0x100] sm:$0xff] %v290_v40  ;;  %v358_v10 = vld [vmem:[%s1397_s5 + $0x420] sm:$0xff]  ;;  %v360_v11 = vld [vmem:[%s1397_s5 + $0x428] sm:$0xff] }
  0x5c   : > { %293 = vst [vmem:[%s1402_s6 + $0x108] sm:$0xff] %v292_v41  ;;  %v362_v12 = vld [vmem:[%s1397_s5 + $0x440] sm:$0xff]  ;;  %v364_v13 = vld [vmem:[%s1397_s5 + $0x448] sm:$0xff] }
  0x5d   : > { %295 = vst [vmem:[%s1402_s6 + $0x110] sm:$0xff] %v294_v42  ;;  %v366_v14 = vld [vmem:[%s1397_s5 + $0x460] sm:$0xff]  ;;  %v368_v15 = vld [vmem:[%s1397_s5 + $0x468] sm:$0xff] }
  0x5e   : > { %297 = vst [vmem:[%s1402_s6 + $0x118] sm:$0xff] %v296_v43  ;;  %v370_v16 = vld [vmem:[%s1397_s5 + $0x480] sm:$0xff]  ;;  %v372_v17 = vld [vmem:[%s1397_s5 + $0x488] sm:$0xff] }
  0x5f   : > { %299 = vst [vmem:[%s1402_s6 + $0x120] sm:$0xff] %v298_v44  ;;  %v374_v18 = vld [vmem:[%s1397_s5 + $0x4a0] sm:$0xff]  ;;  %v376_v19 = vld [vmem:[%s1397_s5 + $0x4a8] sm:$0xff] }
  0x60   : > { %301 = vst [vmem:[%s1402_s6 + $0x128] sm:$0xff] %v300_v45  ;;  %v378_v20 = vld [vmem:[%s1397_s5 + $0x4c0] sm:$0xff]  ;;  %v380_v21 = vld [vmem:[%s1397_s5 + $0x4c8] sm:$0xff] }
  0x61   : > { %303 = vst [vmem:[%s1402_s6 + $0x130] sm:$0xff] %v302_v46  ;;  %v382_v22 = vld [vmem:[%s1397_s5 + $0x4e0] sm:$0xff]  ;;  %v384_v23 = vld [vmem:[%s1397_s5 + $0x4e8] sm:$0xff] }
  0x62   : > { %305 = vst [vmem:[%s1402_s6 + $0x138] sm:$0xff] %v304_v47  ;;  %v386_v24 = vld [vmem:[%s1397_s5 + $0x500] sm:$0xff]  ;;  %v388_v25 = vld [vmem:[%s1397_s5 + $0x508] sm:$0xff] }
  0x63   : > { %307 = vst [vmem:[%s1402_s6 + $0x140] sm:$0xff] %v306_v48  ;;  %v390_v26 = vld [vmem:[%s1397_s5 + $0x520] sm:$0xff]  ;;  %v392_v27 = vld [vmem:[%s1397_s5 + $0x528] sm:$0xff] }
  0x64   : > { %309 = vst [vmem:[%s1402_s6 + $0x148] sm:$0xff] %v308_v49  ;;  %v394_v28 = vld [vmem:[%s1397_s5 + $0x540] sm:$0xff]  ;;  %v396_v29 = vld [vmem:[%s1397_s5 + $0x548] sm:$0xff] }
  0x65   : > { %311 = vst [vmem:[%s1402_s6 + $0x150] sm:$0xff] %v310_v50  ;;  %v398_v30 = vld [vmem:[%s1397_s5 + $0x560] sm:$0xff]  ;;  %v400_v31 = vld [vmem:[%s1397_s5 + $0x568] sm:$0xff] }
  0x66   : > { %313 = vst [vmem:[%s1402_s6 + $0x158] sm:$0xff] %v312_v51  ;;  %v402_v32 = vld [vmem:[%s1397_s5 + $0x580] sm:$0xff]  ;;  %v404_v33 = vld [vmem:[%s1397_s5 + $0x588] sm:$0xff] }
  0x67   : > { %315 = vst [vmem:[%s1402_s6 + $0x160] sm:$0xff] %v314_v52  ;;  %v406_v34 = vld [vmem:[%s1397_s5 + $0x5a0] sm:$0xff]  ;;  %v408_v35 = vld [vmem:[%s1397_s5 + $0x5a8] sm:$0xff] }
  0x68   : > { %317 = vst [vmem:[%s1402_s6 + $0x168] sm:$0xff] %v316_v53  ;;  %v410_v36 = vld [vmem:[%s1397_s5 + $0x5c0] sm:$0xff]  ;;  %v412_v37 = vld [vmem:[%s1397_s5 + $0x5c8] sm:$0xff] }
  0x69   : > { %319 = vst [vmem:[%s1402_s6 + $0x170] sm:$0xff] %v318_v54  ;;  %v414_v38 = vld [vmem:[%s1397_s5 + $0x5e0] sm:$0xff]  ;;  %v416_v39 = vld [vmem:[%s1397_s5 + $0x5e8] sm:$0xff] }
  0x6a   : > { %321 = vst [vmem:[%s1402_s6 + $0x178] sm:$0xff] %v320_v55  ;;  %v418_v40 = vld [vmem:[%s1397_s5 + $0x600] sm:$0xff]  ;;  %v420_v41 = vld [vmem:[%s1397_s5 + $0x608] sm:$0xff] }
  0x6b   : > { %323 = vst [vmem:[%s1402_s6 + $0x180] sm:$0xff] %v322_v56  ;;  %v422_v42 = vld [vmem:[%s1397_s5 + $0x620] sm:$0xff]  ;;  %v424_v43 = vld [vmem:[%s1397_s5 + $0x628] sm:$0xff] }
  0x6c   : > { %325 = vst [vmem:[%s1402_s6 + $0x188] sm:$0xff] %v324_v57  ;;  %v426_v44 = vld [vmem:[%s1397_s5 + $0x640] sm:$0xff]  ;;  %v428_v45 = vld [vmem:[%s1397_s5 + $0x648] sm:$0xff] }
  0x6d   : > { %327 = vst [vmem:[%s1402_s6 + $0x190] sm:$0xff] %v326_v58  ;;  %v430_v46 = vld [vmem:[%s1397_s5 + $0x660] sm:$0xff]  ;;  %v432_v47 = vld [vmem:[%s1397_s5 + $0x668] sm:$0xff] }
  0x6e   : > { %329 = vst [vmem:[%s1402_s6 + $0x198] sm:$0xff] %v328_v59  ;;  %v434_v48 = vld [vmem:[%s1397_s5 + $0x680] sm:$0xff]  ;;  %v436_v49 = vld [vmem:[%s1397_s5 + $0x688] sm:$0xff] }
  0x6f   : > { %331 = vst [vmem:[%s1402_s6 + $0x1a0] sm:$0xff] %v330_v60  ;;  %v438_v50 = vld [vmem:[%s1397_s5 + $0x6a0] sm:$0xff]  ;;  %v440_v51 = vld [vmem:[%s1397_s5 + $0x6a8] sm:$0xff] }
  0x70   : > { %333 = vst [vmem:[%s1402_s6 + $0x1a8] sm:$0xff] %v332_v61  ;;  %v442_v52 = vld [vmem:[%s1397_s5 + $0x6c0] sm:$0xff]  ;;  %v444_v53 = vld [vmem:[%s1397_s5 + $0x6c8] sm:$0xff] }
  0x71   : > { %335 = vst [vmem:[%s1402_s6 + $0x1b0] sm:$0xff] %v334_v62  ;;  %v446_v54 = vld [vmem:[%s1397_s5 + $0x6e0] sm:$0xff]  ;;  %v448_v55 = vld [vmem:[%s1397_s5 + $0x6e8] sm:$0xff] }
  0x72   : > { %337 = vst [vmem:[%s1402_s6 + $0x1b8] sm:$0xff] %v336_v63  ;;  %v450_v56 = vld [vmem:[%s1397_s5 + $0x700] sm:$0xff]  ;;  %v452_v57 = vld [vmem:[%s1397_s5 + $0x708] sm:$0xff] }
  0x73   : > { %339 = vst [vmem:[%s1402_s6 + $0x1c0] sm:$0xff] %v338_v0  ;;  %v454_v58 = vld [vmem:[%s1397_s5 + $0x720] sm:$0xff]  ;;  %v456_v59 = vld [vmem:[%s1397_s5 + $0x728] sm:$0xff] }
  0x74   : > { %341 = vst [vmem:[%s1402_s6 + $0x1c8] sm:$0xff] %v340_v1  ;;  %v458_v60 = vld [vmem:[%s1397_s5 + $0x740] sm:$0xff]  ;;  %v460_v61 = vld [vmem:[%s1397_s5 + $0x748] sm:$0xff] }
  0x75   : > { %343 = vst [vmem:[%s1402_s6 + $0x1d0] sm:$0xff] %v342_v2  ;;  %v462_v62 = vld [vmem:[%s1397_s5 + $0x760] sm:$0xff]  ;;  %v464_v63 = vld [vmem:[%s1397_s5 + $0x768] sm:$0xff] }
  0x76   : > { %345 = vst [vmem:[%s1402_s6 + $0x1d8] sm:$0xff] %v344_v3  ;;  %v466_v0 = vld [vmem:[%s1397_s5 + $0x780] sm:$0xff]  ;;  %v468_v1 = vld [vmem:[%s1397_s5 + $0x788] sm:$0xff] }
  0x77   : > { %347 = vst [vmem:[%s1402_s6 + $0x1e0] sm:$0xff] %v346_v4  ;;  %v470_v2 = vld [vmem:[%s1397_s5 + $0x7a0] sm:$0xff]  ;;  %v472_v3 = vld [vmem:[%s1397_s5 + $0x7a8] sm:$0xff] }
  0x78   : > { %349 = vst [vmem:[%s1402_s6 + $0x1e8] sm:$0xff] %v348_v5  ;;  %v474_v4 = vld [vmem:[%s1397_s5 + $0x7c0] sm:$0xff]  ;;  %v476_v5 = vld [vmem:[%s1397_s5 + $0x7c8] sm:$0xff] }
  0x79   : > { %351 = vst [vmem:[%s1402_s6 + $0x1f0] sm:$0xff] %v350_v6  ;;  %v478_v6 = vld [vmem:[%s1397_s5 + $0x7e0] sm:$0xff] }
  0x7a   : > { %353 = vst [vmem:[%s1402_s6 + $0x1f8] sm:$0xff] %v352_v7  ;;  %v480_v7 = vld [vmem:[%s1397_s5 + $0x7e8] sm:$0xff] }
  0x7b   : > { %355 = vst [vmem:[%s1402_s6 + $0x200] sm:$0xff] %v354_v8 }
  0x7c   : > { %357 = vst [vmem:[%s1402_s6 + $0x208] sm:$0xff] %v356_v9 }
  0x7d   : > { %359 = vst [vmem:[%s1402_s6 + $0x210] sm:$0xff] %v358_v10 }
  0x7e   : > { %361 = vst [vmem:[%s1402_s6 + $0x218] sm:$0xff] %v360_v11 }
  0x7f   : > { %363 = vst [vmem:[%s1402_s6 + $0x220] sm:$0xff] %v362_v12 }
  0x80   : > { %365 = vst [vmem:[%s1402_s6 + $0x228] sm:$0xff] %v364_v13 }
  0x81   : > { %367 = vst [vmem:[%s1402_s6 + $0x230] sm:$0xff] %v366_v14 }
  0x82   : > { %369 = vst [vmem:[%s1402_s6 + $0x238] sm:$0xff] %v368_v15 }
  0x83   : > { %371 = vst [vmem:[%s1402_s6 + $0x240] sm:$0xff] %v370_v16 }
  0x84   : > { %373 = vst [vmem:[%s1402_s6 + $0x248] sm:$0xff] %v372_v17 }
  0x85   : > { %375 = vst [vmem:[%s1402_s6 + $0x250] sm:$0xff] %v374_v18 }
  0x86   : > { %377 = vst [vmem:[%s1402_s6 + $0x258] sm:$0xff] %v376_v19 }
  0x87   : > { %379 = vst [vmem:[%s1402_s6 + $0x260] sm:$0xff] %v378_v20 }
  0x88   : > { %381 = vst [vmem:[%s1402_s6 + $0x268] sm:$0xff] %v380_v21 }
  0x89   : > { %383 = vst [vmem:[%s1402_s6 + $0x270] sm:$0xff] %v382_v22 }
  0x8a   : > { %385 = vst [vmem:[%s1402_s6 + $0x278] sm:$0xff] %v384_v23 }
  0x8b   : > { %387 = vst [vmem:[%s1402_s6 + $0x280] sm:$0xff] %v386_v24 }
  0x8c   : > { %389 = vst [vmem:[%s1402_s6 + $0x288] sm:$0xff] %v388_v25 }
  0x8d   : > { %391 = vst [vmem:[%s1402_s6 + $0x290] sm:$0xff] %v390_v26 }
  0x8e   : > { %393 = vst [vmem:[%s1402_s6 + $0x298] sm:$0xff] %v392_v27 }
  0x8f   : > { %395 = vst [vmem:[%s1402_s6 + $0x2a0] sm:$0xff] %v394_v28 }
  0x90   : > { %397 = vst [vmem:[%s1402_s6 + $0x2a8] sm:$0xff] %v396_v29 }
  0x91   : > { %399 = vst [vmem:[%s1402_s6 + $0x2b0] sm:$0xff] %v398_v30 }
  0x92   : > { %401 = vst [vmem:[%s1402_s6 + $0x2b8] sm:$0xff] %v400_v31 }
  0x93   : > { %403 = vst [vmem:[%s1402_s6 + $0x2c0] sm:$0xff] %v402_v32 }
  0x94   : > { %405 = vst [vmem:[%s1402_s6 + $0x2c8] sm:$0xff] %v404_v33 }
  0x95   : > { %407 = vst [vmem:[%s1402_s6 + $0x2d0] sm:$0xff] %v406_v34 }
  0x96   : > { %409 = vst [vmem:[%s1402_s6 + $0x2d8] sm:$0xff] %v408_v35 }
  0x97   : > { %411 = vst [vmem:[%s1402_s6 + $0x2e0] sm:$0xff] %v410_v36 }
  0x98   : > { %413 = vst [vmem:[%s1402_s6 + $0x2e8] sm:$0xff] %v412_v37 }
  0x99   : > { %415 = vst [vmem:[%s1402_s6 + $0x2f0] sm:$0xff] %v414_v38 }
  0x9a   : > { %417 = vst [vmem:[%s1402_s6 + $0x2f8] sm:$0xff] %v416_v39 }
  0x9b   : > { %419 = vst [vmem:[%s1402_s6 + $0x300] sm:$0xff] %v418_v40 }
  0x9c   : > { %421 = vst [vmem:[%s1402_s6 + $0x308] sm:$0xff] %v420_v41 }
  0x9d   : > { %423 = vst [vmem:[%s1402_s6 + $0x310] sm:$0xff] %v422_v42 }
  0x9e   : > { %425 = vst [vmem:[%s1402_s6 + $0x318] sm:$0xff] %v424_v43 }
  0x9f   : > { %427 = vst [vmem:[%s1402_s6 + $0x320] sm:$0xff] %v426_v44 }
  0xa0   : > { %429 = vst [vmem:[%s1402_s6 + $0x328] sm:$0xff] %v428_v45 }
  0xa1   : > { %431 = vst [vmem:[%s1402_s6 + $0x330] sm:$0xff] %v430_v46 }
  0xa2   : > { %433 = vst [vmem:[%s1402_s6 + $0x338] sm:$0xff] %v432_v47 }
  0xa3   : > { %435 = vst [vmem:[%s1402_s6 + $0x340] sm:$0xff] %v434_v48 }
  0xa4   : > { %437 = vst [vmem:[%s1402_s6 + $0x348] sm:$0xff] %v436_v49 }
  0xa5   : > { %439 = vst [vmem:[%s1402_s6 + $0x350] sm:$0xff] %v438_v50 }
  0xa6   : > { %441 = vst [vmem:[%s1402_s6 + $0x358] sm:$0xff] %v440_v51 }
  0xa7   : > { %443 = vst [vmem:[%s1402_s6 + $0x360] sm:$0xff] %v442_v52 }
  0xa8   : > { %445 = vst [vmem:[%s1402_s6 + $0x368] sm:$0xff] %v444_v53 }
  0xa9   : > { %447 = vst [vmem:[%s1402_s6 + $0x370] sm:$0xff] %v446_v54 }
  0xaa   : > { %449 = vst [vmem:[%s1402_s6 + $0x378] sm:$0xff] %v448_v55 }
  0xab   : > { %451 = vst [vmem:[%s1402_s6 + $0x380] sm:$0xff] %v450_v56 }
  0xac   : > { %453 = vst [vmem:[%s1402_s6 + $0x388] sm:$0xff] %v452_v57 }
  0xad   : > { %455 = vst [vmem:[%s1402_s6 + $0x390] sm:$0xff] %v454_v58 }
  0xae   : > { %457 = vst [vmem:[%s1402_s6 + $0x398] sm:$0xff] %v456_v59 }
  0xaf   : > { %459 = vst [vmem:[%s1402_s6 + $0x3a0] sm:$0xff] %v458_v60 }
  0xb0   : > { %461 = vst [vmem:[%s1402_s6 + $0x3a8] sm:$0xff] %v460_v61 }
  0xb1   : > { %463 = vst [vmem:[%s1402_s6 + $0x3b0] sm:$0xff] %v462_v62 }
  0xb2   : > { %465 = vst [vmem:[%s1402_s6 + $0x3b8] sm:$0xff] %v464_v63 }
  0xb3   : > { %467 = vst [vmem:[%s1402_s6 + $0x3c0] sm:$0xff] %v466_v0 }
  0xb4   : > { %469 = vst [vmem:[%s1402_s6 + $0x3c8] sm:$0xff] %v468_v1 }
  0xb5   : > { %471 = vst [vmem:[%s1402_s6 + $0x3d0] sm:$0xff] %v470_v2 }
  0xb6   : > { %473 = vst [vmem:[%s1402_s6 + $0x3d8] sm:$0xff] %v472_v3 }
  0xb7   : > { %475 = vst [vmem:[%s1402_s6 + $0x3e0] sm:$0xff] %v474_v4 }
  0xb8   : > { %477 = vst [vmem:[%s1402_s6 + $0x3e8] sm:$0xff] %v476_v5 }
  0xb9   : > { %479 = vst [vmem:[%s1402_s6 + $0x3f0] sm:$0xff] %v478_v6 }
  0xba   : > { %481 = vst [vmem:[%s1402_s6 + $0x3f8] sm:$0xff] %v480_v7 }
  0xbb PF: > { %p1070_p0 = scmp.ge.s32.totalorder %s1260_s22, 1  ;;  %p494_p1 = scmp.lt.s32.totalorder %s1260_s22, 19 }
  0xbd   : > { %p495_p2 = pnand %p1070_p0, %p494_p1 }
  0xbe   : > { %s501_s0 = sand.u32 (!%p495_p2), 1, %s1236_s16   ;;  %s508_s23 = sand.u32 (!%p495_p2), 1, %s1228_s14  }
  0xbf   : > { %498 = sbr.rel (%p495_p2) target bundleno = 443 (0x1bb), region = 70  ;;  %s1071_s28 = sshll.u32 (!%p495_p2), %s501_s0, 6 }
  0xc0   : > { %s1072_s7 = sshll.u32 (!%p495_p2), %s508_s23, 10  ;;  %s535_s11 = sand.u32 (!%p495_p2), 1, %s1220_s12  }
  0xc1   : > { %s1074_s26 = sshll.u32 (!%p495_p2), %s1248_s19, 1  ;;  %s1073_s27 = sshll.u32 (!%p495_p2), %s535_s11, 5 }
  0xc2   : > { %p543_p3 = scmp.lt.s32.totalorder (!%p495_p2), %s1074_s26, 3  ;;  %s1669_s6 = scalar_lea.vmem (!%p495_p2), [#allocation3], %s1071_s28 }
  0xc3   : > { %s1671_s1 = scalar_lea.vmem (!%p495_p2), [#allocation4], %s1072_s7  ;;  %s1673_s25 = scalar_lea.vmem (!%p495_p2), [#allocation5], %s1073_s27 }
  0xc4   : > { %s1912_s26 = smov (!%p543_p3, %s1074_s26), 3  ;;  %p1075_p4 = scmp.ne.s32.totalorder %s1244_s18, 0 }
  0xc5   : > { %s545_s5 = scalar_lea.vmem %s1883_s2, %s1912_s26 }
  0xc6   : > { %552 = sbr.rel (%p1075_p4) target bundleno = 208 (0xd0), region = 82 }
  0xcb   : > { %v1262_v8 = vmov 0.0  }
  0xcc   : > { %553 = vst [vmem:[#allocation2 + $0x10] sm:$0xff] %v1262_v8 }
  0xcd   : > { %554 = vst [vmem:[#allocation2] sm:$0xff] %v1262_v8 }
  0xce   : > { %555 = vst [vmem:[#allocation2 + $0x18] sm:$0xff] %v1262_v8 }
  0xcf   : > { %556 = vst [vmem:[#allocation2 + $0x8] sm:$0xff] %v1262_v8 }
  0xd0 PF: > { %v663_v9 = vld [vmem:[%s1671_s1 + $0x2f0] sm:$0xff]  ;;  %v661_v10 = vld [vmem:[%s1671_s1 + $0x2e0] sm:$0xff]  ;;  %v664_v7 = vld [vmem:[%s1671_s1 + $0x2f8] sm:$0xff]  ;;  %p1076_p5 = scmp.ne.s32.totalorder %s1244_s18, 8 }
  0xd1   : > { %v695_v11 = vld [vmem:[%s1671_s1 + $0x3f0] sm:$0xff]  ;;  %743 = vmatpush.msra.mxu2 %v663_v9  ;;  %v693_v15 = vld [vmem:[%s1671_s1 + $0x3e0] sm:$0xff]  ;;  %v696_v8 = vld [vmem:[%s1671_s1 + $0x3f8] sm:$0xff] }
  0xd2   : > { %766 = vmatpush.msra.mxu3 %v695_v11  ;;  %v599_v12 = vld [vmem:[%s1671_s1 + $0xf0] sm:$0xff]  ;;  %v597_v16 = vld [vmem:[%s1671_s1 + $0xe0] sm:$0xff]  ;;  %v662_v11 = vld [vmem:[%s1671_s1 + $0x2e8] sm:$0xff] }
  0xd3   : > { %v631_v13 = vld [vmem:[%s1671_s1 + $0x1f0] sm:$0xff]  ;;  %697 = vmatpush.msra.mxu0 %v599_v12  ;;  %v629_v17 = vld [vmem:[%s1671_s1 + $0x1e0] sm:$0xff]  ;;  %744 = vmatpush.msra.mxu2 %v661_v10  ;;  %v600_v12 = vld [vmem:[%s1671_s1 + $0xf8] sm:$0xff] }
  0xd4   : > { %v659_v14 = vld [vmem:[%s1671_s1 + $0x2d0] sm:$0xff]  ;;  %720 = vmatpush.msra.mxu1 %v631_v13  ;;  %767 = vmatpush.msra.mxu3 %v693_v15  ;;  %v657_v20 = vld [vmem:[%s1671_s1 + $0x2c0] sm:$0xff]  ;;  %v632_v13 = vld [vmem:[%s1671_s1 + $0x1f8] sm:$0xff] }
  0xd5   : > { %v691_v18 = vld [vmem:[%s1671_s1 + $0x3d0] sm:$0xff]  ;;  %698 = vmatpush.msra.mxu0 %v597_v16  ;;  %v689_v22 = vld [vmem:[%s1671_s1 + $0x3c0] sm:$0xff]  ;;  %745 = vmatpush.msra.mxu2 %v659_v14  ;;  %v694_v14 = vld [vmem:[%s1671_s1 + $0x3e8] sm:$0xff] }
  0xd6   : > { %v595_v19 = vld [vmem:[%s1671_s1 + $0xd0] sm:$0xff]  ;;  %721 = vmatpush.msra.mxu1 %v629_v17  ;;  %768 = vmatpush.msra.mxu3 %v691_v18  ;;  %v593_v23 = vld [vmem:[%s1671_s1 + $0xc0] sm:$0xff]  ;;  %v660_v15 = vld [vmem:[%s1671_s1 + $0x2d8] sm:$0xff] }
  0xd7   : > { %v627_v21 = vld [vmem:[%s1671_s1 + $0x1d0] sm:$0xff]  ;;  %v625_v24 = vld [vmem:[%s1671_s1 + $0x1c0] sm:$0xff]  ;;  %699 = vmatpush.msra.mxu0 %v595_v19  ;;  %746 = vmatpush.msra.mxu2 %v657_v20  ;;  %v598_v16 = vld [vmem:[%s1671_s1 + $0xe8] sm:$0xff] }
  0xd8   : > { %722 = vmatpush.msra.mxu1 %v627_v21  ;;  %v655_v25 = vld [vmem:[%s1671_s1 + $0x2b0] sm:$0xff]  ;;  %769 = vmatpush.msra.mxu3 %v689_v22  ;;  %v653_v29 = vld [vmem:[%s1671_s1 + $0x2a0] sm:$0xff]  ;;  %v630_v17 = vld [vmem:[%s1671_s1 + $0x1e8] sm:$0xff] }
  0xd9   : > { %v687_v26 = vld [vmem:[%s1671_s1 + $0x3b0] sm:$0xff]  ;;  %700 = vmatpush.msra.mxu0 %v593_v23  ;;  %v685_v30 = vld [vmem:[%s1671_s1 + $0x3a0] sm:$0xff]  ;;  %747 = vmatpush.msra.mxu2 %v655_v25  ;;  %v692_v18 = vld [vmem:[%s1671_s1 + $0x3d8] sm:$0xff] }
  0xda   : > { %v591_v27 = vld [vmem:[%s1671_s1 + $0xb0] sm:$0xff]  ;;  %723 = vmatpush.msra.mxu1 %v625_v24  ;;  %770 = vmatpush.msra.mxu3 %v687_v26  ;;  %v589_v31 = vld [vmem:[%s1671_s1 + $0xa0] sm:$0xff]  ;;  %v658_v19 = vld [vmem:[%s1671_s1 + $0x2c8] sm:$0xff] }
  0xdb   : > { %v623_v28 = vld [vmem:[%s1671_s1 + $0x1b0] sm:$0xff]  ;;  %v621_v32 = vld [vmem:[%s1671_s1 + $0x1a0] sm:$0xff]  ;;  %701 = vmatpush.msra.mxu0 %v591_v27  ;;  %748 = vmatpush.msra.mxu2 %v653_v29  ;;  %v596_v20 = vld [vmem:[%s1671_s1 + $0xd8] sm:$0xff] }
  0xdc   : > { %724 = vmatpush.msra.mxu1 %v623_v28  ;;  %v651_v33 = vld [vmem:[%s1671_s1 + $0x290] sm:$0xff]  ;;  %771 = vmatpush.msra.mxu3 %v685_v30  ;;  %v649_v37 = vld [vmem:[%s1671_s1 + $0x280] sm:$0xff]  ;;  %v628_v21 = vld [vmem:[%s1671_s1 + $0x1d8] sm:$0xff] }
  0xdd   : > { %v683_v34 = vld [vmem:[%s1671_s1 + $0x390] sm:$0xff]  ;;  %702 = vmatpush.msra.mxu0 %v589_v31  ;;  %v681_v38 = vld [vmem:[%s1671_s1 + $0x380] sm:$0xff]  ;;  %749 = vmatpush.msra.mxu2 %v651_v33  ;;  %v690_v22 = vld [vmem:[%s1671_s1 + $0x3c8] sm:$0xff] }
  0xde   : > { %v587_v35 = vld [vmem:[%s1671_s1 + $0x90] sm:$0xff]  ;;  %725 = vmatpush.msra.mxu1 %v621_v32  ;;  %772 = vmatpush.msra.mxu3 %v683_v34  ;;  %v585_v39 = vld [vmem:[%s1671_s1 + $0x80] sm:$0xff]  ;;  %v656_v23 = vld [vmem:[%s1671_s1 + $0x2b8] sm:$0xff] }
  0xdf   : > { %v619_v36 = vld [vmem:[%s1671_s1 + $0x190] sm:$0xff]  ;;  %v617_v40 = vld [vmem:[%s1671_s1 + $0x180] sm:$0xff]  ;;  %703 = vmatpush.msra.mxu0 %v587_v35  ;;  %750 = vmatpush.msra.mxu2 %v649_v37  ;;  %v594_v24 = vld [vmem:[%s1671_s1 + $0xc8] sm:$0xff] }
  0xe0   : > { %726 = vmatpush.msra.mxu1 %v619_v36  ;;  %v647_v41 = vld [vmem:[%s1671_s1 + $0x270] sm:$0xff]  ;;  %773 = vmatpush.msra.mxu3 %v681_v38  ;;  %v645_v45 = vld [vmem:[%s1671_s1 + $0x260] sm:$0xff]  ;;  %v626_v25 = vld [vmem:[%s1671_s1 + $0x1c8] sm:$0xff] }
  0xe1   : > { %v679_v42 = vld [vmem:[%s1671_s1 + $0x370] sm:$0xff]  ;;  %704 = vmatpush.msra.mxu0 %v585_v39  ;;  %v677_v46 = vld [vmem:[%s1671_s1 + $0x360] sm:$0xff]  ;;  %751 = vmatpush.msra.mxu2 %v647_v41  ;;  %v688_v26 = vld [vmem:[%s1671_s1 + $0x3b8] sm:$0xff] }
  0xe2   : > { %v583_v43 = vld [vmem:[%s1671_s1 + $0x70] sm:$0xff]  ;;  %727 = vmatpush.msra.mxu1 %v617_v40  ;;  %774 = vmatpush.msra.mxu3 %v679_v42  ;;  %v581_v47 = vld [vmem:[%s1671_s1 + $0x60] sm:$0xff]  ;;  %v654_v27 = vld [vmem:[%s1671_s1 + $0x2a8] sm:$0xff] }
  0xe3   : > { %v615_v44 = vld [vmem:[%s1671_s1 + $0x170] sm:$0xff]  ;;  %v613_v48 = vld [vmem:[%s1671_s1 + $0x160] sm:$0xff]  ;;  %705 = vmatpush.msra.mxu0 %v583_v43  ;;  %752 = vmatpush.msra.mxu2 %v645_v45  ;;  %v592_v28 = vld [vmem:[%s1671_s1 + $0xb8] sm:$0xff] }
  0xe4   : > { %728 = vmatpush.msra.mxu1 %v615_v44  ;;  %v643_v49 = vld [vmem:[%s1671_s1 + $0x250] sm:$0xff]  ;;  %775 = vmatpush.msra.mxu3 %v677_v46  ;;  %v641_v53 = vld [vmem:[%s1671_s1 + $0x240] sm:$0xff]  ;;  %v624_v29 = vld [vmem:[%s1671_s1 + $0x1b8] sm:$0xff] }
  0xe5   : > { %v675_v50 = vld [vmem:[%s1671_s1 + $0x350] sm:$0xff]  ;;  %706 = vmatpush.msra.mxu0 %v581_v47  ;;  %v673_v54 = vld [vmem:[%s1671_s1 + $0x340] sm:$0xff]  ;;  %753 = vmatpush.msra.mxu2 %v643_v49  ;;  %v686_v30 = vld [vmem:[%s1671_s1 + $0x3a8] sm:$0xff] }
  0xe6   : > { %v579_v51 = vld [vmem:[%s1671_s1 + $0x50] sm:$0xff]  ;;  %729 = vmatpush.msra.mxu1 %v613_v48  ;;  %776 = vmatpush.msra.mxu3 %v675_v50  ;;  %v577_v55 = vld [vmem:[%s1671_s1 + $0x40] sm:$0xff]  ;;  %v652_v31 = vld [vmem:[%s1671_s1 + $0x298] sm:$0xff] }
  0xe7   : > { %v611_v52 = vld [vmem:[%s1671_s1 + $0x150] sm:$0xff]  ;;  %v609_v56 = vld [vmem:[%s1671_s1 + $0x140] sm:$0xff]  ;;  %707 = vmatpush.msra.mxu0 %v579_v51  ;;  %754 = vmatpush.msra.mxu2 %v641_v53  ;;  %v590_v32 = vld [vmem:[%s1671_s1 + $0xa8] sm:$0xff] }
  0xe8   : > { %730 = vmatpush.msra.mxu1 %v611_v52  ;;  %v639_v57 = vld [vmem:[%s1671_s1 + $0x230] sm:$0xff]  ;;  %777 = vmatpush.msra.mxu3 %v673_v54  ;;  %v637_v61 = vld [vmem:[%s1671_s1 + $0x220] sm:$0xff]  ;;  %v622_v33 = vld [vmem:[%s1671_s1 + $0x1a8] sm:$0xff] }
  0xe9   : > { %v671_v58 = vld [vmem:[%s1671_s1 + $0x330] sm:$0xff]  ;;  %708 = vmatpush.msra.mxu0 %v577_v55  ;;  %v669_v62 = vld [vmem:[%s1671_s1 + $0x320] sm:$0xff]  ;;  %755 = vmatpush.msra.mxu2 %v639_v57  ;;  %v684_v34 = vld [vmem:[%s1671_s1 + $0x398] sm:$0xff] }
  0xea   : > { %v575_v59 = vld [vmem:[%s1671_s1 + $0x30] sm:$0xff]  ;;  %731 = vmatpush.msra.mxu1 %v609_v56  ;;  %778 = vmatpush.msra.mxu3 %v671_v58  ;;  %v573_v63 = vld [vmem:[%s1671_s1 + $0x20] sm:$0xff]  ;;  %v650_v35 = vld [vmem:[%s1671_s1 + $0x288] sm:$0xff] }
  0xeb   : > { %v607_v60 = vld [vmem:[%s1671_s1 + $0x130] sm:$0xff]  ;;  %v605_v0 = vld [vmem:[%s1671_s1 + $0x120] sm:$0xff]  ;;  %709 = vmatpush.msra.mxu0 %v575_v59  ;;  %756 = vmatpush.msra.mxu2 %v637_v61  ;;  %v588_v36 = vld [vmem:[%s1671_s1 + $0x98] sm:$0xff] }
  0xec   : > { %732 = vmatpush.msra.mxu1 %v607_v60  ;;  %v635_v1 = vld [vmem:[%s1671_s1 + $0x210] sm:$0xff]  ;;  %779 = vmatpush.msra.mxu3 %v669_v62  ;;  %v633_v5 = vld [vmem:[%s1671_s1 + $0x200] sm:$0xff]  ;;  %v620_v38 = vld [vmem:[%s1671_s1 + $0x198] sm:$0xff] }
  0xed   : > { %v667_v2 = vld [vmem:[%s1671_s1 + $0x310] sm:$0xff]  ;;  %710 = vmatpush.msra.mxu0 %v573_v63  ;;  %v665_v6 = vld [vmem:[%s1671_s1 + $0x300] sm:$0xff]  ;;  %757 = vmatpush.msra.mxu2 %v635_v1  ;;  %v648_v39 = vld [vmem:[%s1671_s1 + $0x278] sm:$0xff] }
  0xee   : > { %v571_v3 = vld [vmem:[%s1671_s1 + $0x10] sm:$0xff]  ;;  %733 = vmatpush.msra.mxu1 %v605_v0  ;;  %780 = vmatpush.msra.mxu3 %v667_v2  ;;  %v569_v9 = vld [vmem:[%s1671_s1] sm:$0xff]  ;;  %v682_v40 = vld [vmem:[%s1671_s1 + $0x388] sm:$0xff] }
  0xef   : > { %v603_v4 = vld [vmem:[%s1671_s1 + $0x110] sm:$0xff]  ;;  %711 = vmatpush.msra.mxu0 %v571_v3  ;;  %v601_v10 = vld [vmem:[%s1671_s1 + $0x100] sm:$0xff]  ;;  %758 = vmatpush.msra.mxu2 %v633_v5  ;;  %v1775_v41 = vld [vmem:[%s1669_s6 + $0x18] sm:$0xff] }
  0xf0   : > { %734 = vmatpush.msra.mxu1 %v603_v4  ;;  %781 = vmatpush.msra.mxu3 %v665_v6  ;;  %v1769_v37 = vld [vmem:[%s1669_s6 + $0x10] sm:$0xff]  ;;  %v586_v42 = vld [vmem:[%s1671_s1 + $0x88] sm:$0xff]  ;;  %v680_v45 = vld [vmem:[%s1671_s1 + $0x378] sm:$0xff] }
  0xf1   : > { %835 = vmatpush.msrb.mxu2 %v664_v7  ;;  %712 = vmatpush.msra.mxu0 %v569_v9  ;;  %v618_v43 = vld [vmem:[%s1671_s1 + $0x188] sm:$0xff]  ;;  %v1783_v46 = vld [vmem:[%s1669_s6] sm:$0xff]  ;;  %v584_v48 = vld [vmem:[%s1671_s1 + $0x78] sm:$0xff] }
  0xf2   : > { %858 = vmatpush.msrb.mxu3 %v696_v8  ;;  %735 = vmatpush.msra.mxu1 %v601_v10  ;;  %v646_v44 = vld [vmem:[%s1671_s1 + $0x268] sm:$0xff]  ;;  %v616_v49 = vld [vmem:[%s1671_s1 + $0x178] sm:$0xff]  ;;  %v567_v56 = vld [vmem:[%s1669_s6 + $0x30] sm:$0xff] }
  0xf3   : > { %836 = vmatpush.msrb.mxu2 %v662_v11  ;;  %789 = vmatpush.msrb.mxu0 %v600_v12  ;;  %v1787_v47 = vld [vmem:[%s1669_s6 + $0x8] sm:$0xff]  ;;  %v644_v50 = vld [vmem:[%s1671_s1 + $0x258] sm:$0xff]  ;;  %v565_v2 = vld [vmem:[%s1669_s6 + $0x20] sm:$0xff] }
  0xf4   : > { %812 = vmatpush.msrb.mxu1 %v632_v13  ;;  %859 = vmatpush.msrb.mxu3 %v694_v14  ;;  %v678_v51 = vld [vmem:[%s1671_s1 + $0x368] sm:$0xff]  ;;  %v676_v55 = vld [vmem:[%s1671_s1 + $0x358] sm:$0xff] }
  0xf5   : > { %837 = vmatpush.msrb.mxu2 %v660_v15  ;;  %790 = vmatpush.msrb.mxu0 %v598_v16  ;;  %v582_v52 = vld [vmem:[%s1671_s1 + $0x68] sm:$0xff]  ;;  %v580_v57 = vld [vmem:[%s1671_s1 + $0x58] sm:$0xff] }
  0xf6   : > { %813 = vmatpush.msrb.mxu1 %v630_v17  ;;  %860 = vmatpush.msrb.mxu3 %v692_v18  ;;  %v614_v53 = vld [vmem:[%s1671_s1 + $0x168] sm:$0xff]  ;;  %v612_v58 = vld [vmem:[%s1671_s1 + $0x158] sm:$0xff] }
  0xf7   : > { %838 = vmatpush.msrb.mxu2 %v658_v19  ;;  %791 = vmatpush.msrb.mxu0 %v596_v20  ;;  %v642_v54 = vld [vmem:[%s1671_s1 + $0x248] sm:$0xff]  ;;  %v640_v59 = vld [vmem:[%s1671_s1 + $0x238] sm:$0xff] }
  0xf8   : > { %814 = vmatpush.msrb.mxu1 %v628_v21  ;;  %861 = vmatpush.msrb.mxu3 %v690_v22  ;;  %v674_v60 = vld [vmem:[%s1671_s1 + $0x348] sm:$0xff]  ;;  %v568_v61 = vld [vmem:[%s1669_s6 + $0x38] sm:$0xff] }
  0xf9   : > { %839 = vmatpush.msrb.mxu2 %v656_v23  ;;  %792 = vmatpush.msrb.mxu0 %v594_v24  ;;  %v578_v62 = vld [vmem:[%s1671_s1 + $0x48] sm:$0xff]  ;;  %v672_v1 = vld [vmem:[%s1671_s1 + $0x338] sm:$0xff]  ;;  %v557_v23 = vld [vmem:[#allocation2 + $0x10] sm:$0xff] }
  0xfa   : > { %815 = vmatpush.msrb.mxu1 %v626_v25  ;;  %862 = vmatpush.msrb.mxu3 %v688_v26  ;;  %v610_v63 = vld [vmem:[%s1671_s1 + $0x148] sm:$0xff]  ;;  %v576_v4 = vld [vmem:[%s1671_s1 + $0x38] sm:$0xff] }
  0xfb   : > { %840 = vmatpush.msrb.mxu2 %v654_v27  ;;  %793 = vmatpush.msrb.mxu0 %v592_v28  ;;  %v638_v0 = vld [vmem:[%s1671_s1 + $0x228] sm:$0xff]  ;;  %v608_v5 = vld [vmem:[%s1671_s1 + $0x138] sm:$0xff] }
  0xfc   : > { %816 = vmatpush.msrb.mxu1 %v624_v29  ;;  %863 = vmatpush.msrb.mxu3 %v686_v30  ;;  %v566_v3 = vld [vmem:[%s1669_s6 + $0x28] sm:$0xff]  ;;  %v636_v6 = vld [vmem:[%s1671_s1 + $0x218] sm:$0xff] }
  0xfd   : > { %841 = vmatpush.msrb.mxu2 %v652_v31  ;;  %794 = vmatpush.msrb.mxu0 %v590_v32  ;;  %v670_v7 = vld [vmem:[%s1671_s1 + $0x328] sm:$0xff]  ;;  %v668_v11 = vld [vmem:[%s1671_s1 + $0x318] sm:$0xff] }
  0xfe   : > { %817 = vmatpush.msrb.mxu1 %v622_v33  ;;  %864 = vmatpush.msrb.mxu3 %v684_v34  ;;  %v574_v8 = vld [vmem:[%s1671_s1 + $0x28] sm:$0xff]  ;;  %v572_v12 = vld [vmem:[%s1671_s1 + $0x18] sm:$0xff] }
  0xff   : > { %842 = vmatpush.msrb.mxu2 %v650_v35  ;;  %795 = vmatpush.msrb.mxu0 %v588_v36  ;;  %v606_v9 = vld [vmem:[%s1671_s1 + $0x128] sm:$0xff]  ;;  %v604_v13 = vld [vmem:[%s1671_s1 + $0x118] sm:$0xff] }
 0x100   : > { %759 = vmatmul.f32.vlgmr.msra.gmra.mxu2 %v1769_v37  ;;  %818 = vmatpush.msrb.mxu1 %v620_v38  ;;  %v634_v10 = vld [vmem:[%s1671_s1 + $0x208] sm:$0xff]  ;;  %v559_v32 = vld [vmem:[#allocation2 + $0x18] sm:$0xff] }
 0x101   : > { %843 = vmatpush.msrb.mxu2 %v648_v39  ;;  %865 = vmatpush.msrb.mxu3 %v682_v40  ;;  %v666_v14 = vld [vmem:[%s1671_s1 + $0x308] sm:$0xff]  ;;  %v558_v40 = vld [vmem:[#allocation2] sm:$0xff] }
 0x102   : > { %782 = vmatmul.f32.vlgmr.msra.gmra.mxu3 %v1775_v41  ;;  %796 = vmatpush.msrb.mxu0 %v586_v42  ;;  %v570_v15 = vld [vmem:[%s1671_s1 + $0x8] sm:$0xff] }
 0x103   : > { %819 = vmatpush.msrb.mxu1 %v618_v43  ;;  %844 = vmatpush.msrb.mxu2 %v646_v44  ;;  %v602_v16 = vld [vmem:[%s1671_s1 + $0x108] sm:$0xff] }
 0x104   : > { %866 = vmatpush.msrb.mxu3 %v680_v45  ;;  %713 = vmatmul.f32.vlgmr.msra.gmra.mxu0 %v1783_v46 }
 0x105   : > { %736 = vmatmul.f32.vlgmr.msra.gmra.mxu1 %v1787_v47  ;;  %797 = vmatpush.msrb.mxu0 %v584_v48 }
 0x106   : > { %820 = vmatpush.msrb.mxu1 %v616_v49  ;;  %845 = vmatpush.msrb.mxu2 %v644_v50  ;;  %v560_v49 = vld [vmem:[#allocation2 + $0x8] sm:$0xff] }
 0x107   : > { %867 = vmatpush.msrb.mxu3 %v678_v51  ;;  %798 = vmatpush.msrb.mxu0 %v582_v52 }
 0x108   : > { %821 = vmatpush.msrb.mxu1 %v614_v53  ;;  %846 = vmatpush.msrb.mxu2 %v642_v54 }
 0x109   : > { %868 = vmatpush.msrb.mxu3 %v676_v55  ;;  %762 = vmatmul.f32.gmra.mxu2 %v567_v56 }
 0x10a   : > { %799 = vmatpush.msrb.mxu0 %v580_v57  ;;  %822 = vmatpush.msrb.mxu1 %v612_v58 }
 0x10b   : > { %847 = vmatpush.msrb.mxu2 %v640_v59  ;;  %869 = vmatpush.msrb.mxu3 %v674_v60 }
 0x10c   : > { %785 = vmatmul.f32.gmra.mxu3 %v568_v61  ;;  %800 = vmatpush.msrb.mxu0 %v578_v62 }
 0x10d   : > { %823 = vmatpush.msrb.mxu1 %v610_v63  ;;  %848 = vmatpush.msrb.mxu2 %v638_v0 }
 0x10e   : > { %870 = vmatpush.msrb.mxu3 %v672_v1  ;;  %716 = vmatmul.f32.gmra.mxu0 %v565_v2 }
 0x10f   : > { %739 = vmatmul.f32.gmra.mxu1 %v566_v3  ;;  %801 = vmatpush.msrb.mxu0 %v576_v4 }
 0x110   : > { %824 = vmatpush.msrb.mxu1 %v608_v5  ;;  %849 = vmatpush.msrb.mxu2 %v636_v6 }
 0x111   : > { %871 = vmatpush.msrb.mxu3 %v670_v7  ;;  %802 = vmatpush.msrb.mxu0 %v574_v8 }
 0x112   : > { %825 = vmatpush.msrb.mxu1 %v606_v9  ;;  %850 = vmatpush.msrb.mxu2 %v634_v10 }
 0x113   : > { %872 = vmatpush.msrb.mxu3 %v668_v11  ;;  %851 = vmatmul.f32.vlgmr.msrb.gmra.mxu2 %v1769_v37 }
 0x114   : > { %803 = vmatpush.msrb.mxu0 %v572_v12  ;;  %826 = vmatpush.msrb.mxu1 %v604_v13 }
 0x115   : > { %873 = vmatpush.msrb.mxu3 %v666_v14 }
 0x116   : > { %874 = vmatmul.f32.vlgmr.msrb.gmra.mxu3 %v1775_v41  ;;  %804 = vmatpush.msrb.mxu0 %v570_v15 }
 0x117   : > { %827 = vmatpush.msrb.mxu1 %v602_v16  ;;  %805 = vmatmul.f32.vlgmr.msrb.gmra.mxu0 %v1783_v46 }
 0x118   : > { %828 = vmatmul.f32.vlgmr.msrb.gmra.mxu1 %v1787_v47 }
 0x11b   : > { %854 = vmatmul.f32.gmra.mxu2 %v567_v56 }
 0x11e   : > { %877 = vmatmul.f32.gmra.mxu3 %v568_v61 }
 0x11f   : > { %808 = vmatmul.f32.gmra.mxu0 %v565_v2 }
 0x120   : > { %831 = vmatmul.f32.gmra.mxu1 %v566_v3 }
 0x181   : > { %v714_v17 = vpop.f32.mrf.mxu0 }
 0x182   : > { %v737_v18 = vpop.f32.mrf.mxu1 }
 0x183   : > { %v738_v19 = vadd.f32 %v737_v18, %v714_v17  ;;  %v760_v20 = vpop.f32.mrf.mxu2 }
 0x185   : > { %v761_v21 = vadd.f32 %v760_v20, %v738_v19  ;;  %v783_v22 = vpop.f32.mrf.mxu3 }
 0x187   : > { %v784_v24 = vadd.f32 %v783_v22, %v761_v21 }
 0x189   : > { %v881_v25 = vadd.f32 %v784_v24, %v557_v23 }
 0x18b   : > { %885 = vst [vmem:[#allocation2 + $0x10] sm:$0xff] %v881_v25  ;;  %v717_v26 = vpop.f32.mrf.mxu0 }
 0x18c   : > { %v740_v27 = vpop.f32.mrf.mxu1  ;;  %v763_v28 = vpop.f32.mrf.mxu2 }
 0x18d   : > { %v741_v29 = vadd.f32 %v740_v27, %v717_v26 }
 0x18f   : > { %v764_v30 = vadd.f32 %v763_v28, %v741_v29  ;;  %v786_v31 = vpop.f32.mrf.mxu3 }
 0x191   : > { %v787_v33 = vadd.f32 %v786_v31, %v764_v30 }
 0x193   : > { %v883_v34 = vadd.f32 %v787_v33, %v559_v32 }
 0x194   : > { %v806_v35 = vpop.f32.mrf.mxu0 }
 0x195   : > { %887 = vst [vmem:[#allocation2 + $0x18] sm:$0xff] %v883_v34  ;;  %v829_v36 = vpop.f32.mrf.mxu1 }
 0x196   : > { %v830_v37 = vadd.f32 %v829_v36, %v806_v35  ;;  %v852_v38 = vpop.f32.mrf.mxu2 }
 0x198   : > { %v853_v39 = vadd.f32 %v852_v38, %v830_v37 }
 0x199   : > { %v875_v41 = vpop.f32.mrf.mxu3 }
 0x19a   : > { %v876_v42 = vadd.f32 %v875_v41, %v853_v39 }
 0x19c   : > { %v882_v43 = vadd.f32 %v876_v42, %v558_v40  ;;  %v809_v44 = vpop.f32.mrf.mxu0 }
 0x19d   : > { %v832_v45 = vpop.f32.mrf.mxu1 }
 0x19e   : > { %886 = vst [vmem:[#allocation2] sm:$0xff] %v882_v43  ;;  %v833_v46 = vadd.f32 %v832_v45, %v809_v44  ;;  %v855_v47 = vpop.f32.mrf.mxu2 }
 0x1a0   : > { %v856_v48 = vadd.f32 %v855_v47, %v833_v46 }
 0x1a1   : > { %v878_v50 = vpop.f32.mrf.mxu3 }
 0x1a2   : > { %v879_v51 = vadd.f32 %v878_v50, %v856_v48  ;;  %892 = sbr.rel (%p1076_p5) target bundleno = 435 (0x1b3), region = 86 }
 0x1a4   : > { %v884_v52 = vadd.f32 %v879_v51, %v560_v49 }
 0x1a6   : > { %888 = vst [vmem:[#allocation2 + $0x8] sm:$0xff] %v884_v52 }
 0x1a7   : > { %v893_v53 = vld [vmem:[#allocation2 + $0x10] sm:$0xff]  ;;  %v897_v54 = vld [vmem:[%s545_s5] sm:$0x3]  ;;  %v895_v58 = vld [vmem:[#allocation2 + $0x18] sm:$0xff] }
 0x1a8   : > { %v894_v55 = vld [vmem:[#allocation2] sm:$0xff]  ;;  %v899_v56 = vperm.slane %v897_v54, 0  ;;  %v900_v57 = vperm.slane %v897_v54, 1 }
 0x1aa   : > { %v903_v60 = vadd.f32 %v899_v56, %v893_v53  ;;  %v904_v61 = vadd.f32 %v900_v57, %v894_v55  ;;  %v905_v62 = vadd.f32 %v899_v56, %v895_v58 }
 0x1ac   : > { %v907_v0 = vmax.f32 %v903_v60, 0.0  ;;  %v908_v1 = vmax.f32 %v904_v61, 0.0  ;;  %v909_v2 = vmax.f32 %v905_v62, 0.0 }
 0x1ad   : > { %v896_v59 = vld [vmem:[#allocation2 + $0x8] sm:$0xff] }
 0x1ae   : > { %v906_v63 = vadd.f32 %v900_v57, %v896_v59  ;;  %911 = vst [vmem:[%s1673_s25] sm:$0xff] %v907_v0 }
 0x1af   : > { %912 = vst [vmem:[%s1673_s25 + $0x8] sm:$0xff] %v908_v1 }
 0x1b0   : > { %v910_v3 = vmax.f32 %v906_v63, 0.0  ;;  %913 = vst [vmem:[%s1673_s25 + $0x10] sm:$0xff] %v909_v2 }
 0x1b2   : > { %914 = vst [vmem:[%s1673_s25 + $0x18] sm:$0xff] %v910_v3 }
 0x1b3 PF: > { %921 = sbr.rel (!%p1377_p12) target bundleno = 443 (0x1bb), region = 90  ;;  %s1084_s14 = sshll.u32 (%p1377_p12), %s1248_s19, 4 }
 0x1b4   : > { %s927_s0 = scalar_lea.vmem (%p1377_p12), %s1884_s3, %s1084_s14 }
 0x1b5   : > { %v940_v4 = vld [vmem:[%s1673_s25] sm:$0xff] (%p1377_p12) }
 0x1b6   : > { %v942_v5 = vld [vmem:[%s1673_s25 + $0x8] sm:$0xff] (%p1377_p12)  ;;  %941 = vst [vmem:[%s927_s0] sm:$0xff] (%p1377_p12), %v940_v4 }
 0x1b7   : > { %v944_v6 = vld [vmem:[%s1673_s25 + $0x10] sm:$0xff] (%p1377_p12)  ;;  %943 = vst [vmem:[%s927_s0 + $0x8] sm:$0xff] (%p1377_p12), %v942_v5 }
 0x1b8   : > { %945 = vst [vmem:[%s927_s0 + $0x20] sm:$0xff] %v944_v6 }
 0x1b9   : > { %v946_v7 = vld [vmem:[%s1673_s25 + $0x18] sm:$0xff] }
 0x1ba   : > { %947 = vst [vmem:[%s927_s0 + $0x28] sm:$0xff] %v946_v7 }
 0x1bb PF: > { %s13_s22 = sadd.s32 1, %s1260_s22   ;;  %s1894_s10 = sld [smem:[#allocation6_spill]] }
 0x1bc   : > { %p10_p6 = scmp.ge.s32.totalorder %s13_s22, 20   ;;  %s1895_s12 = smov %s1224_s13 }
 0x1bd   : > { %s1896_s13 = smov %s1375_s9  ;;  %s1897_s14 = smov %s1232_s15 }
 0x1be   : > { %s1898_s15 = smov %s1372_s8  ;;  %s1899_s16 = smov %s1240_s17 }
 0x1bf   : > { %s1900_s17 = smov %s1358_s30  ;;  %s1901_s18 = smov %s1252_s20 }
 0x1c0   : > { %s1902_s19 = smov %s1256_s21  ;;  %s1903_s20 = smov %s1906_s24 }
 0x1c1   : > { %s1904_s21 = smov %s1894_s10  ;;  %12 = sbr.rel (!%p10_p6) target bundleno = 9 (0x9), region = 155 }

// kernel: vgg_mse.28
= control target key start
LH: loop header
LB: loop body
LE: loop exit
PB: predicated region body
PF: predicated region fallthrough
CT: control target
= control target key end

     0   :  { %s126_s0 = inlined_call_operand.vmem [shape: f32[32,128], index: 0, kind: input, shape index: {}]   ;;  %s127_s1 = inlined_call_operand.vmem [shape: f32[32,128], index: 1, kind: input, shape index: {}]   ;;  %s128_s2 = inlined_call_operand.hbm [shape: f32[1,1], index: 2, kind: output, shape index: {}]  }
   0x1   :  { %v18_v0 = vld [vmem:[%s126_s0] sm:$0xff]  ;;  %v19_v1 = vld [vmem:[%s126_s0 + $0x8] sm:$0xff]  ;;  %v20_v2 = vld [vmem:[%s126_s0 + $0x10] sm:$0xff] }
   0x2   :  { %v21_v3 = vld [vmem:[%s126_s0 + $0x18] sm:$0xff]  ;;  %v22_v4 = vld [vmem:[%s127_s1] sm:$0xff]  ;;  %v23_v5 = vld [vmem:[%s127_s1 + $0x8] sm:$0xff] }
   0x3   :  { %v24_v6 = vld [vmem:[%s127_s1 + $0x10] sm:$0xff]  ;;  %v25_v7 = vld [vmem:[%s127_s1 + $0x18] sm:$0xff]  ;;  %v26_v8 = vsub.f32 %v18_v0, %v22_v4  ;;  %v27_v9 = vsub.f32 %v19_v1, %v23_v5 }
   0x4   :  { %7 = vsyncpa [#allocation3], 0  ;;  %v28_v10 = vsub.f32 %v20_v2, %v24_v6  ;;  %v29_v11 = vsub.f32 %v21_v3, %v25_v7  ;;  %s55_s25 = sshll.u32 %s128_s2, 4  ;;  %s83_s27 = smov [#allocation2]   ;;  %s56_s25 = int_to_ptr.hbm [resolvable:$true] %s55_s25 }
   0x5   :  { %v31_v12 = vmul.f32 %v26_v8, %v26_v8  ;;  %v32_v13 = vmul.f32 %v27_v9, %v27_v9 }
   0x6   :  { %v33_v14 = vmul.f32 %v28_v10, %v28_v10  ;;  %v34_v15 = vmul.f32 %v29_v11, %v29_v11 }
   0x7   :  { %v35_v16 = vadd.f32 %v32_v13, %v31_v12 }
   0x9   :  { %v36_v17 = vadd.f32 %v35_v16, %v33_v14 }
   0xb   :  { %v37_v18 = vadd.f32 %v36_v17, %v34_v15 }
   0xd   :  { %38 = vadd.xlane.f32.xlu0 %v37_v18 }
  0x80   :  { %v39_v19 = vpop.xlane.xlu0 %38 }
  0x81   :  { %v40_v20 = vrot.slane %v39_v19, 4 }
  0x83   :  { %v41_v21 = vadd.f32 %v40_v20, %v39_v19 }
  0x85   :  { %v42_v22 = vrot.slane %v41_v21, 2 }
  0x87   :  { %v43_v23 = vadd.f32 %v42_v22, %v41_v21 }
  0x89   :  { %v44_v24 = vrot.slane %v43_v23, 1 }
  0x8b   :  { %v45_v25 = vadd.f32 %v44_v24, %v43_v23 }
  0x8d   :  { %65 = vpush %v45_v25 }
  0xbe   :  { %s66_s26 = spop %65 }
  0xbf   :  { %49 = sst [smem:[#allocation2]] %s66_s26 }
  0xc0   :  { %58 = dma.smem_to_hbm %s83_s27, 16, %s56_s25, [#allocation3]  }
  0xc1   :  { %81 = dma.done.wait [#allocation3], 16  }
  0xc2   :  { %82 = vsyncadd [#allocation3], 4294967280 }
  0xc3   :  { %63 = sfence }
  0xc4   :  { %64 = vsyncpa [#allocation3], 1 }

// kernel: vgg_mse.20
= control target key start
LH: loop header
LB: loop body
LE: loop exit
PB: predicated region body
PF: predicated region fallthrough
CT: control target
= control target key end

     0   :  { %s258_s0 = inlined_call_operand.vmem [shape: f32[128,128], index: 0, kind: input, shape index: {}]   ;;  %s259_s1 = inlined_call_operand.vmem [shape: f32[128,128], index: 1, kind: input, shape index: {}]   ;;  %s260_s2 = inlined_call_operand.hbm [shape: f32[1,1], index: 2, kind: output, shape index: {}]  }
   0x1   :  { %v18_v0 = vld [vmem:[%s258_s0] sm:$0xff]  ;;  %v19_v1 = vld [vmem:[%s258_s0 + $0x8] sm:$0xff]  ;;  %v20_v2 = vld [vmem:[%s258_s0 + $0x10] sm:$0xff] }
   0x2   :  { %v34_v3 = vld [vmem:[%s259_s1] sm:$0xff]  ;;  %v35_v4 = vld [vmem:[%s259_s1 + $0x8] sm:$0xff]  ;;  %v36_v5 = vld [vmem:[%s259_s1 + $0x10] sm:$0xff] }
   0x3   :  { %v50_v6 = vsub.f32 %v18_v0, %v34_v3  ;;  %v51_v7 = vsub.f32 %v19_v1, %v35_v4  ;;  %v21_v8 = vld [vmem:[%s258_s0 + $0x18] sm:$0xff]  ;;  %v52_v10 = vsub.f32 %v20_v2, %v36_v5  ;;  %v22_v11 = vld [vmem:[%s258_s0 + $0x20] sm:$0xff] }
   0x4   :  { %v37_v9 = vld [vmem:[%s259_s1 + $0x18] sm:$0xff]  ;;  %v38_v12 = vld [vmem:[%s259_s1 + $0x20] sm:$0xff] }
   0x5   :  { %v53_v13 = vsub.f32 %v21_v8, %v37_v9  ;;  %v67_v14 = vmul.f32 %v50_v6, %v50_v6  ;;  %v68_v15 = vmul.f32 %v51_v7, %v51_v7 }
   0x6   :  { %7 = vsyncpa [#allocation3], 0  ;;  %v23_v16 = vld [vmem:[%s258_s0 + $0x28] sm:$0xff]  ;;  %v54_v18 = vsub.f32 %v22_v11, %v38_v12  ;;  %v69_v19 = vmul.f32 %v52_v10, %v52_v10  ;;  %v24_v20 = vld [vmem:[%s258_s0 + $0x30] sm:$0xff]  ;;  %s115_s17 = sshll.u32 %s260_s2, 4  ;;  %s143_s19 = smov [#allocation2]   ;;  %s116_s17 = int_to_ptr.hbm [resolvable:$true] %s115_s17 }
   0x7   :  { %v39_v17 = vld [vmem:[%s259_s1 + $0x28] sm:$0xff]  ;;  %v40_v21 = vld [vmem:[%s259_s1 + $0x30] sm:$0xff]  ;;  %v70_v23 = vmul.f32 %v53_v13, %v53_v13  ;;  %v83_v24 = vadd.f32 %v68_v15, %v67_v14  ;;  %v25_v25 = vld [vmem:[%s258_s0 + $0x38] sm:$0xff] }
   0x8   :  { %v55_v22 = vsub.f32 %v23_v16, %v39_v17  ;;  %v41_v26 = vld [vmem:[%s259_s1 + $0x38] sm:$0xff]  ;;  %v56_v27 = vsub.f32 %v24_v20, %v40_v21  ;;  %v71_v28 = vmul.f32 %v54_v18, %v54_v18  ;;  %v26_v30 = vld [vmem:[%s258_s0 + $0x40] sm:$0xff]  ;;  %v27_v35 = vld [vmem:[%s258_s0 + $0x48] sm:$0xff] }
   0x9   :  { %v84_v29 = vadd.f32 %v83_v24, %v69_v19  ;;  %v42_v31 = vld [vmem:[%s259_s1 + $0x40] sm:$0xff]  ;;  %v57_v32 = vsub.f32 %v25_v25, %v41_v26  ;;  %v43_v36 = vld [vmem:[%s259_s1 + $0x48] sm:$0xff]  ;;  %v28_v40 = vld [vmem:[%s258_s0 + $0x50] sm:$0xff] }
   0xa   :  { %v72_v33 = vmul.f32 %v55_v22, %v55_v22  ;;  %v58_v37 = vsub.f32 %v26_v30, %v42_v31  ;;  %v73_v38 = vmul.f32 %v56_v27, %v56_v27  ;;  %v44_v41 = vld [vmem:[%s259_s1 + $0x50] sm:$0xff]  ;;  %v59_v42 = vsub.f32 %v27_v35, %v43_v36  ;;  %v29_v45 = vld [vmem:[%s258_s0 + $0x58] sm:$0xff]  ;;  %v30_v50 = vld [vmem:[%s258_s0 + $0x60] sm:$0xff] }
   0xb   :  { %v85_v34 = vadd.f32 %v84_v29, %v70_v23  ;;  %v74_v43 = vmul.f32 %v57_v32, %v57_v32  ;;  %v45_v46 = vld [vmem:[%s259_s1 + $0x58] sm:$0xff]  ;;  %v60_v47 = vsub.f32 %v28_v40, %v44_v41  ;;  %v46_v51 = vld [vmem:[%s259_s1 + $0x60] sm:$0xff]  ;;  %v31_v55 = vld [vmem:[%s258_s0 + $0x68] sm:$0xff] }
   0xc   :  { %v75_v48 = vmul.f32 %v58_v37, %v58_v37  ;;  %v61_v52 = vsub.f32 %v29_v45, %v45_v46  ;;  %v76_v53 = vmul.f32 %v59_v42, %v59_v42  ;;  %v47_v56 = vld [vmem:[%s259_s1 + $0x68] sm:$0xff]  ;;  %v62_v57 = vsub.f32 %v30_v50, %v46_v51  ;;  %v32_v60 = vld [vmem:[%s258_s0 + $0x70] sm:$0xff]  ;;  %v33_v1 = vld [vmem:[%s258_s0 + $0x78] sm:$0xff] }
   0xd   :  { %v86_v39 = vadd.f32 %v85_v34, %v71_v28  ;;  %v77_v58 = vmul.f32 %v60_v47, %v60_v47  ;;  %v48_v61 = vld [vmem:[%s259_s1 + $0x70] sm:$0xff]  ;;  %v63_v62 = vsub.f32 %v31_v55, %v47_v56  ;;  %v49_v2 = vld [vmem:[%s259_s1 + $0x78] sm:$0xff] }
   0xe   :  { %v78_v63 = vmul.f32 %v61_v52, %v61_v52  ;;  %v64_v3 = vsub.f32 %v32_v60, %v48_v61  ;;  %v79_v4 = vmul.f32 %v62_v57, %v62_v57  ;;  %v65_v6 = vsub.f32 %v33_v1, %v49_v2 }
   0xf   :  { %v87_v44 = vadd.f32 %v86_v39, %v72_v33  ;;  %v80_v7 = vmul.f32 %v63_v62, %v63_v62 }
  0x10   :  { %v81_v9 = vmul.f32 %v64_v3, %v64_v3  ;;  %v82_v11 = vmul.f32 %v65_v6, %v65_v6 }
  0x11   :  { %v88_v49 = vadd.f32 %v87_v44, %v73_v38 }
  0x13   :  { %v89_v54 = vadd.f32 %v88_v49, %v74_v43 }
  0x15   :  { %v90_v59 = vadd.f32 %v89_v54, %v75_v48 }
  0x17   :  { %v91_v0 = vadd.f32 %v90_v59, %v76_v53 }
  0x19   :  { %v92_v5 = vadd.f32 %v91_v0, %v77_v58 }
  0x1b   :  { %v93_v8 = vadd.f32 %v92_v5, %v78_v63 }
  0x1d   :  { %v94_v10 = vadd.f32 %v93_v8, %v79_v4 }
  0x1f   :  { %v95_v12 = vadd.f32 %v94_v10, %v80_v7 }
  0x21   :  { %v96_v13 = vadd.f32 %v95_v12, %v81_v9 }
  0x23   :  { %v97_v14 = vadd.f32 %v96_v13, %v82_v11 }
  0x25   :  { %98 = vadd.xlane.f32.xlu0 %v97_v14 }
  0x98   :  { %v99_v15 = vpop.xlane.xlu0 %98 }
  0x99   :  { %v100_v16 = vrot.slane %v99_v15, 4 }
  0x9b   :  { %v101_v17 = vadd.f32 %v100_v16, %v99_v15 }
  0x9d   :  { %v102_v18 = vrot.slane %v101_v17, 2 }
  0x9f   :  { %v103_v19 = vadd.f32 %v102_v18, %v101_v17 }
  0xa1   :  { %v104_v20 = vrot.slane %v103_v19, 1 }
  0xa3   :  { %v105_v21 = vadd.f32 %v104_v20, %v103_v19 }
  0xa5   :  { %125 = vpush %v105_v21 }
  0xd6   :  { %s126_s18 = spop %125 }
  0xd7   :  { %109 = sst [smem:[#allocation2]] %s126_s18 }
  0xd8   :  { %118 = dma.smem_to_hbm %s143_s19, 16, %s116_s17, [#allocation3]  }
  0xd9   :  { %141 = dma.done.wait [#allocation3], 16  }
  0xda   :  { %142 = vsyncadd [#allocation3], 4294967280 }
  0xdb   :  { %123 = sfence }
  0xdc   :  { %124 = vsyncpa [#allocation3], 1 }

// kernel: vgg_mse.29
= control target key start
LH: loop header
LB: loop body
LE: loop exit
PB: predicated region body
PF: predicated region fallthrough
CT: control target
= control target key end

     0   :  { %s106_s0 = inlined_call_operand.vmem [shape: f32[12,128], index: 0, kind: input, shape index: {}]   ;;  %s107_s1 = inlined_call_operand.vmem [shape: f32[12,128], index: 1, kind: input, shape index: {}]   ;;  %s108_s2 = inlined_call_operand.hbm [shape: f32[1,1], index: 2, kind: output, shape index: {}]  }
   0x1   :  { %v18_v0 = vld [vmem:[%s106_s0] sm:$0xff]  ;;  %v19_v1 = vld [vmem:[%s106_s0 + $0x8] sm:$0xf] }
   0x2   :  { %v20_v2 = vld [vmem:[%s107_s1] sm:$0xff]  ;;  %v21_v3 = vld [vmem:[%s107_s1 + $0x8] sm:$0xf] }
   0x3   :  { %v22_v4 = vsub.f32 %v18_v0, %v20_v2 }
   0x4   :  { %7 = vsyncpa [#allocation3], 0  ;;  %v23_v5 = vsub.f32 %v19_v1, %v21_v3  ;;  %vm27_vm0 = vcmask 1043456   ;;  %s47_s1 = sshll.u32 %s108_s2, 4  ;;  %s75_s19 = smov [#allocation2]   ;;  %s48_s1 = int_to_ptr.hbm [resolvable:$true] %s47_s1 }
   0x5   :  { %v25_v6 = vmul.f32 %v22_v4, %v22_v4 }
   0x6   :  { %v26_v7 = vmul.f32 %v23_v5, %v23_v5 }
   0x8   :  { %v28_v8 = vsel %vm27_vm0, %v26_v7, 0.0 }
   0x9   :  { %v29_v9 = vadd.f32 %v28_v8, %v25_v6 }
   0xb   :  { %30 = vadd.xlane.f32.xlu0 %v29_v9 }
  0x7e   :  { %v31_v10 = vpop.xlane.xlu0 %30 }
  0x7f   :  { %v32_v11 = vrot.slane %v31_v10, 4 }
  0x81   :  { %v33_v12 = vadd.f32 %v32_v11, %v31_v10 }
  0x83   :  { %v34_v13 = vrot.slane %v33_v12, 2 }
  0x85   :  { %v35_v14 = vadd.f32 %v34_v13, %v33_v12 }
  0x87   :  { %v36_v15 = vrot.slane %v35_v14, 1 }
  0x89   :  { %v37_v16 = vadd.f32 %v36_v15, %v35_v14 }
  0x8b   :  { %57 = vpush %v37_v16 }
  0xbc   :  { %s58_s18 = spop %57 }
  0xbd   :  { %41 = sst [smem:[#allocation2]] %s58_s18 }
  0xbe   :  { %50 = dma.smem_to_hbm %s75_s19, 16, %s48_s1, [#allocation3]  }
  0xbf   :  { %73 = dma.done.wait [#allocation3], 16  }
  0xc0   :  { %74 = vsyncadd [#allocation3], 4294967280 }
  0xc1   :  { %55 = sfence }
  0xc2   :  { %56 = vsyncpa [#allocation3], 1 }

// kernel: vgg_mse.17
= control target key start
LH: loop header
LB: loop body
LE: loop exit
PB: predicated region body
PF: predicated region fallthrough
CT: control target
= control target key end

     0   :  { %s434_s0 = inlined_call_operand.vmem [shape: f32[256,128], index: 0, kind: input, shape index: {}]   ;;  %s435_s1 = inlined_call_operand.vmem [shape: f32[256,128], index: 1, kind: input, shape index: {}]   ;;  %s436_s2 = inlined_call_operand.hbm [shape: f32[1,1], index: 2, kind: output, shape index: {}]  }
   0x1   :  { %v18_v0 = vld [vmem:[%s434_s0] sm:$0xff]  ;;  %v19_v1 = vld [vmem:[%s434_s0 + $0x8] sm:$0xff]  ;;  %v20_v4 = vld [vmem:[%s434_s0 + $0x10] sm:$0xff] }
   0x2   :  { %v50_v2 = vld [vmem:[%s435_s1] sm:$0xff]  ;;  %v51_v3 = vld [vmem:[%s435_s1 + $0x8] sm:$0xff]  ;;  %v52_v5 = vld [vmem:[%s435_s1 + $0x10] sm:$0xff] }
   0x3   :  { %v82_v6 = vsub.f32 %v18_v0, %v50_v2  ;;  %v83_v7 = vsub.f32 %v19_v1, %v51_v3  ;;  %v21_v8 = vld [vmem:[%s434_s0 + $0x18] sm:$0xff] }
   0x4   :  { %v53_v9 = vld [vmem:[%s435_s1 + $0x18] sm:$0xff] }
   0x5   :  { %7 = vsyncpa [#allocation3], 0  ;;  %v84_v10 = vsub.f32 %v20_v4, %v52_v5  ;;  %v22_v11 = vld [vmem:[%s434_s0 + $0x20] sm:$0xff]  ;;  %v85_v13 = vsub.f32 %v21_v8, %v53_v9  ;;  %v115_v14 = vmul.f32 %v82_v6, %v82_v6  ;;  %v116_v15 = vmul.f32 %v83_v7, %v83_v7  ;;  %v23_v16 = vld [vmem:[%s434_s0 + $0x28] sm:$0xff]  ;;  %s195_s25 = sshll.u32 %s436_s2, 4  ;;  %s223_s27 = smov [#allocation2]   ;;  %s196_s25 = int_to_ptr.hbm [resolvable:$true] %s195_s25 }
   0x6   :  { %v54_v12 = vld [vmem:[%s435_s1 + $0x20] sm:$0xff]  ;;  %v55_v17 = vld [vmem:[%s435_s1 + $0x28] sm:$0xff]  ;;  %v24_v20 = vld [vmem:[%s434_s0 + $0x30] sm:$0xff] }
   0x7   :  { %v86_v18 = vsub.f32 %v22_v11, %v54_v12  ;;  %v117_v19 = vmul.f32 %v84_v10, %v84_v10  ;;  %v56_v21 = vld [vmem:[%s435_s1 + $0x30] sm:$0xff]  ;;  %v87_v22 = vsub.f32 %v23_v16, %v55_v17  ;;  %v118_v23 = vmul.f32 %v85_v13, %v85_v13  ;;  %v25_v25 = vld [vmem:[%s434_s0 + $0x38] sm:$0xff]  ;;  %v26_v30 = vld [vmem:[%s434_s0 + $0x40] sm:$0xff] }
   0x8   :  { %v147_v24 = vadd.f32 %v116_v15, %v115_v14  ;;  %v57_v26 = vld [vmem:[%s435_s1 + $0x38] sm:$0xff]  ;;  %v88_v27 = vsub.f32 %v24_v20, %v56_v21  ;;  %v58_v31 = vld [vmem:[%s435_s1 + $0x40] sm:$0xff]  ;;  %v27_v35 = vld [vmem:[%s434_s0 + $0x48] sm:$0xff] }
   0x9   :  { %v119_v28 = vmul.f32 %v86_v18, %v86_v18  ;;  %v89_v32 = vsub.f32 %v25_v25, %v57_v26  ;;  %v120_v33 = vmul.f32 %v87_v22, %v87_v22  ;;  %v59_v36 = vld [vmem:[%s435_s1 + $0x48] sm:$0xff]  ;;  %v90_v37 = vsub.f32 %v26_v30, %v58_v31  ;;  %v28_v40 = vld [vmem:[%s434_s0 + $0x50] sm:$0xff]  ;;  %v29_v45 = vld [vmem:[%s434_s0 + $0x58] sm:$0xff] }
   0xa   :  { %v148_v29 = vadd.f32 %v147_v24, %v117_v19  ;;  %v121_v38 = vmul.f32 %v88_v27, %v88_v27  ;;  %v60_v41 = vld [vmem:[%s435_s1 + $0x50] sm:$0xff]  ;;  %v91_v42 = vsub.f32 %v27_v35, %v59_v36  ;;  %v61_v46 = vld [vmem:[%s435_s1 + $0x58] sm:$0xff]  ;;  %v30_v50 = vld [vmem:[%s434_s0 + $0x60] sm:$0xff] }
   0xb   :  { %v122_v43 = vmul.f32 %v89_v32, %v89_v32  ;;  %v92_v47 = vsub.f32 %v28_v40, %v60_v41  ;;  %v123_v48 = vmul.f32 %v90_v37, %v90_v37  ;;  %v62_v51 = vld [vmem:[%s435_s1 + $0x60] sm:$0xff]  ;;  %v93_v52 = vsub.f32 %v29_v45, %v61_v46  ;;  %v31_v55 = vld [vmem:[%s434_s0 + $0x68] sm:$0xff]  ;;  %v32_v60 = vld [vmem:[%s434_s0 + $0x70] sm:$0xff] }
   0xc   :  { %v149_v34 = vadd.f32 %v148_v29, %v118_v23  ;;  %v124_v53 = vmul.f32 %v91_v42, %v91_v42  ;;  %v63_v56 = vld [vmem:[%s435_s1 + $0x68] sm:$0xff]  ;;  %v94_v57 = vsub.f32 %v30_v50, %v62_v51  ;;  %v64_v61 = vld [vmem:[%s435_s1 + $0x70] sm:$0xff]  ;;  %v33_v1 = vld [vmem:[%s434_s0 + $0x78] sm:$0xff] }
   0xd   :  { %v125_v58 = vmul.f32 %v92_v47, %v92_v47  ;;  %v95_v62 = vsub.f32 %v31_v55, %v63_v56  ;;  %v126_v63 = vmul.f32 %v93_v52, %v93_v52  ;;  %v65_v2 = vld [vmem:[%s435_s1 + $0x78] sm:$0xff]  ;;  %v96_v3 = vsub.f32 %v32_v60, %v64_v61  ;;  %v34_v6 = vld [vmem:[%s434_s0 + $0x80] sm:$0xff]  ;;  %v35_v11 = vld [vmem:[%s434_s0 + $0x88] sm:$0xff] }
   0xe   :  { %v150_v39 = vadd.f32 %v149_v34, %v119_v28  ;;  %v127_v4 = vmul.f32 %v94_v57, %v94_v57  ;;  %v66_v7 = vld [vmem:[%s435_s1 + $0x80] sm:$0xff]  ;;  %v97_v8 = vsub.f32 %v33_v1, %v65_v2  ;;  %v67_v12 = vld [vmem:[%s435_s1 + $0x88] sm:$0xff]  ;;  %v36_v16 = vld [vmem:[%s434_s0 + $0x90] sm:$0xff] }
   0xf   :  { %v128_v9 = vmul.f32 %v95_v62, %v95_v62  ;;  %v98_v13 = vsub.f32 %v34_v6, %v66_v7  ;;  %v129_v14 = vmul.f32 %v96_v3, %v96_v3  ;;  %v68_v17 = vld [vmem:[%s435_s1 + $0x90] sm:$0xff]  ;;  %v99_v18 = vsub.f32 %v35_v11, %v67_v12  ;;  %v37_v21 = vld [vmem:[%s434_s0 + $0x98] sm:$0xff]  ;;  %v38_v26 = vld [vmem:[%s434_s0 + $0xa0] sm:$0xff] }
  0x10   :  { %v151_v44 = vadd.f32 %v150_v39, %v120_v33  ;;  %v130_v19 = vmul.f32 %v97_v8, %v97_v8  ;;  %v69_v22 = vld [vmem:[%s435_s1 + $0x98] sm:$0xff]  ;;  %v100_v23 = vsub.f32 %v36_v16, %v68_v17  ;;  %v70_v27 = vld [vmem:[%s435_s1 + $0xa0] sm:$0xff]  ;;  %v39_v31 = vld [vmem:[%s434_s0 + $0xa8] sm:$0xff] }
  0x11   :  { %v131_v24 = vmul.f32 %v98_v13, %v98_v13  ;;  %v101_v28 = vsub.f32 %v37_v21, %v69_v22  ;;  %v132_v29 = vmul.f32 %v99_v18, %v99_v18  ;;  %v71_v32 = vld [vmem:[%s435_s1 + $0xa8] sm:$0xff]  ;;  %v102_v33 = vsub.f32 %v38_v26, %v70_v27  ;;  %v40_v36 = vld [vmem:[%s434_s0 + $0xb0] sm:$0xff]  ;;  %v41_v41 = vld [vmem:[%s434_s0 + $0xb8] sm:$0xff] }
  0x12   :  { %v152_v49 = vadd.f32 %v151_v44, %v121_v38  ;;  %v133_v34 = vmul.f32 %v100_v23, %v100_v23  ;;  %v72_v37 = vld [vmem:[%s435_s1 + $0xb0] sm:$0xff]  ;;  %v103_v38 = vsub.f32 %v39_v31, %v71_v32  ;;  %v73_v42 = vld [vmem:[%s435_s1 + $0xb8] sm:$0xff]  ;;  %v42_v46 = vld [vmem:[%s434_s0 + $0xc0] sm:$0xff] }
  0x13   :  { %v134_v39 = vmul.f32 %v101_v28, %v101_v28  ;;  %v135_v44 = vmul.f32 %v102_v33, %v102_v33  ;;  %v74_v47 = vld [vmem:[%s435_s1 + $0xc0] sm:$0xff]  ;;  %v43_v51 = vld [vmem:[%s434_s0 + $0xc8] sm:$0xff]  ;;  %v44_v56 = vld [vmem:[%s434_s0 + $0xd0] sm:$0xff] }
  0x14   :  { %v153_v54 = vadd.f32 %v152_v49, %v122_v43  ;;  %v104_v43 = vsub.f32 %v40_v36, %v72_v37  ;;  %v136_v49 = vmul.f32 %v103_v38, %v103_v38  ;;  %v75_v52 = vld [vmem:[%s435_s1 + $0xc8] sm:$0xff]  ;;  %v76_v57 = vld [vmem:[%s435_s1 + $0xd0] sm:$0xff]  ;;  %v45_v61 = vld [vmem:[%s434_s0 + $0xd8] sm:$0xff] }
  0x15   :  { %v77_v62 = vld [vmem:[%s435_s1 + $0xd8] sm:$0xff]  ;;  %v46_v2 = vld [vmem:[%s434_s0 + $0xe0] sm:$0xff]  ;;  %v47_v7 = vld [vmem:[%s434_s0 + $0xe8] sm:$0xff] }
  0x16   :  { %v154_v59 = vadd.f32 %v153_v54, %v123_v48  ;;  %v105_v48 = vsub.f32 %v41_v41, %v73_v42  ;;  %v137_v54 = vmul.f32 %v104_v43, %v104_v43  ;;  %v78_v3 = vld [vmem:[%s435_s1 + $0xe0] sm:$0xff]  ;;  %v79_v8 = vld [vmem:[%s435_s1 + $0xe8] sm:$0xff]  ;;  %v48_v12 = vld [vmem:[%s434_s0 + $0xf0] sm:$0xff] }
  0x17   :  { %v80_v13 = vld [vmem:[%s435_s1 + $0xf0] sm:$0xff]  ;;  %v49_v17 = vld [vmem:[%s434_s0 + $0xf8] sm:$0xff] }
  0x18   :  { %v155_v0 = vadd.f32 %v154_v59, %v124_v53  ;;  %v106_v53 = vsub.f32 %v42_v46, %v74_v47  ;;  %v138_v59 = vmul.f32 %v105_v48, %v105_v48  ;;  %v81_v18 = vld [vmem:[%s435_s1 + $0xf8] sm:$0xff] }
  0x19   :  { %v113_v22 = vsub.f32 %v49_v17, %v81_v18 }
  0x1a   :  { %v156_v5 = vadd.f32 %v155_v0, %v125_v58  ;;  %v107_v58 = vsub.f32 %v43_v51, %v75_v52  ;;  %v139_v0 = vmul.f32 %v106_v53, %v106_v53 }
  0x1b   :  { %v146_v27 = vmul.f32 %v113_v22, %v113_v22 }
  0x1c   :  { %v157_v10 = vadd.f32 %v156_v5, %v126_v63  ;;  %v108_v63 = vsub.f32 %v44_v56, %v76_v57  ;;  %v140_v5 = vmul.f32 %v107_v58, %v107_v58 }
  0x1e   :  { %v158_v15 = vadd.f32 %v157_v10, %v127_v4  ;;  %v109_v4 = vsub.f32 %v45_v61, %v77_v62  ;;  %v141_v10 = vmul.f32 %v108_v63, %v108_v63 }
  0x20   :  { %v159_v20 = vadd.f32 %v158_v15, %v128_v9  ;;  %v110_v9 = vsub.f32 %v46_v2, %v78_v3  ;;  %v142_v15 = vmul.f32 %v109_v4, %v109_v4 }
  0x22   :  { %v160_v25 = vadd.f32 %v159_v20, %v129_v14  ;;  %v111_v14 = vsub.f32 %v47_v7, %v79_v8  ;;  %v143_v20 = vmul.f32 %v110_v9, %v110_v9 }
  0x24   :  { %v161_v30 = vadd.f32 %v160_v25, %v130_v19  ;;  %v112_v19 = vsub.f32 %v48_v12, %v80_v13  ;;  %v144_v23 = vmul.f32 %v111_v14, %v111_v14 }
  0x26   :  { %v162_v35 = vadd.f32 %v161_v30, %v131_v24  ;;  %v145_v25 = vmul.f32 %v112_v19, %v112_v19 }
  0x28   :  { %v163_v40 = vadd.f32 %v162_v35, %v132_v29 }
  0x2a   :  { %v164_v45 = vadd.f32 %v163_v40, %v133_v34 }
  0x2c   :  { %v165_v50 = vadd.f32 %v164_v45, %v134_v39 }
  0x2e   :  { %v166_v55 = vadd.f32 %v165_v50, %v135_v44 }
  0x30   :  { %v167_v60 = vadd.f32 %v166_v55, %v136_v49 }
  0x32   :  { %v168_v1 = vadd.f32 %v167_v60, %v137_v54 }
  0x34   :  { %v169_v6 = vadd.f32 %v168_v1, %v138_v59 }
  0x36   :  { %v170_v11 = vadd.f32 %v169_v6, %v139_v0 }
  0x38   :  { %v171_v16 = vadd.f32 %v170_v11, %v140_v5 }
  0x3a   :  { %v172_v21 = vadd.f32 %v171_v16, %v141_v10 }
  0x3c   :  { %v173_v24 = vadd.f32 %v172_v21, %v142_v15 }
  0x3e   :  { %v174_v26 = vadd.f32 %v173_v24, %v143_v20 }
  0x40   :  { %v175_v28 = vadd.f32 %v174_v26, %v144_v23 }
  0x42   :  { %v176_v29 = vadd.f32 %v175_v28, %v145_v25 }
  0x44   :  { %v177_v30 = vadd.f32 %v176_v29, %v146_v27 }
  0x46   :  { %178 = vadd.xlane.f32.xlu0 %v177_v30 }
  0xb9   :  { %v179_v31 = vpop.xlane.xlu0 %178 }
  0xba   :  { %v180_v32 = vrot.slane %v179_v31, 4 }
  0xbc   :  { %v181_v33 = vadd.f32 %v180_v32, %v179_v31 }
  0xbe   :  { %v182_v34 = vrot.slane %v181_v33, 2 }
  0xc0   :  { %v183_v35 = vadd.f32 %v182_v34, %v181_v33 }
  0xc2   :  { %v184_v36 = vrot.slane %v183_v35, 1 }
  0xc4   :  { %v185_v37 = vadd.f32 %v184_v36, %v183_v35 }
  0xc6   :  { %205 = vpush %v185_v37 }
  0xf7   :  { %s206_s26 = spop %205 }
  0xf8   :  { %189 = sst [smem:[#allocation2]] %s206_s26 }
  0xf9   :  { %198 = dma.smem_to_hbm %s223_s27, 16, %s196_s25, [#allocation3]  }
  0xfa   :  { %221 = dma.done.wait [#allocation3], 16  }
  0xfb   :  { %222 = vsyncadd [#allocation3], 4294967280 }
  0xfc   :  { %203 = sfence }
  0xfd   :  { %204 = vsyncpa [#allocation3], 1 }

</bundles_post_ra>
